<compile_context>
chip_gen: v7x
topology: tpu7x:2x2x1
jax: 0.10.0
libtpu: 0.0.40
codegen_flags: <defaults>
</compile_context>

<pallas_src>
import jax
import jax.numpy as jnp
from jax import lax
from jax.experimental import pallas as pl
from jax.experimental.pallas import tpu as pltpu

EPS = 1e-5                      # PyTorch BatchNorm default eps
LANE = 128


# ----------------------------- small helpers -----------------------------

def _ceil_to(x, m):
    return (x + m - 1) // m * m


def _default_vmem_limit():
    """Per-generation scoped-VMEM budget: half of physical (32 MiB on v7x,
    64 MiB on v5e/v6e); conservative 32 MiB fallback if the query fails."""
    try:
        cap = pltpu.get_tpu_info().vmem_capacity_bytes
    except Exception:
        cap = 64 * 1024 * 1024
    return int(min(96 * 1024 * 1024, cap // 2))


VMEM_LIMIT = _default_vmem_limit()


def _m_tiles(m):
    """(padded M, M block).  Use 256-row tiles when they add no padding vs 128."""
    if m >= 256 and _ceil_to(m, 256) == _ceil_to(m, 128):
        return _ceil_to(m, 256), 256
    if m >= 128:
        return _ceil_to(m, 128), 128
    mp = max(8, _ceil_to(m, 8))
    return mp, mp


def _pad_k(k):
    """Pad the GEMM K dim so _pick_bk never degrades to tiny 128-wide steps."""
    if k <= 256:
        return _ceil_to(k, 128)
    if k <= 2048:
        return _ceil_to(k, 256)
    return _ceil_to(k, 512)


def _pick_bk(kp):
    for c in (512, 256, 128):
        if kp % c == 0:
            return c
    return 128


def _pick_bn(ocp):
    # 256-wide N tiles fill the 2x256^2 MXU on v6e/v7x (still fine on v5e).
    return 256 if ocp % 256 == 0 else 128


def _zero_map(nd):
    return lambda i: (0,) * nd


def _pad_bn_param(v, ocp, fill=0.0):
    oc = v.shape[0]
    return jnp.pad(v.reshape(1, oc), ((0, 0), (0, ocp - oc)),
                   constant_values=fill)


# ----------------------------- Pallas kernels -----------------------------

def _gemm_stats_kernel(p_ref, w_ref, y_ref, ssum_ref, ssq_ref, acc_ref):
    """Tiled im2col GEMM (bf16 x bf16 -> f32 acc); writes bf16 y + f32 BN stats."""
    k = pl.program_id(2)

    @pl.when(k == 0)
    def _():
        acc_ref[...] = jnp.zeros_like(acc_ref)

    acc_ref[...] += jnp.dot(p_ref[...], w_ref[...],
                            preferred_element_type=jnp.float32)

    @pl.when(k == pl.num_programs(2) - 1)
    def _():
        acc = acc_ref[...]
        y_ref[...] = acc.astype(y_ref.dtype)
        cols = acc.shape[1]
        ssum_ref[...] = jnp.broadcast_to(
            jnp.sum(acc, axis=0, keepdims=True), (8, cols))
        ssq_ref[...] = jnp.broadcast_to(
            jnp.sum(acc * acc, axis=0, keepdims=True), (8, cols))


def make_bn_apply_kernel(has_res, do_relu, dual_out):
    """y * scale + shift (+ residual) (+ ReLU); f32 math, bf16 streaming I/O."""
    def kernel(y_ref, scale_ref, shift_ref, *rest):
        rest = list(rest)
        r_ref = rest.pop(0) if has_res else None
        if dual_out:
            pre_ref, o_ref = rest
        else:
            (o_ref,) = rest
        y = y_ref[...].astype(jnp.float32) * scale_ref[...] + shift_ref[...]
        if dual_out:
            pre_ref[...] = y.astype(pre_ref.dtype)     # pre-ReLU (bn1 output)
        if has_res:
            y = y + r_ref[...].astype(jnp.float32)
        if do_relu:
            y = jnp.maximum(y, 0.0)
        o_ref[...] = y.astype(o_ref.dtype)
    return kernel


def make_maxpool_kernel(oh, ow):
    """3x3/s2/p1 max-pool as the max of 9 shifted parity slices (in VMEM)."""
    sel = ((0, 0), (1, 0), (0, 1))        # window index -> (parity, offset)

    def kernel(x00_ref, x01_ref, x10_ref, x11_ref, o_ref):
        refs = ((x00_ref, x01_ref), (x10_ref, x11_ref))   # refs[row_p][col_p]
        out = None
        for (p, dh) in sel:
            for (q, dw) in sel:
                v = refs[p][q][:, dh:dh + oh, dw:dw + ow, :]
                out = v if out is None else jnp.maximum(out, v)
        # TODO(synk): fold (OW, C) into one lane-dense >=128 output dim to get
        # unmasked vst; kept NHWC here to avoid an in-kernel minor-dim reshape.
        o_ref[...] = out
    return kernel


def make_tail_kernel(n_real, hw):
    """Fused tail: global avg-pool + feat Linear + BN1d(train) + ReLU + classifier."""
    inv_hw = 1.0 / float(hw)

    def kernel(x_ref, fw_ref, fb_ref, g_ref, bb_ref, cw_ref, cb_ref, o_ref):
        pooled = jnp.sum(x_ref[...].astype(jnp.float32), axis=1) * inv_hw
        y = jnp.dot(pooled.astype(jnp.bfloat16), fw_ref[...],
                    preferred_element_type=jnp.float32) + fb_ref[...]
        yr = y[:n_real, :]                    # BN1d stats over real rows only
        mean = jnp.mean(yr, axis=0, keepdims=True)
        var = jnp.mean((yr - mean) * (yr - mean), axis=0, keepdims=True)
        y = (y - mean) * lax.rsqrt(var + EPS) * g_ref[...] + bb_ref[...]
        y = jnp.maximum(y, 0.0)               # norm=False & has_embedding -> ReLU
        o_ref[...] = jnp.dot(y.astype(jnp.bfloat16), cw_ref[...],
                             preferred_element_type=jnp.float32) + cb_ref[...]
    return kernel


# ----------------------------- conv / BN wrappers -----------------------------

def im2col_nhwc(x, kh, kw, stride, padding):
    """NHWC -> (N*OH*OW, kh*kw*C) bf16 patches, column order (kh, kw, C)."""
    x = x.astype(jnp.bfloat16)               # bf16 BEFORE materializing patches
    n, h, w, c = x.shape
    oh = (h + 2 * padding - kh) // stride + 1
    ow = (w + 2 * padding - kw) // stride + 1
    xp = jnp.pad(x, ((0, 0), (padding, padding), (padding, padding), (0, 0)))
    cols = []
    for i in range(kh):
        for j in range(kw):
            cols.append(xp[:, i:i + (oh - 1) * stride + 1:stride,
                           j:j + (ow - 1) * stride + 1:stride, :])
    patches = jnp.concatenate(cols, axis=-1)
    # TODO(synk): implicit-GEMM (K grid axis over kh*kw taps with a shifted-
    # window index_map) would avoid this XLA-side patch materialization.
    return patches.reshape(n * oh * ow, kh * kw * c), oh, ow


def conv_gemm(patches, wmat, bm):
    """patches (Mp,Kp) bf16 x wmat (Kp,OCp) bf16 -> (bf16 Y, f32 tile sums/sq)."""
    mp, kp = patches.shape
    _, ocp = wmat.shape
    bn = _pick_bn(ocp)
    bk = _pick_bk(kp)
    mt, nt, kt = mp // bm, ocp // bn, kp // bk
    return pl.pallas_call(
        _gemm_stats_kernel,
        out_shape=(jax.ShapeDtypeStruct((mp, ocp), jnp.bfloat16),
                   jax.ShapeDtypeStruct((mt * 8, ocp), jnp.float32),
                   jax.ShapeDtypeStruct((mt * 8, ocp), jnp.float32)),
        grid=(mt, nt, kt),
        in_specs=[pl.BlockSpec((bm, bk), lambda i, j, k: (i, k)),
                  pl.BlockSpec((bk, bn), lambda i, j, k: (k, j))],
        out_specs=(pl.BlockSpec((bm, bn), lambda i, j, k: (i, j)),
                   pl.BlockSpec((8, bn), lambda i, j, k: (i, j)),
                   pl.BlockSpec((8, bn), lambda i, j, k: (i, j))),
        scratch_shapes=[pltpu.VMEM((bm, bn), jnp.float32)],
        compiler_params=pltpu.CompilerParams(
            dimension_semantics=("parallel", "parallel", "arbitrary"),
            vmem_limit_bytes=VMEM_LIMIT),
    )(patches, wmat)


def _bn_scale_shift(ssum, ssq, gamma, beta, m_real, ocp):
    """Tiny JAX reduce: per-channel BN scale/shift from per-M-tile GEMM stats."""
    ch_sum = ssum.reshape(-1, 8, ocp)[:, 0, :].sum(axis=0)
    ch_sq = ssq.reshape(-1, 8, ocp)[:, 0, :].sum(axis=0)
    mean = ch_sum / float(m_real)
    var = jnp.maximum(ch_sq / float(m_real) - mean * mean, 0.0)  # clamp cancellation
    gamma_p = jnp.pad(gamma, (0, ocp - gamma.shape[0]), constant_values=1.0)
    beta_p = jnp.pad(beta, (0, ocp - beta.shape[0]))
    scale = gamma_p * lax.rsqrt(var + EPS)
    shift = beta_p - mean * scale
    return scale.reshape(1, ocp), shift.reshape(1, ocp)


def bn_apply(y, scale, shift, *, bm, residual=None, do_relu=True, dual=False):
    mp, ocp = y.shape
    bn = _pick_bn(ocp)
    mt, nt = mp // bm, ocp // bn
    tile = pl.BlockSpec((bm, bn), lambda i, j: (i, j))
    vec = pl.BlockSpec((1, bn), lambda i, j: (0, j))
    inputs = [y, scale, shift]
    in_specs = [tile, vec, vec]
    if residual is not None:
        inputs.append(residual)
        in_specs.append(tile)
    shape = jax.ShapeDtypeStruct((mp, ocp), jnp.bfloat16)
    out_shape = (shape, shape) if dual else shape
    out_specs = (tile, tile) if dual else tile
    return pl.pallas_call(
        make_bn_apply_kernel(residual is not None, do_relu, dual),
        out_shape=out_shape,
        grid=(mt, nt),
        in_specs=in_specs,
        out_specs=out_specs,
        compiler_params=pltpu.CompilerParams(
            dimension_semantics=("parallel", "parallel"),
            vmem_limit_bytes=VMEM_LIMIT),
    )(*inputs)


def conv_bn(x, wmat_p, gamma, beta, *, ksize, stride, padding,
            do_relu, residual=None):
    """conv (im2col GEMM) + train-mode BN2d + optional residual + ReLU, NHWC bf16."""
    n, _, _, c = x.shape
    oc = gamma.shape[0]
    k = ksize * ksize * c
    kp, ocp = wmat_p.shape
    patches, oh, ow = im2col_nhwc(x, ksize, ksize, stride, padding)
    m = n * oh * ow
    mp, bm = _m_tiles(m)
    patches_p = jnp.pad(patches, ((0, mp - m), (0, kp - k)))
    y, ssum, ssq = conv_gemm(patches_p, wmat_p, bm)
    scale, shift = _bn_scale_shift(ssum, ssq, gamma, beta, m, ocp)
    res_p = None
    if residual is not None:
        res_p = jnp.pad(residual.astype(jnp.bfloat16).reshape(m, oc),
                        ((0, mp - m), (0, ocp - oc)))
    out = bn_apply(y, scale, shift, bm=bm, residual=res_p, do_relu=do_relu)
    return out[:m, :oc].reshape(n, oh, ow, oc)


def stem(params, x):
    """conv1 (raw output kept) + fused bn1/relu (dual-output BN apply)."""
    n, _, _, c = x.shape
    oc = params['bn1_g'].shape[0]
    wmat = params['conv1_wmat']
    kp, ocp = wmat.shape
    k = 7 * 7 * c
    patches, oh, ow = im2col_nhwc(x, 7, 7, 2, 3)
    m = n * oh * ow
    mp, bm = _m_tiles(m)
    patches_p = jnp.pad(patches, ((0, mp - m), (0, kp - k)))
    y, ssum, ssq = conv_gemm(patches_p, wmat, bm)
    c1 = y[:m, :oc].reshape(n, oh, ow, oc)
    scale, shift = _bn_scale_shift(ssum, ssq, params['bn1_g'], params['bn1_b'],
                                   m, ocp)
    b1p, r1p = bn_apply(y, scale, shift, bm=bm, do_relu=True, dual=True)
    b1 = b1p[:m, :oc].reshape(n, oh, ow, oc)
    r1 = r1p[:m, :oc].reshape(n, oh, ow, oc)
    return c1, b1, r1


def maxpool_3x3_s2_p1(x):
    """NHWC 3x3/s2/p1 max pool; parity split (no 9x HBM blow-up), N-tiled grid."""
    n, h, w, c = x.shape                      # h, w even here
    oh, ow = h // 2, w // 2
    xp = jnp.pad(x, ((0, 0), (1, 1), (1, 1), (0, 0)),
                 constant_values=-jnp.inf)
    # parity split: subs[(p,q)][n, gh, gw, c] = xp[n, 2*gh+p, 2*gw+q, c]
    subs = [xp[:, p::2, q::2, :] for p in range(2) for q in range(2)]
    sh, sw = subs[0].shape[1], subs[0].shape[2]
    return pl.pallas_call(
        make_maxpool_kernel(oh, ow),
        out_shape=jax.ShapeDtypeStruct((n, oh, ow, c), x.dtype),
        grid=(n,),
        in_specs=[pl.BlockSpec((1, sh, sw, c), lambda b: (b, 0, 0, 0))] * 4,
        out_specs=pl.BlockSpec((1, oh, ow, c), lambda b: (b, 0, 0, 0)),
        compiler_params=pltpu.CompilerParams(
            dimension_semantics=("parallel",),
            vmem_limit_bytes=VMEM_LIMIT),
    )(*subs)


def tail_head(h, params, num_features, num_classes):
    """Fused: global avg-pool + feat Linear + BN1d + ReLU + classifier -> logits."""
    n, hh, ww, c = h.shape
    nb = max(8, _ceil_to(n, 8))
    x = jnp.pad(h.reshape(n, hh * ww, c), ((0, nb - n), (0, 0), (0, 0)))
    fw = params['feat_wmat']                       # (C=512, featp) bf16
    cw = params['cls_wmat']                        # (featp,  clsp) bf16
    featp, clsp = fw.shape[1], cw.shape[1]
    fb = _pad_bn_param(params['feat_b'], featp)
    g = _pad_bn_param(params['feat_bn_g'], featp, 1.0)
    bb = _pad_bn_param(params['feat_bn_b'], featp)
    cb = _pad_bn_param(params['cls_b'], clsp)
    inputs = [x, fw, fb, g, bb, cw, cb]
    out = pl.pallas_call(
        make_tail_kernel(n, hh * ww),
        out_shape=jax.ShapeDtypeStruct((nb, clsp), jnp.float32),
        grid=(1,),
        in_specs=[pl.BlockSpec(tuple(a.shape), _zero_map(a.ndim))
                  for a in inputs],
        out_specs=pl.BlockSpec((nb, clsp), _zero_map(2)),
        compiler_params=pltpu.CompilerParams(
            dimension_semantics=("arbitrary",),
            vmem_limit_bytes=VMEM_LIMIT),
    )(*inputs)
    return out[:n, :num_classes]


# ----------------------------- parameters -----------------------------

def _to_gemm_conv_weight(w):
    """(OC, C, KH, KW) -> padded (K -> _pad_k, OC -> 128k) bf16, rows (kh,kw,c)."""
    oc, ic, kh, kw = w.shape
    k = kh * kw * ic
    wm = jnp.transpose(w, (2, 3, 1, 0)).reshape(k, oc)
    kp, ocp = _pad_k(k), _ceil_to(oc, LANE)
    return jnp.pad(wm, ((0, kp - k), (0, ocp - oc))).astype(jnp.bfloat16)


def _to_gemm_linear_weight(w):
    """(OUT, IN) -> padded (IN -> 128k, OUT -> 128k) bf16."""
    out_f, in_f = w.shape
    wm = w.T
    inp, outp = _ceil_to(in_f, LANE), _ceil_to(out_f, LANE)
    return jnp.pad(wm, ((0, inp - in_f), (0, outp - out_f))).astype(jnp.bfloat16)


def init_params(key, num_features=32, num_classes=10):
    keys = iter(jax.random.split(key, 64))

    def conv_w(oc, ic, kh, kw):
        fan_out = oc * kh * kw                     # kaiming_normal fan_out
        std = (2.0 / fan_out) ** 0.5
        return std * jax.random.normal(next(keys), (oc, ic, kh, kw), jnp.float32)

    p = {
        'conv1_wmat': _to_gemm_conv_weight(conv_w(64, 3, 7, 7)),
        'bn1_g': jnp.ones((64,), jnp.float32),
        'bn1_b': jnp.zeros((64,), jnp.float32),
    }
    inplanes = 64
    for li, planes in enumerate([64, 128, 256, 512]):   # resnet18: 2 blocks/layer
        stride = 1 if li == 0 else 2
        for bi in range(2):
            s = stride if bi == 0 else 1
            inp = inplanes if bi == 0 else planes
            blk = {
                'conv1_wmat': _to_gemm_conv_weight(conv_w(planes, inp, 3, 3)),
                'bn1_g': jnp.ones((planes,), jnp.float32),
                'bn1_b': jnp.zeros((planes,), jnp.float32),
                'conv2_wmat': _to_gemm_conv_weight(conv_w(planes, planes, 3, 3)),
                'bn2_g': jnp.ones((planes,), jnp.float32),
                'bn2_b': jnp.zeros((planes,), jnp.float32),
            }
            if bi == 0 and (s != 1 or inp != planes):
                blk['down_wmat'] = _to_gemm_conv_weight(conv_w(planes, inp, 1, 1))
                blk['dbn_g'] = jnp.ones((planes,), jnp.float32)
                blk['dbn_b'] = jnp.zeros((planes,), jnp.float32)
            p['layer%d_%d' % (li + 1, bi)] = blk
        inplanes = planes

    # embedding head: feat Linear(512 -> num_features), kaiming fan_out; bias 0
    feat_w = ((2.0 / num_features) ** 0.5) * jax.random.normal(
        next(keys), (num_features, 512), jnp.float32)
    p['feat_wmat'] = _to_gemm_linear_weight(feat_w)
    p['feat_b'] = jnp.zeros((num_features,), jnp.float32)
    p['feat_bn_g'] = jnp.ones((num_features,), jnp.float32)
    p['feat_bn_b'] = jnp.zeros((num_features,), jnp.float32)
    # classifier Linear(num_features -> num_classes), normal std=0.001, bias 0
    cls_w = 0.001 * jax.random.normal(
        next(keys), (num_classes, num_features), jnp.float32)
    p['cls_wmat'] = _to_gemm_linear_weight(cls_w)
    p['cls_b'] = jnp.zeros((num_classes,), jnp.float32)
    return p


# ----------------------------- forward -----------------------------

def basic_block(x, blk, stride):
    out = conv_bn(x, blk['conv1_wmat'], blk['bn1_g'], blk['bn1_b'],
                  ksize=3, stride=stride, padding=1, do_relu=True)
    if 'down_wmat' in blk:
        identity = conv_bn(x, blk['down_wmat'], blk['dbn_g'], blk['dbn_b'],
                           ksize=1, stride=stride, padding=0, do_relu=False)
    else:
        identity = x
    return conv_bn(out, blk['conv2_wmat'], blk['bn2_g'], blk['bn2_b'],
                   ksize=3, stride=1, padding=1, do_relu=True,
                   residual=identity)


def resnet_forward(params, x_nchw, num_features=32, num_classes=10):
    """ResNet.forward(x) for depth=18, num_features=32, norm=False, dropout=0,
    num_classes=10.  Returns (conv_feature_list [NCHW], logits)."""
    x = x_nchw.transpose(0, 2, 3, 1)            # NHWC internally
    conv_feats = []
    # stem modules collected one by one (conv1, bn1, relu, maxpool)
    c1, b1, r1 = stem(params, x)
    conv_feats += [c1, b1, r1]
    h = maxpool_3x3_s2_p1(r1)
    conv_feats.append(h)
    # layer1..layer4
    for li in range(4):
        stride = 1 if li == 0 else 2
        h = basic_block(h, params['layer%d_0' % (li + 1)], stride)
        h = basic_block(h, params['layer%d_1' % (li + 1)], 1)
        conv_feats.append(h)
    # fused tail: avg-pool + feat + feat_bn + ReLU + classifier (dropout == 0)
    logits = tail_head(h, params, num_features, num_classes)
    conv_feats = [f.transpose(0, 3, 1, 2) for f in conv_feats]  # NCHW at API edge
    return conv_feats, logits


# ----------------------------- main -----------------------------

if __name__ == "__main__":
    key = jax.random.PRNGKey(0)
    pkey, xkey = jax.random.split(key)
    params = init_params(pkey, num_features=32, num_classes=10)
    # NCHW input, small spatial size (16x16) for a quick run
    x = jax.random.normal(xkey, (2, 3, 16, 16), jnp.float32)

    fwd = jax.jit(resnet_forward)
    conv_feats, logits = fwd(params, x)
    jax.block_until_ready((conv_feats, logits))
    print("KERNEL_OK")
</pallas_src>

<mosaic_0001>
module attributes {stable_mosaic.version = 11 : i64} {
  func.func @kernel(%arg0: i32, %arg1: i32, %arg2: memref<128x128xbf16, #tpu.memory_space<vmem>>, %arg3: memref<1x128xf32, #tpu.memory_space<vmem>>, %arg4: memref<1x128xf32, #tpu.memory_space<vmem>>, %arg5: memref<128x128xbf16, #tpu.memory_space<vmem>>, %arg6: memref<128x128xbf16, #tpu.memory_space<vmem>>) attributes {dimension_semantics = [#tpu.dimension_semantics<parallel>, #tpu.dimension_semantics<parallel>], iteration_bounds = array<i64: 1, 1>, scalar_prefetch = 0 : i64, scratch_operands = 0 : i64, tpu.core_type = #tpu.core_type<tc>, window_params = [{transform_indices = @transform_0, window_bounds = array<i64: 128, 128>}, {transform_indices = @transform_1, window_bounds = array<i64: 1, 128>}, {transform_indices = @transform_2, window_bounds = array<i64: 1, 128>}, {transform_indices = @transform_3, window_bounds = array<i64: 128, 128>}, {transform_indices = @transform_4, window_bounds = array<i64: 128, 128>}]} {
    %c0 = arith.constant 0 : index
    %c0_0 = arith.constant 0 : index
    %0 = vector.load %arg2[%c0, %c0_0] : memref<128x128xbf16, #tpu.memory_space<vmem>>, vector<128x128xbf16>
    %1 = arith.extf %0 : vector<128x128xbf16> to vector<128x128xf32>
    %c0_1 = arith.constant 0 : index
    %c0_2 = arith.constant 0 : index
    %2 = vector.load %arg3[%c0_1, %c0_2] : memref<1x128xf32, #tpu.memory_space<vmem>>, vector<1x128xf32>
    %3 = vector.broadcast %2 : vector<1x128xf32> to vector<128x128xf32>
    %4 = arith.mulf %1, %3 : vector<128x128xf32>
    %c0_3 = arith.constant 0 : index
    %c0_4 = arith.constant 0 : index
    %5 = vector.load %arg4[%c0_3, %c0_4] : memref<1x128xf32, #tpu.memory_space<vmem>>, vector<1x128xf32>
    %6 = vector.broadcast %5 : vector<1x128xf32> to vector<128x128xf32>
    %7 = arith.addf %4, %6 : vector<128x128xf32>
    %8 = arith.truncf %7 : vector<128x128xf32> to vector<128x128xbf16>
    %c0_5 = arith.constant 0 : index
    %c0_6 = arith.constant 0 : index
    %9 = vector.load %arg5[%c0_5, %c0_6] : memref<128x128xbf16, #tpu.memory_space<vmem>>, vector<128x128xbf16>
    tpu.vector_store %arg5[%c0_5, %c0_6], %8 {strides = array<i32>} : memref<128x128xbf16, #tpu.memory_space<vmem>>, vector<128x128xbf16>,
    %cst = arith.constant 0.000000e+00 : f32
    %10 = vector.broadcast %cst : f32 to vector<128x128xf32>
    %11 = arith.maximumf %7, %10 : vector<128x128xf32>
    %12 = arith.truncf %11 : vector<128x128xf32> to vector<128x128xbf16>
    %c0_7 = arith.constant 0 : index
    %c0_8 = arith.constant 0 : index
    %13 = vector.load %arg6[%c0_7, %c0_8] : memref<128x128xbf16, #tpu.memory_space<vmem>>, vector<128x128xbf16>
    tpu.vector_store %arg6[%c0_7, %c0_8], %12 {strides = array<i32>} : memref<128x128xbf16, #tpu.memory_space<vmem>>, vector<128x128xbf16>,
    return
  }
  func.func @transform_0(%arg0: i32, %arg1: i32) -> (i32, i32) {
    %c0_i32 = arith.constant 0 : i32
    return %arg0, %arg1 : i32, i32
  }
  func.func @transform_1(%arg0: i32, %arg1: i32) -> (i32, i32) {
    %c0_i32 = arith.constant 0 : i32
    %c0_i32_0 = arith.constant 0 : i32
    return %c0_i32, %arg1 : i32, i32
  }
  func.func @transform_2(%arg0: i32, %arg1: i32) -> (i32, i32) {
    %c0_i32 = arith.constant 0 : i32
    %c0_i32_0 = arith.constant 0 : i32
    return %c0_i32, %arg1 : i32, i32
  }
  func.func @transform_3(%arg0: i32, %arg1: i32) -> (i32, i32) {
    %c0_i32 = arith.constant 0 : i32
    return %arg0, %arg1 : i32, i32
  }
  func.func @transform_4(%arg0: i32, %arg1: i32) -> (i32, i32) {
    %c0_i32 = arith.constant 0 : i32
    return %arg0, %arg1 : i32, i32
  }
}

module attributes {stable_mosaic.version = 11 : i64} {
  func.func @_gemm_stats_kernel(%arg0: i32, %arg1: i32, %arg2: i32, %arg3: memref<128x256xbf16, #tpu.memory_space<vmem>>, %arg4: memref<256x128xbf16, #tpu.memory_space<vmem>>, %arg5: memref<128x128xbf16, #tpu.memory_space<vmem>>, %arg6: memref<8x128xf32, #tpu.memory_space<vmem>>, %arg7: memref<8x128xf32, #tpu.memory_space<vmem>>, %arg8: memref<128x128xf32, #tpu.memory_space<vmem>>) attributes {dimension_semantics = [#tpu.dimension_semantics<parallel>, #tpu.dimension_semantics<parallel>, #tpu.dimension_semantics<arbitrary>], iteration_bounds = array<i64: 1, 1, 1>, scalar_prefetch = 0 : i64, scratch_operands = 1 : i64, tpu.core_type = #tpu.core_type<tc>, window_params = [{transform_indices = @transform_0, window_bounds = array<i64: 128, 256>}, {transform_indices = @transform_1, window_bounds = array<i64: 256, 128>}, {transform_indices = @transform_2, window_bounds = array<i64: 128, 128>}, {transform_indices = @transform_3, window_bounds = array<i64: 8, 128>}, {transform_indices = @transform_4, window_bounds = array<i64: 8, 128>}]} {
    %c0_i32 = arith.constant 0 : i32
    %0 = arith.cmpi eq, %arg2, %c0_i32 : i32
    %1 = arith.extui %0 : i1 to i32
    %c0_i32_0 = arith.constant 0 : i32
    %2 = arith.cmpi ne, %1, %c0_i32_0 : i32
    scf.if %2 {
      %cst_10 = arith.constant 0.000000e+00 : f32
      %12 = vector.broadcast %cst_10 : f32 to vector<128x128xf32>
      %c0_11 = arith.constant 0 : index
      %c0_12 = arith.constant 0 : index
      %13 = vector.load %arg8[%c0_11, %c0_12] : memref<128x128xf32, #tpu.memory_space<vmem>>, vector<128x128xf32>
      tpu.vector_store %arg8[%c0_11, %c0_12], %12 {strides = array<i32>} : memref<128x128xf32, #tpu.memory_space<vmem>>, vector<128x128xf32>,
    } else {
    }
    %c0 = arith.constant 0 : index
    %c0_1 = arith.constant 0 : index
    %3 = vector.load %arg8[%c0, %c0_1] : memref<128x128xf32, #tpu.memory_space<vmem>>, vector<128x128xf32>
    %c0_2 = arith.constant 0 : index
    %c0_3 = arith.constant 0 : index
    %4 = vector.load %arg3[%c0_2, %c0_3] : memref<128x256xbf16, #tpu.memory_space<vmem>>, vector<128x256xbf16>
    %c0_4 = arith.constant 0 : index
    %c0_5 = arith.constant 0 : index
    %5 = vector.load %arg4[%c0_4, %c0_5] : memref<256x128xbf16, #tpu.memory_space<vmem>>, vector<256x128xbf16>
    %cst = arith.constant dense<0.000000e+00> : vector<128x128xf32>
    %6 = tpu.matmul %4, %5, %cst {dimension_numbers = #tpu.dot_dimension_numbers<[1], [0], [0], [1], [0, 0, 1, 1], [], []>} : vector<128x256xbf16>, vector<256x128xbf16>, vector<128x128xf32> -> vector<128x128xf32>
    %7 = arith.addf %3, %6 : vector<128x128xf32>
    %c0_6 = arith.constant 0 : index
    %c0_7 = arith.constant 0 : index
    %8 = vector.load %arg8[%c0_6, %c0_7] : memref<128x128xf32, #tpu.memory_space<vmem>>, vector<128x128xf32>
    tpu.vector_store %arg8[%c0_6, %c0_7], %7 {strides = array<i32>} : memref<128x128xf32, #tpu.memory_space<vmem>>, vector<128x128xf32>,
    %c0_i32_8 = arith.constant 0 : i32
    %9 = arith.cmpi eq, %arg2, %c0_i32_8 : i32
    %10 = arith.extui %9 : i1 to i32
    %c0_i32_9 = arith.constant 0 : i32
    %11 = arith.cmpi ne, %10, %c0_i32_9 : i32
    scf.if %11 {
      %c0_10 = arith.constant 0 : index
      %c0_11 = arith.constant 0 : index
      %12 = vector.load %arg8[%c0_10, %c0_11] : memref<128x128xf32, #tpu.memory_space<vmem>>, vector<128x128xf32>
      %13 = arith.truncf %12 : vector<128x128xf32> to vector<128x128xbf16>
      %c0_12 = arith.constant 0 : index
      %c0_13 = arith.constant 0 : index
      %14 = vector.load %arg5[%c0_12, %c0_13] : memref<128x128xbf16, #tpu.memory_space<vmem>>, vector<128x128xbf16>
      tpu.vector_store %arg5[%c0_12, %c0_13], %13 {strides = array<i32>} : memref<128x128xbf16, #tpu.memory_space<vmem>>, vector<128x128xbf16>,
      %cst_14 = arith.constant dense<0.000000e+00> : vector<128xf32>
      %15 = vector.multi_reduction <add>, %12, %cst_14 [0] : vector<128x128xf32> to vector<128xf32>
      %16 = vector.shape_cast %15 : vector<128xf32> to vector<1x128xf32>
      %17 = vector.shape_cast %16 : vector<1x128xf32> to vector<1x128xf32>
      %18 = vector.broadcast %17 : vector<1x128xf32> to vector<8x128xf32>
      %c0_15 = arith.constant 0 : index
      %c0_16 = arith.constant 0 : index
      %19 = vector.load %arg6[%c0_15, %c0_16] : memref<8x128xf32, #tpu.memory_space<vmem>>, vector<8x128xf32>
      tpu.vector_store %arg6[%c0_15, %c0_16], %18 {strides = array<i32>} : memref<8x128xf32, #tpu.memory_space<vmem>>, vector<8x128xf32>,
      %20 = arith.mulf %12, %12 : vector<128x128xf32>
      %cst_17 = arith.constant dense<0.000000e+00> : vector<128xf32>
      %21 = vector.multi_reduction <add>, %20, %cst_17 [0] : vector<128x128xf32> to vector<128xf32>
      %22 = vector.shape_cast %21 : vector<128xf32> to vector<1x128xf32>
      %23 = vector.shape_cast %22 : vector<1x128xf32> to vector<1x128xf32>
      %24 = vector.broadcast %23 : vector<1x128xf32> to vector<8x128xf32>
      %c0_18 = arith.constant 0 : index
      %c0_19 = arith.constant 0 : index
      %25 = vector.load %arg7[%c0_18, %c0_19] : memref<8x128xf32, #tpu.memory_space<vmem>>, vector<8x128xf32>
      tpu.vector_store %arg7[%c0_18, %c0_19], %24 {strides = array<i32>} : memref<8x128xf32, #tpu.memory_space<vmem>>, vector<8x128xf32>,
    } else {
    }
    return
  }
  func.func @transform_0(%arg0: i32, %arg1: i32, %arg2: i32) -> (i32, i32) {
    %c0_i32 = arith.constant 0 : i32
    return %arg0, %arg2 : i32, i32
  }
  func.func @transform_1(%arg0: i32, %arg1: i32, %arg2: i32) -> (i32, i32) {
    %c0_i32 = arith.constant 0 : i32
    return %arg2, %arg1 : i32, i32
  }
  func.func @transform_2(%arg0: i32, %arg1: i32, %arg2: i32) -> (i32, i32) {
    %c0_i32 = arith.constant 0 : i32
    return %arg0, %arg1 : i32, i32
  }
  func.func @transform_3(%arg0: i32, %arg1: i32, %arg2: i32) -> (i32, i32) {
    %c0_i32 = arith.constant 0 : i32
    return %arg0, %arg1 : i32, i32
  }
  func.func @transform_4(%arg0: i32, %arg1: i32, %arg2: i32) -> (i32, i32) {
    %c0_i32 = arith.constant 0 : i32
    return %arg0, %arg1 : i32, i32
  }
}

module attributes {stable_mosaic.version = 11 : i64} {
  func.func @kernel(%arg0: i32, %arg1: memref<1x5x5x64xbf16, #tpu.memory_space<vmem>>, %arg2: memref<1x5x5x64xbf16, #tpu.memory_space<vmem>>, %arg3: memref<1x5x5x64xbf16, #tpu.memory_space<vmem>>, %arg4: memref<1x5x5x64xbf16, #tpu.memory_space<vmem>>, %arg5: memref<1x4x4x64xbf16, #tpu.memory_space<vmem>>) attributes {dimension_semantics = [#tpu.dimension_semantics<parallel>], iteration_bounds = array<i64: 2>, scalar_prefetch = 0 : i64, scratch_operands = 0 : i64, tpu.core_type = #tpu.core_type<tc>, window_params = [{transform_indices = @transform_0, window_bounds = array<i64: 1, 5, 5, 64>}, {transform_indices = @transform_1, window_bounds = array<i64: 1, 5, 5, 64>}, {transform_indices = @transform_2, window_bounds = array<i64: 1, 5, 5, 64>}, {transform_indices = @transform_3, window_bounds = array<i64: 1, 5, 5, 64>}, {transform_indices = @transform_4, window_bounds = array<i64: 1, 4, 4, 64>}]} {
    %c0 = arith.constant 0 : index
    %c0_0 = arith.constant 0 : index
    %c0_1 = arith.constant 0 : index
    %c0_2 = arith.constant 0 : index
    %0 = vector.load %arg1[%c0, %c0_0, %c0_1, %c0_2] : memref<1x5x5x64xbf16, #tpu.memory_space<vmem>>, vector<1x4x4x64xbf16>
    %c0_3 = arith.constant 0 : index
    %c0_4 = arith.constant 0 : index
    %c0_5 = arith.constant 0 : index
    %c0_6 = arith.constant 0 : index
    %1 = vector.load %arg2[%c0_3, %c0_4, %c0_5, %c0_6] : memref<1x5x5x64xbf16, #tpu.memory_space<vmem>>, vector<1x4x4x64xbf16>
    %2 = arith.maximumf %0, %1 : vector<1x4x4x64xbf16>
    %c0_7 = arith.constant 0 : index
    %c0_8 = arith.constant 0 : index
    %c1 = arith.constant 1 : index
    %c0_9 = arith.constant 0 : index
    %3 = vector.load %arg1[%c0_7, %c0_8, %c1, %c0_9] : memref<1x5x5x64xbf16, #tpu.memory_space<vmem>>, vector<1x4x4x64xbf16>
    %4 = arith.maximumf %2, %3 : vector<1x4x4x64xbf16>
    %c0_10 = arith.constant 0 : index
    %c0_11 = arith.constant 0 : index
    %c0_12 = arith.constant 0 : index
    %c0_13 = arith.constant 0 : index
    %5 = vector.load %arg3[%c0_10, %c0_11, %c0_12, %c0_13] : memref<1x5x5x64xbf16, #tpu.memory_space<vmem>>, vector<1x4x4x64xbf16>
    %6 = arith.maximumf %4, %5 : vector<1x4x4x64xbf16>
    %c0_14 = arith.constant 0 : index
    %c0_15 = arith.constant 0 : index
    %c0_16 = arith.constant 0 : index
    %c0_17 = arith.constant 0 : index
    %7 = vector.load %arg4[%c0_14, %c0_15, %c0_16, %c0_17] : memref<1x5x5x64xbf16, #tpu.memory_space<vmem>>, vector<1x4x4x64xbf16>
    %8 = arith.maximumf %6, %7 : vector<1x4x4x64xbf16>
    %c0_18 = arith.constant 0 : index
    %c0_19 = arith.constant 0 : index
    %c1_20 = arith.constant 1 : index
    %c0_21 = arith.constant 0 : index
    %9 = vector.load %arg3[%c0_18, %c0_19, %c1_20, %c0_21] : memref<1x5x5x64xbf16, #tpu.memory_space<vmem>>, vector<1x4x4x64xbf16>
    %10 = arith.maximumf %8, %9 : vector<1x4x4x64xbf16>
    %c0_22 = arith.constant 0 : index
    %c1_23 = arith.constant 1 : index
    %c0_24 = arith.constant 0 : index
    %c0_25 = arith.constant 0 : index
    %11 = vector.load %arg1[%c0_22, %c1_23, %c0_24, %c0_25] : memref<1x5x5x64xbf16, #tpu.memory_space<vmem>>, vector<1x4x4x64xbf16>
    %12 = arith.maximumf %10, %11 : vector<1x4x4x64xbf16>
    %c0_26 = arith.constant 0 : index
    %c1_27 = arith.constant 1 : index
    %c0_28 = arith.constant 0 : index
    %c0_29 = arith.constant 0 : index
    %13 = vector.load %arg2[%c0_26, %c1_27, %c0_28, %c0_29] : memref<1x5x5x64xbf16, #tpu.memory_space<vmem>>, vector<1x4x4x64xbf16>
    %14 = arith.maximumf %12, %13 : vector<1x4x4x64xbf16>
    %c0_30 = arith.constant 0 : index
    %c1_31 = arith.constant 1 : index
    %c1_32 = arith.constant 1 : index
    %c0_33 = arith.constant 0 : index
    %15 = vector.load %arg1[%c0_30, %c1_31, %c1_32, %c0_33] : memref<1x5x5x64xbf16, #tpu.memory_space<vmem>>, vector<1x4x4x64xbf16>
    %16 = arith.maximumf %14, %15 : vector<1x4x4x64xbf16>
    %c0_34 = arith.constant 0 : index
    %c0_35 = arith.constant 0 : index
    %c0_36 = arith.constant 0 : index
    %c0_37 = arith.constant 0 : index
    %17 = vector.load %arg5[%c0_34, %c0_35, %c0_36, %c0_37] : memref<1x4x4x64xbf16, #tpu.memory_space<vmem>>, vector<1x4x4x64xbf16>
    tpu.vector_store %arg5[%c0_34, %c0_35, %c0_36, %c0_37], %16 {strides = array<i32>} : memref<1x4x4x64xbf16, #tpu.memory_space<vmem>>, vector<1x4x4x64xbf16>,
    return
  }
  func.func @transform_0(%arg0: i32) -> (i32, i32, i32, i32) {
    %c0_i32 = arith.constant 0 : i32
    %c0_i32_0 = arith.constant 0 : i32
    %c0_i32_1 = arith.constant 0 : i32
    %c0_i32_2 = arith.constant 0 : i32
    return %arg0, %c0_i32, %c0_i32_0, %c0_i32_1 : i32, i32, i32, i32
  }
  func.func @transform_1(%arg0: i32) -> (i32, i32, i32, i32) {
    %c0_i32 = arith.constant 0 : i32
    %c0_i32_0 = arith.constant 0 : i32
    %c0_i32_1 = arith.constant 0 : i32
    %c0_i32_2 = arith.constant 0 : i32
    return %arg0, %c0_i32, %c0_i32_0, %c0_i32_1 : i32, i32, i32, i32
  }
  func.func @transform_2(%arg0: i32) -> (i32, i32, i32, i32) {
    %c0_i32 = arith.constant 0 : i32
    %c0_i32_0 = arith.constant 0 : i32
    %c0_i32_1 = arith.constant 0 : i32
    %c0_i32_2 = arith.constant 0 : i32
    return %arg0, %c0_i32, %c0_i32_0, %c0_i32_1 : i32, i32, i32, i32
  }
  func.func @transform_3(%arg0: i32) -> (i32, i32, i32, i32) {
    %c0_i32 = arith.constant 0 : i32
    %c0_i32_0 = arith.constant 0 : i32
    %c0_i32_1 = arith.constant 0 : i32
    %c0_i32_2 = arith.constant 0 : i32
    return %arg0, %c0_i32, %c0_i32_0, %c0_i32_1 : i32, i32, i32, i32
  }
  func.func @transform_4(%arg0: i32) -> (i32, i32, i32, i32) {
    %c0_i32 = arith.constant 0 : i32
    %c0_i32_0 = arith.constant 0 : i32
    %c0_i32_1 = arith.constant 0 : i32
    %c0_i32_2 = arith.constant 0 : i32
    return %arg0, %c0_i32, %c0_i32_0, %c0_i32_1 : i32, i32, i32, i32
  }
}

module attributes {stable_mosaic.version = 11 : i64} {
  func.func @_gemm_stats_kernel(%arg0: i32, %arg1: i32, %arg2: i32, %arg3: memref<32x256xbf16, #tpu.memory_space<vmem>>, %arg4: memref<256x128xbf16, #tpu.memory_space<vmem>>, %arg5: memref<32x128xbf16, #tpu.memory_space<vmem>>, %arg6: memref<8x128xf32, #tpu.memory_space<vmem>>, %arg7: memref<8x128xf32, #tpu.memory_space<vmem>>, %arg8: memref<32x128xf32, #tpu.memory_space<vmem>>) attributes {dimension_semantics = [#tpu.dimension_semantics<parallel>, #tpu.dimension_semantics<parallel>, #tpu.dimension_semantics<arbitrary>], iteration_bounds = array<i64: 1, 1, 3>, scalar_prefetch = 0 : i64, scratch_operands = 1 : i64, tpu.core_type = #tpu.core_type<tc>, window_params = [{transform_indices = @transform_0, window_bounds = array<i64: 32, 256>}, {transform_indices = @transform_1, window_bounds = array<i64: 256, 128>}, {transform_indices = @transform_2, window_bounds = array<i64: 32, 128>}, {transform_indices = @transform_3, window_bounds = array<i64: 8, 128>}, {transform_indices = @transform_4, window_bounds = array<i64: 8, 128>}]} {
    %c0_i32 = arith.constant 0 : i32
    %0 = arith.cmpi eq, %arg2, %c0_i32 : i32
    %1 = arith.extui %0 : i1 to i32
    %c0_i32_0 = arith.constant 0 : i32
    %2 = arith.cmpi ne, %1, %c0_i32_0 : i32
    scf.if %2 {
      %cst_9 = arith.constant 0.000000e+00 : f32
      %12 = vector.broadcast %cst_9 : f32 to vector<32x128xf32>
      %c0_10 = arith.constant 0 : index
      %c0_11 = arith.constant 0 : index
      %13 = vector.load %arg8[%c0_10, %c0_11] : memref<32x128xf32, #tpu.memory_space<vmem>>, vector<32x128xf32>
      tpu.vector_store %arg8[%c0_10, %c0_11], %12 {strides = array<i32>} : memref<32x128xf32, #tpu.memory_space<vmem>>, vector<32x128xf32>,
    } else {
    }
    %c0 = arith.constant 0 : index
    %c0_1 = arith.constant 0 : index
    %3 = vector.load %arg8[%c0, %c0_1] : memref<32x128xf32, #tpu.memory_space<vmem>>, vector<32x128xf32>
    %c0_2 = arith.constant 0 : index
    %c0_3 = arith.constant 0 : index
    %4 = vector.load %arg3[%c0_2, %c0_3] : memref<32x256xbf16, #tpu.memory_space<vmem>>, vector<32x256xbf16>
    %c0_4 = arith.constant 0 : index
    %c0_5 = arith.constant 0 : index
    %5 = vector.load %arg4[%c0_4, %c0_5] : memref<256x128xbf16, #tpu.memory_space<vmem>>, vector<256x128xbf16>
    %cst = arith.constant dense<0.000000e+00> : vector<32x128xf32>
    %6 = tpu.matmul %4, %5, %cst {dimension_numbers = #tpu.dot_dimension_numbers<[1], [0], [0], [1], [0, 0, 1, 1], [], []>} : vector<32x256xbf16>, vector<256x128xbf16>, vector<32x128xf32> -> vector<32x128xf32>
    %7 = arith.addf %3, %6 : vector<32x128xf32>
    %c0_6 = arith.constant 0 : index
    %c0_7 = arith.constant 0 : index
    %8 = vector.load %arg8[%c0_6, %c0_7] : memref<32x128xf32, #tpu.memory_space<vmem>>, vector<32x128xf32>
    tpu.vector_store %arg8[%c0_6, %c0_7], %7 {strides = array<i32>} : memref<32x128xf32, #tpu.memory_space<vmem>>, vector<32x128xf32>,
    %c2_i32 = arith.constant 2 : i32
    %9 = arith.cmpi eq, %arg2, %c2_i32 : i32
    %10 = arith.extui %9 : i1 to i32
    %c0_i32_8 = arith.constant 0 : i32
    %11 = arith.cmpi ne, %10, %c0_i32_8 : i32
    scf.if %11 {
      %c0_9 = arith.constant 0 : index
      %c0_10 = arith.constant 0 : index
      %12 = vector.load %arg8[%c0_9, %c0_10] : memref<32x128xf32, #tpu.memory_space<vmem>>, vector<32x128xf32>
      %13 = arith.truncf %12 : vector<32x128xf32> to vector<32x128xbf16>
      %c0_11 = arith.constant 0 : index
      %c0_12 = arith.constant 0 : index
      %14 = vector.load %arg5[%c0_11, %c0_12] : memref<32x128xbf16, #tpu.memory_space<vmem>>, vector<32x128xbf16>
      tpu.vector_store %arg5[%c0_11, %c0_12], %13 {strides = array<i32>} : memref<32x128xbf16, #tpu.memory_space<vmem>>, vector<32x128xbf16>,
      %cst_13 = arith.constant dense<0.000000e+00> : vector<128xf32>
      %15 = vector.multi_reduction <add>, %12, %cst_13 [0] : vector<32x128xf32> to vector<128xf32>
      %16 = vector.shape_cast %15 : vector<128xf32> to vector<1x128xf32>
      %17 = vector.shape_cast %16 : vector<1x128xf32> to vector<1x128xf32>
      %18 = vector.broadcast %17 : vector<1x128xf32> to vector<8x128xf32>
      %c0_14 = arith.constant 0 : index
      %c0_15 = arith.constant 0 : index
      %19 = vector.load %arg6[%c0_14, %c0_15] : memref<8x128xf32, #tpu.memory_space<vmem>>, vector<8x128xf32>
      tpu.vector_store %arg6[%c0_14, %c0_15], %18 {strides = array<i32>} : memref<8x128xf32, #tpu.memory_space<vmem>>, vector<8x128xf32>,
      %20 = arith.mulf %12, %12 : vector<32x128xf32>
      %cst_16 = arith.constant dense<0.000000e+00> : vector<128xf32>
      %21 = vector.multi_reduction <add>, %20, %cst_16 [0] : vector<32x128xf32> to vector<128xf32>
      %22 = vector.shape_cast %21 : vector<128xf32> to vector<1x128xf32>
      %23 = vector.shape_cast %22 : vector<1x128xf32> to vector<1x128xf32>
      %24 = vector.broadcast %23 : vector<1x128xf32> to vector<8x128xf32>
      %c0_17 = arith.constant 0 : index
      %c0_18 = arith.constant 0 : index
      %25 = vector.load %arg7[%c0_17, %c0_18] : memref<8x128xf32, #tpu.memory_space<vmem>>, vector<8x128xf32>
      tpu.vector_store %arg7[%c0_17, %c0_18], %24 {strides = array<i32>} : memref<8x128xf32, #tpu.memory_space<vmem>>, vector<8x128xf32>,
    } else {
    }
    return
  }
  func.func @transform_0(%arg0: i32, %arg1: i32, %arg2: i32) -> (i32, i32) {
    %c0_i32 = arith.constant 0 : i32
    return %arg0, %arg2 : i32, i32
  }
  func.func @transform_1(%arg0: i32, %arg1: i32, %arg2: i32) -> (i32, i32) {
    %c0_i32 = arith.constant 0 : i32
    return %arg2, %arg1 : i32, i32
  }
  func.func @transform_2(%arg0: i32, %arg1: i32, %arg2: i32) -> (i32, i32) {
    %c0_i32 = arith.constant 0 : i32
    return %arg0, %arg1 : i32, i32
  }
  func.func @transform_3(%arg0: i32, %arg1: i32, %arg2: i32) -> (i32, i32) {
    %c0_i32 = arith.constant 0 : i32
    return %arg0, %arg1 : i32, i32
  }
  func.func @transform_4(%arg0: i32, %arg1: i32, %arg2: i32) -> (i32, i32) {
    %c0_i32 = arith.constant 0 : i32
    return %arg0, %arg1 : i32, i32
  }
}

module attributes {stable_mosaic.version = 11 : i64} {
  func.func @kernel(%arg0: i32, %arg1: i32, %arg2: memref<32x128xbf16, #tpu.memory_space<vmem>>, %arg3: memref<1x128xf32, #tpu.memory_space<vmem>>, %arg4: memref<1x128xf32, #tpu.memory_space<vmem>>, %arg5: memref<32x128xbf16, #tpu.memory_space<vmem>>) attributes {dimension_semantics = [#tpu.dimension_semantics<parallel>, #tpu.dimension_semantics<parallel>], iteration_bounds = array<i64: 1, 1>, scalar_prefetch = 0 : i64, scratch_operands = 0 : i64, tpu.core_type = #tpu.core_type<tc>, window_params = [{transform_indices = @transform_0, window_bounds = array<i64: 32, 128>}, {transform_indices = @transform_1, window_bounds = array<i64: 1, 128>}, {transform_indices = @transform_2, window_bounds = array<i64: 1, 128>}, {transform_indices = @transform_3, window_bounds = array<i64: 32, 128>}]} {
    %c0 = arith.constant 0 : index
    %c0_0 = arith.constant 0 : index
    %0 = vector.load %arg2[%c0, %c0_0] : memref<32x128xbf16, #tpu.memory_space<vmem>>, vector<32x128xbf16>
    %1 = arith.extf %0 : vector<32x128xbf16> to vector<32x128xf32>
    %c0_1 = arith.constant 0 : index
    %c0_2 = arith.constant 0 : index
    %2 = vector.load %arg3[%c0_1, %c0_2] : memref<1x128xf32, #tpu.memory_space<vmem>>, vector<1x128xf32>
    %3 = vector.broadcast %2 : vector<1x128xf32> to vector<32x128xf32>
    %4 = arith.mulf %1, %3 : vector<32x128xf32>
    %c0_3 = arith.constant 0 : index
    %c0_4 = arith.constant 0 : index
    %5 = vector.load %arg4[%c0_3, %c0_4] : memref<1x128xf32, #tpu.memory_space<vmem>>, vector<1x128xf32>
    %6 = vector.broadcast %5 : vector<1x128xf32> to vector<32x128xf32>
    %7 = arith.addf %4, %6 : vector<32x128xf32>
    %cst = arith.constant 0.000000e+00 : f32
    %8 = vector.broadcast %cst : f32 to vector<32x128xf32>
    %9 = arith.maximumf %7, %8 : vector<32x128xf32>
    %10 = arith.truncf %9 : vector<32x128xf32> to vector<32x128xbf16>
    %c0_5 = arith.constant 0 : index
    %c0_6 = arith.constant 0 : index
    %11 = vector.load %arg5[%c0_5, %c0_6] : memref<32x128xbf16, #tpu.memory_space<vmem>>, vector<32x128xbf16>
    tpu.vector_store %arg5[%c0_5, %c0_6], %10 {strides = array<i32>} : memref<32x128xbf16, #tpu.memory_space<vmem>>, vector<32x128xbf16>,
    return
  }
  func.func @transform_0(%arg0: i32, %arg1: i32) -> (i32, i32) {
    %c0_i32 = arith.constant 0 : i32
    return %arg0, %arg1 : i32, i32
  }
  func.func @transform_1(%arg0: i32, %arg1: i32) -> (i32, i32) {
    %c0_i32 = arith.constant 0 : i32
    %c0_i32_0 = arith.constant 0 : i32
    return %c0_i32, %arg1 : i32, i32
  }
  func.func @transform_2(%arg0: i32, %arg1: i32) -> (i32, i32) {
    %c0_i32 = arith.constant 0 : i32
    %c0_i32_0 = arith.constant 0 : i32
    return %c0_i32, %arg1 : i32, i32
  }
  func.func @transform_3(%arg0: i32, %arg1: i32) -> (i32, i32) {
    %c0_i32 = arith.constant 0 : i32
    return %arg0, %arg1 : i32, i32
  }
}

module attributes {stable_mosaic.version = 11 : i64} {
  func.func @kernel(%arg0: i32, %arg1: i32, %arg2: memref<32x128xbf16, #tpu.memory_space<vmem>>, %arg3: memref<1x128xf32, #tpu.memory_space<vmem>>, %arg4: memref<1x128xf32, #tpu.memory_space<vmem>>, %arg5: memref<32x128xbf16, #tpu.memory_space<vmem>>, %arg6: memref<32x128xbf16, #tpu.memory_space<vmem>>) attributes {dimension_semantics = [#tpu.dimension_semantics<parallel>, #tpu.dimension_semantics<parallel>], iteration_bounds = array<i64: 1, 1>, scalar_prefetch = 0 : i64, scratch_operands = 0 : i64, tpu.core_type = #tpu.core_type<tc>, window_params = [{transform_indices = @transform_0, window_bounds = array<i64: 32, 128>}, {transform_indices = @transform_1, window_bounds = array<i64: 1, 128>}, {transform_indices = @transform_2, window_bounds = array<i64: 1, 128>}, {transform_indices = @transform_3, window_bounds = array<i64: 32, 128>}, {transform_indices = @transform_4, window_bounds = array<i64: 32, 128>}]} {
    %c0 = arith.constant 0 : index
    %c0_0 = arith.constant 0 : index
    %0 = vector.load %arg2[%c0, %c0_0] : memref<32x128xbf16, #tpu.memory_space<vmem>>, vector<32x128xbf16>
    %1 = arith.extf %0 : vector<32x128xbf16> to vector<32x128xf32>
    %c0_1 = arith.constant 0 : index
    %c0_2 = arith.constant 0 : index
    %2 = vector.load %arg3[%c0_1, %c0_2] : memref<1x128xf32, #tpu.memory_space<vmem>>, vector<1x128xf32>
    %3 = vector.broadcast %2 : vector<1x128xf32> to vector<32x128xf32>
    %4 = arith.mulf %1, %3 : vector<32x128xf32>
    %c0_3 = arith.constant 0 : index
    %c0_4 = arith.constant 0 : index
    %5 = vector.load %arg4[%c0_3, %c0_4] : memref<1x128xf32, #tpu.memory_space<vmem>>, vector<1x128xf32>
    %6 = vector.broadcast %5 : vector<1x128xf32> to vector<32x128xf32>
    %7 = arith.addf %4, %6 : vector<32x128xf32>
    %c0_5 = arith.constant 0 : index
    %c0_6 = arith.constant 0 : index
    %8 = vector.load %arg5[%c0_5, %c0_6] : memref<32x128xbf16, #tpu.memory_space<vmem>>, vector<32x128xbf16>
    %9 = arith.extf %8 : vector<32x128xbf16> to vector<32x128xf32>
    %10 = arith.addf %7, %9 : vector<32x128xf32>
    %cst = arith.constant 0.000000e+00 : f32
    %11 = vector.broadcast %cst : f32 to vector<32x128xf32>
    %12 = arith.maximumf %10, %11 : vector<32x128xf32>
    %13 = arith.truncf %12 : vector<32x128xf32> to vector<32x128xbf16>
    %c0_7 = arith.constant 0 : index
    %c0_8 = arith.constant 0 : index
    %14 = vector.load %arg6[%c0_7, %c0_8] : memref<32x128xbf16, #tpu.memory_space<vmem>>, vector<32x128xbf16>
    tpu.vector_store %arg6[%c0_7, %c0_8], %13 {strides = array<i32>} : memref<32x128xbf16, #tpu.memory_space<vmem>>, vector<32x128xbf16>,
    return
  }
  func.func @transform_0(%arg0: i32, %arg1: i32) -> (i32, i32) {
    %c0_i32 = arith.constant 0 : i32
    return %arg0, %arg1 : i32, i32
  }
  func.func @transform_1(%arg0: i32, %arg1: i32) -> (i32, i32) {
    %c0_i32 = arith.constant 0 : i32
    %c0_i32_0 = arith.constant 0 : i32
    return %c0_i32, %arg1 : i32, i32
  }
  func.func @transform_2(%arg0: i32, %arg1: i32) -> (i32, i32) {
    %c0_i32 = arith.constant 0 : i32
    %c0_i32_0 = arith.constant 0 : i32
    return %c0_i32, %arg1 : i32, i32
  }
  func.func @transform_3(%arg0: i32, %arg1: i32) -> (i32, i32) {
    %c0_i32 = arith.constant 0 : i32
    return %arg0, %arg1 : i32, i32
  }
  func.func @transform_4(%arg0: i32, %arg1: i32) -> (i32, i32) {
    %c0_i32 = arith.constant 0 : i32
    return %arg0, %arg1 : i32, i32
  }
}

module attributes {stable_mosaic.version = 11 : i64} {
  func.func @_gemm_stats_kernel(%arg0: i32, %arg1: i32, %arg2: i32, %arg3: memref<8x128xbf16, #tpu.memory_space<vmem>>, %arg4: memref<128x128xbf16, #tpu.memory_space<vmem>>, %arg5: memref<8x128xbf16, #tpu.memory_space<vmem>>, %arg6: memref<8x128xf32, #tpu.memory_space<vmem>>, %arg7: memref<8x128xf32, #tpu.memory_space<vmem>>, %arg8: memref<8x128xf32, #tpu.memory_space<vmem>>) attributes {dimension_semantics = [#tpu.dimension_semantics<parallel>, #tpu.dimension_semantics<parallel>, #tpu.dimension_semantics<arbitrary>], iteration_bounds = array<i64: 1, 1, 1>, scalar_prefetch = 0 : i64, scratch_operands = 1 : i64, tpu.core_type = #tpu.core_type<tc>, window_params = [{transform_indices = @transform_0, window_bounds = array<i64: 8, 128>}, {transform_indices = @transform_1, window_bounds = array<i64: 128, 128>}, {transform_indices = @transform_2, window_bounds = array<i64: 8, 128>}, {transform_indices = @transform_3, window_bounds = array<i64: 8, 128>}, {transform_indices = @transform_4, window_bounds = array<i64: 8, 128>}]} {
    %c0_i32 = arith.constant 0 : i32
    %0 = arith.cmpi eq, %arg2, %c0_i32 : i32
    %1 = arith.extui %0 : i1 to i32
    %c0_i32_0 = arith.constant 0 : i32
    %2 = arith.cmpi ne, %1, %c0_i32_0 : i32
    scf.if %2 {
      %cst_10 = arith.constant 0.000000e+00 : f32
      %12 = vector.broadcast %cst_10 : f32 to vector<8x128xf32>
      %c0_11 = arith.constant 0 : index
      %c0_12 = arith.constant 0 : index
      %13 = vector.load %arg8[%c0_11, %c0_12] : memref<8x128xf32, #tpu.memory_space<vmem>>, vector<8x128xf32>
      tpu.vector_store %arg8[%c0_11, %c0_12], %12 {strides = array<i32>} : memref<8x128xf32, #tpu.memory_space<vmem>>, vector<8x128xf32>,
    } else {
    }
    %c0 = arith.constant 0 : index
    %c0_1 = arith.constant 0 : index
    %3 = vector.load %arg8[%c0, %c0_1] : memref<8x128xf32, #tpu.memory_space<vmem>>, vector<8x128xf32>
    %c0_2 = arith.constant 0 : index
    %c0_3 = arith.constant 0 : index
    %4 = vector.load %arg3[%c0_2, %c0_3] : memref<8x128xbf16, #tpu.memory_space<vmem>>, vector<8x128xbf16>
    %c0_4 = arith.constant 0 : index
    %c0_5 = arith.constant 0 : index
    %5 = vector.load %arg4[%c0_4, %c0_5] : memref<128x128xbf16, #tpu.memory_space<vmem>>, vector<128x128xbf16>
    %cst = arith.constant dense<0.000000e+00> : vector<8x128xf32>
    %6 = tpu.matmul %4, %5, %cst {dimension_numbers = #tpu.dot_dimension_numbers<[1], [0], [0], [1], [0, 0, 1, 1], [], []>} : vector<8x128xbf16>, vector<128x128xbf16>, vector<8x128xf32> -> vector<8x128xf32>
    %7 = arith.addf %3, %6 : vector<8x128xf32>
    %c0_6 = arith.constant 0 : index
    %c0_7 = arith.constant 0 : index
    %8 = vector.load %arg8[%c0_6, %c0_7] : memref<8x128xf32, #tpu.memory_space<vmem>>, vector<8x128xf32>
    tpu.vector_store %arg8[%c0_6, %c0_7], %7 {strides = array<i32>} : memref<8x128xf32, #tpu.memory_space<vmem>>, vector<8x128xf32>,
    %c0_i32_8 = arith.constant 0 : i32
    %9 = arith.cmpi eq, %arg2, %c0_i32_8 : i32
    %10 = arith.extui %9 : i1 to i32
    %c0_i32_9 = arith.constant 0 : i32
    %11 = arith.cmpi ne, %10, %c0_i32_9 : i32
    scf.if %11 {
      %c0_10 = arith.constant 0 : index
      %c0_11 = arith.constant 0 : index
      %12 = vector.load %arg8[%c0_10, %c0_11] : memref<8x128xf32, #tpu.memory_space<vmem>>, vector<8x128xf32>
      %13 = arith.truncf %12 : vector<8x128xf32> to vector<8x128xbf16>
      %c0_12 = arith.constant 0 : index
      %c0_13 = arith.constant 0 : index
      %14 = vector.load %arg5[%c0_12, %c0_13] : memref<8x128xbf16, #tpu.memory_space<vmem>>, vector<8x128xbf16>
      tpu.vector_store %arg5[%c0_12, %c0_13], %13 {strides = array<i32>} : memref<8x128xbf16, #tpu.memory_space<vmem>>, vector<8x128xbf16>,
      %cst_14 = arith.constant dense<0.000000e+00> : vector<128xf32>
      %15 = vector.multi_reduction <add>, %12, %cst_14 [0] : vector<8x128xf32> to vector<128xf32>
      %16 = vector.shape_cast %15 : vector<128xf32> to vector<1x128xf32>
      %17 = vector.shape_cast %16 : vector<1x128xf32> to vector<1x128xf32>
      %18 = vector.broadcast %17 : vector<1x128xf32> to vector<8x128xf32>
      %c0_15 = arith.constant 0 : index
      %c0_16 = arith.constant 0 : index
      %19 = vector.load %arg6[%c0_15, %c0_16] : memref<8x128xf32, #tpu.memory_space<vmem>>, vector<8x128xf32>
      tpu.vector_store %arg6[%c0_15, %c0_16], %18 {strides = array<i32>} : memref<8x128xf32, #tpu.memory_space<vmem>>, vector<8x128xf32>,
      %20 = arith.mulf %12, %12 : vector<8x128xf32>
      %cst_17 = arith.constant dense<0.000000e+00> : vector<128xf32>
      %21 = vector.multi_reduction <add>, %20, %cst_17 [0] : vector<8x128xf32> to vector<128xf32>
      %22 = vector.shape_cast %21 : vector<128xf32> to vector<1x128xf32>
      %23 = vector.shape_cast %22 : vector<1x128xf32> to vector<1x128xf32>
      %24 = vector.broadcast %23 : vector<1x128xf32> to vector<8x128xf32>
      %c0_18 = arith.constant 0 : index
      %c0_19 = arith.constant 0 : index
      %25 = vector.load %arg7[%c0_18, %c0_19] : memref<8x128xf32, #tpu.memory_space<vmem>>, vector<8x128xf32>
      tpu.vector_store %arg7[%c0_18, %c0_19], %24 {strides = array<i32>} : memref<8x128xf32, #tpu.memory_space<vmem>>, vector<8x128xf32>,
    } else {
    }
    return
  }
  func.func @transform_0(%arg0: i32, %arg1: i32, %arg2: i32) -> (i32, i32) {
    %c0_i32 = arith.constant 0 : i32
    return %arg0, %arg2 : i32, i32
  }
  func.func @transform_1(%arg0: i32, %arg1: i32, %arg2: i32) -> (i32, i32) {
    %c0_i32 = arith.constant 0 : i32
    return %arg2, %arg1 : i32, i32
  }
  func.func @transform_2(%arg0: i32, %arg1: i32, %arg2: i32) -> (i32, i32) {
    %c0_i32 = arith.constant 0 : i32
    return %arg0, %arg1 : i32, i32
  }
  func.func @transform_3(%arg0: i32, %arg1: i32, %arg2: i32) -> (i32, i32) {
    %c0_i32 = arith.constant 0 : i32
    return %arg0, %arg1 : i32, i32
  }
  func.func @transform_4(%arg0: i32, %arg1: i32, %arg2: i32) -> (i32, i32) {
    %c0_i32 = arith.constant 0 : i32
    return %arg0, %arg1 : i32, i32
  }
}

module attributes {stable_mosaic.version = 11 : i64} {
  func.func @kernel(%arg0: i32, %arg1: i32, %arg2: memref<8x128xbf16, #tpu.memory_space<vmem>>, %arg3: memref<1x128xf32, #tpu.memory_space<vmem>>, %arg4: memref<1x128xf32, #tpu.memory_space<vmem>>, %arg5: memref<8x128xbf16, #tpu.memory_space<vmem>>) attributes {dimension_semantics = [#tpu.dimension_semantics<parallel>, #tpu.dimension_semantics<parallel>], iteration_bounds = array<i64: 1, 1>, scalar_prefetch = 0 : i64, scratch_operands = 0 : i64, tpu.core_type = #tpu.core_type<tc>, window_params = [{transform_indices = @transform_0, window_bounds = array<i64: 8, 128>}, {transform_indices = @transform_1, window_bounds = array<i64: 1, 128>}, {transform_indices = @transform_2, window_bounds = array<i64: 1, 128>}, {transform_indices = @transform_3, window_bounds = array<i64: 8, 128>}]} {
    %c0 = arith.constant 0 : index
    %c0_0 = arith.constant 0 : index
    %0 = vector.load %arg2[%c0, %c0_0] : memref<8x128xbf16, #tpu.memory_space<vmem>>, vector<8x128xbf16>
    %1 = arith.extf %0 : vector<8x128xbf16> to vector<8x128xf32>
    %c0_1 = arith.constant 0 : index
    %c0_2 = arith.constant 0 : index
    %2 = vector.load %arg3[%c0_1, %c0_2] : memref<1x128xf32, #tpu.memory_space<vmem>>, vector<1x128xf32>
    %3 = vector.broadcast %2 : vector<1x128xf32> to vector<8x128xf32>
    %4 = arith.mulf %1, %3 : vector<8x128xf32>
    %c0_3 = arith.constant 0 : index
    %c0_4 = arith.constant 0 : index
    %5 = vector.load %arg4[%c0_3, %c0_4] : memref<1x128xf32, #tpu.memory_space<vmem>>, vector<1x128xf32>
    %6 = vector.broadcast %5 : vector<1x128xf32> to vector<8x128xf32>
    %7 = arith.addf %4, %6 : vector<8x128xf32>
    %8 = arith.truncf %7 : vector<8x128xf32> to vector<8x128xbf16>
    %c0_5 = arith.constant 0 : index
    %c0_6 = arith.constant 0 : index
    %9 = vector.load %arg5[%c0_5, %c0_6] : memref<8x128xbf16, #tpu.memory_space<vmem>>, vector<8x128xbf16>
    tpu.vector_store %arg5[%c0_5, %c0_6], %8 {strides = array<i32>} : memref<8x128xbf16, #tpu.memory_space<vmem>>, vector<8x128xbf16>,
    return
  }
  func.func @transform_0(%arg0: i32, %arg1: i32) -> (i32, i32) {
    %c0_i32 = arith.constant 0 : i32
    return %arg0, %arg1 : i32, i32
  }
  func.func @transform_1(%arg0: i32, %arg1: i32) -> (i32, i32) {
    %c0_i32 = arith.constant 0 : i32
    %c0_i32_0 = arith.constant 0 : i32
    return %c0_i32, %arg1 : i32, i32
  }
  func.func @transform_2(%arg0: i32, %arg1: i32) -> (i32, i32) {
    %c0_i32 = arith.constant 0 : i32
    %c0_i32_0 = arith.constant 0 : i32
    return %c0_i32, %arg1 : i32, i32
  }
  func.func @transform_3(%arg0: i32, %arg1: i32) -> (i32, i32) {
    %c0_i32 = arith.constant 0 : i32
    return %arg0, %arg1 : i32, i32
  }
}

module attributes {stable_mosaic.version = 11 : i64} {
  func.func @kernel(%arg0: i32, %arg1: i32, %arg2: memref<8x128xbf16, #tpu.memory_space<vmem>>, %arg3: memref<1x128xf32, #tpu.memory_space<vmem>>, %arg4: memref<1x128xf32, #tpu.memory_space<vmem>>, %arg5: memref<8x128xbf16, #tpu.memory_space<vmem>>) attributes {dimension_semantics = [#tpu.dimension_semantics<parallel>, #tpu.dimension_semantics<parallel>], iteration_bounds = array<i64: 1, 1>, scalar_prefetch = 0 : i64, scratch_operands = 0 : i64, tpu.core_type = #tpu.core_type<tc>, window_params = [{transform_indices = @transform_0, window_bounds = array<i64: 8, 128>}, {transform_indices = @transform_1, window_bounds = array<i64: 1, 128>}, {transform_indices = @transform_2, window_bounds = array<i64: 1, 128>}, {transform_indices = @transform_3, window_bounds = array<i64: 8, 128>}]} {
    %c0 = arith.constant 0 : index
    %c0_0 = arith.constant 0 : index
    %0 = vector.load %arg2[%c0, %c0_0] : memref<8x128xbf16, #tpu.memory_space<vmem>>, vector<8x128xbf16>
    %1 = arith.extf %0 : vector<8x128xbf16> to vector<8x128xf32>
    %c0_1 = arith.constant 0 : index
    %c0_2 = arith.constant 0 : index
    %2 = vector.load %arg3[%c0_1, %c0_2] : memref<1x128xf32, #tpu.memory_space<vmem>>, vector<1x128xf32>
    %3 = vector.broadcast %2 : vector<1x128xf32> to vector<8x128xf32>
    %4 = arith.mulf %1, %3 : vector<8x128xf32>
    %c0_3 = arith.constant 0 : index
    %c0_4 = arith.constant 0 : index
    %5 = vector.load %arg4[%c0_3, %c0_4] : memref<1x128xf32, #tpu.memory_space<vmem>>, vector<1x128xf32>
    %6 = vector.broadcast %5 : vector<1x128xf32> to vector<8x128xf32>
    %7 = arith.addf %4, %6 : vector<8x128xf32>
    %cst = arith.constant 0.000000e+00 : f32
    %8 = vector.broadcast %cst : f32 to vector<8x128xf32>
    %9 = arith.maximumf %7, %8 : vector<8x128xf32>
    %10 = arith.truncf %9 : vector<8x128xf32> to vector<8x128xbf16>
    %c0_5 = arith.constant 0 : index
    %c0_6 = arith.constant 0 : index
    %11 = vector.load %arg5[%c0_5, %c0_6] : memref<8x128xbf16, #tpu.memory_space<vmem>>, vector<8x128xbf16>
    tpu.vector_store %arg5[%c0_5, %c0_6], %10 {strides = array<i32>} : memref<8x128xbf16, #tpu.memory_space<vmem>>, vector<8x128xbf16>,
    return
  }
  func.func @transform_0(%arg0: i32, %arg1: i32) -> (i32, i32) {
    %c0_i32 = arith.constant 0 : i32
    return %arg0, %arg1 : i32, i32
  }
  func.func @transform_1(%arg0: i32, %arg1: i32) -> (i32, i32) {
    %c0_i32 = arith.constant 0 : i32
    %c0_i32_0 = arith.constant 0 : i32
    return %c0_i32, %arg1 : i32, i32
  }
  func.func @transform_2(%arg0: i32, %arg1: i32) -> (i32, i32) {
    %c0_i32 = arith.constant 0 : i32
    %c0_i32_0 = arith.constant 0 : i32
    return %c0_i32, %arg1 : i32, i32
  }
  func.func @transform_3(%arg0: i32, %arg1: i32) -> (i32, i32) {
    %c0_i32 = arith.constant 0 : i32
    return %arg0, %arg1 : i32, i32
  }
}

module attributes {stable_mosaic.version = 11 : i64} {
  func.func @_gemm_stats_kernel(%arg0: i32, %arg1: i32, %arg2: i32, %arg3: memref<8x256xbf16, #tpu.memory_space<vmem>>, %arg4: memref<256x128xbf16, #tpu.memory_space<vmem>>, %arg5: memref<8x128xbf16, #tpu.memory_space<vmem>>, %arg6: memref<8x128xf32, #tpu.memory_space<vmem>>, %arg7: memref<8x128xf32, #tpu.memory_space<vmem>>, %arg8: memref<8x128xf32, #tpu.memory_space<vmem>>) attributes {dimension_semantics = [#tpu.dimension_semantics<parallel>, #tpu.dimension_semantics<parallel>, #tpu.dimension_semantics<arbitrary>], iteration_bounds = array<i64: 1, 1, 3>, scalar_prefetch = 0 : i64, scratch_operands = 1 : i64, tpu.core_type = #tpu.core_type<tc>, window_params = [{transform_indices = @transform_0, window_bounds = array<i64: 8, 256>}, {transform_indices = @transform_1, window_bounds = array<i64: 256, 128>}, {transform_indices = @transform_2, window_bounds = array<i64: 8, 128>}, {transform_indices = @transform_3, window_bounds = array<i64: 8, 128>}, {transform_indices = @transform_4, window_bounds = array<i64: 8, 128>}]} {
    %c0_i32 = arith.constant 0 : i32
    %0 = arith.cmpi eq, %arg2, %c0_i32 : i32
    %1 = arith.extui %0 : i1 to i32
    %c0_i32_0 = arith.constant 0 : i32
    %2 = arith.cmpi ne, %1, %c0_i32_0 : i32
    scf.if %2 {
      %cst_9 = arith.constant 0.000000e+00 : f32
      %12 = vector.broadcast %cst_9 : f32 to vector<8x128xf32>
      %c0_10 = arith.constant 0 : index
      %c0_11 = arith.constant 0 : index
      %13 = vector.load %arg8[%c0_10, %c0_11] : memref<8x128xf32, #tpu.memory_space<vmem>>, vector<8x128xf32>
      tpu.vector_store %arg8[%c0_10, %c0_11], %12 {strides = array<i32>} : memref<8x128xf32, #tpu.memory_space<vmem>>, vector<8x128xf32>,
    } else {
    }
    %c0 = arith.constant 0 : index
    %c0_1 = arith.constant 0 : index
    %3 = vector.load %arg8[%c0, %c0_1] : memref<8x128xf32, #tpu.memory_space<vmem>>, vector<8x128xf32>
    %c0_2 = arith.constant 0 : index
    %c0_3 = arith.constant 0 : index
    %4 = vector.load %arg3[%c0_2, %c0_3] : memref<8x256xbf16, #tpu.memory_space<vmem>>, vector<8x256xbf16>
    %c0_4 = arith.constant 0 : index
    %c0_5 = arith.constant 0 : index
    %5 = vector.load %arg4[%c0_4, %c0_5] : memref<256x128xbf16, #tpu.memory_space<vmem>>, vector<256x128xbf16>
    %cst = arith.constant dense<0.000000e+00> : vector<8x128xf32>
    %6 = tpu.matmul %4, %5, %cst {dimension_numbers = #tpu.dot_dimension_numbers<[1], [0], [0], [1], [0, 0, 1, 1], [], []>} : vector<8x256xbf16>, vector<256x128xbf16>, vector<8x128xf32> -> vector<8x128xf32>
    %7 = arith.addf %3, %6 : vector<8x128xf32>
    %c0_6 = arith.constant 0 : index
    %c0_7 = arith.constant 0 : index
    %8 = vector.load %arg8[%c0_6, %c0_7] : memref<8x128xf32, #tpu.memory_space<vmem>>, vector<8x128xf32>
    tpu.vector_store %arg8[%c0_6, %c0_7], %7 {strides = array<i32>} : memref<8x128xf32, #tpu.memory_space<vmem>>, vector<8x128xf32>,
    %c2_i32 = arith.constant 2 : i32
    %9 = arith.cmpi eq, %arg2, %c2_i32 : i32
    %10 = arith.extui %9 : i1 to i32
    %c0_i32_8 = arith.constant 0 : i32
    %11 = arith.cmpi ne, %10, %c0_i32_8 : i32
    scf.if %11 {
      %c0_9 = arith.constant 0 : index
      %c0_10 = arith.constant 0 : index
      %12 = vector.load %arg8[%c0_9, %c0_10] : memref<8x128xf32, #tpu.memory_space<vmem>>, vector<8x128xf32>
      %13 = arith.truncf %12 : vector<8x128xf32> to vector<8x128xbf16>
      %c0_11 = arith.constant 0 : index
      %c0_12 = arith.constant 0 : index
      %14 = vector.load %arg5[%c0_11, %c0_12] : memref<8x128xbf16, #tpu.memory_space<vmem>>, vector<8x128xbf16>
      tpu.vector_store %arg5[%c0_11, %c0_12], %13 {strides = array<i32>} : memref<8x128xbf16, #tpu.memory_space<vmem>>, vector<8x128xbf16>,
      %cst_13 = arith.constant dense<0.000000e+00> : vector<128xf32>
      %15 = vector.multi_reduction <add>, %12, %cst_13 [0] : vector<8x128xf32> to vector<128xf32>
      %16 = vector.shape_cast %15 : vector<128xf32> to vector<1x128xf32>
      %17 = vector.shape_cast %16 : vector<1x128xf32> to vector<1x128xf32>
      %18 = vector.broadcast %17 : vector<1x128xf32> to vector<8x128xf32>
      %c0_14 = arith.constant 0 : index
      %c0_15 = arith.constant 0 : index
      %19 = vector.load %arg6[%c0_14, %c0_15] : memref<8x128xf32, #tpu.memory_space<vmem>>, vector<8x128xf32>
      tpu.vector_store %arg6[%c0_14, %c0_15], %18 {strides = array<i32>} : memref<8x128xf32, #tpu.memory_space<vmem>>, vector<8x128xf32>,
      %20 = arith.mulf %12, %12 : vector<8x128xf32>
      %cst_16 = arith.constant dense<0.000000e+00> : vector<128xf32>
      %21 = vector.multi_reduction <add>, %20, %cst_16 [0] : vector<8x128xf32> to vector<128xf32>
      %22 = vector.shape_cast %21 : vector<128xf32> to vector<1x128xf32>
      %23 = vector.shape_cast %22 : vector<1x128xf32> to vector<1x128xf32>
      %24 = vector.broadcast %23 : vector<1x128xf32> to vector<8x128xf32>
      %c0_17 = arith.constant 0 : index
      %c0_18 = arith.constant 0 : index
      %25 = vector.load %arg7[%c0_17, %c0_18] : memref<8x128xf32, #tpu.memory_space<vmem>>, vector<8x128xf32>
      tpu.vector_store %arg7[%c0_17, %c0_18], %24 {strides = array<i32>} : memref<8x128xf32, #tpu.memory_space<vmem>>, vector<8x128xf32>,
    } else {
    }
    return
  }
  func.func @transform_0(%arg0: i32, %arg1: i32, %arg2: i32) -> (i32, i32) {
    %c0_i32 = arith.constant 0 : i32
    return %arg0, %arg2 : i32, i32
  }
  func.func @transform_1(%arg0: i32, %arg1: i32, %arg2: i32) -> (i32, i32) {
    %c0_i32 = arith.constant 0 : i32
    return %arg2, %arg1 : i32, i32
  }
  func.func @transform_2(%arg0: i32, %arg1: i32, %arg2: i32) -> (i32, i32) {
    %c0_i32 = arith.constant 0 : i32
    return %arg0, %arg1 : i32, i32
  }
  func.func @transform_3(%arg0: i32, %arg1: i32, %arg2: i32) -> (i32, i32) {
    %c0_i32 = arith.constant 0 : i32
    return %arg0, %arg1 : i32, i32
  }
  func.func @transform_4(%arg0: i32, %arg1: i32, %arg2: i32) -> (i32, i32) {
    %c0_i32 = arith.constant 0 : i32
    return %arg0, %arg1 : i32, i32
  }
}

module attributes {stable_mosaic.version = 11 : i64} {
  func.func @kernel(%arg0: i32, %arg1: i32, %arg2: memref<8x128xbf16, #tpu.memory_space<vmem>>, %arg3: memref<1x128xf32, #tpu.memory_space<vmem>>, %arg4: memref<1x128xf32, #tpu.memory_space<vmem>>, %arg5: memref<8x128xbf16, #tpu.memory_space<vmem>>, %arg6: memref<8x128xbf16, #tpu.memory_space<vmem>>) attributes {dimension_semantics = [#tpu.dimension_semantics<parallel>, #tpu.dimension_semantics<parallel>], iteration_bounds = array<i64: 1, 1>, scalar_prefetch = 0 : i64, scratch_operands = 0 : i64, tpu.core_type = #tpu.core_type<tc>, window_params = [{transform_indices = @transform_0, window_bounds = array<i64: 8, 128>}, {transform_indices = @transform_1, window_bounds = array<i64: 1, 128>}, {transform_indices = @transform_2, window_bounds = array<i64: 1, 128>}, {transform_indices = @transform_3, window_bounds = array<i64: 8, 128>}, {transform_indices = @transform_4, window_bounds = array<i64: 8, 128>}]} {
    %c0 = arith.constant 0 : index
    %c0_0 = arith.constant 0 : index
    %0 = vector.load %arg2[%c0, %c0_0] : memref<8x128xbf16, #tpu.memory_space<vmem>>, vector<8x128xbf16>
    %1 = arith.extf %0 : vector<8x128xbf16> to vector<8x128xf32>
    %c0_1 = arith.constant 0 : index
    %c0_2 = arith.constant 0 : index
    %2 = vector.load %arg3[%c0_1, %c0_2] : memref<1x128xf32, #tpu.memory_space<vmem>>, vector<1x128xf32>
    %3 = vector.broadcast %2 : vector<1x128xf32> to vector<8x128xf32>
    %4 = arith.mulf %1, %3 : vector<8x128xf32>
    %c0_3 = arith.constant 0 : index
    %c0_4 = arith.constant 0 : index
    %5 = vector.load %arg4[%c0_3, %c0_4] : memref<1x128xf32, #tpu.memory_space<vmem>>, vector<1x128xf32>
    %6 = vector.broadcast %5 : vector<1x128xf32> to vector<8x128xf32>
    %7 = arith.addf %4, %6 : vector<8x128xf32>
    %c0_5 = arith.constant 0 : index
    %c0_6 = arith.constant 0 : index
    %8 = vector.load %arg5[%c0_5, %c0_6] : memref<8x128xbf16, #tpu.memory_space<vmem>>, vector<8x128xbf16>
    %9 = arith.extf %8 : vector<8x128xbf16> to vector<8x128xf32>
    %10 = arith.addf %7, %9 : vector<8x128xf32>
    %cst = arith.constant 0.000000e+00 : f32
    %11 = vector.broadcast %cst : f32 to vector<8x128xf32>
    %12 = arith.maximumf %10, %11 : vector<8x128xf32>
    %13 = arith.truncf %12 : vector<8x128xf32> to vector<8x128xbf16>
    %c0_7 = arith.constant 0 : index
    %c0_8 = arith.constant 0 : index
    %14 = vector.load %arg6[%c0_7, %c0_8] : memref<8x128xbf16, #tpu.memory_space<vmem>>, vector<8x128xbf16>
    tpu.vector_store %arg6[%c0_7, %c0_8], %13 {strides = array<i32>} : memref<8x128xbf16, #tpu.memory_space<vmem>>, vector<8x128xbf16>,
    return
  }
  func.func @transform_0(%arg0: i32, %arg1: i32) -> (i32, i32) {
    %c0_i32 = arith.constant 0 : i32
    return %arg0, %arg1 : i32, i32
  }
  func.func @transform_1(%arg0: i32, %arg1: i32) -> (i32, i32) {
    %c0_i32 = arith.constant 0 : i32
    %c0_i32_0 = arith.constant 0 : i32
    return %c0_i32, %arg1 : i32, i32
  }
  func.func @transform_2(%arg0: i32, %arg1: i32) -> (i32, i32) {
    %c0_i32 = arith.constant 0 : i32
    %c0_i32_0 = arith.constant 0 : i32
    return %c0_i32, %arg1 : i32, i32
  }
  func.func @transform_3(%arg0: i32, %arg1: i32) -> (i32, i32) {
    %c0_i32 = arith.constant 0 : i32
    return %arg0, %arg1 : i32, i32
  }
  func.func @transform_4(%arg0: i32, %arg1: i32) -> (i32, i32) {
    %c0_i32 = arith.constant 0 : i32
    return %arg0, %arg1 : i32, i32
  }
}

module attributes {stable_mosaic.version = 11 : i64} {
  func.func @_gemm_stats_kernel(%arg0: i32, %arg1: i32, %arg2: i32, %arg3: memref<8x256xbf16, #tpu.memory_space<vmem>>, %arg4: memref<256x128xbf16, #tpu.memory_space<vmem>>, %arg5: memref<8x128xbf16, #tpu.memory_space<vmem>>, %arg6: memref<8x128xf32, #tpu.memory_space<vmem>>, %arg7: memref<8x128xf32, #tpu.memory_space<vmem>>, %arg8: memref<8x128xf32, #tpu.memory_space<vmem>>) attributes {dimension_semantics = [#tpu.dimension_semantics<parallel>, #tpu.dimension_semantics<parallel>, #tpu.dimension_semantics<arbitrary>], iteration_bounds = array<i64: 1, 1, 5>, scalar_prefetch = 0 : i64, scratch_operands = 1 : i64, tpu.core_type = #tpu.core_type<tc>, window_params = [{transform_indices = @transform_0, window_bounds = array<i64: 8, 256>}, {transform_indices = @transform_1, window_bounds = array<i64: 256, 128>}, {transform_indices = @transform_2, window_bounds = array<i64: 8, 128>}, {transform_indices = @transform_3, window_bounds = array<i64: 8, 128>}, {transform_indices = @transform_4, window_bounds = array<i64: 8, 128>}]} {
    %c0_i32 = arith.constant 0 : i32
    %0 = arith.cmpi eq, %arg2, %c0_i32 : i32
    %1 = arith.extui %0 : i1 to i32
    %c0_i32_0 = arith.constant 0 : i32
    %2 = arith.cmpi ne, %1, %c0_i32_0 : i32
    scf.if %2 {
      %cst_9 = arith.constant 0.000000e+00 : f32
      %12 = vector.broadcast %cst_9 : f32 to vector<8x128xf32>
      %c0_10 = arith.constant 0 : index
      %c0_11 = arith.constant 0 : index
      %13 = vector.load %arg8[%c0_10, %c0_11] : memref<8x128xf32, #tpu.memory_space<vmem>>, vector<8x128xf32>
      tpu.vector_store %arg8[%c0_10, %c0_11], %12 {strides = array<i32>} : memref<8x128xf32, #tpu.memory_space<vmem>>, vector<8x128xf32>,
    } else {
    }
    %c0 = arith.constant 0 : index
    %c0_1 = arith.constant 0 : index
    %3 = vector.load %arg8[%c0, %c0_1] : memref<8x128xf32, #tpu.memory_space<vmem>>, vector<8x128xf32>
    %c0_2 = arith.constant 0 : index
    %c0_3 = arith.constant 0 : index
    %4 = vector.load %arg3[%c0_2, %c0_3] : memref<8x256xbf16, #tpu.memory_space<vmem>>, vector<8x256xbf16>
    %c0_4 = arith.constant 0 : index
    %c0_5 = arith.constant 0 : index
    %5 = vector.load %arg4[%c0_4, %c0_5] : memref<256x128xbf16, #tpu.memory_space<vmem>>, vector<256x128xbf16>
    %cst = arith.constant dense<0.000000e+00> : vector<8x128xf32>
    %6 = tpu.matmul %4, %5, %cst {dimension_numbers = #tpu.dot_dimension_numbers<[1], [0], [0], [1], [0, 0, 1, 1], [], []>} : vector<8x256xbf16>, vector<256x128xbf16>, vector<8x128xf32> -> vector<8x128xf32>
    %7 = arith.addf %3, %6 : vector<8x128xf32>
    %c0_6 = arith.constant 0 : index
    %c0_7 = arith.constant 0 : index
    %8 = vector.load %arg8[%c0_6, %c0_7] : memref<8x128xf32, #tpu.memory_space<vmem>>, vector<8x128xf32>
    tpu.vector_store %arg8[%c0_6, %c0_7], %7 {strides = array<i32>} : memref<8x128xf32, #tpu.memory_space<vmem>>, vector<8x128xf32>,
    %c4_i32 = arith.constant 4 : i32
    %9 = arith.cmpi eq, %arg2, %c4_i32 : i32
    %10 = arith.extui %9 : i1 to i32
    %c0_i32_8 = arith.constant 0 : i32
    %11 = arith.cmpi ne, %10, %c0_i32_8 : i32
    scf.if %11 {
      %c0_9 = arith.constant 0 : index
      %c0_10 = arith.constant 0 : index
      %12 = vector.load %arg8[%c0_9, %c0_10] : memref<8x128xf32, #tpu.memory_space<vmem>>, vector<8x128xf32>
      %13 = arith.truncf %12 : vector<8x128xf32> to vector<8x128xbf16>
      %c0_11 = arith.constant 0 : index
      %c0_12 = arith.constant 0 : index
      %14 = vector.load %arg5[%c0_11, %c0_12] : memref<8x128xbf16, #tpu.memory_space<vmem>>, vector<8x128xbf16>
      tpu.vector_store %arg5[%c0_11, %c0_12], %13 {strides = array<i32>} : memref<8x128xbf16, #tpu.memory_space<vmem>>, vector<8x128xbf16>,
      %cst_13 = arith.constant dense<0.000000e+00> : vector<128xf32>
      %15 = vector.multi_reduction <add>, %12, %cst_13 [0] : vector<8x128xf32> to vector<128xf32>
      %16 = vector.shape_cast %15 : vector<128xf32> to vector<1x128xf32>
      %17 = vector.shape_cast %16 : vector<1x128xf32> to vector<1x128xf32>
      %18 = vector.broadcast %17 : vector<1x128xf32> to vector<8x128xf32>
      %c0_14 = arith.constant 0 : index
      %c0_15 = arith.constant 0 : index
      %19 = vector.load %arg6[%c0_14, %c0_15] : memref<8x128xf32, #tpu.memory_space<vmem>>, vector<8x128xf32>
      tpu.vector_store %arg6[%c0_14, %c0_15], %18 {strides = array<i32>} : memref<8x128xf32, #tpu.memory_space<vmem>>, vector<8x128xf32>,
      %20 = arith.mulf %12, %12 : vector<8x128xf32>
      %cst_16 = arith.constant dense<0.000000e+00> : vector<128xf32>
      %21 = vector.multi_reduction <add>, %20, %cst_16 [0] : vector<8x128xf32> to vector<128xf32>
      %22 = vector.shape_cast %21 : vector<128xf32> to vector<1x128xf32>
      %23 = vector.shape_cast %22 : vector<1x128xf32> to vector<1x128xf32>
      %24 = vector.broadcast %23 : vector<1x128xf32> to vector<8x128xf32>
      %c0_17 = arith.constant 0 : index
      %c0_18 = arith.constant 0 : index
      %25 = vector.load %arg7[%c0_17, %c0_18] : memref<8x128xf32, #tpu.memory_space<vmem>>, vector<8x128xf32>
      tpu.vector_store %arg7[%c0_17, %c0_18], %24 {strides = array<i32>} : memref<8x128xf32, #tpu.memory_space<vmem>>, vector<8x128xf32>,
    } else {
    }
    return
  }
  func.func @transform_0(%arg0: i32, %arg1: i32, %arg2: i32) -> (i32, i32) {
    %c0_i32 = arith.constant 0 : i32
    return %arg0, %arg2 : i32, i32
  }
  func.func @transform_1(%arg0: i32, %arg1: i32, %arg2: i32) -> (i32, i32) {
    %c0_i32 = arith.constant 0 : i32
    return %arg2, %arg1 : i32, i32
  }
  func.func @transform_2(%arg0: i32, %arg1: i32, %arg2: i32) -> (i32, i32) {
    %c0_i32 = arith.constant 0 : i32
    return %arg0, %arg1 : i32, i32
  }
  func.func @transform_3(%arg0: i32, %arg1: i32, %arg2: i32) -> (i32, i32) {
    %c0_i32 = arith.constant 0 : i32
    return %arg0, %arg1 : i32, i32
  }
  func.func @transform_4(%arg0: i32, %arg1: i32, %arg2: i32) -> (i32, i32) {
    %c0_i32 = arith.constant 0 : i32
    return %arg0, %arg1 : i32, i32
  }
}

module attributes {stable_mosaic.version = 11 : i64} {
  func.func @_gemm_stats_kernel(%arg0: i32, %arg1: i32, %arg2: i32, %arg3: memref<8x128xbf16, #tpu.memory_space<vmem>>, %arg4: memref<128x256xbf16, #tpu.memory_space<vmem>>, %arg5: memref<8x256xbf16, #tpu.memory_space<vmem>>, %arg6: memref<8x256xf32, #tpu.memory_space<vmem>>, %arg7: memref<8x256xf32, #tpu.memory_space<vmem>>, %arg8: memref<8x256xf32, #tpu.memory_space<vmem>>) attributes {dimension_semantics = [#tpu.dimension_semantics<parallel>, #tpu.dimension_semantics<parallel>, #tpu.dimension_semantics<arbitrary>], iteration_bounds = array<i64: 1, 1, 1>, scalar_prefetch = 0 : i64, scratch_operands = 1 : i64, tpu.core_type = #tpu.core_type<tc>, window_params = [{transform_indices = @transform_0, window_bounds = array<i64: 8, 128>}, {transform_indices = @transform_1, window_bounds = array<i64: 128, 256>}, {transform_indices = @transform_2, window_bounds = array<i64: 8, 256>}, {transform_indices = @transform_3, window_bounds = array<i64: 8, 256>}, {transform_indices = @transform_4, window_bounds = array<i64: 8, 256>}]} {
    %c0_i32 = arith.constant 0 : i32
    %0 = arith.cmpi eq, %arg2, %c0_i32 : i32
    %1 = arith.extui %0 : i1 to i32
    %c0_i32_0 = arith.constant 0 : i32
    %2 = arith.cmpi ne, %1, %c0_i32_0 : i32
    scf.if %2 {
      %cst_10 = arith.constant 0.000000e+00 : f32
      %12 = vector.broadcast %cst_10 : f32 to vector<8x256xf32>
      %c0_11 = arith.constant 0 : index
      %c0_12 = arith.constant 0 : index
      %13 = vector.load %arg8[%c0_11, %c0_12] : memref<8x256xf32, #tpu.memory_space<vmem>>, vector<8x256xf32>
      tpu.vector_store %arg8[%c0_11, %c0_12], %12 {strides = array<i32>} : memref<8x256xf32, #tpu.memory_space<vmem>>, vector<8x256xf32>,
    } else {
    }
    %c0 = arith.constant 0 : index
    %c0_1 = arith.constant 0 : index
    %3 = vector.load %arg8[%c0, %c0_1] : memref<8x256xf32, #tpu.memory_space<vmem>>, vector<8x256xf32>
    %c0_2 = arith.constant 0 : index
    %c0_3 = arith.constant 0 : index
    %4 = vector.load %arg3[%c0_2, %c0_3] : memref<8x128xbf16, #tpu.memory_space<vmem>>, vector<8x128xbf16>
    %c0_4 = arith.constant 0 : index
    %c0_5 = arith.constant 0 : index
    %5 = vector.load %arg4[%c0_4, %c0_5] : memref<128x256xbf16, #tpu.memory_space<vmem>>, vector<128x256xbf16>
    %cst = arith.constant dense<0.000000e+00> : vector<8x256xf32>
    %6 = tpu.matmul %4, %5, %cst {dimension_numbers = #tpu.dot_dimension_numbers<[1], [0], [0], [1], [0, 0, 1, 1], [], []>} : vector<8x128xbf16>, vector<128x256xbf16>, vector<8x256xf32> -> vector<8x256xf32>
    %7 = arith.addf %3, %6 : vector<8x256xf32>
    %c0_6 = arith.constant 0 : index
    %c0_7 = arith.constant 0 : index
    %8 = vector.load %arg8[%c0_6, %c0_7] : memref<8x256xf32, #tpu.memory_space<vmem>>, vector<8x256xf32>
    tpu.vector_store %arg8[%c0_6, %c0_7], %7 {strides = array<i32>} : memref<8x256xf32, #tpu.memory_space<vmem>>, vector<8x256xf32>,
    %c0_i32_8 = arith.constant 0 : i32
    %9 = arith.cmpi eq, %arg2, %c0_i32_8 : i32
    %10 = arith.extui %9 : i1 to i32
    %c0_i32_9 = arith.constant 0 : i32
    %11 = arith.cmpi ne, %10, %c0_i32_9 : i32
    scf.if %11 {
      %c0_10 = arith.constant 0 : index
      %c0_11 = arith.constant 0 : index
      %12 = vector.load %arg8[%c0_10, %c0_11] : memref<8x256xf32, #tpu.memory_space<vmem>>, vector<8x256xf32>
      %13 = arith.truncf %12 : vector<8x256xf32> to vector<8x256xbf16>
      %c0_12 = arith.constant 0 : index
      %c0_13 = arith.constant 0 : index
      %14 = vector.load %arg5[%c0_12, %c0_13] : memref<8x256xbf16, #tpu.memory_space<vmem>>, vector<8x256xbf16>
      tpu.vector_store %arg5[%c0_12, %c0_13], %13 {strides = array<i32>} : memref<8x256xbf16, #tpu.memory_space<vmem>>, vector<8x256xbf16>,
      %cst_14 = arith.constant dense<0.000000e+00> : vector<256xf32>
      %15 = vector.multi_reduction <add>, %12, %cst_14 [0] : vector<8x256xf32> to vector<256xf32>
      %16 = vector.shape_cast %15 : vector<256xf32> to vector<1x256xf32>
      %17 = vector.shape_cast %16 : vector<1x256xf32> to vector<1x256xf32>
      %18 = vector.broadcast %17 : vector<1x256xf32> to vector<8x256xf32>
      %c0_15 = arith.constant 0 : index
      %c0_16 = arith.constant 0 : index
      %19 = vector.load %arg6[%c0_15, %c0_16] : memref<8x256xf32, #tpu.memory_space<vmem>>, vector<8x256xf32>
      tpu.vector_store %arg6[%c0_15, %c0_16], %18 {strides = array<i32>} : memref<8x256xf32, #tpu.memory_space<vmem>>, vector<8x256xf32>,
      %20 = arith.mulf %12, %12 : vector<8x256xf32>
      %cst_17 = arith.constant dense<0.000000e+00> : vector<256xf32>
      %21 = vector.multi_reduction <add>, %20, %cst_17 [0] : vector<8x256xf32> to vector<256xf32>
      %22 = vector.shape_cast %21 : vector<256xf32> to vector<1x256xf32>
      %23 = vector.shape_cast %22 : vector<1x256xf32> to vector<1x256xf32>
      %24 = vector.broadcast %23 : vector<1x256xf32> to vector<8x256xf32>
      %c0_18 = arith.constant 0 : index
      %c0_19 = arith.constant 0 : index
      %25 = vector.load %arg7[%c0_18, %c0_19] : memref<8x256xf32, #tpu.memory_space<vmem>>, vector<8x256xf32>
      tpu.vector_store %arg7[%c0_18, %c0_19], %24 {strides = array<i32>} : memref<8x256xf32, #tpu.memory_space<vmem>>, vector<8x256xf32>,
    } else {
    }
    return
  }
  func.func @transform_0(%arg0: i32, %arg1: i32, %arg2: i32) -> (i32, i32) {
    %c0_i32 = arith.constant 0 : i32
    return %arg0, %arg2 : i32, i32
  }
  func.func @transform_1(%arg0: i32, %arg1: i32, %arg2: i32) -> (i32, i32) {
    %c0_i32 = arith.constant 0 : i32
    return %arg2, %arg1 : i32, i32
  }
  func.func @transform_2(%arg0: i32, %arg1: i32, %arg2: i32) -> (i32, i32) {
    %c0_i32 = arith.constant 0 : i32
    return %arg0, %arg1 : i32, i32
  }
  func.func @transform_3(%arg0: i32, %arg1: i32, %arg2: i32) -> (i32, i32) {
    %c0_i32 = arith.constant 0 : i32
    return %arg0, %arg1 : i32, i32
  }
  func.func @transform_4(%arg0: i32, %arg1: i32, %arg2: i32) -> (i32, i32) {
    %c0_i32 = arith.constant 0 : i32
    return %arg0, %arg1 : i32, i32
  }
}

module attributes {stable_mosaic.version = 11 : i64} {
  func.func @kernel(%arg0: i32, %arg1: i32, %arg2: memref<8x256xbf16, #tpu.memory_space<vmem>>, %arg3: memref<1x256xf32, #tpu.memory_space<vmem>>, %arg4: memref<1x256xf32, #tpu.memory_space<vmem>>, %arg5: memref<8x256xbf16, #tpu.memory_space<vmem>>) attributes {dimension_semantics = [#tpu.dimension_semantics<parallel>, #tpu.dimension_semantics<parallel>], iteration_bounds = array<i64: 1, 1>, scalar_prefetch = 0 : i64, scratch_operands = 0 : i64, tpu.core_type = #tpu.core_type<tc>, window_params = [{transform_indices = @transform_0, window_bounds = array<i64: 8, 256>}, {transform_indices = @transform_1, window_bounds = array<i64: 1, 256>}, {transform_indices = @transform_2, window_bounds = array<i64: 1, 256>}, {transform_indices = @transform_3, window_bounds = array<i64: 8, 256>}]} {
    %c0 = arith.constant 0 : index
    %c0_0 = arith.constant 0 : index
    %0 = vector.load %arg2[%c0, %c0_0] : memref<8x256xbf16, #tpu.memory_space<vmem>>, vector<8x256xbf16>
    %1 = arith.extf %0 : vector<8x256xbf16> to vector<8x256xf32>
    %c0_1 = arith.constant 0 : index
    %c0_2 = arith.constant 0 : index
    %2 = vector.load %arg3[%c0_1, %c0_2] : memref<1x256xf32, #tpu.memory_space<vmem>>, vector<1x256xf32>
    %3 = vector.broadcast %2 : vector<1x256xf32> to vector<8x256xf32>
    %4 = arith.mulf %1, %3 : vector<8x256xf32>
    %c0_3 = arith.constant 0 : index
    %c0_4 = arith.constant 0 : index
    %5 = vector.load %arg4[%c0_3, %c0_4] : memref<1x256xf32, #tpu.memory_space<vmem>>, vector<1x256xf32>
    %6 = vector.broadcast %5 : vector<1x256xf32> to vector<8x256xf32>
    %7 = arith.addf %4, %6 : vector<8x256xf32>
    %8 = arith.truncf %7 : vector<8x256xf32> to vector<8x256xbf16>
    %c0_5 = arith.constant 0 : index
    %c0_6 = arith.constant 0 : index
    %9 = vector.load %arg5[%c0_5, %c0_6] : memref<8x256xbf16, #tpu.memory_space<vmem>>, vector<8x256xbf16>
    tpu.vector_store %arg5[%c0_5, %c0_6], %8 {strides = array<i32>} : memref<8x256xbf16, #tpu.memory_space<vmem>>, vector<8x256xbf16>,
    return
  }
  func.func @transform_0(%arg0: i32, %arg1: i32) -> (i32, i32) {
    %c0_i32 = arith.constant 0 : i32
    return %arg0, %arg1 : i32, i32
  }
  func.func @transform_1(%arg0: i32, %arg1: i32) -> (i32, i32) {
    %c0_i32 = arith.constant 0 : i32
    %c0_i32_0 = arith.constant 0 : i32
    return %c0_i32, %arg1 : i32, i32
  }
  func.func @transform_2(%arg0: i32, %arg1: i32) -> (i32, i32) {
    %c0_i32 = arith.constant 0 : i32
    %c0_i32_0 = arith.constant 0 : i32
    return %c0_i32, %arg1 : i32, i32
  }
  func.func @transform_3(%arg0: i32, %arg1: i32) -> (i32, i32) {
    %c0_i32 = arith.constant 0 : i32
    return %arg0, %arg1 : i32, i32
  }
}

module attributes {stable_mosaic.version = 11 : i64} {
  func.func @_gemm_stats_kernel(%arg0: i32, %arg1: i32, %arg2: i32, %arg3: memref<8x256xbf16, #tpu.memory_space<vmem>>, %arg4: memref<256x256xbf16, #tpu.memory_space<vmem>>, %arg5: memref<8x256xbf16, #tpu.memory_space<vmem>>, %arg6: memref<8x256xf32, #tpu.memory_space<vmem>>, %arg7: memref<8x256xf32, #tpu.memory_space<vmem>>, %arg8: memref<8x256xf32, #tpu.memory_space<vmem>>) attributes {dimension_semantics = [#tpu.dimension_semantics<parallel>, #tpu.dimension_semantics<parallel>, #tpu.dimension_semantics<arbitrary>], iteration_bounds = array<i64: 1, 1, 5>, scalar_prefetch = 0 : i64, scratch_operands = 1 : i64, tpu.core_type = #tpu.core_type<tc>, window_params = [{transform_indices = @transform_0, window_bounds = array<i64: 8, 256>}, {transform_indices = @transform_1, window_bounds = array<i64: 256, 256>}, {transform_indices = @transform_2, window_bounds = array<i64: 8, 256>}, {transform_indices = @transform_3, window_bounds = array<i64: 8, 256>}, {transform_indices = @transform_4, window_bounds = array<i64: 8, 256>}]} {
    %c0_i32 = arith.constant 0 : i32
    %0 = arith.cmpi eq, %arg2, %c0_i32 : i32
    %1 = arith.extui %0 : i1 to i32
    %c0_i32_0 = arith.constant 0 : i32
    %2 = arith.cmpi ne, %1, %c0_i32_0 : i32
    scf.if %2 {
      %cst_9 = arith.constant 0.000000e+00 : f32
      %12 = vector.broadcast %cst_9 : f32 to vector<8x256xf32>
      %c0_10 = arith.constant 0 : index
      %c0_11 = arith.constant 0 : index
      %13 = vector.load %arg8[%c0_10, %c0_11] : memref<8x256xf32, #tpu.memory_space<vmem>>, vector<8x256xf32>
      tpu.vector_store %arg8[%c0_10, %c0_11], %12 {strides = array<i32>} : memref<8x256xf32, #tpu.memory_space<vmem>>, vector<8x256xf32>,
    } else {
    }
    %c0 = arith.constant 0 : index
    %c0_1 = arith.constant 0 : index
    %3 = vector.load %arg8[%c0, %c0_1] : memref<8x256xf32, #tpu.memory_space<vmem>>, vector<8x256xf32>
    %c0_2 = arith.constant 0 : index
    %c0_3 = arith.constant 0 : index
    %4 = vector.load %arg3[%c0_2, %c0_3] : memref<8x256xbf16, #tpu.memory_space<vmem>>, vector<8x256xbf16>
    %c0_4 = arith.constant 0 : index
    %c0_5 = arith.constant 0 : index
    %5 = vector.load %arg4[%c0_4, %c0_5] : memref<256x256xbf16, #tpu.memory_space<vmem>>, vector<256x256xbf16>
    %cst = arith.constant dense<0.000000e+00> : vector<8x256xf32>
    %6 = tpu.matmul %4, %5, %cst {dimension_numbers = #tpu.dot_dimension_numbers<[1], [0], [0], [1], [0, 0, 1, 1], [], []>} : vector<8x256xbf16>, vector<256x256xbf16>, vector<8x256xf32> -> vector<8x256xf32>
    %7 = arith.addf %3, %6 : vector<8x256xf32>
    %c0_6 = arith.constant 0 : index
    %c0_7 = arith.constant 0 : index
    %8 = vector.load %arg8[%c0_6, %c0_7] : memref<8x256xf32, #tpu.memory_space<vmem>>, vector<8x256xf32>
    tpu.vector_store %arg8[%c0_6, %c0_7], %7 {strides = array<i32>} : memref<8x256xf32, #tpu.memory_space<vmem>>, vector<8x256xf32>,
    %c4_i32 = arith.constant 4 : i32
    %9 = arith.cmpi eq, %arg2, %c4_i32 : i32
    %10 = arith.extui %9 : i1 to i32
    %c0_i32_8 = arith.constant 0 : i32
    %11 = arith.cmpi ne, %10, %c0_i32_8 : i32
    scf.if %11 {
      %c0_9 = arith.constant 0 : index
      %c0_10 = arith.constant 0 : index
      %12 = vector.load %arg8[%c0_9, %c0_10] : memref<8x256xf32, #tpu.memory_space<vmem>>, vector<8x256xf32>
      %13 = arith.truncf %12 : vector<8x256xf32> to vector<8x256xbf16>
      %c0_11 = arith.constant 0 : index
      %c0_12 = arith.constant 0 : index
      %14 = vector.load %arg5[%c0_11, %c0_12] : memref<8x256xbf16, #tpu.memory_space<vmem>>, vector<8x256xbf16>
      tpu.vector_store %arg5[%c0_11, %c0_12], %13 {strides = array<i32>} : memref<8x256xbf16, #tpu.memory_space<vmem>>, vector<8x256xbf16>,
      %cst_13 = arith.constant dense<0.000000e+00> : vector<256xf32>
      %15 = vector.multi_reduction <add>, %12, %cst_13 [0] : vector<8x256xf32> to vector<256xf32>
      %16 = vector.shape_cast %15 : vector<256xf32> to vector<1x256xf32>
      %17 = vector.shape_cast %16 : vector<1x256xf32> to vector<1x256xf32>
      %18 = vector.broadcast %17 : vector<1x256xf32> to vector<8x256xf32>
      %c0_14 = arith.constant 0 : index
      %c0_15 = arith.constant 0 : index
      %19 = vector.load %arg6[%c0_14, %c0_15] : memref<8x256xf32, #tpu.memory_space<vmem>>, vector<8x256xf32>
      tpu.vector_store %arg6[%c0_14, %c0_15], %18 {strides = array<i32>} : memref<8x256xf32, #tpu.memory_space<vmem>>, vector<8x256xf32>,
      %20 = arith.mulf %12, %12 : vector<8x256xf32>
      %cst_16 = arith.constant dense<0.000000e+00> : vector<256xf32>
      %21 = vector.multi_reduction <add>, %20, %cst_16 [0] : vector<8x256xf32> to vector<256xf32>
      %22 = vector.shape_cast %21 : vector<256xf32> to vector<1x256xf32>
      %23 = vector.shape_cast %22 : vector<1x256xf32> to vector<1x256xf32>
      %24 = vector.broadcast %23 : vector<1x256xf32> to vector<8x256xf32>
      %c0_17 = arith.constant 0 : index
      %c0_18 = arith.constant 0 : index
      %25 = vector.load %arg7[%c0_17, %c0_18] : memref<8x256xf32, #tpu.memory_space<vmem>>, vector<8x256xf32>
      tpu.vector_store %arg7[%c0_17, %c0_18], %24 {strides = array<i32>} : memref<8x256xf32, #tpu.memory_space<vmem>>, vector<8x256xf32>,
    } else {
    }
    return
  }
  func.func @transform_0(%arg0: i32, %arg1: i32, %arg2: i32) -> (i32, i32) {
    %c0_i32 = arith.constant 0 : i32
    return %arg0, %arg2 : i32, i32
  }
  func.func @transform_1(%arg0: i32, %arg1: i32, %arg2: i32) -> (i32, i32) {
    %c0_i32 = arith.constant 0 : i32
    return %arg2, %arg1 : i32, i32
  }
  func.func @transform_2(%arg0: i32, %arg1: i32, %arg2: i32) -> (i32, i32) {
    %c0_i32 = arith.constant 0 : i32
    return %arg0, %arg1 : i32, i32
  }
  func.func @transform_3(%arg0: i32, %arg1: i32, %arg2: i32) -> (i32, i32) {
    %c0_i32 = arith.constant 0 : i32
    return %arg0, %arg1 : i32, i32
  }
  func.func @transform_4(%arg0: i32, %arg1: i32, %arg2: i32) -> (i32, i32) {
    %c0_i32 = arith.constant 0 : i32
    return %arg0, %arg1 : i32, i32
  }
}

module attributes {stable_mosaic.version = 11 : i64} {
  func.func @kernel(%arg0: i32, %arg1: i32, %arg2: memref<8x256xbf16, #tpu.memory_space<vmem>>, %arg3: memref<1x256xf32, #tpu.memory_space<vmem>>, %arg4: memref<1x256xf32, #tpu.memory_space<vmem>>, %arg5: memref<8x256xbf16, #tpu.memory_space<vmem>>) attributes {dimension_semantics = [#tpu.dimension_semantics<parallel>, #tpu.dimension_semantics<parallel>], iteration_bounds = array<i64: 1, 1>, scalar_prefetch = 0 : i64, scratch_operands = 0 : i64, tpu.core_type = #tpu.core_type<tc>, window_params = [{transform_indices = @transform_0, window_bounds = array<i64: 8, 256>}, {transform_indices = @transform_1, window_bounds = array<i64: 1, 256>}, {transform_indices = @transform_2, window_bounds = array<i64: 1, 256>}, {transform_indices = @transform_3, window_bounds = array<i64: 8, 256>}]} {
    %c0 = arith.constant 0 : index
    %c0_0 = arith.constant 0 : index
    %0 = vector.load %arg2[%c0, %c0_0] : memref<8x256xbf16, #tpu.memory_space<vmem>>, vector<8x256xbf16>
    %1 = arith.extf %0 : vector<8x256xbf16> to vector<8x256xf32>
    %c0_1 = arith.constant 0 : index
    %c0_2 = arith.constant 0 : index
    %2 = vector.load %arg3[%c0_1, %c0_2] : memref<1x256xf32, #tpu.memory_space<vmem>>, vector<1x256xf32>
    %3 = vector.broadcast %2 : vector<1x256xf32> to vector<8x256xf32>
    %4 = arith.mulf %1, %3 : vector<8x256xf32>
    %c0_3 = arith.constant 0 : index
    %c0_4 = arith.constant 0 : index
    %5 = vector.load %arg4[%c0_3, %c0_4] : memref<1x256xf32, #tpu.memory_space<vmem>>, vector<1x256xf32>
    %6 = vector.broadcast %5 : vector<1x256xf32> to vector<8x256xf32>
    %7 = arith.addf %4, %6 : vector<8x256xf32>
    %cst = arith.constant 0.000000e+00 : f32
    %8 = vector.broadcast %cst : f32 to vector<8x256xf32>
    %9 = arith.maximumf %7, %8 : vector<8x256xf32>
    %10 = arith.truncf %9 : vector<8x256xf32> to vector<8x256xbf16>
    %c0_5 = arith.constant 0 : index
    %c0_6 = arith.constant 0 : index
    %11 = vector.load %arg5[%c0_5, %c0_6] : memref<8x256xbf16, #tpu.memory_space<vmem>>, vector<8x256xbf16>
    tpu.vector_store %arg5[%c0_5, %c0_6], %10 {strides = array<i32>} : memref<8x256xbf16, #tpu.memory_space<vmem>>, vector<8x256xbf16>,
    return
  }
  func.func @transform_0(%arg0: i32, %arg1: i32) -> (i32, i32) {
    %c0_i32 = arith.constant 0 : i32
    return %arg0, %arg1 : i32, i32
  }
  func.func @transform_1(%arg0: i32, %arg1: i32) -> (i32, i32) {
    %c0_i32 = arith.constant 0 : i32
    %c0_i32_0 = arith.constant 0 : i32
    return %c0_i32, %arg1 : i32, i32
  }
  func.func @transform_2(%arg0: i32, %arg1: i32) -> (i32, i32) {
    %c0_i32 = arith.constant 0 : i32
    %c0_i32_0 = arith.constant 0 : i32
    return %c0_i32, %arg1 : i32, i32
  }
  func.func @transform_3(%arg0: i32, %arg1: i32) -> (i32, i32) {
    %c0_i32 = arith.constant 0 : i32
    return %arg0, %arg1 : i32, i32
  }
}

module attributes {stable_mosaic.version = 11 : i64} {
  func.func @_gemm_stats_kernel(%arg0: i32, %arg1: i32, %arg2: i32, %arg3: memref<8x512xbf16, #tpu.memory_space<vmem>>, %arg4: memref<512x256xbf16, #tpu.memory_space<vmem>>, %arg5: memref<8x256xbf16, #tpu.memory_space<vmem>>, %arg6: memref<8x256xf32, #tpu.memory_space<vmem>>, %arg7: memref<8x256xf32, #tpu.memory_space<vmem>>, %arg8: memref<8x256xf32, #tpu.memory_space<vmem>>) attributes {dimension_semantics = [#tpu.dimension_semantics<parallel>, #tpu.dimension_semantics<parallel>, #tpu.dimension_semantics<arbitrary>], iteration_bounds = array<i64: 1, 1, 5>, scalar_prefetch = 0 : i64, scratch_operands = 1 : i64, tpu.core_type = #tpu.core_type<tc>, window_params = [{transform_indices = @transform_0, window_bounds = array<i64: 8, 512>}, {transform_indices = @transform_1, window_bounds = array<i64: 512, 256>}, {transform_indices = @transform_2, window_bounds = array<i64: 8, 256>}, {transform_indices = @transform_3, window_bounds = array<i64: 8, 256>}, {transform_indices = @transform_4, window_bounds = array<i64: 8, 256>}]} {
    %c0_i32 = arith.constant 0 : i32
    %0 = arith.cmpi eq, %arg2, %c0_i32 : i32
    %1 = arith.extui %0 : i1 to i32
    %c0_i32_0 = arith.constant 0 : i32
    %2 = arith.cmpi ne, %1, %c0_i32_0 : i32
    scf.if %2 {
      %cst_9 = arith.constant 0.000000e+00 : f32
      %12 = vector.broadcast %cst_9 : f32 to vector<8x256xf32>
      %c0_10 = arith.constant 0 : index
      %c0_11 = arith.constant 0 : index
      %13 = vector.load %arg8[%c0_10, %c0_11] : memref<8x256xf32, #tpu.memory_space<vmem>>, vector<8x256xf32>
      tpu.vector_store %arg8[%c0_10, %c0_11], %12 {strides = array<i32>} : memref<8x256xf32, #tpu.memory_space<vmem>>, vector<8x256xf32>,
    } else {
    }
    %c0 = arith.constant 0 : index
    %c0_1 = arith.constant 0 : index
    %3 = vector.load %arg8[%c0, %c0_1] : memref<8x256xf32, #tpu.memory_space<vmem>>, vector<8x256xf32>
    %c0_2 = arith.constant 0 : index
    %c0_3 = arith.constant 0 : index
    %4 = vector.load %arg3[%c0_2, %c0_3] : memref<8x512xbf16, #tpu.memory_space<vmem>>, vector<8x512xbf16>
    %c0_4 = arith.constant 0 : index
    %c0_5 = arith.constant 0 : index
    %5 = vector.load %arg4[%c0_4, %c0_5] : memref<512x256xbf16, #tpu.memory_space<vmem>>, vector<512x256xbf16>
    %cst = arith.constant dense<0.000000e+00> : vector<8x256xf32>
    %6 = tpu.matmul %4, %5, %cst {dimension_numbers = #tpu.dot_dimension_numbers<[1], [0], [0], [1], [0, 0, 1, 1], [], []>} : vector<8x512xbf16>, vector<512x256xbf16>, vector<8x256xf32> -> vector<8x256xf32>
    %7 = arith.addf %3, %6 : vector<8x256xf32>
    %c0_6 = arith.constant 0 : index
    %c0_7 = arith.constant 0 : index
    %8 = vector.load %arg8[%c0_6, %c0_7] : memref<8x256xf32, #tpu.memory_space<vmem>>, vector<8x256xf32>
    tpu.vector_store %arg8[%c0_6, %c0_7], %7 {strides = array<i32>} : memref<8x256xf32, #tpu.memory_space<vmem>>, vector<8x256xf32>,
    %c4_i32 = arith.constant 4 : i32
    %9 = arith.cmpi eq, %arg2, %c4_i32 : i32
    %10 = arith.extui %9 : i1 to i32
    %c0_i32_8 = arith.constant 0 : i32
    %11 = arith.cmpi ne, %10, %c0_i32_8 : i32
    scf.if %11 {
      %c0_9 = arith.constant 0 : index
      %c0_10 = arith.constant 0 : index
      %12 = vector.load %arg8[%c0_9, %c0_10] : memref<8x256xf32, #tpu.memory_space<vmem>>, vector<8x256xf32>
      %13 = arith.truncf %12 : vector<8x256xf32> to vector<8x256xbf16>
      %c0_11 = arith.constant 0 : index
      %c0_12 = arith.constant 0 : index
      %14 = vector.load %arg5[%c0_11, %c0_12] : memref<8x256xbf16, #tpu.memory_space<vmem>>, vector<8x256xbf16>
      tpu.vector_store %arg5[%c0_11, %c0_12], %13 {strides = array<i32>} : memref<8x256xbf16, #tpu.memory_space<vmem>>, vector<8x256xbf16>,
      %cst_13 = arith.constant dense<0.000000e+00> : vector<256xf32>
      %15 = vector.multi_reduction <add>, %12, %cst_13 [0] : vector<8x256xf32> to vector<256xf32>
      %16 = vector.shape_cast %15 : vector<256xf32> to vector<1x256xf32>
      %17 = vector.shape_cast %16 : vector<1x256xf32> to vector<1x256xf32>
      %18 = vector.broadcast %17 : vector<1x256xf32> to vector<8x256xf32>
      %c0_14 = arith.constant 0 : index
      %c0_15 = arith.constant 0 : index
      %19 = vector.load %arg6[%c0_14, %c0_15] : memref<8x256xf32, #tpu.memory_space<vmem>>, vector<8x256xf32>
      tpu.vector_store %arg6[%c0_14, %c0_15], %18 {strides = array<i32>} : memref<8x256xf32, #tpu.memory_space<vmem>>, vector<8x256xf32>,
      %20 = arith.mulf %12, %12 : vector<8x256xf32>
      %cst_16 = arith.constant dense<0.000000e+00> : vector<256xf32>
      %21 = vector.multi_reduction <add>, %20, %cst_16 [0] : vector<8x256xf32> to vector<256xf32>
      %22 = vector.shape_cast %21 : vector<256xf32> to vector<1x256xf32>
      %23 = vector.shape_cast %22 : vector<1x256xf32> to vector<1x256xf32>
      %24 = vector.broadcast %23 : vector<1x256xf32> to vector<8x256xf32>
      %c0_17 = arith.constant 0 : index
      %c0_18 = arith.constant 0 : index
      %25 = vector.load %arg7[%c0_17, %c0_18] : memref<8x256xf32, #tpu.memory_space<vmem>>, vector<8x256xf32>
      tpu.vector_store %arg7[%c0_17, %c0_18], %24 {strides = array<i32>} : memref<8x256xf32, #tpu.memory_space<vmem>>, vector<8x256xf32>,
    } else {
    }
    return
  }
  func.func @transform_0(%arg0: i32, %arg1: i32, %arg2: i32) -> (i32, i32) {
    %c0_i32 = arith.constant 0 : i32
    return %arg0, %arg2 : i32, i32
  }
  func.func @transform_1(%arg0: i32, %arg1: i32, %arg2: i32) -> (i32, i32) {
    %c0_i32 = arith.constant 0 : i32
    return %arg2, %arg1 : i32, i32
  }
  func.func @transform_2(%arg0: i32, %arg1: i32, %arg2: i32) -> (i32, i32) {
    %c0_i32 = arith.constant 0 : i32
    return %arg0, %arg1 : i32, i32
  }
  func.func @transform_3(%arg0: i32, %arg1: i32, %arg2: i32) -> (i32, i32) {
    %c0_i32 = arith.constant 0 : i32
    return %arg0, %arg1 : i32, i32
  }
  func.func @transform_4(%arg0: i32, %arg1: i32, %arg2: i32) -> (i32, i32) {
    %c0_i32 = arith.constant 0 : i32
    return %arg0, %arg1 : i32, i32
  }
}

module attributes {stable_mosaic.version = 11 : i64} {
  func.func @kernel(%arg0: i32, %arg1: i32, %arg2: memref<8x256xbf16, #tpu.memory_space<vmem>>, %arg3: memref<1x256xf32, #tpu.memory_space<vmem>>, %arg4: memref<1x256xf32, #tpu.memory_space<vmem>>, %arg5: memref<8x256xbf16, #tpu.memory_space<vmem>>, %arg6: memref<8x256xbf16, #tpu.memory_space<vmem>>) attributes {dimension_semantics = [#tpu.dimension_semantics<parallel>, #tpu.dimension_semantics<parallel>], iteration_bounds = array<i64: 1, 1>, scalar_prefetch = 0 : i64, scratch_operands = 0 : i64, tpu.core_type = #tpu.core_type<tc>, window_params = [{transform_indices = @transform_0, window_bounds = array<i64: 8, 256>}, {transform_indices = @transform_1, window_bounds = array<i64: 1, 256>}, {transform_indices = @transform_2, window_bounds = array<i64: 1, 256>}, {transform_indices = @transform_3, window_bounds = array<i64: 8, 256>}, {transform_indices = @transform_4, window_bounds = array<i64: 8, 256>}]} {
    %c0 = arith.constant 0 : index
    %c0_0 = arith.constant 0 : index
    %0 = vector.load %arg2[%c0, %c0_0] : memref<8x256xbf16, #tpu.memory_space<vmem>>, vector<8x256xbf16>
    %1 = arith.extf %0 : vector<8x256xbf16> to vector<8x256xf32>
    %c0_1 = arith.constant 0 : index
    %c0_2 = arith.constant 0 : index
    %2 = vector.load %arg3[%c0_1, %c0_2] : memref<1x256xf32, #tpu.memory_space<vmem>>, vector<1x256xf32>
    %3 = vector.broadcast %2 : vector<1x256xf32> to vector<8x256xf32>
    %4 = arith.mulf %1, %3 : vector<8x256xf32>
    %c0_3 = arith.constant 0 : index
    %c0_4 = arith.constant 0 : index
    %5 = vector.load %arg4[%c0_3, %c0_4] : memref<1x256xf32, #tpu.memory_space<vmem>>, vector<1x256xf32>
    %6 = vector.broadcast %5 : vector<1x256xf32> to vector<8x256xf32>
    %7 = arith.addf %4, %6 : vector<8x256xf32>
    %c0_5 = arith.constant 0 : index
    %c0_6 = arith.constant 0 : index
    %8 = vector.load %arg5[%c0_5, %c0_6] : memref<8x256xbf16, #tpu.memory_space<vmem>>, vector<8x256xbf16>
    %9 = arith.extf %8 : vector<8x256xbf16> to vector<8x256xf32>
    %10 = arith.addf %7, %9 : vector<8x256xf32>
    %cst = arith.constant 0.000000e+00 : f32
    %11 = vector.broadcast %cst : f32 to vector<8x256xf32>
    %12 = arith.maximumf %10, %11 : vector<8x256xf32>
    %13 = arith.truncf %12 : vector<8x256xf32> to vector<8x256xbf16>
    %c0_7 = arith.constant 0 : index
    %c0_8 = arith.constant 0 : index
    %14 = vector.load %arg6[%c0_7, %c0_8] : memref<8x256xbf16, #tpu.memory_space<vmem>>, vector<8x256xbf16>
    tpu.vector_store %arg6[%c0_7, %c0_8], %13 {strides = array<i32>} : memref<8x256xbf16, #tpu.memory_space<vmem>>, vector<8x256xbf16>,
    return
  }
  func.func @transform_0(%arg0: i32, %arg1: i32) -> (i32, i32) {
    %c0_i32 = arith.constant 0 : i32
    return %arg0, %arg1 : i32, i32
  }
  func.func @transform_1(%arg0: i32, %arg1: i32) -> (i32, i32) {
    %c0_i32 = arith.constant 0 : i32
    %c0_i32_0 = arith.constant 0 : i32
    return %c0_i32, %arg1 : i32, i32
  }
  func.func @transform_2(%arg0: i32, %arg1: i32) -> (i32, i32) {
    %c0_i32 = arith.constant 0 : i32
    %c0_i32_0 = arith.constant 0 : i32
    return %c0_i32, %arg1 : i32, i32
  }
  func.func @transform_3(%arg0: i32, %arg1: i32) -> (i32, i32) {
    %c0_i32 = arith.constant 0 : i32
    return %arg0, %arg1 : i32, i32
  }
  func.func @transform_4(%arg0: i32, %arg1: i32) -> (i32, i32) {
    %c0_i32 = arith.constant 0 : i32
    return %arg0, %arg1 : i32, i32
  }
}

module attributes {stable_mosaic.version = 11 : i64} {
  func.func @_gemm_stats_kernel(%arg0: i32, %arg1: i32, %arg2: i32, %arg3: memref<8x256xbf16, #tpu.memory_space<vmem>>, %arg4: memref<256x256xbf16, #tpu.memory_space<vmem>>, %arg5: memref<8x256xbf16, #tpu.memory_space<vmem>>, %arg6: memref<8x256xf32, #tpu.memory_space<vmem>>, %arg7: memref<8x256xf32, #tpu.memory_space<vmem>>, %arg8: memref<8x256xf32, #tpu.memory_space<vmem>>) attributes {dimension_semantics = [#tpu.dimension_semantics<parallel>, #tpu.dimension_semantics<parallel>, #tpu.dimension_semantics<arbitrary>], iteration_bounds = array<i64: 1, 2, 1>, scalar_prefetch = 0 : i64, scratch_operands = 1 : i64, tpu.core_type = #tpu.core_type<tc>, window_params = [{transform_indices = @transform_0, window_bounds = array<i64: 8, 256>}, {transform_indices = @transform_1, window_bounds = array<i64: 256, 256>}, {transform_indices = @transform_2, window_bounds = array<i64: 8, 256>}, {transform_indices = @transform_3, window_bounds = array<i64: 8, 256>}, {transform_indices = @transform_4, window_bounds = array<i64: 8, 256>}]} {
    %c0_i32 = arith.constant 0 : i32
    %0 = arith.cmpi eq, %arg2, %c0_i32 : i32
    %1 = arith.extui %0 : i1 to i32
    %c0_i32_0 = arith.constant 0 : i32
    %2 = arith.cmpi ne, %1, %c0_i32_0 : i32
    scf.if %2 {
      %cst_10 = arith.constant 0.000000e+00 : f32
      %12 = vector.broadcast %cst_10 : f32 to vector<8x256xf32>
      %c0_11 = arith.constant 0 : index
      %c0_12 = arith.constant 0 : index
      %13 = vector.load %arg8[%c0_11, %c0_12] : memref<8x256xf32, #tpu.memory_space<vmem>>, vector<8x256xf32>
      tpu.vector_store %arg8[%c0_11, %c0_12], %12 {strides = array<i32>} : memref<8x256xf32, #tpu.memory_space<vmem>>, vector<8x256xf32>,
    } else {
    }
    %c0 = arith.constant 0 : index
    %c0_1 = arith.constant 0 : index
    %3 = vector.load %arg8[%c0, %c0_1] : memref<8x256xf32, #tpu.memory_space<vmem>>, vector<8x256xf32>
    %c0_2 = arith.constant 0 : index
    %c0_3 = arith.constant 0 : index
    %4 = vector.load %arg3[%c0_2, %c0_3] : memref<8x256xbf16, #tpu.memory_space<vmem>>, vector<8x256xbf16>
    %c0_4 = arith.constant 0 : index
    %c0_5 = arith.constant 0 : index
    %5 = vector.load %arg4[%c0_4, %c0_5] : memref<256x256xbf16, #tpu.memory_space<vmem>>, vector<256x256xbf16>
    %cst = arith.constant dense<0.000000e+00> : vector<8x256xf32>
    %6 = tpu.matmul %4, %5, %cst {dimension_numbers = #tpu.dot_dimension_numbers<[1], [0], [0], [1], [0, 0, 1, 1], [], []>} : vector<8x256xbf16>, vector<256x256xbf16>, vector<8x256xf32> -> vector<8x256xf32>
    %7 = arith.addf %3, %6 : vector<8x256xf32>
    %c0_6 = arith.constant 0 : index
    %c0_7 = arith.constant 0 : index
    %8 = vector.load %arg8[%c0_6, %c0_7] : memref<8x256xf32, #tpu.memory_space<vmem>>, vector<8x256xf32>
    tpu.vector_store %arg8[%c0_6, %c0_7], %7 {strides = array<i32>} : memref<8x256xf32, #tpu.memory_space<vmem>>, vector<8x256xf32>,
    %c0_i32_8 = arith.constant 0 : i32
    %9 = arith.cmpi eq, %arg2, %c0_i32_8 : i32
    %10 = arith.extui %9 : i1 to i32
    %c0_i32_9 = arith.constant 0 : i32
    %11 = arith.cmpi ne, %10, %c0_i32_9 : i32
    scf.if %11 {
      %c0_10 = arith.constant 0 : index
      %c0_11 = arith.constant 0 : index
      %12 = vector.load %arg8[%c0_10, %c0_11] : memref<8x256xf32, #tpu.memory_space<vmem>>, vector<8x256xf32>
      %13 = arith.truncf %12 : vector<8x256xf32> to vector<8x256xbf16>
      %c0_12 = arith.constant 0 : index
      %c0_13 = arith.constant 0 : index
      %14 = vector.load %arg5[%c0_12, %c0_13] : memref<8x256xbf16, #tpu.memory_space<vmem>>, vector<8x256xbf16>
      tpu.vector_store %arg5[%c0_12, %c0_13], %13 {strides = array<i32>} : memref<8x256xbf16, #tpu.memory_space<vmem>>, vector<8x256xbf16>,
      %cst_14 = arith.constant dense<0.000000e+00> : vector<256xf32>
      %15 = vector.multi_reduction <add>, %12, %cst_14 [0] : vector<8x256xf32> to vector<256xf32>
      %16 = vector.shape_cast %15 : vector<256xf32> to vector<1x256xf32>
      %17 = vector.shape_cast %16 : vector<1x256xf32> to vector<1x256xf32>
      %18 = vector.broadcast %17 : vector<1x256xf32> to vector<8x256xf32>
      %c0_15 = arith.constant 0 : index
      %c0_16 = arith.constant 0 : index
      %19 = vector.load %arg6[%c0_15, %c0_16] : memref<8x256xf32, #tpu.memory_space<vmem>>, vector<8x256xf32>
      tpu.vector_store %arg6[%c0_15, %c0_16], %18 {strides = array<i32>} : memref<8x256xf32, #tpu.memory_space<vmem>>, vector<8x256xf32>,
      %20 = arith.mulf %12, %12 : vector<8x256xf32>
      %cst_17 = arith.constant dense<0.000000e+00> : vector<256xf32>
      %21 = vector.multi_reduction <add>, %20, %cst_17 [0] : vector<8x256xf32> to vector<256xf32>
      %22 = vector.shape_cast %21 : vector<256xf32> to vector<1x256xf32>
      %23 = vector.shape_cast %22 : vector<1x256xf32> to vector<1x256xf32>
      %24 = vector.broadcast %23 : vector<1x256xf32> to vector<8x256xf32>
      %c0_18 = arith.constant 0 : index
      %c0_19 = arith.constant 0 : index
      %25 = vector.load %arg7[%c0_18, %c0_19] : memref<8x256xf32, #tpu.memory_space<vmem>>, vector<8x256xf32>
      tpu.vector_store %arg7[%c0_18, %c0_19], %24 {strides = array<i32>} : memref<8x256xf32, #tpu.memory_space<vmem>>, vector<8x256xf32>,
    } else {
    }
    return
  }
  func.func @transform_0(%arg0: i32, %arg1: i32, %arg2: i32) -> (i32, i32) {
    %c0_i32 = arith.constant 0 : i32
    return %arg0, %arg2 : i32, i32
  }
  func.func @transform_1(%arg0: i32, %arg1: i32, %arg2: i32) -> (i32, i32) {
    %c0_i32 = arith.constant 0 : i32
    return %arg2, %arg1 : i32, i32
  }
  func.func @transform_2(%arg0: i32, %arg1: i32, %arg2: i32) -> (i32, i32) {
    %c0_i32 = arith.constant 0 : i32
    return %arg0, %arg1 : i32, i32
  }
  func.func @transform_3(%arg0: i32, %arg1: i32, %arg2: i32) -> (i32, i32) {
    %c0_i32 = arith.constant 0 : i32
    return %arg0, %arg1 : i32, i32
  }
  func.func @transform_4(%arg0: i32, %arg1: i32, %arg2: i32) -> (i32, i32) {
    %c0_i32 = arith.constant 0 : i32
    return %arg0, %arg1 : i32, i32
  }
}

module attributes {stable_mosaic.version = 11 : i64} {
  func.func @kernel(%arg0: i32, %arg1: i32, %arg2: memref<8x256xbf16, #tpu.memory_space<vmem>>, %arg3: memref<1x256xf32, #tpu.memory_space<vmem>>, %arg4: memref<1x256xf32, #tpu.memory_space<vmem>>, %arg5: memref<8x256xbf16, #tpu.memory_space<vmem>>) attributes {dimension_semantics = [#tpu.dimension_semantics<parallel>, #tpu.dimension_semantics<parallel>], iteration_bounds = array<i64: 1, 2>, scalar_prefetch = 0 : i64, scratch_operands = 0 : i64, tpu.core_type = #tpu.core_type<tc>, window_params = [{transform_indices = @transform_0, window_bounds = array<i64: 8, 256>}, {transform_indices = @transform_1, window_bounds = array<i64: 1, 256>}, {transform_indices = @transform_2, window_bounds = array<i64: 1, 256>}, {transform_indices = @transform_3, window_bounds = array<i64: 8, 256>}]} {
    %c0 = arith.constant 0 : index
    %c0_0 = arith.constant 0 : index
    %0 = vector.load %arg2[%c0, %c0_0] : memref<8x256xbf16, #tpu.memory_space<vmem>>, vector<8x256xbf16>
    %1 = arith.extf %0 : vector<8x256xbf16> to vector<8x256xf32>
    %c0_1 = arith.constant 0 : index
    %c0_2 = arith.constant 0 : index
    %2 = vector.load %arg3[%c0_1, %c0_2] : memref<1x256xf32, #tpu.memory_space<vmem>>, vector<1x256xf32>
    %3 = vector.broadcast %2 : vector<1x256xf32> to vector<8x256xf32>
    %4 = arith.mulf %1, %3 : vector<8x256xf32>
    %c0_3 = arith.constant 0 : index
    %c0_4 = arith.constant 0 : index
    %5 = vector.load %arg4[%c0_3, %c0_4] : memref<1x256xf32, #tpu.memory_space<vmem>>, vector<1x256xf32>
    %6 = vector.broadcast %5 : vector<1x256xf32> to vector<8x256xf32>
    %7 = arith.addf %4, %6 : vector<8x256xf32>
    %8 = arith.truncf %7 : vector<8x256xf32> to vector<8x256xbf16>
    %c0_5 = arith.constant 0 : index
    %c0_6 = arith.constant 0 : index
    %9 = vector.load %arg5[%c0_5, %c0_6] : memref<8x256xbf16, #tpu.memory_space<vmem>>, vector<8x256xbf16>
    tpu.vector_store %arg5[%c0_5, %c0_6], %8 {strides = array<i32>} : memref<8x256xbf16, #tpu.memory_space<vmem>>, vector<8x256xbf16>,
    return
  }
  func.func @transform_0(%arg0: i32, %arg1: i32) -> (i32, i32) {
    %c0_i32 = arith.constant 0 : i32
    return %arg0, %arg1 : i32, i32
  }
  func.func @transform_1(%arg0: i32, %arg1: i32) -> (i32, i32) {
    %c0_i32 = arith.constant 0 : i32
    %c0_i32_0 = arith.constant 0 : i32
    return %c0_i32, %arg1 : i32, i32
  }
  func.func @transform_2(%arg0: i32, %arg1: i32) -> (i32, i32) {
    %c0_i32 = arith.constant 0 : i32
    %c0_i32_0 = arith.constant 0 : i32
    return %c0_i32, %arg1 : i32, i32
  }
  func.func @transform_3(%arg0: i32, %arg1: i32) -> (i32, i32) {
    %c0_i32 = arith.constant 0 : i32
    return %arg0, %arg1 : i32, i32
  }
}

module attributes {stable_mosaic.version = 11 : i64} {
  func.func @_gemm_stats_kernel(%arg0: i32, %arg1: i32, %arg2: i32, %arg3: memref<8x512xbf16, #tpu.memory_space<vmem>>, %arg4: memref<512x256xbf16, #tpu.memory_space<vmem>>, %arg5: memref<8x256xbf16, #tpu.memory_space<vmem>>, %arg6: memref<8x256xf32, #tpu.memory_space<vmem>>, %arg7: memref<8x256xf32, #tpu.memory_space<vmem>>, %arg8: memref<8x256xf32, #tpu.memory_space<vmem>>) attributes {dimension_semantics = [#tpu.dimension_semantics<parallel>, #tpu.dimension_semantics<parallel>, #tpu.dimension_semantics<arbitrary>], iteration_bounds = array<i64: 1, 2, 5>, scalar_prefetch = 0 : i64, scratch_operands = 1 : i64, tpu.core_type = #tpu.core_type<tc>, window_params = [{transform_indices = @transform_0, window_bounds = array<i64: 8, 512>}, {transform_indices = @transform_1, window_bounds = array<i64: 512, 256>}, {transform_indices = @transform_2, window_bounds = array<i64: 8, 256>}, {transform_indices = @transform_3, window_bounds = array<i64: 8, 256>}, {transform_indices = @transform_4, window_bounds = array<i64: 8, 256>}]} {
    %c0_i32 = arith.constant 0 : i32
    %0 = arith.cmpi eq, %arg2, %c0_i32 : i32
    %1 = arith.extui %0 : i1 to i32
    %c0_i32_0 = arith.constant 0 : i32
    %2 = arith.cmpi ne, %1, %c0_i32_0 : i32
    scf.if %2 {
      %cst_9 = arith.constant 0.000000e+00 : f32
      %12 = vector.broadcast %cst_9 : f32 to vector<8x256xf32>
      %c0_10 = arith.constant 0 : index
      %c0_11 = arith.constant 0 : index
      %13 = vector.load %arg8[%c0_10, %c0_11] : memref<8x256xf32, #tpu.memory_space<vmem>>, vector<8x256xf32>
      tpu.vector_store %arg8[%c0_10, %c0_11], %12 {strides = array<i32>} : memref<8x256xf32, #tpu.memory_space<vmem>>, vector<8x256xf32>,
    } else {
    }
    %c0 = arith.constant 0 : index
    %c0_1 = arith.constant 0 : index
    %3 = vector.load %arg8[%c0, %c0_1] : memref<8x256xf32, #tpu.memory_space<vmem>>, vector<8x256xf32>
    %c0_2 = arith.constant 0 : index
    %c0_3 = arith.constant 0 : index
    %4 = vector.load %arg3[%c0_2, %c0_3] : memref<8x512xbf16, #tpu.memory_space<vmem>>, vector<8x512xbf16>
    %c0_4 = arith.constant 0 : index
    %c0_5 = arith.constant 0 : index
    %5 = vector.load %arg4[%c0_4, %c0_5] : memref<512x256xbf16, #tpu.memory_space<vmem>>, vector<512x256xbf16>
    %cst = arith.constant dense<0.000000e+00> : vector<8x256xf32>
    %6 = tpu.matmul %4, %5, %cst {dimension_numbers = #tpu.dot_dimension_numbers<[1], [0], [0], [1], [0, 0, 1, 1], [], []>} : vector<8x512xbf16>, vector<512x256xbf16>, vector<8x256xf32> -> vector<8x256xf32>
    %7 = arith.addf %3, %6 : vector<8x256xf32>
    %c0_6 = arith.constant 0 : index
    %c0_7 = arith.constant 0 : index
    %8 = vector.load %arg8[%c0_6, %c0_7] : memref<8x256xf32, #tpu.memory_space<vmem>>, vector<8x256xf32>
    tpu.vector_store %arg8[%c0_6, %c0_7], %7 {strides = array<i32>} : memref<8x256xf32, #tpu.memory_space<vmem>>, vector<8x256xf32>,
    %c4_i32 = arith.constant 4 : i32
    %9 = arith.cmpi eq, %arg2, %c4_i32 : i32
    %10 = arith.extui %9 : i1 to i32
    %c0_i32_8 = arith.constant 0 : i32
    %11 = arith.cmpi ne, %10, %c0_i32_8 : i32
    scf.if %11 {
      %c0_9 = arith.constant 0 : index
      %c0_10 = arith.constant 0 : index
      %12 = vector.load %arg8[%c0_9, %c0_10] : memref<8x256xf32, #tpu.memory_space<vmem>>, vector<8x256xf32>
      %13 = arith.truncf %12 : vector<8x256xf32> to vector<8x256xbf16>
      %c0_11 = arith.constant 0 : index
      %c0_12 = arith.constant 0 : index
      %14 = vector.load %arg5[%c0_11, %c0_12] : memref<8x256xbf16, #tpu.memory_space<vmem>>, vector<8x256xbf16>
      tpu.vector_store %arg5[%c0_11, %c0_12], %13 {strides = array<i32>} : memref<8x256xbf16, #tpu.memory_space<vmem>>, vector<8x256xbf16>,
      %cst_13 = arith.constant dense<0.000000e+00> : vector<256xf32>
      %15 = vector.multi_reduction <add>, %12, %cst_13 [0] : vector<8x256xf32> to vector<256xf32>
      %16 = vector.shape_cast %15 : vector<256xf32> to vector<1x256xf32>
      %17 = vector.shape_cast %16 : vector<1x256xf32> to vector<1x256xf32>
      %18 = vector.broadcast %17 : vector<1x256xf32> to vector<8x256xf32>
      %c0_14 = arith.constant 0 : index
      %c0_15 = arith.constant 0 : index
      %19 = vector.load %arg6[%c0_14, %c0_15] : memref<8x256xf32, #tpu.memory_space<vmem>>, vector<8x256xf32>
      tpu.vector_store %arg6[%c0_14, %c0_15], %18 {strides = array<i32>} : memref<8x256xf32, #tpu.memory_space<vmem>>, vector<8x256xf32>,
      %20 = arith.mulf %12, %12 : vector<8x256xf32>
      %cst_16 = arith.constant dense<0.000000e+00> : vector<256xf32>
      %21 = vector.multi_reduction <add>, %20, %cst_16 [0] : vector<8x256xf32> to vector<256xf32>
      %22 = vector.shape_cast %21 : vector<256xf32> to vector<1x256xf32>
      %23 = vector.shape_cast %22 : vector<1x256xf32> to vector<1x256xf32>
      %24 = vector.broadcast %23 : vector<1x256xf32> to vector<8x256xf32>
      %c0_17 = arith.constant 0 : index
      %c0_18 = arith.constant 0 : index
      %25 = vector.load %arg7[%c0_17, %c0_18] : memref<8x256xf32, #tpu.memory_space<vmem>>, vector<8x256xf32>
      tpu.vector_store %arg7[%c0_17, %c0_18], %24 {strides = array<i32>} : memref<8x256xf32, #tpu.memory_space<vmem>>, vector<8x256xf32>,
    } else {
    }
    return
  }
  func.func @transform_0(%arg0: i32, %arg1: i32, %arg2: i32) -> (i32, i32) {
    %c0_i32 = arith.constant 0 : i32
    return %arg0, %arg2 : i32, i32
  }
  func.func @transform_1(%arg0: i32, %arg1: i32, %arg2: i32) -> (i32, i32) {
    %c0_i32 = arith.constant 0 : i32
    return %arg2, %arg1 : i32, i32
  }
  func.func @transform_2(%arg0: i32, %arg1: i32, %arg2: i32) -> (i32, i32) {
    %c0_i32 = arith.constant 0 : i32
    return %arg0, %arg1 : i32, i32
  }
  func.func @transform_3(%arg0: i32, %arg1: i32, %arg2: i32) -> (i32, i32) {
    %c0_i32 = arith.constant 0 : i32
    return %arg0, %arg1 : i32, i32
  }
  func.func @transform_4(%arg0: i32, %arg1: i32, %arg2: i32) -> (i32, i32) {
    %c0_i32 = arith.constant 0 : i32
    return %arg0, %arg1 : i32, i32
  }
}

module attributes {stable_mosaic.version = 11 : i64} {
  func.func @kernel(%arg0: i32, %arg1: i32, %arg2: memref<8x256xbf16, #tpu.memory_space<vmem>>, %arg3: memref<1x256xf32, #tpu.memory_space<vmem>>, %arg4: memref<1x256xf32, #tpu.memory_space<vmem>>, %arg5: memref<8x256xbf16, #tpu.memory_space<vmem>>) attributes {dimension_semantics = [#tpu.dimension_semantics<parallel>, #tpu.dimension_semantics<parallel>], iteration_bounds = array<i64: 1, 2>, scalar_prefetch = 0 : i64, scratch_operands = 0 : i64, tpu.core_type = #tpu.core_type<tc>, window_params = [{transform_indices = @transform_0, window_bounds = array<i64: 8, 256>}, {transform_indices = @transform_1, window_bounds = array<i64: 1, 256>}, {transform_indices = @transform_2, window_bounds = array<i64: 1, 256>}, {transform_indices = @transform_3, window_bounds = array<i64: 8, 256>}]} {
    %c0 = arith.constant 0 : index
    %c0_0 = arith.constant 0 : index
    %0 = vector.load %arg2[%c0, %c0_0] : memref<8x256xbf16, #tpu.memory_space<vmem>>, vector<8x256xbf16>
    %1 = arith.extf %0 : vector<8x256xbf16> to vector<8x256xf32>
    %c0_1 = arith.constant 0 : index
    %c0_2 = arith.constant 0 : index
    %2 = vector.load %arg3[%c0_1, %c0_2] : memref<1x256xf32, #tpu.memory_space<vmem>>, vector<1x256xf32>
    %3 = vector.broadcast %2 : vector<1x256xf32> to vector<8x256xf32>
    %4 = arith.mulf %1, %3 : vector<8x256xf32>
    %c0_3 = arith.constant 0 : index
    %c0_4 = arith.constant 0 : index
    %5 = vector.load %arg4[%c0_3, %c0_4] : memref<1x256xf32, #tpu.memory_space<vmem>>, vector<1x256xf32>
    %6 = vector.broadcast %5 : vector<1x256xf32> to vector<8x256xf32>
    %7 = arith.addf %4, %6 : vector<8x256xf32>
    %cst = arith.constant 0.000000e+00 : f32
    %8 = vector.broadcast %cst : f32 to vector<8x256xf32>
    %9 = arith.maximumf %7, %8 : vector<8x256xf32>
    %10 = arith.truncf %9 : vector<8x256xf32> to vector<8x256xbf16>
    %c0_5 = arith.constant 0 : index
    %c0_6 = arith.constant 0 : index
    %11 = vector.load %arg5[%c0_5, %c0_6] : memref<8x256xbf16, #tpu.memory_space<vmem>>, vector<8x256xbf16>
    tpu.vector_store %arg5[%c0_5, %c0_6], %10 {strides = array<i32>} : memref<8x256xbf16, #tpu.memory_space<vmem>>, vector<8x256xbf16>,
    return
  }
  func.func @transform_0(%arg0: i32, %arg1: i32) -> (i32, i32) {
    %c0_i32 = arith.constant 0 : i32
    return %arg0, %arg1 : i32, i32
  }
  func.func @transform_1(%arg0: i32, %arg1: i32) -> (i32, i32) {
    %c0_i32 = arith.constant 0 : i32
    %c0_i32_0 = arith.constant 0 : i32
    return %c0_i32, %arg1 : i32, i32
  }
  func.func @transform_2(%arg0: i32, %arg1: i32) -> (i32, i32) {
    %c0_i32 = arith.constant 0 : i32
    %c0_i32_0 = arith.constant 0 : i32
    return %c0_i32, %arg1 : i32, i32
  }
  func.func @transform_3(%arg0: i32, %arg1: i32) -> (i32, i32) {
    %c0_i32 = arith.constant 0 : i32
    return %arg0, %arg1 : i32, i32
  }
}

module attributes {stable_mosaic.version = 11 : i64} {
  func.func @_gemm_stats_kernel(%arg0: i32, %arg1: i32, %arg2: i32, %arg3: memref<8x512xbf16, #tpu.memory_space<vmem>>, %arg4: memref<512x256xbf16, #tpu.memory_space<vmem>>, %arg5: memref<8x256xbf16, #tpu.memory_space<vmem>>, %arg6: memref<8x256xf32, #tpu.memory_space<vmem>>, %arg7: memref<8x256xf32, #tpu.memory_space<vmem>>, %arg8: memref<8x256xf32, #tpu.memory_space<vmem>>) attributes {dimension_semantics = [#tpu.dimension_semantics<parallel>, #tpu.dimension_semantics<parallel>, #tpu.dimension_semantics<arbitrary>], iteration_bounds = array<i64: 1, 2, 9>, scalar_prefetch = 0 : i64, scratch_operands = 1 : i64, tpu.core_type = #tpu.core_type<tc>, window_params = [{transform_indices = @transform_0, window_bounds = array<i64: 8, 512>}, {transform_indices = @transform_1, window_bounds = array<i64: 512, 256>}, {transform_indices = @transform_2, window_bounds = array<i64: 8, 256>}, {transform_indices = @transform_3, window_bounds = array<i64: 8, 256>}, {transform_indices = @transform_4, window_bounds = array<i64: 8, 256>}]} {
    %c0_i32 = arith.constant 0 : i32
    %0 = arith.cmpi eq, %arg2, %c0_i32 : i32
    %1 = arith.extui %0 : i1 to i32
    %c0_i32_0 = arith.constant 0 : i32
    %2 = arith.cmpi ne, %1, %c0_i32_0 : i32
    scf.if %2 {
      %cst_9 = arith.constant 0.000000e+00 : f32
      %12 = vector.broadcast %cst_9 : f32 to vector<8x256xf32>
      %c0_10 = arith.constant 0 : index
      %c0_11 = arith.constant 0 : index
      %13 = vector.load %arg8[%c0_10, %c0_11] : memref<8x256xf32, #tpu.memory_space<vmem>>, vector<8x256xf32>
      tpu.vector_store %arg8[%c0_10, %c0_11], %12 {strides = array<i32>} : memref<8x256xf32, #tpu.memory_space<vmem>>, vector<8x256xf32>,
    } else {
    }
    %c0 = arith.constant 0 : index
    %c0_1 = arith.constant 0 : index
    %3 = vector.load %arg8[%c0, %c0_1] : memref<8x256xf32, #tpu.memory_space<vmem>>, vector<8x256xf32>
    %c0_2 = arith.constant 0 : index
    %c0_3 = arith.constant 0 : index
    %4 = vector.load %arg3[%c0_2, %c0_3] : memref<8x512xbf16, #tpu.memory_space<vmem>>, vector<8x512xbf16>
    %c0_4 = arith.constant 0 : index
    %c0_5 = arith.constant 0 : index
    %5 = vector.load %arg4[%c0_4, %c0_5] : memref<512x256xbf16, #tpu.memory_space<vmem>>, vector<512x256xbf16>
    %cst = arith.constant dense<0.000000e+00> : vector<8x256xf32>
    %6 = tpu.matmul %4, %5, %cst {dimension_numbers = #tpu.dot_dimension_numbers<[1], [0], [0], [1], [0, 0, 1, 1], [], []>} : vector<8x512xbf16>, vector<512x256xbf16>, vector<8x256xf32> -> vector<8x256xf32>
    %7 = arith.addf %3, %6 : vector<8x256xf32>
    %c0_6 = arith.constant 0 : index
    %c0_7 = arith.constant 0 : index
    %8 = vector.load %arg8[%c0_6, %c0_7] : memref<8x256xf32, #tpu.memory_space<vmem>>, vector<8x256xf32>
    tpu.vector_store %arg8[%c0_6, %c0_7], %7 {strides = array<i32>} : memref<8x256xf32, #tpu.memory_space<vmem>>, vector<8x256xf32>,
    %c8_i32 = arith.constant 8 : i32
    %9 = arith.cmpi eq, %arg2, %c8_i32 : i32
    %10 = arith.extui %9 : i1 to i32
    %c0_i32_8 = arith.constant 0 : i32
    %11 = arith.cmpi ne, %10, %c0_i32_8 : i32
    scf.if %11 {
      %c0_9 = arith.constant 0 : index
      %c0_10 = arith.constant 0 : index
      %12 = vector.load %arg8[%c0_9, %c0_10] : memref<8x256xf32, #tpu.memory_space<vmem>>, vector<8x256xf32>
      %13 = arith.truncf %12 : vector<8x256xf32> to vector<8x256xbf16>
      %c0_11 = arith.constant 0 : index
      %c0_12 = arith.constant 0 : index
      %14 = vector.load %arg5[%c0_11, %c0_12] : memref<8x256xbf16, #tpu.memory_space<vmem>>, vector<8x256xbf16>
      tpu.vector_store %arg5[%c0_11, %c0_12], %13 {strides = array<i32>} : memref<8x256xbf16, #tpu.memory_space<vmem>>, vector<8x256xbf16>,
      %cst_13 = arith.constant dense<0.000000e+00> : vector<256xf32>
      %15 = vector.multi_reduction <add>, %12, %cst_13 [0] : vector<8x256xf32> to vector<256xf32>
      %16 = vector.shape_cast %15 : vector<256xf32> to vector<1x256xf32>
      %17 = vector.shape_cast %16 : vector<1x256xf32> to vector<1x256xf32>
      %18 = vector.broadcast %17 : vector<1x256xf32> to vector<8x256xf32>
      %c0_14 = arith.constant 0 : index
      %c0_15 = arith.constant 0 : index
      %19 = vector.load %arg6[%c0_14, %c0_15] : memref<8x256xf32, #tpu.memory_space<vmem>>, vector<8x256xf32>
      tpu.vector_store %arg6[%c0_14, %c0_15], %18 {strides = array<i32>} : memref<8x256xf32, #tpu.memory_space<vmem>>, vector<8x256xf32>,
      %20 = arith.mulf %12, %12 : vector<8x256xf32>
      %cst_16 = arith.constant dense<0.000000e+00> : vector<256xf32>
      %21 = vector.multi_reduction <add>, %20, %cst_16 [0] : vector<8x256xf32> to vector<256xf32>
      %22 = vector.shape_cast %21 : vector<256xf32> to vector<1x256xf32>
      %23 = vector.shape_cast %22 : vector<1x256xf32> to vector<1x256xf32>
      %24 = vector.broadcast %23 : vector<1x256xf32> to vector<8x256xf32>
      %c0_17 = arith.constant 0 : index
      %c0_18 = arith.constant 0 : index
      %25 = vector.load %arg7[%c0_17, %c0_18] : memref<8x256xf32, #tpu.memory_space<vmem>>, vector<8x256xf32>
      tpu.vector_store %arg7[%c0_17, %c0_18], %24 {strides = array<i32>} : memref<8x256xf32, #tpu.memory_space<vmem>>, vector<8x256xf32>,
    } else {
    }
    return
  }
  func.func @transform_0(%arg0: i32, %arg1: i32, %arg2: i32) -> (i32, i32) {
    %c0_i32 = arith.constant 0 : i32
    return %arg0, %arg2 : i32, i32
  }
  func.func @transform_1(%arg0: i32, %arg1: i32, %arg2: i32) -> (i32, i32) {
    %c0_i32 = arith.constant 0 : i32
    return %arg2, %arg1 : i32, i32
  }
  func.func @transform_2(%arg0: i32, %arg1: i32, %arg2: i32) -> (i32, i32) {
    %c0_i32 = arith.constant 0 : i32
    return %arg0, %arg1 : i32, i32
  }
  func.func @transform_3(%arg0: i32, %arg1: i32, %arg2: i32) -> (i32, i32) {
    %c0_i32 = arith.constant 0 : i32
    return %arg0, %arg1 : i32, i32
  }
  func.func @transform_4(%arg0: i32, %arg1: i32, %arg2: i32) -> (i32, i32) {
    %c0_i32 = arith.constant 0 : i32
    return %arg0, %arg1 : i32, i32
  }
}

module attributes {stable_mosaic.version = 11 : i64} {
  func.func @kernel(%arg0: i32, %arg1: i32, %arg2: memref<8x256xbf16, #tpu.memory_space<vmem>>, %arg3: memref<1x256xf32, #tpu.memory_space<vmem>>, %arg4: memref<1x256xf32, #tpu.memory_space<vmem>>, %arg5: memref<8x256xbf16, #tpu.memory_space<vmem>>, %arg6: memref<8x256xbf16, #tpu.memory_space<vmem>>) attributes {dimension_semantics = [#tpu.dimension_semantics<parallel>, #tpu.dimension_semantics<parallel>], iteration_bounds = array<i64: 1, 2>, scalar_prefetch = 0 : i64, scratch_operands = 0 : i64, tpu.core_type = #tpu.core_type<tc>, window_params = [{transform_indices = @transform_0, window_bounds = array<i64: 8, 256>}, {transform_indices = @transform_1, window_bounds = array<i64: 1, 256>}, {transform_indices = @transform_2, window_bounds = array<i64: 1, 256>}, {transform_indices = @transform_3, window_bounds = array<i64: 8, 256>}, {transform_indices = @transform_4, window_bounds = array<i64: 8, 256>}]} {
    %c0 = arith.constant 0 : index
    %c0_0 = arith.constant 0 : index
    %0 = vector.load %arg2[%c0, %c0_0] : memref<8x256xbf16, #tpu.memory_space<vmem>>, vector<8x256xbf16>
    %1 = arith.extf %0 : vector<8x256xbf16> to vector<8x256xf32>
    %c0_1 = arith.constant 0 : index
    %c0_2 = arith.constant 0 : index
    %2 = vector.load %arg3[%c0_1, %c0_2] : memref<1x256xf32, #tpu.memory_space<vmem>>, vector<1x256xf32>
    %3 = vector.broadcast %2 : vector<1x256xf32> to vector<8x256xf32>
    %4 = arith.mulf %1, %3 : vector<8x256xf32>
    %c0_3 = arith.constant 0 : index
    %c0_4 = arith.constant 0 : index
    %5 = vector.load %arg4[%c0_3, %c0_4] : memref<1x256xf32, #tpu.memory_space<vmem>>, vector<1x256xf32>
    %6 = vector.broadcast %5 : vector<1x256xf32> to vector<8x256xf32>
    %7 = arith.addf %4, %6 : vector<8x256xf32>
    %c0_5 = arith.constant 0 : index
    %c0_6 = arith.constant 0 : index
    %8 = vector.load %arg5[%c0_5, %c0_6] : memref<8x256xbf16, #tpu.memory_space<vmem>>, vector<8x256xbf16>
    %9 = arith.extf %8 : vector<8x256xbf16> to vector<8x256xf32>
    %10 = arith.addf %7, %9 : vector<8x256xf32>
    %cst = arith.constant 0.000000e+00 : f32
    %11 = vector.broadcast %cst : f32 to vector<8x256xf32>
    %12 = arith.maximumf %10, %11 : vector<8x256xf32>
    %13 = arith.truncf %12 : vector<8x256xf32> to vector<8x256xbf16>
    %c0_7 = arith.constant 0 : index
    %c0_8 = arith.constant 0 : index
    %14 = vector.load %arg6[%c0_7, %c0_8] : memref<8x256xbf16, #tpu.memory_space<vmem>>, vector<8x256xbf16>
    tpu.vector_store %arg6[%c0_7, %c0_8], %13 {strides = array<i32>} : memref<8x256xbf16, #tpu.memory_space<vmem>>, vector<8x256xbf16>,
    return
  }
  func.func @transform_0(%arg0: i32, %arg1: i32) -> (i32, i32) {
    %c0_i32 = arith.constant 0 : i32
    return %arg0, %arg1 : i32, i32
  }
  func.func @transform_1(%arg0: i32, %arg1: i32) -> (i32, i32) {
    %c0_i32 = arith.constant 0 : i32
    %c0_i32_0 = arith.constant 0 : i32
    return %c0_i32, %arg1 : i32, i32
  }
  func.func @transform_2(%arg0: i32, %arg1: i32) -> (i32, i32) {
    %c0_i32 = arith.constant 0 : i32
    %c0_i32_0 = arith.constant 0 : i32
    return %c0_i32, %arg1 : i32, i32
  }
  func.func @transform_3(%arg0: i32, %arg1: i32) -> (i32, i32) {
    %c0_i32 = arith.constant 0 : i32
    return %arg0, %arg1 : i32, i32
  }
  func.func @transform_4(%arg0: i32, %arg1: i32) -> (i32, i32) {
    %c0_i32 = arith.constant 0 : i32
    return %arg0, %arg1 : i32, i32
  }
}

module attributes {stable_mosaic.version = 11 : i64} {
  func.func @kernel(%arg0: i32, %arg1: memref<8x1x512xbf16, #tpu.memory_space<vmem>>, %arg2: memref<512x128xbf16, #tpu.memory_space<vmem>>, %arg3: memref<1x128xf32, #tpu.memory_space<vmem>>, %arg4: memref<1x128xf32, #tpu.memory_space<vmem>>, %arg5: memref<1x128xf32, #tpu.memory_space<vmem>>, %arg6: memref<128x128xbf16, #tpu.memory_space<vmem>>, %arg7: memref<1x128xf32, #tpu.memory_space<vmem>>, %arg8: memref<8x128xf32, #tpu.memory_space<vmem>>) attributes {dimension_semantics = [#tpu.dimension_semantics<arbitrary>], iteration_bounds = array<i64: 1>, scalar_prefetch = 0 : i64, scratch_operands = 0 : i64, tpu.core_type = #tpu.core_type<tc>, window_params = [{pipeline_mode = #tpu.pipeline_mode<synchronous>, transform_indices = @transform_0, window_bounds = array<i64: 8, 1, 512>}, {pipeline_mode = #tpu.pipeline_mode<synchronous>, transform_indices = @transform_1, window_bounds = array<i64: 512, 128>}, {pipeline_mode = #tpu.pipeline_mode<synchronous>, transform_indices = @transform_2, window_bounds = array<i64: 1, 128>}, {pipeline_mode = #tpu.pipeline_mode<synchronous>, transform_indices = @transform_3, window_bounds = array<i64: 1, 128>}, {pipeline_mode = #tpu.pipeline_mode<synchronous>, transform_indices = @transform_4, window_bounds = array<i64: 1, 128>}, {pipeline_mode = #tpu.pipeline_mode<synchronous>, transform_indices = @transform_5, window_bounds = array<i64: 128, 128>}, {pipeline_mode = #tpu.pipeline_mode<synchronous>, transform_indices = @transform_6, window_bounds = array<i64: 1, 128>}, {pipeline_mode = #tpu.pipeline_mode<synchronous>, transform_indices = @transform_7, window_bounds = array<i64: 8, 128>}]} {
    %c0 = arith.constant 0 : index
    %c0_0 = arith.constant 0 : index
    %c0_1 = arith.constant 0 : index
    %0 = vector.load %arg1[%c0, %c0_0, %c0_1] : memref<8x1x512xbf16, #tpu.memory_space<vmem>>, vector<8x1x512xbf16>
    %1 = arith.extf %0 : vector<8x1x512xbf16> to vector<8x1x512xf32>
    %cst = arith.constant dense<0.000000e+00> : vector<8x512xf32>
    %2 = vector.multi_reduction <add>, %1, %cst [1] : vector<8x1x512xf32> to vector<8x512xf32>
    %cst_2 = arith.constant 1.000000e+00 : f32
    %3 = vector.broadcast %cst_2 : f32 to vector<8x512xf32>
    %4 = arith.mulf %2, %3 : vector<8x512xf32>
    %5 = arith.truncf %4 : vector<8x512xf32> to vector<8x512xbf16>
    %c0_3 = arith.constant 0 : index
    %c0_4 = arith.constant 0 : index
    %6 = vector.load %arg2[%c0_3, %c0_4] : memref<512x128xbf16, #tpu.memory_space<vmem>>, vector<512x128xbf16>
    %cst_5 = arith.constant dense<0.000000e+00> : vector<8x128xf32>
    %7 = tpu.matmul %5, %6, %cst_5 {dimension_numbers = #tpu.dot_dimension_numbers<[1], [0], [0], [1], [0, 0, 1, 1], [], []>} : vector<8x512xbf16>, vector<512x128xbf16>, vector<8x128xf32> -> vector<8x128xf32>
    %c0_6 = arith.constant 0 : index
    %c0_7 = arith.constant 0 : index
    %8 = vector.load %arg3[%c0_6, %c0_7] : memref<1x128xf32, #tpu.memory_space<vmem>>, vector<1x128xf32>
    %9 = vector.broadcast %8 : vector<1x128xf32> to vector<8x128xf32>
    %10 = arith.addf %7, %9 : vector<8x128xf32>
    %11 = vector.extract_strided_slice %10 {offsets = [0, 0], sizes = [2, 128], strides = [1, 1]} : vector<8x128xf32> to vector<2x128xf32>
    %cst_8 = arith.constant dense<0.000000e+00> : vector<128xf32>
    %12 = vector.multi_reduction <add>, %11, %cst_8 [0] : vector<2x128xf32> to vector<128xf32>
    %13 = vector.shape_cast %12 : vector<128xf32> to vector<1x128xf32>
    %cst_9 = arith.constant 2.000000e+00 : f32
    %14 = vector.broadcast %cst_9 : f32 to vector<1x128xf32>
    %15 = arith.divf %13, %14 : vector<1x128xf32>
    %16 = vector.broadcast %15 : vector<1x128xf32> to vector<2x128xf32>
    %17 = arith.subf %11, %16 : vector<2x128xf32>
    %18 = vector.broadcast %15 : vector<1x128xf32> to vector<2x128xf32>
    %19 = arith.subf %11, %18 : vector<2x128xf32>
    %20 = arith.mulf %17, %19 : vector<2x128xf32>
    %cst_10 = arith.constant dense<0.000000e+00> : vector<128xf32>
    %21 = vector.multi_reduction <add>, %20, %cst_10 [0] : vector<2x128xf32> to vector<128xf32>
    %22 = vector.shape_cast %21 : vector<128xf32> to vector<1x128xf32>
    %cst_11 = arith.constant 2.000000e+00 : f32
    %23 = vector.broadcast %cst_11 : f32 to vector<1x128xf32>
    %24 = arith.divf %22, %23 : vector<1x128xf32>
    %25 = vector.broadcast %15 : vector<1x128xf32> to vector<8x128xf32>
    %26 = arith.subf %10, %25 : vector<8x128xf32>
    %cst_12 = arith.constant 9.99999974E-6 : f32
    %27 = vector.broadcast %cst_12 : f32 to vector<1x128xf32>
    %28 = arith.addf %24, %27 : vector<1x128xf32>
    %29 = math.rsqrt %28 : vector<1x128xf32>
    %30 = vector.broadcast %29 : vector<1x128xf32> to vector<8x128xf32>
    %31 = arith.mulf %26, %30 : vector<8x128xf32>
    %c0_13 = arith.constant 0 : index
    %c0_14 = arith.constant 0 : index
    %32 = vector.load %arg4[%c0_13, %c0_14] : memref<1x128xf32, #tpu.memory_space<vmem>>, vector<1x128xf32>
    %33 = vector.broadcast %32 : vector<1x128xf32> to vector<8x128xf32>
    %34 = arith.mulf %31, %33 : vector<8x128xf32>
    %c0_15 = arith.constant 0 : index
    %c0_16 = arith.constant 0 : index
    %35 = vector.load %arg5[%c0_15, %c0_16] : memref<1x128xf32, #tpu.memory_space<vmem>>, vector<1x128xf32>
    %36 = vector.broadcast %35 : vector<1x128xf32> to vector<8x128xf32>
    %37 = arith.addf %34, %36 : vector<8x128xf32>
    %cst_17 = arith.constant 0.000000e+00 : f32
    %38 = vector.broadcast %cst_17 : f32 to vector<8x128xf32>
    %39 = arith.maximumf %37, %38 : vector<8x128xf32>
    %40 = arith.truncf %39 : vector<8x128xf32> to vector<8x128xbf16>
    %c0_18 = arith.constant 0 : index
    %c0_19 = arith.constant 0 : index
    %41 = vector.load %arg6[%c0_18, %c0_19] : memref<128x128xbf16, #tpu.memory_space<vmem>>, vector<128x128xbf16>
    %cst_20 = arith.constant dense<0.000000e+00> : vector<8x128xf32>
    %42 = tpu.matmul %40, %41, %cst_20 {dimension_numbers = #tpu.dot_dimension_numbers<[1], [0], [0], [1], [0, 0, 1, 1], [], []>} : vector<8x128xbf16>, vector<128x128xbf16>, vector<8x128xf32> -> vector<8x128xf32>
    %c0_21 = arith.constant 0 : index
    %c0_22 = arith.constant 0 : index
    %43 = vector.load %arg7[%c0_21, %c0_22] : memref<1x128xf32, #tpu.memory_space<vmem>>, vector<1x128xf32>
    %44 = vector.broadcast %43 : vector<1x128xf32> to vector<8x128xf32>
    %45 = arith.addf %42, %44 : vector<8x128xf32>
    %c0_23 = arith.constant 0 : index
    %c0_24 = arith.constant 0 : index
    %46 = vector.load %arg8[%c0_23, %c0_24] : memref<8x128xf32, #tpu.memory_space<vmem>>, vector<8x128xf32>
    tpu.vector_store %arg8[%c0_23, %c0_24], %45 {strides = array<i32>} : memref<8x128xf32, #tpu.memory_space<vmem>>, vector<8x128xf32>,
    return
  }
  func.func @transform_0(%arg0: i32) -> (i32, i32, i32) {
    %c0_i32 = arith.constant 0 : i32
    %c0_i32_0 = arith.constant 0 : i32
    %c0_i32_1 = arith.constant 0 : i32
    %c0_i32_2 = arith.constant 0 : i32
    return %c0_i32, %c0_i32_0, %c0_i32_1 : i32, i32, i32
  }
  func.func @transform_1(%arg0: i32) -> (i32, i32) {
    %c0_i32 = arith.constant 0 : i32
    %c0_i32_0 = arith.constant 0 : i32
    %c0_i32_1 = arith.constant 0 : i32
    return %c0_i32, %c0_i32_0 : i32, i32
  }
  func.func @transform_2(%arg0: i32) -> (i32, i32) {
    %c0_i32 = arith.constant 0 : i32
    %c0_i32_0 = arith.constant 0 : i32
    %c0_i32_1 = arith.constant 0 : i32
    return %c0_i32, %c0_i32_0 : i32, i32
  }
  func.func @transform_3(%arg0: i32) -> (i32, i32) {
    %c0_i32 = arith.constant 0 : i32
    %c0_i32_0 = arith.constant 0 : i32
    %c0_i32_1 = arith.constant 0 : i32
    return %c0_i32, %c0_i32_0 : i32, i32
  }
  func.func @transform_4(%arg0: i32) -> (i32, i32) {
    %c0_i32 = arith.constant 0 : i32
    %c0_i32_0 = arith.constant 0 : i32
    %c0_i32_1 = arith.constant 0 : i32
    return %c0_i32, %c0_i32_0 : i32, i32
  }
  func.func @transform_5(%arg0: i32) -> (i32, i32) {
    %c0_i32 = arith.constant 0 : i32
    %c0_i32_0 = arith.constant 0 : i32
    %c0_i32_1 = arith.constant 0 : i32
    return %c0_i32, %c0_i32_0 : i32, i32
  }
  func.func @transform_6(%arg0: i32) -> (i32, i32) {
    %c0_i32 = arith.constant 0 : i32
    %c0_i32_0 = arith.constant 0 : i32
    %c0_i32_1 = arith.constant 0 : i32
    return %c0_i32, %c0_i32_0 : i32, i32
  }
  func.func @transform_7(%arg0: i32) -> (i32, i32) {
    %c0_i32 = arith.constant 0 : i32
    %c0_i32_0 = arith.constant 0 : i32
    %c0_i32_1 = arith.constant 0 : i32
    return %c0_i32, %c0_i32_0 : i32, i32
  }
}

</mosaic_0001>

<bundles_post_ra>
// kernel: resnet_forward.43
= control target key start
LH: loop header
LB: loop body
LE: loop exit
PB: predicated region body
PF: predicated region fallthrough
CT: control target
= control target key end

     0   :  { %s636_s0 = inlined_call_operand.vmem [shape: bf16[128,128], index: 0, kind: input, shape index: {}]   ;;  %s637_s1 = inlined_call_operand.vmem [shape: f32[1,128], index: 1, kind: input, shape index: {}]   ;;  %s638_s2 = inlined_call_operand.vmem [shape: f32[1,128], index: 2, kind: input, shape index: {}]   ;;  %s639_s3 = inlined_call_operand.hbm [shape: bf16[128,128], index: 3, kind: output, shape index: {0}]   ;;  %s640_s4 = inlined_call_operand.vmem [shape: bf16[128,128], index: 4, kind: output, shape index: {1}]  }
   0x1   :  { %v358_v0 = vld [vmem:[%s636_s0] sm:$0xff]   ;;  %v469_v4 = vld [vmem:[%s636_s0 + $0x8] sm:$0xff]   ;;  %v470_v5 = vld [vmem:[%s636_s0 + $0x10] sm:$0xff]  }
   0x2   :  { %v291_v1 = vld [vmem:[%s637_s1] ss:$0 sm:$0xff]  ;;  %v359_v2 = vunpack.c.l.bf16 %v358_v0  ;;  %v360_v3 = vunpack.c.h.bf16 %v358_v0  ;;  %v471_v6 = vld [vmem:[%s636_s0 + $0x18] sm:$0xff]   ;;  %v363_v8 = vunpack.c.l.bf16 %v469_v4  ;;  %v364_v9 = vunpack.c.h.bf16 %v469_v4 }
   0x3   :  { %v563_v7 = vld [vmem:[%s638_s2] ss:$0 sm:$0xff]  ;;  %v367_v10 = vunpack.c.l.bf16 %v470_v5  ;;  %v368_v11 = vunpack.c.h.bf16 %v470_v5  ;;  %v371_v14 = vunpack.c.l.bf16 %v471_v6  ;;  %v372_v15 = vunpack.c.h.bf16 %v471_v6 }
   0x4   :  { %v56_v12 = vmul.f32 %v359_v2, %v291_v1  ;;  %v57_v13 = vmul.f32 %v360_v3, %v291_v1 }
   0x5   :  { %10 = vsyncpa [#allocation3], 0  ;;  %v58_v16 = vmul.f32 %v363_v8, %v291_v1  ;;  %v59_v17 = vmul.f32 %v364_v9, %v291_v1  ;;  %v60_v18 = vmul.f32 %v367_v10, %v291_v1  ;;  %v61_v19 = vmul.f32 %v368_v11, %v291_v1  ;;  %v472_v20 = vld [vmem:[%s636_s0 + $0x20] sm:$0xff]   ;;  %v473_v25 = vld [vmem:[%s636_s0 + $0x28] sm:$0xff]  }
   0x6   :  { %v79_v21 = vadd.f32 %v563_v7, %v56_v12  ;;  %v80_v22 = vadd.f32 %v563_v7, %v57_v13  ;;  %v62_v23 = vmul.f32 %v371_v14, %v291_v1  ;;  %v63_v24 = vmul.f32 %v372_v15, %v291_v1  ;;  %v474_v30 = vld [vmem:[%s636_s0 + $0x30] sm:$0xff]   ;;  %v475_v35 = vld [vmem:[%s636_s0 + $0x38] sm:$0xff]   ;;  %s517_s0 = smov [#allocation2]  }
   0x7   :  { %v81_v26 = vadd.f32 %v563_v7, %v58_v16  ;;  %v82_v27 = vadd.f32 %v563_v7, %v59_v17  ;;  %v83_v28 = vadd.f32 %v563_v7, %v60_v18  ;;  %v84_v29 = vadd.f32 %v563_v7, %v61_v19  ;;  %s276_s7 = sshll.u32 %s517_s0, 4  ;;  %s593_s7 = int_to_ptr.vmem [resolvable:$true] %s276_s7 }
   0x8   :  { %v392_v31 = vpack.c.bf16 %v80_v22, %v79_v21  ;;  %v85_v32 = vadd.f32 %v563_v7, %v62_v23  ;;  %v86_v33 = vadd.f32 %v563_v7, %v63_v24  ;;  %v375_v34 = vunpack.c.l.bf16 %v472_v20  ;;  %s493_s14 = scalar_lea.vmem %s593_s7, 1024  ;;  %p498_p1 = scmp.lt.s32.totalorder %s593_s7, %s593_s7 }
   0x9   :  { %v397_v36 = vpack.c.bf16 %v82_v27, %v81_v26  ;;  %v402_v37 = vpack.c.bf16 %v84_v29, %v83_v28  ;;  %v376_v38 = vunpack.c.h.bf16 %v472_v20  ;;  %v379_v39 = vunpack.c.l.bf16 %v473_v25  ;;  %p494_p0 = scmp.ne.s32.totalorder %s593_s7, %s493_s14  ;;  %p499_p2 = scmp.lt.s32.totalorder %s493_s14, %s493_s14 }
   0xa   :  { %393 = vst [vmem:[#allocation2] sm:$0xff] %v392_v31   ;;  %v407_v40 = vpack.c.bf16 %v86_v33, %v85_v32  ;;  %v64_v41 = vmul.f32 %v375_v34, %v291_v1  ;;  %v380_v42 = vunpack.c.h.bf16 %v473_v25  ;;  %v383_v43 = vunpack.c.l.bf16 %v474_v30 }
   0xb   :  { %476 = vst [vmem:[#allocation2 + $0x8] sm:$0xff] %v397_v36   ;;  %477 = vst [vmem:[#allocation2 + $0x10] sm:$0xff] %v402_v37   ;;  %v65_v44 = vmul.f32 %v376_v38, %v291_v1  ;;  %v66_v45 = vmul.f32 %v379_v39, %v291_v1  ;;  %v384_v46 = vunpack.c.h.bf16 %v474_v30  ;;  %v387_v47 = vunpack.c.l.bf16 %v475_v35  ;;  %p500_p3 = por %p499_p2, %p498_p1 }
   0xc   :  { %478 = vst [vmem:[#allocation2 + $0x18] sm:$0xff] %v407_v40   ;;  %v87_v48 = vadd.f32 %v563_v7, %v64_v41  ;;  %v67_v49 = vmul.f32 %v380_v42, %v291_v1  ;;  %v68_v50 = vmul.f32 %v383_v43, %v291_v1  ;;  %v388_v51 = vunpack.c.h.bf16 %v475_v35 }
   0xd   :  { %v88_v52 = vadd.f32 %v563_v7, %v65_v44  ;;  %v89_v53 = vadd.f32 %v563_v7, %v66_v45  ;;  %v69_v54 = vmul.f32 %v384_v46, %v291_v1  ;;  %v70_v55 = vmul.f32 %v387_v47, %v291_v1  ;;  %p501_p4 = pnand %p500_p3, %p494_p0 }
   0xe   :  { %v90_v56 = vadd.f32 %v563_v7, %v67_v49  ;;  %v91_v57 = vadd.f32 %v563_v7, %v68_v50  ;;  %v71_v58 = vmul.f32 %v388_v51, %v291_v1  ;;  %v175_v59 = vmax.f32 %v79_v21, 0.0 }
   0xf   :  { %v412_v60 = vpack.c.bf16 %v88_v52, %v87_v48  ;;  %v92_v61 = vadd.f32 %v563_v7, %v69_v54  ;;  %v93_v62 = vadd.f32 %v563_v7, %v70_v55  ;;  %v176_v63 = vmax.f32 %v80_v22, 0.0 }
  0x10   :  { %v417_v0 = vpack.c.bf16 %v90_v56, %v89_v53  ;;  %v94_v2 = vadd.f32 %v563_v7, %v71_v58  ;;  %v177_v3 = vmax.f32 %v81_v26, 0.0  ;;  %v178_v4 = vmax.f32 %v82_v27, 0.0 }
  0x11   :  { %479 = vst [vmem:[#allocation2 + $0x20] sm:$0xff] %v412_v60   ;;  %v422_v5 = vpack.c.bf16 %v92_v61, %v91_v57  ;;  %v432_v6 = vpack.c.bf16 %v176_v63, %v175_v59  ;;  %v179_v8 = vmax.f32 %v83_v28, 0.0  ;;  %v180_v9 = vmax.f32 %v84_v29, 0.0 }
  0x12   :  { %480 = vst [vmem:[#allocation2 + $0x28] sm:$0xff] %v417_v0   ;;  %v427_v1 = vpack.c.bf16 %v94_v2, %v93_v62  ;;  %v437_v10 = vpack.c.bf16 %v178_v4, %v177_v3  ;;  %v181_v11 = vmax.f32 %v85_v32, 0.0  ;;  %v182_v12 = vmax.f32 %v86_v33, 0.0 }
  0x13   :  { %481 = vst [vmem:[#allocation2 + $0x30] sm:$0xff] %v422_v5   ;;  %433 = vst [vmem:[%s640_s4] sm:$0xff] %v432_v6   ;;  %v442_v7 = vpack.c.bf16 %v180_v9, %v179_v8  ;;  %v183_v13 = vmax.f32 %v87_v48, 0.0  ;;  %v184_v14 = vmax.f32 %v88_v52, 0.0  ;;  %v185_v15 = vmax.f32 %v89_v53, 0.0 }
  0x14   :  { %482 = vst [vmem:[#allocation2 + $0x38] sm:$0xff] %v427_v1   ;;  %483 = vst [vmem:[%s640_s4 + $0x8] sm:$0xff] %v437_v10   ;;  %v447_v16 = vpack.c.bf16 %v182_v12, %v181_v11  ;;  %v186_v17 = vmax.f32 %v90_v56, 0.0  ;;  %v187_v18 = vmax.f32 %v91_v57, 0.0  ;;  %v188_v19 = vmax.f32 %v92_v61, 0.0 }
  0x15   :  { %484 = vst [vmem:[%s640_s4 + $0x10] sm:$0xff] %v442_v7   ;;  %v452_v20 = vpack.c.bf16 %v184_v14, %v183_v13  ;;  %v189_v21 = vmax.f32 %v93_v62, 0.0  ;;  %v190_v22 = vmax.f32 %v94_v2, 0.0 }
  0x16   :  { %504 = shalt.err (!%p501_p4)
}
  0x17   :  { %s505_s17 = scalar_lea.hbm %s639_s3, 1024 }
  0x18   :  { %p506_p5 = scmp.ne.s32.totalorder %s639_s3, %s505_s17  ;;  %p509_p6 = scmp.lt.u32.totalorder %s505_s17, %s639_s3 }
  0x1a   :  { %p511_p7 = pnand %p509_p6, %p506_p5 }
  0x1c   :  { %514 = shalt.err (!%p511_p7)
}
  0x1d   :  { %s518_s22 = smov 64   ;;  %s519_s23 = smov 4   ;;  %485 = vst [vmem:[%s640_s4 + $0x18] sm:$0xff] %v447_v16   ;;  %v457_v23 = vpack.c.bf16 %v186_v17, %v185_v15  ;;  %v462_v24 = vpack.c.bf16 %v188_v19, %v187_v18  ;;  %486 = vst [vmem:[%s640_s4 + $0x20] sm:$0xff] %v452_v20   ;;  %v467_v25 = vpack.c.bf16 %v190_v22, %v189_v21 }
  0x1e   :  { %282 = dma.vmem_to_hbm [thread:$0]  %s593_s7, 1024, %s639_s3, [#allocation3], %s518_s22, %s518_s22, %s519_s23  }
  0x1f   :  { %487 = vst [vmem:[%s640_s4 + $0x28] sm:$0xff] %v457_v23   ;;  %488 = vst [vmem:[%s640_s4 + $0x30] sm:$0xff] %v462_v24  }
  0x20   :  { %489 = vst [vmem:[%s640_s4 + $0x38] sm:$0xff] %v467_v25  }
  0x21   :  { %515 = dma.done.wait [#allocation3], 1024  }
  0x22   :  { %516 = vsyncadd [#allocation3], 4294966272 }
  0x23   :  { %290 = vsyncpa [#allocation3], 1 }

// kernel: resnet_forward.44
= control target key start
LH: loop header
LB: loop body
LE: loop exit
PB: predicated region body
PF: predicated region fallthrough
CT: control target
= control target key end

     0   :  { %s612_s15 = smov 0   ;;  %s696_s0 = inlined_call_operand.vmem [shape: bf16[2,5,5,64], index: 0, kind: input, shape index: {}]   ;;  %s697_s1 = inlined_call_operand.vmem [shape: bf16[2,5,5,64], index: 1, kind: input, shape index: {}]   ;;  %s698_s2 = inlined_call_operand.vmem [shape: bf16[2,5,5,64], index: 2, kind: input, shape index: {}]   ;;  %s699_s3 = inlined_call_operand.vmem [shape: bf16[2,5,5,64], index: 3, kind: input, shape index: {}]   ;;  %s700_s4 = inlined_call_operand.vmem [shape: bf16[2,4,4,64], index: 4, kind: output, shape index: {}]  }
   0x1 LB: > { %s544_s16 = sadd.s32 4294967295, %s585_s15   ;;  %p548_p0 = scmp.ge.s32.totalorder %s585_s15, 1  ;;  %s585_s15 = sphi %s612_s15, %s14_s15  }
   0x2   : > { %p192_p1 = scmp.lt.s32.totalorder %s585_s15, 3 }
   0x4   : > { %p193_p2 = pnand %p548_p0, %p192_p1 }
   0x5   : > { %p233_p3 = scmp.lt.s32.totalorder (!%p193_p2), %s544_s16, 1  ;;  %vm448_vm0 = vcmask (!%p193_p2), 517120  }
   0x6   : > { %196 = sbr.rel (%p193_p2) target bundleno = 57 (0x39), region = 36 }
   0xd   : > { %s702_s16 = smov (!%p233_p3, %s544_s16), 1 }
   0xe   : > { %s570_s17 = smul.u32 20, %s702_s16  ;;  %s569_s30 = sshll.u32 %s702_s16, 3 }
   0xf   : > { %s674_s7 = scalar_lea.vmem %s700_s4, %s569_s30 }
  0x10   : > { %s626_s20 = scalar_lea.vmem %s696_s0, %s570_s17  ;;  %s631_s23 = scalar_lea.vmem %s697_s1, %s570_s17 }
  0x11   : > { %s636_s26 = scalar_lea.vmem %s698_s2, %s570_s17  ;;  %v270_v0 = vld [vmem:[%s626_s20] sm:$0x7]  ;;  %v563_v10 = vld [vmem:[%s626_s20 + $0x4] sm:$0x7]  ;;  %s649_s29 = scalar_lea.vmem %s699_s3, %s570_s17  ;;  %v564_v35 = vld [vmem:[%s626_s20 + $0x8] sm:$0x7] }
  0x12   : > { %v275_v1 = vshrl.u32 %v270_v0, 16  ;;  %v278_v2 = vshll.u32 %v270_v0, 16  ;;  %v258_v3 = vld [vmem:[%s626_s20] sm:$0x3]  ;;  %v405_v11 = vshrl.u32 %v563_v10, 16  ;;  %v408_v12 = vshll.u32 %v563_v10, 16 }
  0x13   : > { %v262_v4 = vld [vmem:[%s631_s23] sm:$0x3]  ;;  %v259_v17 = vld [vmem:[%s626_s20 + $0x4] sm:$0x3]  ;;  %v414_v40 = vshrl.u32 %v564_v35, 16  ;;  %v417_v43 = vshll.u32 %v564_v35, 16 }
  0x14   : > { %v334_v5 = vld [vmem:[%s636_s26] sm:$0x7]  ;;  %v277_v6 = vrot.slane %v275_v1, 4  ;;  %v280_v7 = vrot.slane %v278_v2, 5  ;;  %v266_v13 = vmax.bf16 %v262_v4, %v258_v3  ;;  %v271_v18 = vld [vmem:[%s626_s20 + $0x4] sm:$0x7] }
  0x15   : > { %v339_v8 = vshrl.u32 %v334_v5, 16  ;;  %v342_v9 = vshll.u32 %v334_v5, 16  ;;  %v407_v19 = vrot.slane %v405_v11, 4  ;;  %v410_v20 = vrot.slane %v408_v12, 5  ;;  %v263_v21 = vld [vmem:[%s631_s23 + $0x4] sm:$0x3] }
  0x16   : > { %v281_v14 = vor.u32 %v280_v7, %v277_v6  ;;  %v284_v22 = vshrl.u32 %v271_v18, 16  ;;  %v287_v23 = vshll.u32 %v271_v18, 16  ;;  %v335_v26 = vld [vmem:[%s636_s26 + $0x4] sm:$0x7]  ;;  %v318_v27 = vld [vmem:[%s636_s26] sm:$0x3]  ;;  %v267_v33 = vmax.bf16 %v263_v21, %v259_v17 }
  0x17   : > { %v341_v15 = vrot.slane %v339_v8, 4  ;;  %v344_v16 = vrot.slane %v342_v9, 5  ;;  %v411_v28 = vor.u32 %v410_v20, %v407_v19  ;;  %v348_v31 = vshrl.u32 %v335_v26, 16  ;;  %v326_v36 = vld [vmem:[%s649_s29] sm:$0x3] }
  0x18   : > { %v282_v24 = vrot.slane %v281_v14, 4  ;;  %v286_v29 = vrot.slane %v284_v22, 4  ;;  %v289_v30 = vrot.slane %v287_v23, 5  ;;  %v351_v34 = vshll.u32 %v335_v26, 16  ;;  %v260_v44 = vld [vmem:[%s626_s20 + $0x8] sm:$0x3] }
  0x19   : > { %v345_v25 = vor.u32 %v344_v16, %v341_v15  ;;  %v350_v39 = vrot.slane %v348_v31, 4  ;;  %v272_v45 = vld [vmem:[%s626_s20 + $0x8] sm:$0x7]  ;;  %v412_v46 = vrot.slane %v411_v28, 4  ;;  %v319_v52 = vld [vmem:[%s636_s26 + $0x4] sm:$0x3] }
  0x1a   : > { %v314_v32 = vmax.bf16 %v282_v24, %v266_v13  ;;  %v290_v38 = vor.u32 %v289_v30, %v286_v29  ;;  %v353_v42 = vrot.slane %v351_v34, 5  ;;  %v264_v48 = vld [vmem:[%s631_s23 + $0x8] sm:$0x3]  ;;  %v293_v49 = vshrl.u32 %v272_v45, 16  ;;  %v555_v57 = vld [vmem:[%s626_s20 + $0x4] sm:$0x3] }
  0x1b   : > { %v346_v37 = vrot.slane %v345_v25, 4  ;;  %v296_v50 = vshll.u32 %v272_v45, 16  ;;  %v416_v54 = vrot.slane %v414_v40, 4  ;;  %v419_v55 = vrot.slane %v417_v43, 5  ;;  %v336_v56 = vld [vmem:[%s636_s26 + $0x8] sm:$0x7] }
  0x1c   : > { %v322_v41 = vmax.bf16 %v318_v27, %v314_v32  ;;  %v291_v47 = vrot.slane %v290_v38, 4  ;;  %v354_v53 = vor.u32 %v353_v42, %v350_v39  ;;  %v295_v59 = vrot.slane %v293_v49, 4  ;;  %v327_v63 = vld [vmem:[%s649_s29 + $0x4] sm:$0x3]  ;;  %v565_v3 = vld [vmem:[%s626_s20 + $0xc] sm:$0x7] }
  0x1d   : > { %v298_v60 = vrot.slane %v296_v50, 5  ;;  %v357_v61 = vshrl.u32 %v336_v56, 16  ;;  %v268_v1 = vmax.bf16 %v264_v48, %v260_v44  ;;  %v360_v2 = vshll.u32 %v336_v56, 16  ;;  %v559_v4 = vld [vmem:[%s631_s23 + $0x4] sm:$0x3] }
  0x1e   : > { %v330_v51 = vmax.bf16 %v326_v36, %v322_v41  ;;  %v315_v58 = vmax.bf16 %v291_v47, %v267_v33  ;;  %v355_v0 = vrot.slane %v354_v53, 4  ;;  %v423_v8 = vshrl.u32 %v565_v3, 16  ;;  %v273_v9 = vld [vmem:[%s626_s20 + $0xc] sm:$0x7]  ;;  %v556_v21 = vld [vmem:[%s626_s20 + $0x8] sm:$0x3] }
  0x1f   : > { %v299_v6 = vor.u32 %v298_v60, %v295_v59  ;;  %v359_v7 = vrot.slane %v357_v61, 4  ;;  %v420_v11 = vor.u32 %v419_v55, %v416_v54  ;;  %v362_v12 = vrot.slane %v360_v2, 5  ;;  %v261_v14 = vld [vmem:[%s626_s20 + $0xc] sm:$0x3]  ;;  %v320_v22 = vld [vmem:[%s636_s26 + $0x8] sm:$0x3] }
  0x20   : > { %v378_v62 = vmax.bf16 %v346_v37, %v330_v51  ;;  %v323_v5 = vmax.bf16 %v319_v52, %v315_v58  ;;  %v426_v13 = vshll.u32 %v565_v3, 16  ;;  %v425_v17 = vrot.slane %v423_v8, 4  ;;  %v265_v18 = vld [vmem:[%s631_s23 + $0xc] sm:$0x3]  ;;  %v566_v30 = vld [vmem:[%s626_s20 + $0x10] sm:$0x7] }
  0x21   : > { %v300_v16 = vrot.slane %v299_v6, 4  ;;  %v337_v19 = vld [vmem:[%s636_s26 + $0xc] sm:$0x7]  ;;  %v363_v23 = vor.u32 %v362_v12, %v359_v7  ;;  %v302_v25 = vshrl.u32 %v273_v9, 16  ;;  %v305_v28 = vshll.u32 %v273_v9, 16 }
  0x22   : > { %v387_v10 = vmax.bf16 %v555_v57, %v378_v62  ;;  %v331_v15 = vmax.bf16 %v327_v63, %v323_v5  ;;  %v428_v24 = vrot.slane %v426_v13, 5  ;;  %v366_v29 = vshrl.u32 %v337_v19, 16  ;;  %v560_v32 = vld [vmem:[%s631_s23 + $0x8] sm:$0x3]  ;;  %v557_v49 = vld [vmem:[%s626_s20 + $0xc] sm:$0x3] }
  0x23   : > { %v316_v27 = vmax.bf16 %v300_v16, %v268_v1  ;;  %v421_v33 = vrot.slane %v420_v11, 4  ;;  %v328_v34 = vld [vmem:[%s649_s29 + $0x8] sm:$0x3]  ;;  %v269_v35 = vmax.bf16 %v265_v18, %v261_v14  ;;  %v304_v36 = vrot.slane %v302_v25, 4  ;;  %v561_v54 = vld [vmem:[%s631_s23 + $0xc] sm:$0x3] }
  0x24   : > { %v396_v20 = vmax.bf16 %v559_v4, %v387_v10  ;;  %v379_v26 = vmax.bf16 %v355_v0, %v331_v15  ;;  %v364_v39 = vrot.slane %v363_v23, 4  ;;  %v307_v40 = vrot.slane %v305_v28, 5  ;;  %v321_v56 = vld [vmem:[%s636_s26 + $0xc] sm:$0x3]  ;;  %v558_v5 = vld [vmem:[%s626_s20 + $0x10] sm:$0x3] }
  0x25   : > { %v324_v38 = vmax.bf16 %v320_v22, %v316_v27  ;;  %v429_v41 = vor.u32 %v428_v24, %v425_v17  ;;  %v368_v42 = vrot.slane %v366_v29, 4  ;;  %v369_v43 = vshll.u32 %v337_v19, 16  ;;  %v329_v62 = vld [vmem:[%s649_s29 + $0xc] sm:$0x3]  ;;  %v562_v7 = vld [vmem:[%s631_s23 + $0x10] sm:$0x3] }
  0x26   : > { %v444_v31 = vmax.bf16 %v412_v46, %v396_v20  ;;  %v388_v37 = vmax.bf16 %v556_v21, %v379_v26  ;;  %v432_v44 = vshrl.u32 %v566_v30, 16  ;;  %v308_v47 = vor.u32 %v307_v40, %v304_v36 }
  0x27   : > { %v332_v46 = vmax.bf16 %v328_v34, %v324_v38  ;;  %v435_v48 = vshll.u32 %v566_v30, 16  ;;  %v371_v50 = vrot.slane %v369_v43, 5  ;;  %v430_v55 = vrot.slane %v429_v41, 4 }
  0x28   : > { %449 = vst.msk [vmem:[%s674_s7] sm:$0x3] %vm448_vm0, %v444_v31  ;;  %v397_v45 = vmax.bf16 %v560_v32, %v388_v37  ;;  %v309_v53 = vrot.slane %v308_v47, 4  ;;  %v434_v60 = vrot.slane %v432_v44, 4 }
  0x29   : > { %v380_v52 = vmax.bf16 %v364_v39, %v332_v46  ;;  %v372_v57 = vor.u32 %v371_v50, %v368_v42  ;;  %v437_v61 = vrot.slane %v435_v48, 5 }
  0x2a   : > { %v445_v51 = vmax.bf16 %v421_v33, %v397_v45  ;;  %v317_v59 = vmax.bf16 %v309_v53, %v269_v35 }
  0x2b   : > { %v389_v58 = vmax.bf16 %v557_v49, %v380_v52  ;;  %v373_v1 = vrot.slane %v372_v57, 4  ;;  %v438_v4 = vor.u32 %v437_v61, %v434_v60 }
  0x2c   : > { %450 = vst.msk [vmem:[%s674_s7 + $0x2] sm:$0x3] %vm448_vm0, %v445_v51  ;;  %v325_v0 = vmax.bf16 %v321_v56, %v317_v59 }
  0x2d   : > { %v398_v63 = vmax.bf16 %v561_v54, %v389_v58  ;;  %v439_v9 = vrot.slane %v438_v4, 4 }
  0x2e   : > { %v333_v3 = vmax.bf16 %v329_v62, %v325_v0 }
  0x2f   : > { %v446_v2 = vmax.bf16 %v430_v55, %v398_v63 }
  0x30   : > { %v381_v6 = vmax.bf16 %v373_v1, %v333_v3 }
  0x31   : > { %451 = vst.msk [vmem:[%s674_s7 + $0x4] sm:$0x3] %vm448_vm0, %v446_v2 }
  0x32   : > { %v390_v8 = vmax.bf16 %v558_v5, %v381_v6 }
  0x34   : > { %v399_v10 = vmax.bf16 %v562_v7, %v390_v8 }
  0x36   : > { %v447_v11 = vmax.bf16 %v439_v9, %v399_v10 }
  0x38   : > { %452 = vst.msk [vmem:[%s674_s7 + $0x6] sm:$0x3] %vm448_vm0, %v447_v11 }
  0x39 PF: > { %s14_s15 = sadd.s32 1, %s585_s15  }
  0x3a   : > { %p11_p4 = scmp.ge.s32.totalorder %s14_s15, 4  }
  0x3c   :  { %13 = sbr.rel (!%p11_p4) target bundleno = 1 (0x1), region = 77 }

// kernel: resnet_forward.42
= control target key start
LH: loop header
LB: loop body
LE: loop exit
PB: predicated region body
PF: predicated region fallthrough
CT: control target
= control target key end

     0   :  { %s975_s1 = inlined_call_operand.vmem [shape: bf16[256,128], index: 1, kind: input, shape index: {}]   ;;  %s976_s0 = inlined_call_operand.vmem [shape: bf16[128,256], index: 0, kind: input, shape index: {}]   ;;  %s977_s2 = inlined_call_operand.vmem [shape: bf16[128,128], index: 2, kind: output, shape index: {0}]   ;;  %s978_s3 = inlined_call_operand.vmem [shape: f32[8,128], index: 3, kind: output, shape index: {1}]   ;;  %s979_s4 = inlined_call_operand.vmem [shape: f32[8,128], index: 4, kind: output, shape index: {2}]  }
   0x1   :  { %v766_v0 = vld [vmem:[%s975_s1 + $0x40] sm:$0xff]   ;;  %v768_v2 = vld [vmem:[%s975_s1 + $0x48] sm:$0xff]   ;;  %v770_v4 = vld [vmem:[%s975_s1 + $0x50] sm:$0xff]  }
   0x2   :  { %v767_v1 = vld [vmem:[%s975_s1] sm:$0xff]   ;;  %686 = vmatprep.subr.bf16.mxu0 %v766_v0  ;;  %750 = vmatprep.subr.bf16.mxu1 %v766_v0  ;;  %v769_v3 = vld [vmem:[%s975_s1 + $0x8] sm:$0xff]   ;;  %v771_v5 = vld [vmem:[%s975_s1 + $0x10] sm:$0xff]  }
   0x3   :  { %687 = vmatpush3.bf16.msra.mxu0 %v767_v1  ;;  %758 = vmatpush3.bf16.msra.mxu1 %v767_v1  ;;  %v772_v6 = vld [vmem:[%s975_s1 + $0x58] sm:$0xff]   ;;  %v774_v8 = vld [vmem:[%s975_s1 + $0x60] sm:$0xff]   ;;  %v776_v10 = vld [vmem:[%s975_s1 + $0x68] sm:$0xff]  }
   0x4   :  { %688 = vmatprep.subr.bf16.mxu0 %v768_v2  ;;  %751 = vmatprep.subr.bf16.mxu1 %v768_v2  ;;  %v773_v7 = vld [vmem:[%s975_s1 + $0x18] sm:$0xff]   ;;  %v775_v9 = vld [vmem:[%s975_s1 + $0x20] sm:$0xff]   ;;  %v777_v12 = vld [vmem:[%s975_s1 + $0x28] sm:$0xff]  }
   0x5   :  { %v784_v11 = vld [vmem:[%s976_s0 + $0x4] ss:$8 sps:$4 sm:$0xff]   ;;  %v778_v14 = vld [vmem:[%s975_s1 + $0x70] sm:$0xff]   ;;  %v780_v16 = vld [vmem:[%s975_s1 + $0x78] sm:$0xff]  }
   0x6   :  { %v790_v13 = vld [vmem:[%s976_s0 + $0x44] ss:$8 sps:$4 sm:$0xff]   ;;  %307 = vmatprep.mubr.bf16.mxu0 %v784_v11  ;;  %v779_v15 = vld [vmem:[%s975_s1 + $0x30] sm:$0xff]   ;;  %v781_v17 = vld [vmem:[%s975_s1 + $0x38] sm:$0xff]  }
   0x7   :  { %689 = vmatpush3.bf16.msra.mxu0 %v769_v3  ;;  %759 = vmatpush3.bf16.msra.mxu1 %v769_v3  ;;  %v782_v18 = vld [vmem:[%s976_s0] ss:$8 sps:$4 sm:$0xff]   ;;  %v785_v20 = vld [vmem:[%s976_s0 + $0x14] ss:$8 sps:$4 sm:$0xff]   ;;  %v787_v22 = vld [vmem:[%s976_s0 + $0x10] ss:$8 sps:$4 sm:$0xff]  }
   0x8   :  { %690 = vmatprep.subr.bf16.mxu0 %v770_v4  ;;  %752 = vmatprep.subr.bf16.mxu1 %v770_v4  ;;  %v788_v19 = vld [vmem:[%s976_s0 + $0x40] ss:$8 sps:$4 sm:$0xff]   ;;  %v794_v21 = vld [vmem:[%s976_s0 + $0x54] ss:$8 sps:$4 sm:$0xff]   ;;  %v796_v23 = vld [vmem:[%s976_s0 + $0x50] ss:$8 sps:$4 sm:$0xff]  }
   0x9   :  { %339 = vmatprep.mubr.bf16.mxu1 %v790_v13  ;;  %v791_v24 = vld [vmem:[%s976_s0 + $0x24] ss:$8 sps:$4 sm:$0xff]   ;;  %v793_v26 = vld [vmem:[%s976_s0 + $0x20] ss:$8 sps:$4 sm:$0xff]   ;;  %v797_v28 = vld [vmem:[%s976_s0 + $0x34] ss:$8 sps:$4 sm:$0xff]  }
   0xa   :  { %v800_v25 = vld [vmem:[%s976_s0 + $0x64] ss:$8 sps:$4 sm:$0xff]   ;;  %v802_v27 = vld [vmem:[%s976_s0 + $0x60] ss:$8 sps:$4 sm:$0xff]   ;;  %v803_v29 = vld [vmem:[%s976_s0 + $0x74] ss:$8 sps:$4 sm:$0xff]  }
   0xb   :  { %691 = vmatpush3.bf16.msra.mxu0 %v771_v5  ;;  %760 = vmatpush3.bf16.msra.mxu1 %v771_v5  ;;  %v799_v30 = vld [vmem:[%s976_s0 + $0x30] ss:$8 sps:$4 sm:$0xff]  }
   0xc   :  { %692 = vmatprep.subr.bf16.mxu0 %v772_v6  ;;  %753 = vmatprep.subr.bf16.mxu1 %v772_v6  ;;  %v805_v31 = vld [vmem:[%s976_s0 + $0x70] ss:$8 sps:$4 sm:$0xff]  }
   0xf   :  { %693 = vmatpush3.bf16.msra.mxu0 %v773_v7  ;;  %761 = vmatpush3.bf16.msra.mxu1 %v773_v7 }
  0x10   :  { %694 = vmatprep.subr.bf16.mxu0 %v774_v8  ;;  %754 = vmatprep.subr.bf16.mxu1 %v774_v8 }
  0x13   :  { %695 = vmatpush3.bf16.msra.mxu0 %v775_v9  ;;  %762 = vmatpush3.bf16.msra.mxu1 %v775_v9 }
  0x14   :  { %696 = vmatprep.subr.bf16.mxu0 %v776_v10  ;;  %755 = vmatprep.subr.bf16.mxu1 %v776_v10 }
  0x17   :  { %697 = vmatpush3.bf16.msra.mxu0 %v777_v12  ;;  %763 = vmatpush3.bf16.msra.mxu1 %v777_v12 }
  0x18   :  { %698 = vmatprep.subr.bf16.mxu0 %v778_v14  ;;  %756 = vmatprep.subr.bf16.mxu1 %v778_v14 }
  0x1b   :  { %699 = vmatpush3.bf16.msra.mxu0 %v779_v15  ;;  %764 = vmatpush3.bf16.msra.mxu1 %v779_v15 }
  0x1c   :  { %700 = vmatprep.subr.bf16.mxu0 %v780_v16  ;;  %757 = vmatprep.subr.bf16.mxu1 %v780_v16 }
  0x1f   :  { %701 = vmatpush3.bf16.msra.mxu0 %v781_v17  ;;  %765 = vmatpush3.bf16.msra.mxu1 %v781_v17 }
  0x22   :  { %308 = vmatmul.mubr.bf16.vlgmr.msra.gmra.mrb[0].mxu0 %v782_v18  ;;  %340 = vmatmul.mubr.bf16.vlgmr.msra.gmra.mrb[0].mxu1 %v788_v19 }
  0x23   :  { %315 = vmatprep.mubr.bf16.mxu0 %v785_v20  ;;  %347 = vmatprep.mubr.bf16.mxu1 %v794_v21 }
  0x2a   :  { %316 = vmatmul.mubr.bf16.gmra.mrb[4].mxu0 %v787_v22  ;;  %348 = vmatmul.mubr.bf16.gmra.mrb[4].mxu1 %v796_v23 }
  0x2b   :  { %323 = vmatprep.mubr.bf16.mxu0 %v791_v24  ;;  %355 = vmatprep.mubr.bf16.mxu1 %v800_v25 }
  0x32   :  { %324 = vmatmul.mubr.bf16.gmra.mrb[8].mxu0 %v793_v26  ;;  %356 = vmatmul.mubr.bf16.gmra.mrb[8].mxu1 %v802_v27 }
  0x33   :  { %331 = vmatprep.mubr.bf16.mxu0 %v797_v28  ;;  %363 = vmatprep.mubr.bf16.mxu1 %v803_v29 }
  0x3a   :  { %332 = vmatmul.mubr.bf16.gmra.mrb[12].mxu0 %v799_v30  ;;  %364 = vmatmul.mubr.bf16.gmra.mrb[12].mxu1 %v805_v31 }
  0xf5   :  { %v702_v32 = vpop.f32.mrb[0].mxu0  ;;  %v726_v33 = vpop.f32.mrb[0].mxu1 }
  0xf6   :  { %v703_v34 = vpop.f32.mrb[1].mxu0  ;;  %v727_v35 = vpop.f32.mrb[1].mxu1 }
  0xf7   :  { %v704_v36 = vadd.f32 %v703_v34, %v702_v32  ;;  %v705_v37 = vpop.f32.mrb[2].mxu0  ;;  %v927_v38 = vadd.f32 %v727_v35, %v726_v33  ;;  %v729_v39 = vpop.f32.mrb[2].mxu1 }
  0xf8   :  { %v706_v40 = vpop.f32.mrb[3].mxu0  ;;  %v730_v41 = vpop.f32.mrb[3].mxu1 }
  0xf9   :  { %v707_v42 = vadd.f32 %v706_v40, %v705_v37  ;;  %v929_v43 = vadd.f32 %v730_v41, %v729_v39  ;;  %v525_v44 = vmul.f32 %v704_v36, %v704_v36 }
  0xfb   :  { %v642_v45 = vpack.c.bf16 %v707_v42, %v704_v36  ;;  %v503_v46 = vadd.f32 %v707_v42, %v704_v36  ;;  %v526_v47 = vmul.f32 %v707_v42, %v707_v42  ;;  %v662_v48 = vpack.c.bf16 %v929_v43, %v927_v38 }
  0xfd   :  { %643 = vst [vmem:[%s977_s2] sm:$0xff] %v642_v45   ;;  %v541_v49 = vadd.f32 %v526_v47, %v525_v44  ;;  %v708_v50 = vpop.f32.mrb[4].mxu0  ;;  %682 = vst [vmem:[%s977_s2 + $0x20] sm:$0xff] %v662_v48   ;;  %v732_v51 = vpop.f32.mrb[4].mxu1  ;;  %v533_v47 = vmul.f32 %v927_v38, %v927_v38 }
  0xfe   :  { %v709_v52 = vpop.f32.mrb[5].mxu0  ;;  %v733_v53 = vpop.f32.mrb[5].mxu1 }
  0xff   :  { %v710_v54 = vadd.f32 %v709_v52, %v708_v50  ;;  %v711_v55 = vpop.f32.mrb[6].mxu0  ;;  %v939_v56 = vadd.f32 %v733_v53, %v732_v51  ;;  %v735_v57 = vpop.f32.mrb[6].mxu1  ;;  %v534_v50 = vmul.f32 %v929_v43, %v929_v43 }
 0x100   :  { %v712_v58 = vpop.f32.mrb[7].mxu0  ;;  %v736_v59 = vpop.f32.mrb[7].mxu1 }
 0x101   :  { %v504_v60 = vadd.f32 %v710_v54, %v503_v46  ;;  %v527_v61 = vmul.f32 %v710_v54, %v710_v54  ;;  %v713_v62 = vadd.f32 %v712_v58, %v711_v55  ;;  %v737_v63 = vadd.f32 %v736_v59, %v735_v57 }
 0x102   :  { %v535_v53 = vmul.f32 %v939_v56, %v939_v56 }
 0x103   :  { %v542_v0 = vadd.f32 %v541_v49, %v527_v61  ;;  %v647_v1 = vpack.c.bf16 %v713_v62, %v710_v54  ;;  %v505_v2 = vadd.f32 %v713_v62, %v504_v60  ;;  %v528_v3 = vmul.f32 %v713_v62, %v713_v62 }
 0x104   :  { %v667_v4 = vpack.c.bf16 %v737_v63, %v939_v56  ;;  %v536_v57 = vmul.f32 %v737_v63, %v737_v63 }
 0x105   :  { %679 = vst [vmem:[%s977_s2 + $0x8] sm:$0xff] %v647_v1   ;;  %v543_v5 = vadd.f32 %v542_v0, %v528_v3  ;;  %v714_v6 = vpop.f32.mrb[8].mxu0  ;;  %v738_v7 = vpop.f32.mrb[8].mxu1 }
 0x106   :  { %v715_v8 = vpop.f32.mrb[9].mxu0  ;;  %683 = vst [vmem:[%s977_s2 + $0x28] sm:$0xff] %v667_v4   ;;  %v739_v9 = vpop.f32.mrb[9].mxu1 }
 0x107   :  { %v716_v10 = vadd.f32 %v715_v8, %v714_v6  ;;  %v717_v11 = vpop.f32.mrb[10].mxu0  ;;  %v740_v12 = vadd.f32 %v739_v9, %v738_v7  ;;  %v741_v13 = vpop.f32.mrb[10].mxu1 }
 0x108   :  { %v718_v14 = vpop.f32.mrb[11].mxu0  ;;  %v742_v15 = vpop.f32.mrb[11].mxu1 }
 0x109   :  { %v506_v16 = vadd.f32 %v716_v10, %v505_v2  ;;  %v529_v17 = vmul.f32 %v716_v10, %v716_v10  ;;  %v719_v18 = vadd.f32 %v718_v14, %v717_v11  ;;  %v743_v19 = vadd.f32 %v742_v15, %v741_v13 }
 0x10a   :  { %v537_v60 = vmul.f32 %v740_v12, %v740_v12 }
 0x10b   :  { %v544_v20 = vadd.f32 %v543_v5, %v529_v17  ;;  %v652_v21 = vpack.c.bf16 %v719_v18, %v716_v10  ;;  %v507_v22 = vadd.f32 %v719_v18, %v506_v16  ;;  %v530_v23 = vmul.f32 %v719_v18, %v719_v18 }
 0x10c   :  { %v672_v24 = vpack.c.bf16 %v743_v19, %v740_v12  ;;  %v538_v1 = vmul.f32 %v743_v19, %v743_v19 }
 0x10d   :  { %680 = vst [vmem:[%s977_s2 + $0x10] sm:$0xff] %v652_v21   ;;  %v545_v25 = vadd.f32 %v544_v20, %v530_v23  ;;  %v720_v26 = vpop.f32.mrb[12].mxu0  ;;  %v744_v27 = vpop.f32.mrb[12].mxu1 }
 0x10e   :  { %v721_v28 = vpop.f32.mrb[13].mxu0  ;;  %684 = vst [vmem:[%s977_s2 + $0x30] sm:$0xff] %v672_v24   ;;  %v745_v29 = vpop.f32.mrb[13].mxu1 }
 0x10f   :  { %v722_v30 = vadd.f32 %v721_v28, %v720_v26  ;;  %v723_v31 = vpop.f32.mrb[14].mxu0  ;;  %v746_v32 = vadd.f32 %v745_v29, %v744_v27  ;;  %v747_v33 = vpop.f32.mrb[14].mxu1 }
 0x110   :  { %v724_v34 = vpop.f32.mrb[15].mxu0  ;;  %v748_v35 = vpop.f32.mrb[15].mxu1 }
 0x111   :  { %v508_v36 = vadd.f32 %v722_v30, %v507_v22  ;;  %v531_v37 = vmul.f32 %v722_v30, %v722_v30  ;;  %v725_v39 = vadd.f32 %v724_v34, %v723_v31  ;;  %v749_v40 = vadd.f32 %v748_v35, %v747_v33 }
 0x112   :  { %v539_v2 = vmul.f32 %v746_v32, %v746_v32 }
 0x113   :  { %v546_v41 = vadd.f32 %v545_v25, %v531_v37  ;;  %v657_v42 = vpack.c.bf16 %v725_v39, %v722_v30  ;;  %v509_v44 = vadd.f32 %v725_v39, %v508_v36  ;;  %v532_v45 = vmul.f32 %v725_v39, %v725_v39 }
 0x114   :  { %v677_v46 = vpack.c.bf16 %v749_v40, %v746_v32  ;;  %v540_v6 = vmul.f32 %v749_v40, %v749_v40 }
 0x115   :  { %681 = vst [vmem:[%s977_s2 + $0x18] sm:$0xff] %v657_v42   ;;  %v510_v48 = vadd.f32 %v927_v38, %v509_v44  ;;  %v547_v49 = vadd.f32 %v546_v41, %v532_v45 }
 0x116   :  { %685 = vst [vmem:[%s977_s2 + $0x38] sm:$0xff] %v677_v46  }
 0x117   :  { %v511_v51 = vadd.f32 %v929_v43, %v510_v48  ;;  %v548_v52 = vadd.f32 %v547_v49, %v533_v47 }
 0x119   :  { %v549_v54 = vadd.f32 %v548_v52, %v534_v50  ;;  %v512_v55 = vadd.f32 %v939_v56, %v511_v51 }
 0x11b   :  { %v513_v58 = vadd.f32 %v737_v63, %v512_v55  ;;  %v550_v38 = vadd.f32 %v549_v54, %v535_v53 }
 0x11d   :  { %v514_v59 = vadd.f32 %v740_v12, %v513_v58  ;;  %v551_v61 = vadd.f32 %v550_v38, %v536_v57 }
 0x11f   :  { %v552_v62 = vadd.f32 %v551_v61, %v537_v60  ;;  %v515_v0 = vadd.f32 %v743_v19, %v514_v59 }
 0x121   :  { %v553_v3 = vadd.f32 %v552_v62, %v538_v1  ;;  %v516_v4 = vadd.f32 %v746_v32, %v515_v0 }
 0x123   :  { %v554_v43 = vadd.f32 %v553_v3, %v539_v2  ;;  %v517_v5 = vadd.f32 %v749_v40, %v516_v4 }
 0x125   :  { %v518_v7 = vrot.slane %v517_v5, 4  ;;  %v555_v8 = vadd.f32 %v554_v43, %v540_v6 }
 0x127   :  { %v519_v9 = vadd.f32 %v518_v7, %v517_v5  ;;  %v556_v10 = vrot.slane %v555_v8, 4 }
 0x129   :  { %v520_v56 = vrot.slane %v519_v9, 2  ;;  %v557_v11 = vadd.f32 %v556_v10, %v555_v8 }
 0x12b   :  { %v521_v63 = vadd.f32 %v520_v56, %v519_v9  ;;  %v558_v13 = vrot.slane %v557_v11, 2 }
 0x12d   :  { %v522_v14 = vrot.slane %v521_v63, 1  ;;  %v559_v12 = vadd.f32 %v558_v13, %v557_v11 }
 0x12f   :  { %v523_v15 = vadd.f32 %v522_v14, %v521_v63  ;;  %v560_v16 = vrot.slane %v559_v12, 1 }
 0x131   :  { %524 = vst [vmem:[%s978_s3] sm:$0xff] %v523_v15  ;;  %v561_v17 = vadd.f32 %v560_v16, %v559_v12 }
 0x133   :  { %562 = vst [vmem:[%s979_s4] sm:$0xff] %v561_v17 }

// kernel: resnet_forward.46
= control target key start
LH: loop header
LB: loop body
LE: loop exit
PB: predicated region body
PF: predicated region fallthrough
CT: control target
= control target key end

     0   :  { %s140_s0 = inlined_call_operand.vmem [shape: bf16[32,128], index: 0, kind: input, shape index: {}]   ;;  %s141_s1 = inlined_call_operand.vmem [shape: f32[1,128], index: 1, kind: input, shape index: {}]   ;;  %s142_s2 = inlined_call_operand.vmem [shape: f32[1,128], index: 2, kind: input, shape index: {}]   ;;  %s143_s3 = inlined_call_operand.vmem [shape: bf16[32,128], index: 3, kind: output, shape index: {}]  }
   0x1   :  { %v83_v0 = vld [vmem:[%s140_s0] sm:$0xff]   ;;  %v100_v4 = vld [vmem:[%s140_s0 + $0x8] sm:$0xff]  }
   0x2   :  { %v72_v1 = vld [vmem:[%s141_s1] ss:$0 sm:$0xff]  ;;  %v84_v2 = vunpack.c.l.bf16 %v83_v0  ;;  %v85_v3 = vunpack.c.h.bf16 %v83_v0  ;;  %v88_v6 = vunpack.c.l.bf16 %v100_v4  ;;  %v89_v7 = vunpack.c.h.bf16 %v100_v4 }
   0x3   :  { %v73_v5 = vld [vmem:[%s142_s2] ss:$0 sm:$0xff] }
   0x4   :  { %v29_v8 = vmul.f32 %v84_v2, %v72_v1  ;;  %v30_v9 = vmul.f32 %v85_v3, %v72_v1  ;;  %v31_v10 = vmul.f32 %v88_v6, %v72_v1  ;;  %v32_v11 = vmul.f32 %v89_v7, %v72_v1 }
   0x6   :  { %v40_v12 = vadd.f32 %v73_v5, %v29_v8  ;;  %v41_v13 = vadd.f32 %v73_v5, %v30_v9  ;;  %v42_v14 = vadd.f32 %v73_v5, %v31_v10  ;;  %v43_v15 = vadd.f32 %v73_v5, %v32_v11 }
   0x8   :  { %v44_v16 = vmax.f32 %v40_v12, 0.0  ;;  %v45_v17 = vmax.f32 %v41_v13, 0.0  ;;  %v46_v18 = vmax.f32 %v42_v14, 0.0  ;;  %v47_v19 = vmax.f32 %v43_v15, 0.0 }
   0xa   :  { %v93_v20 = vpack.c.bf16 %v45_v17, %v44_v16  ;;  %v98_v21 = vpack.c.bf16 %v47_v19, %v46_v18 }
   0xc   :  { %94 = vst [vmem:[%s143_s3] sm:$0xff] %v93_v20   ;;  %101 = vst [vmem:[%s143_s3 + $0x8] sm:$0xff] %v98_v21  }

// kernel: resnet_forward.45
= control target key start
LH: loop header
LB: loop body
LE: loop exit
PB: predicated region body
PF: predicated region fallthrough
CT: control target
= control target key end

     0   :  { %s1030_s15 = smov 0   ;;  %s1032_s16 = smov 0   ;;  %s1133_s0 = inlined_call_operand.vmem [shape: bf16[32,768], index: 0, kind: input, shape index: {}]   ;;  %s1134_s1 = inlined_call_operand.vmem [shape: bf16[768,128], index: 1, kind: input, shape index: {}]   ;;  %s1135_s2 = inlined_call_operand.vmem [shape: bf16[32,128], index: 2, kind: output, shape index: {0}]   ;;  %s1136_s3 = inlined_call_operand.vmem [shape: f32[8,128], index: 3, kind: output, shape index: {1}]   ;;  %s1137_s4 = inlined_call_operand.vmem [shape: f32[8,128], index: 4, kind: output, shape index: {2}]  }
   0x1   :  { %s1034_s17 = smov 0   ;;  %s1036_s18 = smov 0  }
   0x2   :  { %s1038_s19 = smov 0  }
   0x3 LB: > { %s27_s20 = sadd.s32 1, %s998_s18  ;;  %p50_p1 = scmp.ne.s32.totalorder %s990_s16, %s986_s15  ;;  %s1002_s19 = sphi %s1038_s19, %s15_s19   ;;  %s998_s18 = sphi %s1036_s18, %s1141_s18   ;;  %s994_s17 = sphi %s1034_s17, %s1140_s17   ;;  %s990_s16 = sphi %s1032_s16, %s1139_s16   ;;  %s986_s15 = sphi %s1030_s15, %s1138_s15  }
   0x4   : > { %p28_p0 = scmp.ge.s32.totalorder %s27_s20, 3  ;;  %p51_p2 = scmp.eq.s32.totalorder %s1002_s19, 0 }
   0x5   : > { %s43_s22 = sadd.s32 1, %s990_s16  ;;  %p801_p5 = scmp.ge.s32.totalorder %s1002_s19, 3 }
   0x6   : > { %s1143_s20 = smov (%p28_p0, %s27_s20), 0  ;;  %p52_p3 = por %p51_p2, %p50_p1 }
   0x7   : > { %s39_s21 = ssub.s32 %s998_s18, %s1143_s20  ;;  %188 = sbr.rel (%p801_p5) target bundleno = 21 (0x15), region = 16 }
   0x8   : > { %p41_p4 = scmp.eq.s32.totalorder %s39_s21, 0 }
   0xa   : > { %s1065_s23 = scalar_select %p41_p4, %s990_s16, %s43_s22  }
   0xe   : > { %191 = sbr.rel (!%p52_p3) target bundleno = 21 (0x15), region = 20  ;;  %s193_s24 = sand.u32 (%p52_p3), 1, %s990_s16  }
   0xf   : > { %s841_s25 = sshll.u32 (%p52_p3), %s998_s18, 3  ;;  %s802_s26 = sshll.u32 (%p52_p3), %s193_s24, 5 }
  0x10   : > { %s201_s29 = scalar_lea.vmem (%p52_p3), %s1133_s0, %s841_s25  ;;  %s195_s30 = scalar_lea.vmem (%p52_p3), [#allocation3], %s802_s26 }
  0x11   : > { %v235_v0 = vld [vmem:[%s201_s29] sm:$0xff] (%p52_p3)  ;;  %v237_v1 = vld [vmem:[%s201_s29 + $0x18] sm:$0xff] (%p52_p3)  ;;  %v239_v2 = vld [vmem:[%s201_s29 + $0x30] sm:$0xff] (%p52_p3) }
  0x12   : > { %236 = vst [vmem:[%s195_s30] sm:$0xff] (%p52_p3), %v235_v0  ;;  %238 = vst [vmem:[%s195_s30 + $0x8] sm:$0xff] (%p52_p3), %v237_v1  ;;  %v241_v3 = vld [vmem:[%s201_s29 + $0x48] sm:$0xff] (%p52_p3) }
  0x13   : > { %240 = vst [vmem:[%s195_s30 + $0x10] sm:$0xff] (%p52_p3), %v239_v2  ;;  %242 = vst [vmem:[%s195_s30 + $0x18] sm:$0xff] (%p52_p3), %v241_v3 }
  0x15 PF: > { %p805_p6 = scmp.ge.s32.totalorder %s1002_s19, 1  ;;  %p259_p7 = scmp.lt.s32.totalorder %s1002_s19, 4 }
  0x17   : > { %p260_p8 = pnand %p805_p6, %p259_p7 }
  0x18   : > { %s266_s5 = sand.u32 (!%p260_p8), 1, %s986_s15   ;;  %s807_s6 = sshll.u32 (!%p260_p8), %s994_s17, 5 }
  0x19   : > { %263 = sbr.rel (%p260_p8) target bundleno = 320 (0x140), region = 62  ;;  %s806_s7 = sshll.u32 (!%p260_p8), %s266_s5, 5 }
  0x1a   : > { %p319_p9 = scmp.lt.s32.totalorder (!%p260_p8), %s807_s6, 95  ;;  %s1082_s12 = scalar_lea.vmem (!%p260_p8), [#allocation3], %s806_s7 }
  0x1b   : > { %p809_p10 = scmp.ne.s32.totalorder (!%p260_p8), %s994_s17, 0 }
  0x20   : > { %s1145_s6 = smov (!%p319_p9, %s807_s6), 95  ;;  %354 = sbr.rel (%p809_p10) target bundleno = 39 (0x27), region = 70 }
  0x21   : > { %s808_s8 = sshll.u32 %s1145_s6, 2  ;;  %v1004_v4 = vmov (!%p809_p10), 0.0  }
  0x22   : > { %s1080_s11 = scalar_lea.vmem %s1134_s1, %s808_s8  ;;  %355 = vst [vmem:[#allocation2] sm:$0xff] (!%p809_p10), %v1004_v4  ;;  %356 = vst [vmem:[#allocation2 + $0x8] sm:$0xff] (!%p809_p10), %v1004_v4 }
  0x23   : > { %357 = vst [vmem:[#allocation2 + $0x10] sm:$0xff] (!%p809_p10), %v1004_v4  ;;  %358 = vst [vmem:[#allocation2 + $0x18] sm:$0xff] (!%p809_p10), %v1004_v4 }
  0x27 PF: > { %v942_v5 = vld [vmem:[%s1080_s11 + $0x40] sm:$0xff]   ;;  %v944_v7 = vld [vmem:[%s1080_s11 + $0x48] sm:$0xff]   ;;  %v946_v9 = vld [vmem:[%s1080_s11 + $0x50] sm:$0xff]   ;;  %p830_p11 = scmp.ne.s32.totalorder %s994_s17, 2 }
  0x28   : > { %v943_v6 = vld [vmem:[%s1080_s11] sm:$0xff]   ;;  %857 = vmatprep.subr.bf16.mxu0 %v942_v5  ;;  %885 = vmatprep.subr.bf16.mxu1 %v942_v5  ;;  %v945_v8 = vld [vmem:[%s1080_s11 + $0x8] sm:$0xff]   ;;  %v947_v10 = vld [vmem:[%s1080_s11 + $0x10] sm:$0xff]  }
  0x29   : > { %858 = vmatpush3.bf16.msra.mxu0 %v943_v6  ;;  %893 = vmatpush3.bf16.msra.mxu1 %v943_v6  ;;  %v948_v11 = vld [vmem:[%s1080_s11 + $0x58] sm:$0xff]   ;;  %v950_v13 = vld [vmem:[%s1080_s11 + $0x60] sm:$0xff]   ;;  %v952_v15 = vld [vmem:[%s1080_s11 + $0x68] sm:$0xff]  }
  0x2a   : > { %859 = vmatprep.subr.bf16.mxu0 %v944_v7  ;;  %886 = vmatprep.subr.bf16.mxu1 %v944_v7  ;;  %v949_v12 = vld [vmem:[%s1080_s11 + $0x18] sm:$0xff]   ;;  %v951_v14 = vld [vmem:[%s1080_s11 + $0x20] sm:$0xff]   ;;  %v953_v18 = vld [vmem:[%s1080_s11 + $0x28] sm:$0xff]  }
  0x2b   : > { %v960_v16 = vld [vmem:[%s1082_s12 + $0x4] ss:$8 sps:$4 sm:$0xff]   ;;  %v963_v17 = vld [vmem:[%s1082_s12 + $0x14] ss:$8 sps:$4 sm:$0xff]   ;;  %v958_v23 = vld [vmem:[%s1082_s12] ss:$8 sps:$4 sm:$0xff]  }
  0x2c   : > { %v954_v19 = vld [vmem:[%s1080_s11 + $0x70] sm:$0xff]   ;;  %547 = vmatprep.mubr.bf16.mxu0 %v960_v16  ;;  %555 = vmatprep.mubr.bf16.mxu1 %v963_v17  ;;  %v956_v21 = vld [vmem:[%s1080_s11 + $0x78] sm:$0xff]   ;;  %v359_v27 = vld [vmem:[#allocation2] sm:$0xff] }
  0x2d   : > { %860 = vmatpush3.bf16.msra.mxu0 %v945_v8  ;;  %894 = vmatpush3.bf16.msra.mxu1 %v945_v8  ;;  %v955_v20 = vld [vmem:[%s1080_s11 + $0x30] sm:$0xff]   ;;  %v957_v22 = vld [vmem:[%s1080_s11 + $0x38] sm:$0xff]   ;;  %v360_v35 = vld [vmem:[#allocation2 + $0x8] sm:$0xff] }
  0x2e   : > { %861 = vmatprep.subr.bf16.mxu0 %v946_v9  ;;  %887 = vmatprep.subr.bf16.mxu1 %v946_v9  ;;  %v961_v24 = vld [vmem:[%s1082_s12 + $0x10] ss:$8 sps:$4 sm:$0xff]  }
  0x2f   : > { %v361_v29 = vld [vmem:[#allocation2 + $0x10] sm:$0xff]  ;;  %v362_v37 = vld [vmem:[#allocation2 + $0x18] sm:$0xff] }
  0x31   : > { %862 = vmatpush3.bf16.msra.mxu0 %v947_v10  ;;  %895 = vmatpush3.bf16.msra.mxu1 %v947_v10 }
  0x32   : > { %863 = vmatprep.subr.bf16.mxu0 %v948_v11  ;;  %888 = vmatprep.subr.bf16.mxu1 %v948_v11 }
  0x35   : > { %864 = vmatpush3.bf16.msra.mxu0 %v949_v12  ;;  %896 = vmatpush3.bf16.msra.mxu1 %v949_v12 }
  0x36   : > { %865 = vmatprep.subr.bf16.mxu0 %v950_v13  ;;  %889 = vmatprep.subr.bf16.mxu1 %v950_v13 }
  0x39   : > { %866 = vmatpush3.bf16.msra.mxu0 %v951_v14  ;;  %897 = vmatpush3.bf16.msra.mxu1 %v951_v14 }
  0x3a   : > { %867 = vmatprep.subr.bf16.mxu0 %v952_v15  ;;  %890 = vmatprep.subr.bf16.mxu1 %v952_v15 }
  0x3d   : > { %868 = vmatpush3.bf16.msra.mxu0 %v953_v18  ;;  %898 = vmatpush3.bf16.msra.mxu1 %v953_v18 }
  0x3e   : > { %869 = vmatprep.subr.bf16.mxu0 %v954_v19  ;;  %891 = vmatprep.subr.bf16.mxu1 %v954_v19 }
  0x41   : > { %870 = vmatpush3.bf16.msra.mxu0 %v955_v20  ;;  %899 = vmatpush3.bf16.msra.mxu1 %v955_v20 }
  0x42   : > { %871 = vmatprep.subr.bf16.mxu0 %v956_v21  ;;  %892 = vmatprep.subr.bf16.mxu1 %v956_v21 }
  0x45   : > { %872 = vmatpush3.bf16.msra.mxu0 %v957_v22  ;;  %900 = vmatpush3.bf16.msra.mxu1 %v957_v22 }
  0x48   : > { %548 = vmatmul.mubr.bf16.vlgmr.msra.gmra.mrb[0].mxu0 %v958_v23  ;;  %556 = vmatmul.mubr.bf16.vlgmr.msra.gmra.mrb[0].mxu1 %v961_v24 }
 0x11b   : > { %v873_v25 = vpop.f32.mrb[0].mxu0  ;;  %v879_v26 = vpop.f32.mrb[0].mxu1 }
 0x11c   : > { %v874_v28 = vpop.f32.mrb[1].mxu0  ;;  %v880_v30 = vpop.f32.mrb[1].mxu1 }
 0x11d   : > { %v875_v31 = vadd.f32 %v874_v28, %v873_v25  ;;  %v881_v32 = vadd.f32 %v880_v30, %v879_v26  ;;  %v876_v33 = vpop.f32.mrb[2].mxu0  ;;  %v882_v34 = vpop.f32.mrb[2].mxu1  ;;  %575 = sbr.rel (%p830_p11) target bundleno = 320 (0x140), region = 74 }
 0x11e   : > { %v877_v36 = vpop.f32.mrb[3].mxu0  ;;  %v883_v38 = vpop.f32.mrb[3].mxu1 }
 0x11f   : > { %v564_v39 = vadd.f32 %v875_v31, %v359_v27  ;;  %v566_v40 = vadd.f32 %v881_v32, %v361_v29  ;;  %v878_v41 = vadd.f32 %v877_v36, %v876_v33  ;;  %v884_v42 = vadd.f32 %v883_v38, %v882_v34 }
 0x121   : > { %568 = vst [vmem:[#allocation2] sm:$0xff] %v564_v39  ;;  %570 = vst [vmem:[#allocation2 + $0x10] sm:$0xff] %v566_v40  ;;  %v565_v43 = vadd.f32 %v878_v41, %v360_v35  ;;  %v567_v44 = vadd.f32 %v884_v42, %v362_v37 }
 0x123   : > { %569 = vst [vmem:[#allocation2 + $0x8] sm:$0xff] %v565_v43  ;;  %571 = vst [vmem:[#allocation2 + $0x18] sm:$0xff] %v567_v44 }
 0x128   : > { %v576_v45 = vld [vmem:[#allocation2] sm:$0xff]  ;;  %v578_v47 = vld [vmem:[#allocation2 + $0x10] sm:$0xff] }
 0x129   : > { %v610_v50 = vmul.f32 %v576_v45, %v576_v45  ;;  %v612_v54 = vmul.f32 %v578_v47, %v578_v47 }
 0x12a   : > { %v577_v46 = vld [vmem:[#allocation2 + $0x8] sm:$0xff]  ;;  %v579_v52 = vld [vmem:[#allocation2 + $0x18] sm:$0xff] }
 0x12b   : > { %v849_v48 = vpack.c.bf16 %v577_v46, %v576_v45  ;;  %v600_v49 = vadd.f32 %v577_v46, %v576_v45  ;;  %v611_v51 = vmul.f32 %v577_v46, %v577_v46  ;;  %v854_v53 = vpack.c.bf16 %v579_v52, %v578_v47 }
 0x12c   : > { %v613_v57 = vmul.f32 %v579_v52, %v579_v52 }
 0x12d   : > { %850 = vst [vmem:[%s1135_s2] sm:$0xff] %v849_v48   ;;  %v614_v55 = vadd.f32 %v611_v51, %v610_v50  ;;  %v601_v56 = vadd.f32 %v600_v49, %v578_v47  ;;  %856 = vst [vmem:[%s1135_s2 + $0x8] sm:$0xff] %v854_v53  }
 0x12f   : > { %v602_v58 = vadd.f32 %v601_v56, %v579_v52  ;;  %v615_v59 = vadd.f32 %v614_v55, %v612_v54 }
 0x131   : > { %v603_v60 = vrot.slane %v602_v58, 4  ;;  %v616_v61 = vadd.f32 %v615_v59, %v613_v57 }
 0x133   : > { %v604_v62 = vadd.f32 %v603_v60, %v602_v58  ;;  %v617_v63 = vrot.slane %v616_v61, 4 }
 0x135   : > { %v605_v0 = vrot.slane %v604_v62, 2  ;;  %v618_v1 = vadd.f32 %v617_v63, %v616_v61 }
 0x137   : > { %v606_v2 = vadd.f32 %v605_v0, %v604_v62  ;;  %v619_v3 = vrot.slane %v618_v1, 2 }
 0x139   : > { %v607_v4 = vrot.slane %v606_v2, 1  ;;  %v620_v5 = vadd.f32 %v619_v3, %v618_v1 }
 0x13b   : > { %v608_v6 = vadd.f32 %v607_v4, %v606_v2  ;;  %v621_v7 = vrot.slane %v620_v5, 1 }
 0x13d   : > { %609 = vst [vmem:[%s1136_s3] sm:$0xff] %v608_v6  ;;  %v622_v8 = vadd.f32 %v621_v7, %v620_v5 }
 0x13f   : > { %623 = vst [vmem:[%s1137_s4] sm:$0xff] %v622_v8 }
 0x140 PF: > { %s15_s19 = sadd.s32 1, %s1002_s19   ;;  %s1138_s15 = smov %s990_s16 }
 0x141   : > { %p12_p12 = scmp.ge.s32.totalorder %s15_s19, 5   ;;  %s1139_s16 = smov %s1065_s23 }
 0x142   : > { %s1140_s17 = smov %s998_s18  ;;  %s1141_s18 = smov %s1143_s20 }
 0x143   :  { %14 = sbr.rel (!%p12_p12) target bundleno = 3 (0x3), region = 136 }

// kernel: resnet_forward.48
= control target key start
LH: loop header
LB: loop body
LE: loop exit
PB: predicated region body
PF: predicated region fallthrough
CT: control target
= control target key end

     0   :  { %s175_s0 = inlined_call_operand.vmem [shape: bf16[32,128], index: 0, kind: input, shape index: {}]   ;;  %s176_s1 = inlined_call_operand.vmem [shape: f32[1,128], index: 1, kind: input, shape index: {}]   ;;  %s177_s2 = inlined_call_operand.vmem [shape: f32[1,128], index: 2, kind: input, shape index: {}]   ;;  %s178_s3 = inlined_call_operand.vmem [shape: bf16[32,128], index: 3, kind: input, shape index: {}]   ;;  %s179_s4 = inlined_call_operand.vmem [shape: bf16[32,128], index: 4, kind: output, shape index: {}]  }
   0x1   :  { %v98_v0 = vld [vmem:[%s175_s0] sm:$0xff]   ;;  %v123_v5 = vld [vmem:[%s175_s0 + $0x8] sm:$0xff]  }
   0x2   :  { %v87_v1 = vld [vmem:[%s176_s1] ss:$0 sm:$0xff]  ;;  %v99_v2 = vunpack.c.l.bf16 %v98_v0  ;;  %v100_v3 = vunpack.c.h.bf16 %v98_v0  ;;  %v124_v6 = vld [vmem:[%s178_s3 + $0x8] sm:$0xff]   ;;  %v103_v8 = vunpack.c.l.bf16 %v123_v5  ;;  %v104_v9 = vunpack.c.h.bf16 %v123_v5 }
   0x3   :  { %v106_v4 = vld [vmem:[%s178_s3] sm:$0xff]   ;;  %v111_v16 = vunpack.c.l.bf16 %v124_v6  ;;  %v112_v17 = vunpack.c.h.bf16 %v124_v6 }
   0x4   :  { %v88_v7 = vld [vmem:[%s177_s2] ss:$0 sm:$0xff]  ;;  %v32_v10 = vmul.f32 %v99_v2, %v87_v1  ;;  %v33_v11 = vmul.f32 %v100_v3, %v87_v1  ;;  %v107_v12 = vunpack.c.l.bf16 %v106_v4  ;;  %v108_v13 = vunpack.c.h.bf16 %v106_v4 }
   0x5   :  { %v34_v14 = vmul.f32 %v103_v8, %v87_v1  ;;  %v35_v15 = vmul.f32 %v104_v9, %v87_v1 }
   0x6   :  { %v43_v18 = vadd.f32 %v88_v7, %v32_v10  ;;  %v44_v19 = vadd.f32 %v88_v7, %v33_v11 }
   0x7   :  { %v45_v20 = vadd.f32 %v88_v7, %v34_v14  ;;  %v46_v21 = vadd.f32 %v88_v7, %v35_v15 }
   0x8   :  { %v55_v22 = vadd.f32 %v107_v12, %v43_v18  ;;  %v56_v23 = vadd.f32 %v108_v13, %v44_v19 }
   0x9   :  { %v57_v24 = vadd.f32 %v111_v16, %v45_v20  ;;  %v58_v25 = vadd.f32 %v112_v17, %v46_v21 }
   0xa   :  { %v59_v26 = vmax.f32 %v55_v22, 0.0  ;;  %v60_v27 = vmax.f32 %v56_v23, 0.0 }
   0xb   :  { %v61_v28 = vmax.f32 %v57_v24, 0.0  ;;  %v62_v29 = vmax.f32 %v58_v25, 0.0 }
   0xc   :  { %v116_v30 = vpack.c.bf16 %v60_v27, %v59_v26 }
   0xd   :  { %v121_v31 = vpack.c.bf16 %v62_v29, %v61_v28 }
   0xe   :  { %117 = vst [vmem:[%s179_s4] sm:$0xff] %v116_v30  }
   0xf   :  { %125 = vst [vmem:[%s179_s4 + $0x8] sm:$0xff] %v121_v31  }

// kernel: resnet_forward.55
= control target key start
LH: loop header
LB: loop body
LE: loop exit
PB: predicated region body
PF: predicated region fallthrough
CT: control target
= control target key end

     0   :  { %v208_v0 = vmov 0.0   ;;  %vm209_vm0 = vmmov 0   ;;  %s271_s1 = inlined_call_operand.vmem [shape: bf16[128,128], index: 1, kind: input, shape index: {}]   ;;  %s272_s0 = inlined_call_operand.vmem [shape: bf16[8,128], index: 0, kind: input, shape index: {}]   ;;  %s273_s2 = inlined_call_operand.vmem [shape: bf16[8,128], index: 2, kind: output, shape index: {0}]   ;;  %s274_s3 = inlined_call_operand.vmem [shape: f32[8,128], index: 3, kind: output, shape index: {1}]   ;;  %s275_s4 = inlined_call_operand.vmem [shape: f32[8,128], index: 4, kind: output, shape index: {2}]  }
   0x1   :  { %178 = vmatprep.subr.bf16.mxu0 %v208_v0  ;;  %v200_v1 = vld [vmem:[%s271_s1] sm:$0xff]   ;;  %194 = vmatprep.mubr.msk.bf16.mxu0 %vm209_vm0, %v208_v0  ;;  %v201_v2 = vld [vmem:[%s271_s1 + $0x8] sm:$0xff]   ;;  %v202_v3 = vld [vmem:[%s271_s1 + $0x10] sm:$0xff]  }
   0x2   :  { %179 = vmatpush3.bf16.msra.mxu0 %v200_v1  ;;  %v203_v4 = vld [vmem:[%s271_s1 + $0x18] sm:$0xff]   ;;  %v204_v5 = vld [vmem:[%s271_s1 + $0x20] sm:$0xff]   ;;  %v205_v6 = vld [vmem:[%s271_s1 + $0x28] sm:$0xff]  }
   0x3   :  { %180 = vmatprep.subr.bf16.mxu0 %v208_v0  ;;  %v206_v7 = vld [vmem:[%s271_s1 + $0x30] sm:$0xff]   ;;  %v207_v8 = vld [vmem:[%s271_s1 + $0x38] sm:$0xff]   ;;  %v21_v9 = vld [vmem:[%s272_s0] sm:$0xf] }
   0x6   :  { %181 = vmatpush3.bf16.msra.mxu0 %v201_v2 }
   0x7   :  { %182 = vmatprep.subr.bf16.mxu0 %v208_v0 }
   0xa   :  { %183 = vmatpush3.bf16.msra.mxu0 %v202_v3 }
   0xb   :  { %184 = vmatprep.subr.bf16.mxu0 %v208_v0 }
   0xe   :  { %185 = vmatpush3.bf16.msra.mxu0 %v203_v4 }
   0xf   :  { %186 = vmatprep.subr.bf16.mxu0 %v208_v0 }
  0x12   :  { %187 = vmatpush3.bf16.msra.mxu0 %v204_v5 }
  0x13   :  { %188 = vmatprep.subr.bf16.mxu0 %v208_v0 }
  0x16   :  { %189 = vmatpush3.bf16.msra.mxu0 %v205_v6 }
  0x17   :  { %190 = vmatprep.subr.bf16.mxu0 %v208_v0 }
  0x1a   :  { %191 = vmatpush3.bf16.msra.mxu0 %v206_v7 }
  0x1b   :  { %192 = vmatprep.subr.bf16.mxu0 %v208_v0 }
  0x1e   :  { %193 = vmatpush3.bf16.msra.mxu0 %v207_v8 }
  0x21   :  { %195 = vmatmul.mubr.bf16.vlgmr.msra.gmra.mrb[0].mxu0 %v21_v9 }
  0xf4   :  { %v120_v10 = vpop.f32.mrb[0].mxu0 }
  0xf5   :  { %v132_v11 = vpack.c.bf16 %v120_v10, %v120_v10  ;;  %v134_v12 = vrot.slane %v120_v10, 4  ;;  %v141_v13 = vmul.f32 %v120_v10, %v120_v10  ;;  %v196_v14 = vpop.f32.mrb[1].mxu0 }
  0xf6   :  { %v123_v15 = vpop.f32.mrb[2].mxu0 }
  0xf7   :  { %133 = vst [vmem:[%s273_s2] sm:$0xf] %v132_v11  ;;  %v135_v16 = vadd.f32 %v134_v12, %v120_v10  ;;  %v142_v17 = vrot.slane %v141_v13, 4  ;;  %v197_v18 = vpop.f32.mrb[3].mxu0 }
  0xf9   :  { %v136_v19 = vrot.slane %v135_v16, 2  ;;  %v143_v20 = vadd.f32 %v142_v17, %v141_v13 }
  0xfb   :  { %v137_v21 = vadd.f32 %v136_v19, %v135_v16  ;;  %v144_v22 = vrot.slane %v143_v20, 2 }
  0xfd   :  { %v138_v23 = vrot.slane %v137_v21, 1  ;;  %v145_v24 = vadd.f32 %v144_v22, %v143_v20 }
  0xff   :  { %v139_v25 = vadd.f32 %v138_v23, %v137_v21  ;;  %v146_v26 = vrot.slane %v145_v24, 1 }
 0x101   :  { %140 = vst [vmem:[%s274_s3] sm:$0xff] %v139_v25  ;;  %v147_v27 = vadd.f32 %v146_v26, %v145_v24 }
 0x103   :  { %148 = vst [vmem:[%s275_s4] sm:$0xff] %v147_v27 }

// kernel: resnet_forward.56
= control target key start
LH: loop header
LB: loop body
LE: loop exit
PB: predicated region body
PF: predicated region fallthrough
CT: control target
= control target key end

     0   :  { %s72_s0 = inlined_call_operand.vmem [shape: bf16[8,128], index: 0, kind: input, shape index: {}]   ;;  %s73_s1 = inlined_call_operand.vmem [shape: f32[1,128], index: 1, kind: input, shape index: {}]   ;;  %s74_s2 = inlined_call_operand.vmem [shape: f32[1,128], index: 2, kind: input, shape index: {}]   ;;  %s75_s3 = inlined_call_operand.vmem [shape: bf16[8,128], index: 3, kind: output, shape index: {}]  }
   0x1   :  { %v14_v0 = vld [vmem:[%s72_s0] sm:$0xf] }
   0x2   :  { %v38_v1 = vld [vmem:[%s73_s1] ss:$0 sm:$0xff]  ;;  %v15_v2 = vunpack.c.l.bf16 %v14_v0 }
   0x3   :  { %v39_v3 = vld [vmem:[%s74_s2] ss:$0 sm:$0xff] }
   0x4   :  { %v23_v4 = vmul.f32 %v38_v1, %v15_v2 }
   0x6   :  { %v31_v5 = vadd.f32 %v39_v3, %v23_v4 }
   0x8   :  { %v32_v6 = vpack.c.bf16 %v31_v5, %v31_v5 }
   0xa   :  { %33 = vst [vmem:[%s75_s3] sm:$0xf] %v32_v6 }

// kernel: resnet_forward.54
= control target key start
LH: loop header
LB: loop body
LE: loop exit
PB: predicated region body
PF: predicated region fallthrough
CT: control target
= control target key end

     0   :  { %s73_s0 = inlined_call_operand.vmem [shape: bf16[8,128], index: 0, kind: input, shape index: {}]   ;;  %s74_s1 = inlined_call_operand.vmem [shape: f32[1,128], index: 1, kind: input, shape index: {}]   ;;  %s75_s2 = inlined_call_operand.vmem [shape: f32[1,128], index: 2, kind: input, shape index: {}]   ;;  %s76_s3 = inlined_call_operand.vmem [shape: bf16[8,128], index: 3, kind: output, shape index: {}]  }
   0x1   :  { %v14_v0 = vld [vmem:[%s73_s0] sm:$0xf] }
   0x2   :  { %v39_v1 = vld [vmem:[%s74_s1] ss:$0 sm:$0xff]  ;;  %v15_v2 = vunpack.c.l.bf16 %v14_v0 }
   0x3   :  { %v40_v3 = vld [vmem:[%s75_s2] ss:$0 sm:$0xff] }
   0x4   :  { %v23_v4 = vmul.f32 %v39_v1, %v15_v2 }
   0x6   :  { %v31_v5 = vadd.f32 %v40_v3, %v23_v4 }
   0x8   :  { %v32_v6 = vmax.f32 %v31_v5, 0.0 }
   0xa   :  { %v33_v7 = vpack.c.bf16 %v32_v6, %v32_v6 }
   0xc   :  { %34 = vst [vmem:[%s76_s3] sm:$0xf] %v33_v7 }

// kernel: resnet_forward.53
= control target key start
LH: loop header
LB: loop body
LE: loop exit
PB: predicated region body
PF: predicated region fallthrough
CT: control target
= control target key end

     0   :  { %s833_s15 = smov 0   ;;  %s835_s16 = smov 0   ;;  %s899_s0 = inlined_call_operand.vmem [shape: bf16[8,768], index: 0, kind: input, shape index: {}]   ;;  %s900_s1 = inlined_call_operand.vmem [shape: bf16[768,128], index: 1, kind: input, shape index: {}]   ;;  %s901_s2 = inlined_call_operand.vmem [shape: bf16[8,128], index: 2, kind: output, shape index: {0}]   ;;  %s902_s3 = inlined_call_operand.vmem [shape: f32[8,128], index: 3, kind: output, shape index: {1}]   ;;  %s903_s4 = inlined_call_operand.vmem [shape: f32[8,128], index: 4, kind: output, shape index: {2}]  }
   0x1   :  { %s837_s17 = smov 0  }
   0x2 LB: > { %s27_s18 = sadd.s32 1, %s801_s16  ;;  %p688_p0 = scmp.ge.s32.totalorder %s805_s17, 1  ;;  %s805_s17 = sphi %s837_s17, %s15_s17   ;;  %s801_s16 = sphi %s835_s16, %s905_s16   ;;  %s797_s15 = sphi %s833_s15, %s904_s15  }
   0x3   : > { %p28_p1 = scmp.ge.s32.totalorder %s27_s18, 3  ;;  %p215_p2 = scmp.lt.s32.totalorder %s805_s17, 4 }
   0x5   : > { %s907_s18 = smov (%p28_p1, %s27_s18), 0  ;;  %p216_p3 = pnand %p688_p0, %p215_p2 }
   0x6   : > { %s689_s19 = sshll.u32 (!%p216_p3), %s797_s15, 1  ;;  %s691_s20 = sshll.u32 (!%p216_p3), %s797_s15, 5 }
   0x7   : > { %219 = sbr.rel (%p216_p3) target bundleno = 297 (0x129), region = 28  ;;  %p272_p4 = scmp.lt.s32.totalorder (!%p216_p3), %s689_s19, 5 }
   0x8   : > { %p280_p5 = scmp.lt.s32.totalorder (!%p216_p3), %s691_s20, 95  ;;  %p693_p6 = scmp.ne.s32.totalorder (!%p216_p3), %s797_s15, 0 }
   0xe   : > { %s909_s19 = smov (!%p272_p4, %s689_s19), 5  ;;  %s911_s20 = smov (!%p280_p5, %s691_s20), 95 }
   0xf   : > { %s690_s21 = sshll.u32 %s909_s19, 2  ;;  %s692_s25 = sshll.u32 %s911_s20, 2  ;;  %v807_v0 = vmov (!%p693_p6), 0.0  }
  0x10   : > { %s277_s24 = scalar_lea.vmem %s899_s0, %s690_s21  ;;  %s861_s28 = scalar_lea.vmem %s900_s1, %s692_s25  ;;  %314 = vst [vmem:[#allocation2] sm:$0xff] (!%p693_p6), %v807_v0 }
  0x11   : > { %313 = sbr.rel (%p693_p6) target bundleno = 24 (0x18), region = 32 }
  0x18 PF: > { %v765_v1 = vld [vmem:[%s861_s28 + $0x40] sm:$0xff]   ;;  %v767_v3 = vld [vmem:[%s861_s28 + $0x48] sm:$0xff]   ;;  %v769_v5 = vld [vmem:[%s861_s28 + $0x50] sm:$0xff]   ;;  %p712_p7 = scmp.ne.s32.totalorder %s797_s15, 2 }
  0x19   : > { %v766_v2 = vld [vmem:[%s861_s28] sm:$0xff]   ;;  %718 = vmatprep.subr.bf16.mxu0 %v765_v1  ;;  %v768_v4 = vld [vmem:[%s861_s28 + $0x8] sm:$0xff]   ;;  %v770_v6 = vld [vmem:[%s861_s28 + $0x10] sm:$0xff]  }
  0x1a   : > { %719 = vmatpush3.bf16.msra.mxu0 %v766_v2  ;;  %v771_v7 = vld [vmem:[%s861_s28 + $0x58] sm:$0xff]   ;;  %v773_v9 = vld [vmem:[%s861_s28 + $0x60] sm:$0xff]   ;;  %v775_v11 = vld [vmem:[%s861_s28 + $0x68] sm:$0xff]  }
  0x1b   : > { %720 = vmatprep.subr.bf16.mxu0 %v767_v3  ;;  %v772_v8 = vld [vmem:[%s861_s28 + $0x18] sm:$0xff]   ;;  %v774_v10 = vld [vmem:[%s861_s28 + $0x20] sm:$0xff]   ;;  %v776_v14 = vld [vmem:[%s861_s28 + $0x28] sm:$0xff]  }
  0x1c   : > { %v316_v12 = vld [vmem:[%s277_s24] sm:$0xff]  ;;  %v777_v15 = vld [vmem:[%s861_s28 + $0x70] sm:$0xff]   ;;  %v779_v17 = vld [vmem:[%s861_s28 + $0x78] sm:$0xff]  }
  0x1d   : > { %v695_v13 = vcombine.high %v316_v12, %v316_v12  ;;  %v778_v16 = vld [vmem:[%s861_s28 + $0x30] sm:$0xff]   ;;  %v780_v18 = vld [vmem:[%s861_s28 + $0x38] sm:$0xff]   ;;  %v694_v19 = vcombine.low %v316_v12, %v316_v12  ;;  %v315_v21 = vld [vmem:[#allocation2] sm:$0xff] }
  0x1e   : > { %721 = vmatpush3.bf16.msra.mxu0 %v768_v4 }
  0x1f   : > { %722 = vmatprep.subr.bf16.mxu0 %v769_v5  ;;  %484 = vmatprep.mubr.bf16.mxu0 %v695_v13 }
  0x22   : > { %723 = vmatpush3.bf16.msra.mxu0 %v770_v6 }
  0x23   : > { %724 = vmatprep.subr.bf16.mxu0 %v771_v7 }
  0x26   : > { %725 = vmatpush3.bf16.msra.mxu0 %v772_v8 }
  0x27   : > { %726 = vmatprep.subr.bf16.mxu0 %v773_v9 }
  0x2a   : > { %727 = vmatpush3.bf16.msra.mxu0 %v774_v10 }
  0x2b   : > { %728 = vmatprep.subr.bf16.mxu0 %v775_v11 }
  0x2e   : > { %729 = vmatpush3.bf16.msra.mxu0 %v776_v14 }
  0x2f   : > { %730 = vmatprep.subr.bf16.mxu0 %v777_v15 }
  0x32   : > { %731 = vmatpush3.bf16.msra.mxu0 %v778_v16 }
  0x33   : > { %732 = vmatprep.subr.bf16.mxu0 %v779_v17 }
  0x36   : > { %733 = vmatpush3.bf16.msra.mxu0 %v780_v18 }
  0x39   : > { %485 = vmatmul.mubr.bf16.vlgmr.msra.gmra.mrb[0].mxu0 %v694_v19 }
 0x10c   : > { %v734_v20 = vpop.f32.mrb[0].mxu0  ;;  %497 = sbr.rel (%p712_p7) target bundleno = 297 (0x129), region = 36 }
 0x10d   : > { %v735_v22 = vpop.f32.mrb[1].mxu0 }
 0x10e   : > { %v736_v23 = vadd.f32 %v735_v22, %v734_v20  ;;  %v737_v24 = vpop.f32.mrb[2].mxu0 }
 0x10f   : > { %v738_v25 = vpop.f32.mrb[3].mxu0 }
 0x110   : > { %v492_v26 = vadd.f32 %v736_v23, %v315_v21 }
 0x112   : > { %493 = vst [vmem:[#allocation2] sm:$0xff] %v492_v26 }
 0x119   : > { %v498_v27 = vld [vmem:[#allocation2] sm:$0xff] }
 0x11a   : > { %v499_v28 = vpack.c.bf16 %v498_v27, %v498_v27  ;;  %v501_v29 = vrot.slane %v498_v27, 4  ;;  %v508_v30 = vmul.f32 %v498_v27, %v498_v27 }
 0x11c   : > { %500 = vst [vmem:[%s901_s2] sm:$0xf] %v499_v28  ;;  %v502_v31 = vadd.f32 %v501_v29, %v498_v27  ;;  %v509_v32 = vrot.slane %v508_v30, 4 }
 0x11e   : > { %v503_v33 = vrot.slane %v502_v31, 2  ;;  %v510_v34 = vadd.f32 %v509_v32, %v508_v30 }
 0x120   : > { %v504_v35 = vadd.f32 %v503_v33, %v502_v31  ;;  %v511_v36 = vrot.slane %v510_v34, 2 }
 0x122   : > { %v505_v37 = vrot.slane %v504_v35, 1  ;;  %v512_v38 = vadd.f32 %v511_v36, %v510_v34 }
 0x124   : > { %v506_v39 = vadd.f32 %v505_v37, %v504_v35  ;;  %v513_v40 = vrot.slane %v512_v38, 1 }
 0x126   : > { %507 = vst [vmem:[%s902_s3] sm:$0xff] %v506_v39  ;;  %v514_v41 = vadd.f32 %v513_v40, %v512_v38 }
 0x128   : > { %515 = vst [vmem:[%s903_s4] sm:$0xff] %v514_v41 }
 0x129 PF: > { %s15_s17 = sadd.s32 1, %s805_s17   ;;  %s904_s15 = smov %s801_s16 }
 0x12a   : > { %p12_p8 = scmp.ge.s32.totalorder %s15_s17, 5   ;;  %s905_s16 = smov %s907_s18 }
 0x12c   :  { %14 = sbr.rel (!%p12_p8) target bundleno = 2 (0x2), region = 93 }

// kernel: resnet_forward.58
= control target key start
LH: loop header
LB: loop body
LE: loop exit
PB: predicated region body
PF: predicated region fallthrough
CT: control target
= control target key end

     0   :  { %s87_s0 = inlined_call_operand.vmem [shape: bf16[8,128], index: 0, kind: input, shape index: {}]   ;;  %s88_s1 = inlined_call_operand.vmem [shape: f32[1,128], index: 1, kind: input, shape index: {}]   ;;  %s89_s2 = inlined_call_operand.vmem [shape: f32[1,128], index: 2, kind: input, shape index: {}]   ;;  %s90_s3 = inlined_call_operand.vmem [shape: bf16[8,128], index: 3, kind: input, shape index: {}]   ;;  %s91_s4 = inlined_call_operand.vmem [shape: bf16[8,128], index: 4, kind: output, shape index: {}]  }
   0x1   :  { %v17_v0 = vld [vmem:[%s87_s0] sm:$0xf] }
   0x2   :  { %v45_v1 = vld [vmem:[%s88_s1] ss:$0 sm:$0xff]  ;;  %v18_v2 = vunpack.c.l.bf16 %v17_v0 }
   0x3   :  { %v35_v3 = vld [vmem:[%s90_s3] sm:$0xf] }
   0x4   :  { %v46_v4 = vld [vmem:[%s89_s2] ss:$0 sm:$0xff]  ;;  %v26_v5 = vmul.f32 %v45_v1, %v18_v2  ;;  %v36_v6 = vunpack.c.l.bf16 %v35_v3 }
   0x6   :  { %v34_v7 = vadd.f32 %v46_v4, %v26_v5 }
   0x8   :  { %v37_v8 = vadd.f32 %v36_v6, %v34_v7 }
   0xa   :  { %v38_v9 = vmax.f32 %v37_v8, 0.0 }
   0xc   :  { %v39_v10 = vpack.c.bf16 %v38_v9, %v38_v9 }
   0xe   :  { %40 = vst [vmem:[%s91_s4] sm:$0xf] %v39_v10 }

// kernel: resnet_forward.57
= control target key start
LH: loop header
LB: loop body
LE: loop exit
PB: predicated region body
PF: predicated region fallthrough
CT: control target
= control target key end

     0   :  { %s833_s15 = smov 0   ;;  %s835_s16 = smov 0   ;;  %s899_s0 = inlined_call_operand.vmem [shape: bf16[8,1280], index: 0, kind: input, shape index: {}]   ;;  %s900_s1 = inlined_call_operand.vmem [shape: bf16[1280,128], index: 1, kind: input, shape index: {}]   ;;  %s901_s2 = inlined_call_operand.vmem [shape: bf16[8,128], index: 2, kind: output, shape index: {0}]   ;;  %s902_s3 = inlined_call_operand.vmem [shape: f32[8,128], index: 3, kind: output, shape index: {1}]   ;;  %s903_s4 = inlined_call_operand.vmem [shape: f32[8,128], index: 4, kind: output, shape index: {2}]  }
   0x1   :  { %s837_s17 = smov 0  }
   0x2 LB: > { %s27_s18 = sadd.s32 1, %s801_s16  ;;  %p688_p0 = scmp.ge.s32.totalorder %s805_s17, 1  ;;  %s805_s17 = sphi %s837_s17, %s15_s17   ;;  %s801_s16 = sphi %s835_s16, %s905_s16   ;;  %s797_s15 = sphi %s833_s15, %s904_s15  }
   0x3   : > { %p28_p1 = scmp.ge.s32.totalorder %s27_s18, 5  ;;  %p215_p2 = scmp.lt.s32.totalorder %s805_s17, 6 }
   0x5   : > { %s907_s18 = smov (%p28_p1, %s27_s18), 0  ;;  %p216_p3 = pnand %p688_p0, %p215_p2 }
   0x6   : > { %s689_s19 = sshll.u32 (!%p216_p3), %s797_s15, 1  ;;  %s691_s20 = sshll.u32 (!%p216_p3), %s797_s15, 5 }
   0x7   : > { %219 = sbr.rel (%p216_p3) target bundleno = 297 (0x129), region = 28  ;;  %p272_p4 = scmp.lt.s32.totalorder (!%p216_p3), %s689_s19, 9 }
   0x8   : > { %p280_p5 = scmp.lt.s32.totalorder (!%p216_p3), %s691_s20, 159  ;;  %p693_p6 = scmp.ne.s32.totalorder (!%p216_p3), %s797_s15, 0 }
   0xe   : > { %s909_s19 = smov (!%p272_p4, %s689_s19), 9  ;;  %s911_s20 = smov (!%p280_p5, %s691_s20), 159 }
   0xf   : > { %s690_s21 = sshll.u32 %s909_s19, 2  ;;  %s692_s25 = sshll.u32 %s911_s20, 2  ;;  %v807_v0 = vmov (!%p693_p6), 0.0  }
  0x10   : > { %s277_s24 = scalar_lea.vmem %s899_s0, %s690_s21  ;;  %s861_s28 = scalar_lea.vmem %s900_s1, %s692_s25  ;;  %314 = vst [vmem:[#allocation2] sm:$0xff] (!%p693_p6), %v807_v0 }
  0x11   : > { %313 = sbr.rel (%p693_p6) target bundleno = 24 (0x18), region = 32 }
  0x18 PF: > { %v765_v1 = vld [vmem:[%s861_s28 + $0x40] sm:$0xff]   ;;  %v767_v3 = vld [vmem:[%s861_s28 + $0x48] sm:$0xff]   ;;  %v769_v5 = vld [vmem:[%s861_s28 + $0x50] sm:$0xff]   ;;  %p712_p7 = scmp.ne.s32.totalorder %s797_s15, 4 }
  0x19   : > { %v766_v2 = vld [vmem:[%s861_s28] sm:$0xff]   ;;  %718 = vmatprep.subr.bf16.mxu0 %v765_v1  ;;  %v768_v4 = vld [vmem:[%s861_s28 + $0x8] sm:$0xff]   ;;  %v770_v6 = vld [vmem:[%s861_s28 + $0x10] sm:$0xff]  }
  0x1a   : > { %719 = vmatpush3.bf16.msra.mxu0 %v766_v2  ;;  %v771_v7 = vld [vmem:[%s861_s28 + $0x58] sm:$0xff]   ;;  %v773_v9 = vld [vmem:[%s861_s28 + $0x60] sm:$0xff]   ;;  %v775_v11 = vld [vmem:[%s861_s28 + $0x68] sm:$0xff]  }
  0x1b   : > { %720 = vmatprep.subr.bf16.mxu0 %v767_v3  ;;  %v772_v8 = vld [vmem:[%s861_s28 + $0x18] sm:$0xff]   ;;  %v774_v10 = vld [vmem:[%s861_s28 + $0x20] sm:$0xff]   ;;  %v776_v14 = vld [vmem:[%s861_s28 + $0x28] sm:$0xff]  }
  0x1c   : > { %v316_v12 = vld [vmem:[%s277_s24] sm:$0xff]  ;;  %v777_v15 = vld [vmem:[%s861_s28 + $0x70] sm:$0xff]   ;;  %v779_v17 = vld [vmem:[%s861_s28 + $0x78] sm:$0xff]  }
  0x1d   : > { %v695_v13 = vcombine.high %v316_v12, %v316_v12  ;;  %v778_v16 = vld [vmem:[%s861_s28 + $0x30] sm:$0xff]   ;;  %v780_v18 = vld [vmem:[%s861_s28 + $0x38] sm:$0xff]   ;;  %v694_v19 = vcombine.low %v316_v12, %v316_v12  ;;  %v315_v21 = vld [vmem:[#allocation2] sm:$0xff] }
  0x1e   : > { %721 = vmatpush3.bf16.msra.mxu0 %v768_v4 }
  0x1f   : > { %722 = vmatprep.subr.bf16.mxu0 %v769_v5  ;;  %484 = vmatprep.mubr.bf16.mxu0 %v695_v13 }
  0x22   : > { %723 = vmatpush3.bf16.msra.mxu0 %v770_v6 }
  0x23   : > { %724 = vmatprep.subr.bf16.mxu0 %v771_v7 }
  0x26   : > { %725 = vmatpush3.bf16.msra.mxu0 %v772_v8 }
  0x27   : > { %726 = vmatprep.subr.bf16.mxu0 %v773_v9 }
  0x2a   : > { %727 = vmatpush3.bf16.msra.mxu0 %v774_v10 }
  0x2b   : > { %728 = vmatprep.subr.bf16.mxu0 %v775_v11 }
  0x2e   : > { %729 = vmatpush3.bf16.msra.mxu0 %v776_v14 }
  0x2f   : > { %730 = vmatprep.subr.bf16.mxu0 %v777_v15 }
  0x32   : > { %731 = vmatpush3.bf16.msra.mxu0 %v778_v16 }
  0x33   : > { %732 = vmatprep.subr.bf16.mxu0 %v779_v17 }
  0x36   : > { %733 = vmatpush3.bf16.msra.mxu0 %v780_v18 }
  0x39   : > { %485 = vmatmul.mubr.bf16.vlgmr.msra.gmra.mrb[0].mxu0 %v694_v19 }
 0x10c   : > { %v734_v20 = vpop.f32.mrb[0].mxu0  ;;  %497 = sbr.rel (%p712_p7) target bundleno = 297 (0x129), region = 36 }
 0x10d   : > { %v735_v22 = vpop.f32.mrb[1].mxu0 }
 0x10e   : > { %v736_v23 = vadd.f32 %v735_v22, %v734_v20  ;;  %v737_v24 = vpop.f32.mrb[2].mxu0 }
 0x10f   : > { %v738_v25 = vpop.f32.mrb[3].mxu0 }
 0x110   : > { %v492_v26 = vadd.f32 %v736_v23, %v315_v21 }
 0x112   : > { %493 = vst [vmem:[#allocation2] sm:$0xff] %v492_v26 }
 0x119   : > { %v498_v27 = vld [vmem:[#allocation2] sm:$0xff] }
 0x11a   : > { %v499_v28 = vpack.c.bf16 %v498_v27, %v498_v27  ;;  %v501_v29 = vrot.slane %v498_v27, 4  ;;  %v508_v30 = vmul.f32 %v498_v27, %v498_v27 }
 0x11c   : > { %500 = vst [vmem:[%s901_s2] sm:$0xf] %v499_v28  ;;  %v502_v31 = vadd.f32 %v501_v29, %v498_v27  ;;  %v509_v32 = vrot.slane %v508_v30, 4 }
 0x11e   : > { %v503_v33 = vrot.slane %v502_v31, 2  ;;  %v510_v34 = vadd.f32 %v509_v32, %v508_v30 }
 0x120   : > { %v504_v35 = vadd.f32 %v503_v33, %v502_v31  ;;  %v511_v36 = vrot.slane %v510_v34, 2 }
 0x122   : > { %v505_v37 = vrot.slane %v504_v35, 1  ;;  %v512_v38 = vadd.f32 %v511_v36, %v510_v34 }
 0x124   : > { %v506_v39 = vadd.f32 %v505_v37, %v504_v35  ;;  %v513_v40 = vrot.slane %v512_v38, 1 }
 0x126   : > { %507 = vst [vmem:[%s902_s3] sm:$0xff] %v506_v39  ;;  %v514_v41 = vadd.f32 %v513_v40, %v512_v38 }
 0x128   : > { %515 = vst [vmem:[%s903_s4] sm:$0xff] %v514_v41 }
 0x129 PF: > { %s15_s17 = sadd.s32 1, %s805_s17   ;;  %s904_s15 = smov %s801_s16 }
 0x12a   : > { %p12_p8 = scmp.ge.s32.totalorder %s15_s17, 7   ;;  %s905_s16 = smov %s907_s18 }
 0x12c   :  { %14 = sbr.rel (!%p12_p8) target bundleno = 2 (0x2), region = 93 }

// kernel: resnet_forward.65
= control target key start
LH: loop header
LB: loop body
LE: loop exit
PB: predicated region body
PF: predicated region fallthrough
CT: control target
= control target key end

     0   :  { %v264_v1 = vmov 0   ;;  %s356_s1 = inlined_call_operand.vmem [shape: bf16[128,256], index: 1, kind: input, shape index: {}]   ;;  %s357_s0 = inlined_call_operand.vmem [shape: bf16[8,128], index: 0, kind: input, shape index: {}]   ;;  %s358_s2 = inlined_call_operand.vmem [shape: bf16[8,256], index: 2, kind: output, shape index: {0}]   ;;  %s359_s3 = inlined_call_operand.vmem [shape: f32[8,256], index: 3, kind: output, shape index: {1}]   ;;  %s360_s4 = inlined_call_operand.vmem [shape: f32[8,256], index: 4, kind: output, shape index: {2}]  }
   0x1   :  { %v240_v0 = vld [vmem:[%s356_s1 + $0x4] ss:$8 sps:$4 sm:$0xff]   ;;  %152 = vmatprep.mubr.bf16.mxu0 %v264_v1  ;;  %v242_v2 = vld [vmem:[%s356_s1] ss:$8 sps:$4 sm:$0xff]   ;;  %v243_v3 = vld [vmem:[%s356_s1 + $0x14] ss:$8 sps:$4 sm:$0xff]  }
   0x2   :  { %120 = vmatprep.subr.bf16.mxu0 %v240_v0  ;;  %v245_v4 = vld [vmem:[%s356_s1 + $0x10] ss:$8 sps:$4 sm:$0xff]   ;;  %v246_v5 = vld [vmem:[%s356_s1 + $0x24] ss:$8 sps:$4 sm:$0xff]   ;;  %v248_v6 = vld [vmem:[%s356_s1 + $0x20] ss:$8 sps:$4 sm:$0xff]  }
   0x3   :  { %121 = vmatpush1.bf16.msra.mxu0 %v242_v2  ;;  %v249_v7 = vld [vmem:[%s356_s1 + $0x34] ss:$8 sps:$4 sm:$0xff]   ;;  %v251_v8 = vld [vmem:[%s356_s1 + $0x30] ss:$8 sps:$4 sm:$0xff]   ;;  %v252_v9 = vld [vmem:[%s356_s1 + $0x44] ss:$8 sps:$4 sm:$0xff]  }
   0x4   :  { %122 = vmatprep.subr.bf16.mxu0 %v243_v3  ;;  %v254_v10 = vld [vmem:[%s356_s1 + $0x40] ss:$8 sps:$4 sm:$0xff]   ;;  %v255_v11 = vld [vmem:[%s356_s1 + $0x54] ss:$8 sps:$4 sm:$0xff]   ;;  %v257_v12 = vld [vmem:[%s356_s1 + $0x50] ss:$8 sps:$4 sm:$0xff]  }
   0x5   :  { %v258_v13 = vld [vmem:[%s356_s1 + $0x64] ss:$8 sps:$4 sm:$0xff]   ;;  %v260_v14 = vld [vmem:[%s356_s1 + $0x60] ss:$8 sps:$4 sm:$0xff]   ;;  %v261_v15 = vld [vmem:[%s356_s1 + $0x74] ss:$8 sps:$4 sm:$0xff]  }
   0x6   :  { %v263_v16 = vld [vmem:[%s356_s1 + $0x70] ss:$8 sps:$4 sm:$0xff]   ;;  %v23_v17 = vld [vmem:[%s357_s0] sm:$0xf] }
   0x7   :  { %123 = vmatpush1.bf16.msra.mxu0 %v245_v4 }
   0x8   :  { %124 = vmatprep.subr.bf16.mxu0 %v246_v5 }
   0xb   :  { %125 = vmatpush1.bf16.msra.mxu0 %v248_v6 }
   0xc   :  { %126 = vmatprep.subr.bf16.mxu0 %v249_v7 }
   0xf   :  { %127 = vmatpush1.bf16.msra.mxu0 %v251_v8 }
  0x10   :  { %128 = vmatprep.subr.bf16.mxu0 %v252_v9 }
  0x13   :  { %129 = vmatpush1.bf16.msra.mxu0 %v254_v10 }
  0x14   :  { %130 = vmatprep.subr.bf16.mxu0 %v255_v11 }
  0x17   :  { %131 = vmatpush1.bf16.msra.mxu0 %v257_v12 }
  0x18   :  { %132 = vmatprep.subr.bf16.mxu0 %v258_v13 }
  0x1b   :  { %133 = vmatpush1.bf16.msra.mxu0 %v260_v14 }
  0x1c   :  { %134 = vmatprep.subr.bf16.mxu0 %v261_v15 }
  0x1f   :  { %135 = vmatpush1.bf16.msra.mxu0 %v263_v16 }
  0x22   :  { %153 = vmatmul.mubr.bf16.vlgmr.msra.gmra.mrb[0].mxu0 %v23_v17 }
  0xf5   :  { %v154_v18 = vpop.f32.mrb[0].mxu0 }
  0xf6   :  { %v179_v19 = vrot.slane %v154_v18, 4  ;;  %v193_v20 = vmul.f32 %v154_v18, %v154_v18  ;;  %v156_v21 = vpop.f32.mrb[1].mxu0 }
  0xf7   :  { %v238_v22 = vpack.c.bf16 %v156_v21, %v154_v18  ;;  %v185_v23 = vrot.slane %v156_v21, 4  ;;  %v194_v24 = vmul.f32 %v156_v21, %v156_v21  ;;  %v158_v25 = vpop.f32.mrb[2].mxu0 }
  0xf8   :  { %v180_v26 = vadd.f32 %v179_v19, %v154_v18  ;;  %v195_v27 = vrot.slane %v193_v20, 4  ;;  %v159_v28 = vpop.f32.mrb[3].mxu0 }
  0xf9   :  { %178 = vst [vmem:[%s358_s2] sm:$0xff] %v238_v22  ;;  %v186_v29 = vadd.f32 %v185_v23, %v156_v21  ;;  %v201_v30 = vrot.slane %v194_v24, 4 }
  0xfa   :  { %v181_v31 = vrot.slane %v180_v26, 2  ;;  %v196_v32 = vadd.f32 %v195_v27, %v193_v20 }
  0xfb   :  { %v187_v33 = vrot.slane %v186_v29, 2  ;;  %v202_v34 = vadd.f32 %v201_v30, %v194_v24 }
  0xfc   :  { %v182_v35 = vadd.f32 %v181_v31, %v180_v26  ;;  %v197_v36 = vrot.slane %v196_v32, 2 }
  0xfd   :  { %v188_v37 = vadd.f32 %v187_v33, %v186_v29  ;;  %v203_v38 = vrot.slane %v202_v34, 2 }
  0xfe   :  { %v183_v39 = vrot.slane %v182_v35, 1  ;;  %v198_v40 = vadd.f32 %v197_v36, %v196_v32 }
  0xff   :  { %v189_v41 = vrot.slane %v188_v37, 1  ;;  %v204_v42 = vadd.f32 %v203_v38, %v202_v34 }
 0x100   :  { %v184_v43 = vadd.f32 %v183_v39, %v182_v35  ;;  %v199_v44 = vrot.slane %v198_v40, 1 }
 0x101   :  { %v190_v45 = vadd.f32 %v189_v41, %v188_v37  ;;  %v205_v46 = vrot.slane %v204_v42, 1 }
 0x102   :  { %191 = vst [vmem:[%s359_s3] sm:$0xff] %v184_v43  ;;  %v200_v47 = vadd.f32 %v199_v44, %v198_v40 }
 0x103   :  { %192 = vst [vmem:[%s359_s3 + $0x8] sm:$0xff] %v190_v45  ;;  %v206_v48 = vadd.f32 %v205_v46, %v204_v42 }
 0x104   :  { %207 = vst [vmem:[%s360_s4] sm:$0xff] %v200_v47 }
 0x105   :  { %208 = vst [vmem:[%s360_s4 + $0x8] sm:$0xff] %v206_v48 }

// kernel: resnet_forward.66
= control target key start
LH: loop header
LB: loop body
LE: loop exit
PB: predicated region body
PF: predicated region fallthrough
CT: control target
= control target key end

     0   :  { %v19_v0 = vlaneseq  ;;  %s92_s0 = inlined_call_operand.vmem [shape: bf16[8,256], index: 0, kind: input, shape index: {}]   ;;  %s93_s1 = inlined_call_operand.vmem [shape: f32[1,256], index: 1, kind: input, shape index: {}]   ;;  %s94_s2 = inlined_call_operand.vmem [shape: f32[1,256], index: 2, kind: input, shape index: {}]   ;;  %s95_s3 = inlined_call_operand.vmem [shape: bf16[8,256], index: 3, kind: output, shape index: {}]  }
   0x1   :  { %v14_v1 = vld [vmem:[%s92_s0] sm:$0xff] }
   0x2   :  { %v20_v2 = vshrl.u32 %v19_v0, 7  ;;  %v17_v3 = vld [vmem:[%s93_s1] sm:$0x3]  ;;  %v15_v5 = vunpack.c.l.bf16 %v14_v1  ;;  %v16_v6 = vunpack.c.h.bf16 %v14_v1 }
   0x3   :  { %v31_v4 = vld [vmem:[%s94_s2] sm:$0x3] }
   0x4   :  { %v21_v7 = vsub.s32 0, %v20_v2  ;;  %v25_v8 = vsub.s32 1, %v20_v2 }
   0x6   :  { %v22_v9 = vrot.slane %v17_v3, %v21_v7  ;;  %v26_v10 = vrot.slane %v17_v3, %v25_v8  ;;  %v36_v11 = vrot.slane %v31_v4, %v21_v7  ;;  %v40_v12 = vrot.slane %v31_v4, %v25_v8 }
   0x8   :  { %v29_v13 = vmul.f32 %v22_v9, %v15_v5  ;;  %v30_v14 = vmul.f32 %v26_v10, %v16_v6 }
   0xa   :  { %v43_v15 = vadd.f32 %v36_v11, %v29_v13  ;;  %v44_v16 = vadd.f32 %v40_v12, %v30_v14 }
   0xc   :  { %v59_v17 = vpack.c.bf16 %v44_v16, %v43_v15 }
   0xe   :  { %53 = vst [vmem:[%s95_s3] sm:$0xff] %v59_v17 }

// kernel: resnet_forward.63
= control target key start
LH: loop header
LB: loop body
LE: loop exit
PB: predicated region body
PF: predicated region fallthrough
CT: control target
= control target key end

     0   :  { %s1010_s15 = smov 0   ;;  %s1012_s16 = smov 0   ;;  %s1101_s0 = inlined_call_operand.vmem [shape: bf16[8,1280], index: 0, kind: input, shape index: {}]   ;;  %s1102_s1 = inlined_call_operand.vmem [shape: bf16[1280,256], index: 1, kind: input, shape index: {}]   ;;  %s1103_s2 = inlined_call_operand.vmem [shape: bf16[8,256], index: 2, kind: output, shape index: {0}]   ;;  %s1104_s3 = inlined_call_operand.vmem [shape: f32[8,256], index: 3, kind: output, shape index: {1}]   ;;  %s1105_s4 = inlined_call_operand.vmem [shape: f32[8,256], index: 4, kind: output, shape index: {2}]  }
   0x1   :  { %s1014_s17 = smov 0  }
   0x2 LB: > { %s27_s18 = sadd.s32 1, %s978_s16  ;;  %p832_p0 = scmp.ge.s32.totalorder %s982_s17, 1  ;;  %s982_s17 = sphi %s1014_s17, %s15_s17   ;;  %s978_s16 = sphi %s1012_s16, %s1107_s16   ;;  %s974_s15 = sphi %s1010_s15, %s1106_s15  }
   0x3   : > { %p28_p1 = scmp.ge.s32.totalorder %s27_s18, 5  ;;  %p218_p2 = scmp.lt.s32.totalorder %s982_s17, 6 }
   0x5   : > { %s1109_s18 = smov (%p28_p1, %s27_s18), 0  ;;  %p219_p3 = pnand %p832_p0, %p218_p2 }
   0x6   : > { %s833_s19 = sshll.u32 (!%p219_p3), %s974_s15, 1  ;;  %s835_s20 = sshll.u32 (!%p219_p3), %s974_s15, 5 }
   0x7   : > { %222 = sbr.rel (%p219_p3) target bundleno = 327 (0x147), region = 28  ;;  %p283_p4 = scmp.lt.s32.totalorder (!%p219_p3), %s833_s19, 9 }
   0x8   : > { %p292_p5 = scmp.lt.s32.totalorder (!%p219_p3), %s835_s20, 159  ;;  %p838_p6 = scmp.ne.s32.totalorder (!%p219_p3), %s974_s15, 0 }
   0xe   : > { %s1111_s19 = smov (!%p283_p4, %s833_s19), 9  ;;  %s1113_s20 = smov (!%p292_p5, %s835_s20), 159 }
   0xf   : > { %s834_s21 = sshll.u32 %s1111_s19, 2  ;;  %s883_s25 = sshll.u32 %s1113_s20, 3  ;;  %v984_v0 = vmov (!%p838_p6), 0.0  }
  0x10   : > { %s1035_s24 = scalar_lea.vmem %s1101_s0, %s834_s21  ;;  %s1040_s28 = scalar_lea.vmem %s1102_s1, %s883_s25  ;;  %336 = vst [vmem:[#allocation2] sm:$0xff] (!%p838_p6), %v984_v0  ;;  %337 = vst [vmem:[#allocation2 + $0x8] sm:$0xff] (!%p838_p6), %v984_v0 }
  0x11   : > { %335 = sbr.rel (%p838_p6) target bundleno = 24 (0x18), region = 32 }
  0x18 PF: > { %v910_v1 = vld [vmem:[%s1040_s28 + $0x4] ss:$8 sps:$4 sm:$0xff]   ;;  %v912_v2 = vld [vmem:[%s1040_s28] ss:$8 sps:$4 sm:$0xff]   ;;  %v913_v3 = vld [vmem:[%s1040_s28 + $0x14] ss:$8 sps:$4 sm:$0xff]  }
  0x19   : > { %540 = vmatprep.subr.bf16.mxu0 %v910_v1  ;;  %v915_v4 = vld [vmem:[%s1040_s28 + $0x10] ss:$8 sps:$4 sm:$0xff]   ;;  %v916_v5 = vld [vmem:[%s1040_s28 + $0x24] ss:$8 sps:$4 sm:$0xff]   ;;  %v918_v6 = vld [vmem:[%s1040_s28 + $0x20] ss:$8 sps:$4 sm:$0xff]  }
  0x1a   : > { %541 = vmatpush1.bf16.msra.mxu0 %v912_v2  ;;  %v919_v7 = vld [vmem:[%s1040_s28 + $0x34] ss:$8 sps:$4 sm:$0xff]   ;;  %v921_v8 = vld [vmem:[%s1040_s28 + $0x30] ss:$8 sps:$4 sm:$0xff]   ;;  %v922_v9 = vld [vmem:[%s1040_s28 + $0x44] ss:$8 sps:$4 sm:$0xff]  }
  0x1b   : > { %542 = vmatprep.subr.bf16.mxu0 %v913_v3  ;;  %v924_v10 = vld [vmem:[%s1040_s28 + $0x40] ss:$8 sps:$4 sm:$0xff]   ;;  %v925_v11 = vld [vmem:[%s1040_s28 + $0x54] ss:$8 sps:$4 sm:$0xff]   ;;  %v927_v12 = vld [vmem:[%s1040_s28 + $0x50] ss:$8 sps:$4 sm:$0xff]  }
  0x1c   : > { %v928_v13 = vld [vmem:[%s1040_s28 + $0x64] ss:$8 sps:$4 sm:$0xff]   ;;  %v930_v16 = vld [vmem:[%s1040_s28 + $0x60] ss:$8 sps:$4 sm:$0xff]   ;;  %v931_v17 = vld [vmem:[%s1040_s28 + $0x74] ss:$8 sps:$4 sm:$0xff]  }
  0x1d   : > { %v340_v14 = vld [vmem:[%s1035_s24] sm:$0xff]  ;;  %v933_v18 = vld [vmem:[%s1040_s28 + $0x70] ss:$8 sps:$4 sm:$0xff]   ;;  %v937_v21 = vld [vmem:[%s1040_s28 + $0x94] ss:$8 sps:$4 sm:$0xff]   ;;  %p873_p7 = scmp.ne.s32.totalorder %s974_s15, 4 }
  0x1e   : > { %543 = vmatpush1.bf16.msra.mxu0 %v915_v4  ;;  %v840_v15 = vcombine.high %v340_v14, %v340_v14  ;;  %v934_v19 = vld [vmem:[%s1040_s28 + $0x84] ss:$8 sps:$4 sm:$0xff]   ;;  %v936_v20 = vld [vmem:[%s1040_s28 + $0x80] ss:$8 sps:$4 sm:$0xff]   ;;  %v939_v22 = vld [vmem:[%s1040_s28 + $0x90] ss:$8 sps:$4 sm:$0xff]   ;;  %v839_v35 = vcombine.low %v340_v14, %v340_v14 }
  0x1f   : > { %544 = vmatprep.subr.bf16.mxu0 %v916_v5  ;;  %v940_v23 = vld [vmem:[%s1040_s28 + $0xa4] ss:$8 sps:$4 sm:$0xff]   ;;  %v942_v24 = vld [vmem:[%s1040_s28 + $0xa0] ss:$8 sps:$4 sm:$0xff]   ;;  %v943_v25 = vld [vmem:[%s1040_s28 + $0xb4] ss:$8 sps:$4 sm:$0xff]  }
  0x20   : > { %572 = vmatprep.mubr.bf16.mxu0 %v840_v15  ;;  %v945_v26 = vld [vmem:[%s1040_s28 + $0xb0] ss:$8 sps:$4 sm:$0xff]   ;;  %v946_v27 = vld [vmem:[%s1040_s28 + $0xc4] ss:$8 sps:$4 sm:$0xff]   ;;  %v948_v28 = vld [vmem:[%s1040_s28 + $0xc0] ss:$8 sps:$4 sm:$0xff]  }
  0x21   : > { %v949_v29 = vld [vmem:[%s1040_s28 + $0xd4] ss:$8 sps:$4 sm:$0xff]   ;;  %v951_v30 = vld [vmem:[%s1040_s28 + $0xd0] ss:$8 sps:$4 sm:$0xff]   ;;  %v952_v31 = vld [vmem:[%s1040_s28 + $0xe4] ss:$8 sps:$4 sm:$0xff]  }
  0x22   : > { %545 = vmatpush1.bf16.msra.mxu0 %v918_v6  ;;  %v954_v32 = vld [vmem:[%s1040_s28 + $0xe0] ss:$8 sps:$4 sm:$0xff]   ;;  %v955_v33 = vld [vmem:[%s1040_s28 + $0xf4] ss:$8 sps:$4 sm:$0xff]   ;;  %v957_v34 = vld [vmem:[%s1040_s28 + $0xf0] ss:$8 sps:$4 sm:$0xff]  }
  0x23   : > { %546 = vmatprep.subr.bf16.mxu0 %v919_v7  ;;  %v338_v36 = vld [vmem:[#allocation2] sm:$0xff]  ;;  %v339_v37 = vld [vmem:[#allocation2 + $0x8] sm:$0xff] }
  0x26   : > { %547 = vmatpush1.bf16.msra.mxu0 %v921_v8 }
  0x27   : > { %548 = vmatprep.subr.bf16.mxu0 %v922_v9 }
  0x2a   : > { %549 = vmatpush1.bf16.msra.mxu0 %v924_v10 }
  0x2b   : > { %550 = vmatprep.subr.bf16.mxu0 %v925_v11 }
  0x2e   : > { %551 = vmatpush1.bf16.msra.mxu0 %v927_v12 }
  0x2f   : > { %552 = vmatprep.subr.bf16.mxu0 %v928_v13 }
  0x32   : > { %553 = vmatpush1.bf16.msra.mxu0 %v930_v16 }
  0x33   : > { %554 = vmatprep.subr.bf16.mxu0 %v931_v17 }
  0x36   : > { %555 = vmatpush1.bf16.msra.mxu0 %v933_v18 }
  0x37   : > { %556 = vmatprep.subr.bf16.mxu0 %v934_v19 }
  0x3a   : > { %557 = vmatpush1.bf16.msra.mxu0 %v936_v20 }
  0x3b   : > { %558 = vmatprep.subr.bf16.mxu0 %v937_v21 }
  0x3e   : > { %559 = vmatpush1.bf16.msra.mxu0 %v939_v22 }
  0x3f   : > { %560 = vmatprep.subr.bf16.mxu0 %v940_v23 }
  0x42   : > { %561 = vmatpush1.bf16.msra.mxu0 %v942_v24 }
  0x43   : > { %562 = vmatprep.subr.bf16.mxu0 %v943_v25 }
  0x46   : > { %563 = vmatpush1.bf16.msra.mxu0 %v945_v26 }
  0x47   : > { %564 = vmatprep.subr.bf16.mxu0 %v946_v27 }
  0x4a   : > { %565 = vmatpush1.bf16.msra.mxu0 %v948_v28 }
  0x4b   : > { %566 = vmatprep.subr.bf16.mxu0 %v949_v29 }
  0x4e   : > { %567 = vmatpush1.bf16.msra.mxu0 %v951_v30 }
  0x4f   : > { %568 = vmatprep.subr.bf16.mxu0 %v952_v31 }
  0x52   : > { %569 = vmatpush1.bf16.msra.mxu0 %v954_v32 }
  0x53   : > { %570 = vmatprep.subr.bf16.mxu0 %v955_v33 }
  0x56   : > { %571 = vmatpush1.bf16.msra.mxu0 %v957_v34 }
  0x59   : > { %573 = vmatmul.mubr.bf16.vlgmr.msra.gmra.mrb[0].mxu0 %v839_v35 }
 0x12a   : > { %588 = sbr.rel (%p873_p7) target bundleno = 327 (0x147), region = 36 }
 0x12c   : > { %v574_v38 = vpop.f32.mrb[0].mxu0 }
 0x12d   : > { %v581_v39 = vadd.f32 %v574_v38, %v338_v36  ;;  %v576_v40 = vpop.f32.mrb[1].mxu0 }
 0x12e   : > { %v582_v41 = vadd.f32 %v576_v40, %v339_v37  ;;  %v578_v42 = vpop.f32.mrb[2].mxu0 }
 0x12f   : > { %583 = vst [vmem:[#allocation2] sm:$0xff] %v581_v39  ;;  %v579_v43 = vpop.f32.mrb[3].mxu0 }
 0x130   : > { %584 = vst [vmem:[#allocation2 + $0x8] sm:$0xff] %v582_v41 }
 0x136   : > { %v589_v44 = vld [vmem:[#allocation2] sm:$0xff] }
 0x137   : > { %v590_v45 = vld [vmem:[#allocation2 + $0x8] sm:$0xff]  ;;  %v600_v47 = vrot.slane %v589_v44, 4  ;;  %v614_v49 = vmul.f32 %v589_v44, %v589_v44 }
 0x138   : > { %v884_v46 = vpack.c.bf16 %v590_v45, %v589_v44  ;;  %v606_v48 = vrot.slane %v590_v45, 4  ;;  %v615_v50 = vmul.f32 %v590_v45, %v590_v45 }
 0x139   : > { %v601_v51 = vadd.f32 %v600_v47, %v589_v44  ;;  %v616_v53 = vrot.slane %v614_v49, 4 }
 0x13a   : > { %599 = vst [vmem:[%s1103_s2] sm:$0xff] %v884_v46  ;;  %v607_v52 = vadd.f32 %v606_v48, %v590_v45  ;;  %v622_v54 = vrot.slane %v615_v50, 4 }
 0x13b   : > { %v602_v55 = vrot.slane %v601_v51, 2  ;;  %v617_v57 = vadd.f32 %v616_v53, %v614_v49 }
 0x13c   : > { %v608_v56 = vrot.slane %v607_v52, 2  ;;  %v623_v58 = vadd.f32 %v622_v54, %v615_v50 }
 0x13d   : > { %v603_v59 = vadd.f32 %v602_v55, %v601_v51  ;;  %v618_v61 = vrot.slane %v617_v57, 2 }
 0x13e   : > { %v609_v60 = vadd.f32 %v608_v56, %v607_v52  ;;  %v624_v62 = vrot.slane %v623_v58, 2 }
 0x13f   : > { %v604_v63 = vrot.slane %v603_v59, 1  ;;  %v619_v1 = vadd.f32 %v618_v61, %v617_v57 }
 0x140   : > { %v610_v0 = vrot.slane %v609_v60, 1  ;;  %v625_v2 = vadd.f32 %v624_v62, %v623_v58 }
 0x141   : > { %v605_v3 = vadd.f32 %v604_v63, %v603_v59  ;;  %v620_v5 = vrot.slane %v619_v1, 1 }
 0x142   : > { %v611_v4 = vadd.f32 %v610_v0, %v609_v60  ;;  %v626_v6 = vrot.slane %v625_v2, 1 }
 0x143   : > { %612 = vst [vmem:[%s1104_s3] sm:$0xff] %v605_v3  ;;  %v621_v7 = vadd.f32 %v620_v5, %v619_v1 }
 0x144   : > { %613 = vst [vmem:[%s1104_s3 + $0x8] sm:$0xff] %v611_v4  ;;  %v627_v8 = vadd.f32 %v626_v6, %v625_v2 }
 0x145   : > { %628 = vst [vmem:[%s1105_s4] sm:$0xff] %v621_v7 }
 0x146   : > { %629 = vst [vmem:[%s1105_s4 + $0x8] sm:$0xff] %v627_v8 }
 0x147 PF: > { %s15_s17 = sadd.s32 1, %s982_s17   ;;  %s1106_s15 = smov %s978_s16 }
 0x148   : > { %p12_p8 = scmp.ge.s32.totalorder %s15_s17, 7   ;;  %s1107_s16 = smov %s1109_s18 }
 0x14a   :  { %14 = sbr.rel (!%p12_p8) target bundleno = 2 (0x2), region = 93 }

// kernel: resnet_forward.64
= control target key start
LH: loop header
LB: loop body
LE: loop exit
PB: predicated region body
PF: predicated region fallthrough
CT: control target
= control target key end

     0   :  { %v19_v0 = vlaneseq  ;;  %s94_s0 = inlined_call_operand.vmem [shape: bf16[8,256], index: 0, kind: input, shape index: {}]   ;;  %s95_s1 = inlined_call_operand.vmem [shape: f32[1,256], index: 1, kind: input, shape index: {}]   ;;  %s96_s2 = inlined_call_operand.vmem [shape: f32[1,256], index: 2, kind: input, shape index: {}]   ;;  %s97_s3 = inlined_call_operand.vmem [shape: bf16[8,256], index: 3, kind: output, shape index: {}]  }
   0x1   :  { %v14_v1 = vld [vmem:[%s94_s0] sm:$0xff] }
   0x2   :  { %v20_v2 = vshrl.u32 %v19_v0, 7  ;;  %v17_v3 = vld [vmem:[%s95_s1] sm:$0x3]  ;;  %v15_v5 = vunpack.c.l.bf16 %v14_v1  ;;  %v16_v6 = vunpack.c.h.bf16 %v14_v1 }
   0x3   :  { %v31_v4 = vld [vmem:[%s96_s2] sm:$0x3] }
   0x4   :  { %v21_v7 = vsub.s32 0, %v20_v2  ;;  %v25_v8 = vsub.s32 1, %v20_v2 }
   0x6   :  { %v22_v9 = vrot.slane %v17_v3, %v21_v7  ;;  %v26_v10 = vrot.slane %v17_v3, %v25_v8  ;;  %v36_v11 = vrot.slane %v31_v4, %v21_v7  ;;  %v40_v12 = vrot.slane %v31_v4, %v25_v8 }
   0x8   :  { %v29_v13 = vmul.f32 %v22_v9, %v15_v5  ;;  %v30_v14 = vmul.f32 %v26_v10, %v16_v6 }
   0xa   :  { %v43_v15 = vadd.f32 %v36_v11, %v29_v13  ;;  %v44_v16 = vadd.f32 %v40_v12, %v30_v14 }
   0xc   :  { %v45_v17 = vmax.f32 %v43_v15, 0.0  ;;  %v46_v18 = vmax.f32 %v44_v16, 0.0 }
   0xe   :  { %v61_v19 = vpack.c.bf16 %v46_v18, %v45_v17 }
  0x10   :  { %55 = vst [vmem:[%s97_s3] sm:$0xff] %v61_v19 }

// kernel: resnet_forward.68
= control target key start
LH: loop header
LB: loop body
LE: loop exit
PB: predicated region body
PF: predicated region fallthrough
CT: control target
= control target key end

     0   :  { %v22_v0 = vlaneseq  ;;  %s110_s0 = inlined_call_operand.vmem [shape: bf16[8,256], index: 0, kind: input, shape index: {}]   ;;  %s111_s1 = inlined_call_operand.vmem [shape: f32[1,256], index: 1, kind: input, shape index: {}]   ;;  %s112_s2 = inlined_call_operand.vmem [shape: f32[1,256], index: 2, kind: input, shape index: {}]   ;;  %s113_s3 = inlined_call_operand.vmem [shape: bf16[8,256], index: 3, kind: input, shape index: {}]   ;;  %s114_s4 = inlined_call_operand.vmem [shape: bf16[8,256], index: 4, kind: output, shape index: {}]  }
   0x1   :  { %v17_v1 = vld [vmem:[%s110_s0] sm:$0xff] }
   0x2   :  { %v23_v2 = vshrl.u32 %v22_v0, 7  ;;  %v20_v3 = vld [vmem:[%s111_s1] sm:$0x3]  ;;  %v18_v5 = vunpack.c.l.bf16 %v17_v1  ;;  %v19_v6 = vunpack.c.h.bf16 %v17_v1 }
   0x3   :  { %v34_v4 = vld [vmem:[%s112_s2] sm:$0x3] }
   0x4   :  { %v24_v7 = vsub.s32 0, %v23_v2  ;;  %v28_v8 = vsub.s32 1, %v23_v2  ;;  %v48_v9 = vld [vmem:[%s113_s3] sm:$0xff] }
   0x5   :  { %v49_v16 = vunpack.c.l.bf16 %v48_v9  ;;  %v50_v17 = vunpack.c.h.bf16 %v48_v9 }
   0x6   :  { %v25_v10 = vrot.slane %v20_v3, %v24_v7  ;;  %v29_v11 = vrot.slane %v20_v3, %v28_v8  ;;  %v39_v12 = vrot.slane %v34_v4, %v24_v7  ;;  %v43_v13 = vrot.slane %v34_v4, %v28_v8 }
   0x8   :  { %v32_v14 = vmul.f32 %v25_v10, %v18_v5  ;;  %v33_v15 = vmul.f32 %v29_v11, %v19_v6 }
   0xa   :  { %v46_v18 = vadd.f32 %v39_v12, %v32_v14  ;;  %v47_v19 = vadd.f32 %v43_v13, %v33_v15 }
   0xc   :  { %v51_v20 = vadd.f32 %v49_v16, %v46_v18  ;;  %v52_v21 = vadd.f32 %v50_v17, %v47_v19 }
   0xe   :  { %v53_v22 = vmax.f32 %v51_v20, 0.0  ;;  %v54_v23 = vmax.f32 %v52_v21, 0.0 }
  0x10   :  { %v69_v24 = vpack.c.bf16 %v54_v23, %v53_v22 }
  0x12   :  { %63 = vst [vmem:[%s114_s4] sm:$0xff] %v69_v24 }

// kernel: resnet_forward.67
= control target key start
LH: loop header
LB: loop body
LE: loop exit
PB: predicated region body
PF: predicated region fallthrough
CT: control target
= control target key end

     0   :  { %s1335_s15 = smov 0   ;;  %s1337_s16 = smov 0   ;;  %s1459_s0 = inlined_call_operand.vmem [shape: bf16[8,2560], index: 0, kind: input, shape index: {}]   ;;  %s1460_s1 = inlined_call_operand.vmem [shape: bf16[2560,256], index: 1, kind: input, shape index: {}]   ;;  %s1461_s2 = inlined_call_operand.vmem [shape: bf16[8,256], index: 2, kind: output, shape index: {0}]   ;;  %s1462_s3 = inlined_call_operand.vmem [shape: f32[8,256], index: 3, kind: output, shape index: {1}]   ;;  %s1463_s4 = inlined_call_operand.vmem [shape: f32[8,256], index: 4, kind: output, shape index: {2}]  }
   0x1   :  { %s1339_s17 = smov 0  }
   0x2 LB: > { %s27_s18 = sadd.s32 1, %s1303_s16  ;;  %p1073_p0 = scmp.ge.s32.totalorder %s1307_s17, 1  ;;  %s1307_s17 = sphi %s1339_s17, %s15_s17   ;;  %s1303_s16 = sphi %s1337_s16, %s1465_s16   ;;  %s1299_s15 = sphi %s1335_s15, %s1464_s15  }
   0x3   : > { %p28_p1 = scmp.ge.s32.totalorder %s27_s18, 5  ;;  %p218_p2 = scmp.lt.s32.totalorder %s1307_s17, 6 }
   0x5   : > { %s1467_s18 = smov (%p28_p1, %s27_s18), 0  ;;  %p219_p3 = pnand %p1073_p0, %p218_p2 }
   0x6   : > { %s1074_s19 = sshll.u32 (!%p219_p3), %s1299_s15, 2  ;;  %s1076_s20 = sshll.u32 (!%p219_p3), %s1299_s15, 6 }
   0x7   : > { %222 = sbr.rel (%p219_p3) target bundleno = 330 (0x14a), region = 28  ;;  %p283_p4 = scmp.lt.s32.totalorder (!%p219_p3), %s1074_s19, 19 }
   0x8   : > { %p292_p5 = scmp.lt.s32.totalorder (!%p219_p3), %s1076_s20, 319  ;;  %p1079_p6 = scmp.ne.s32.totalorder (!%p219_p3), %s1299_s15, 0 }
   0xe   : > { %s1469_s19 = smov (!%p283_p4, %s1074_s19), 19  ;;  %s1471_s20 = smov (!%p292_p5, %s1076_s20), 319 }
   0xf   : > { %s1075_s21 = sshll.u32 %s1469_s19, 2  ;;  %s1158_s25 = sshll.u32 %s1471_s20, 3  ;;  %v1309_v0 = vmov (!%p1079_p6), 0.0  }
  0x10   : > { %s1360_s24 = scalar_lea.vmem %s1459_s0, %s1075_s21  ;;  %s1365_s28 = scalar_lea.vmem %s1460_s1, %s1158_s25  ;;  %336 = vst [vmem:[#allocation2] sm:$0xff] (!%p1079_p6), %v1309_v0  ;;  %337 = vst [vmem:[#allocation2 + $0x8] sm:$0xff] (!%p1079_p6), %v1309_v0 }
  0x11   : > { %335 = sbr.rel (%p1079_p6) target bundleno = 24 (0x18), region = 32 }
  0x18 PF: > { %v1185_v1 = vld [vmem:[%s1365_s28 + $0x4] ss:$8 sps:$4 sm:$0xff]   ;;  %v1189_v3 = vld [vmem:[%s1365_s28] ss:$8 sps:$4 sm:$0xff]   ;;  %v1191_v5 = vld [vmem:[%s1365_s28 + $0x14] ss:$8 sps:$4 sm:$0xff]  }
  0x19   : > { %v1187_v2 = vld [vmem:[%s1365_s28 + $0x104] ss:$8 sps:$4 sm:$0xff]   ;;  %740 = vmatprep.subr.bf16.mxu0 %v1185_v1  ;;  %v1190_v4 = vld [vmem:[%s1365_s28 + $0x100] ss:$8 sps:$4 sm:$0xff]   ;;  %v1193_v6 = vld [vmem:[%s1365_s28 + $0x114] ss:$8 sps:$4 sm:$0xff]  }
  0x1a   : > { %781 = vmatprep.subr.bf16.mxu1 %v1187_v2  ;;  %741 = vmatpush1.bf16.msra.mxu0 %v1189_v3  ;;  %v1195_v7 = vld [vmem:[%s1365_s28 + $0x10] ss:$8 sps:$4 sm:$0xff]   ;;  %v1197_v9 = vld [vmem:[%s1365_s28 + $0x24] ss:$8 sps:$4 sm:$0xff]   ;;  %v1201_v11 = vld [vmem:[%s1365_s28 + $0x20] ss:$8 sps:$4 sm:$0xff]  }
  0x1b   : > { %782 = vmatpush1.bf16.msra.mxu1 %v1190_v4  ;;  %742 = vmatprep.subr.bf16.mxu0 %v1191_v5  ;;  %v1196_v8 = vld [vmem:[%s1365_s28 + $0x110] ss:$8 sps:$4 sm:$0xff]   ;;  %v1199_v10 = vld [vmem:[%s1365_s28 + $0x124] ss:$8 sps:$4 sm:$0xff]   ;;  %v1202_v12 = vld [vmem:[%s1365_s28 + $0x120] ss:$8 sps:$4 sm:$0xff]  }
  0x1c   : > { %783 = vmatprep.subr.bf16.mxu1 %v1193_v6  ;;  %v1203_v13 = vld [vmem:[%s1365_s28 + $0x34] ss:$8 sps:$4 sm:$0xff]   ;;  %v1207_v15 = vld [vmem:[%s1365_s28 + $0x30] ss:$8 sps:$4 sm:$0xff]   ;;  %v1209_v17 = vld [vmem:[%s1365_s28 + $0x44] ss:$8 sps:$4 sm:$0xff]  }
  0x1d   : > { %v1205_v14 = vld [vmem:[%s1365_s28 + $0x134] ss:$8 sps:$4 sm:$0xff]   ;;  %v1208_v16 = vld [vmem:[%s1365_s28 + $0x130] ss:$8 sps:$4 sm:$0xff]   ;;  %v1211_v18 = vld [vmem:[%s1365_s28 + $0x144] ss:$8 sps:$4 sm:$0xff]  }
  0x1e   : > { %743 = vmatpush1.bf16.msra.mxu0 %v1195_v7  ;;  %v1213_v19 = vld [vmem:[%s1365_s28 + $0x40] ss:$8 sps:$4 sm:$0xff]   ;;  %v1215_v21 = vld [vmem:[%s1365_s28 + $0x54] ss:$8 sps:$4 sm:$0xff]   ;;  %v1219_v23 = vld [vmem:[%s1365_s28 + $0x50] ss:$8 sps:$4 sm:$0xff]  }
  0x1f   : > { %784 = vmatpush1.bf16.msra.mxu1 %v1196_v8  ;;  %744 = vmatprep.subr.bf16.mxu0 %v1197_v9  ;;  %v1214_v20 = vld [vmem:[%s1365_s28 + $0x140] ss:$8 sps:$4 sm:$0xff]   ;;  %v1217_v22 = vld [vmem:[%s1365_s28 + $0x154] ss:$8 sps:$4 sm:$0xff]   ;;  %v1220_v24 = vld [vmem:[%s1365_s28 + $0x150] ss:$8 sps:$4 sm:$0xff]  }
  0x20   : > { %785 = vmatprep.subr.bf16.mxu1 %v1199_v10  ;;  %v1221_v25 = vld [vmem:[%s1365_s28 + $0x64] ss:$8 sps:$4 sm:$0xff]   ;;  %v1225_v27 = vld [vmem:[%s1365_s28 + $0x60] ss:$8 sps:$4 sm:$0xff]   ;;  %v1227_v29 = vld [vmem:[%s1365_s28 + $0x74] ss:$8 sps:$4 sm:$0xff]  }
  0x21   : > { %v1223_v26 = vld [vmem:[%s1365_s28 + $0x164] ss:$8 sps:$4 sm:$0xff]   ;;  %v1226_v28 = vld [vmem:[%s1365_s28 + $0x160] ss:$8 sps:$4 sm:$0xff]   ;;  %v1229_v30 = vld [vmem:[%s1365_s28 + $0x174] ss:$8 sps:$4 sm:$0xff]  }
  0x22   : > { %745 = vmatpush1.bf16.msra.mxu0 %v1201_v11  ;;  %v1231_v31 = vld [vmem:[%s1365_s28 + $0x70] ss:$8 sps:$4 sm:$0xff]   ;;  %v1233_v33 = vld [vmem:[%s1365_s28 + $0x84] ss:$8 sps:$4 sm:$0xff]   ;;  %v1237_v35 = vld [vmem:[%s1365_s28 + $0x80] ss:$8 sps:$4 sm:$0xff]  }
  0x23   : > { %786 = vmatpush1.bf16.msra.mxu1 %v1202_v12  ;;  %746 = vmatprep.subr.bf16.mxu0 %v1203_v13  ;;  %v1232_v32 = vld [vmem:[%s1365_s28 + $0x170] ss:$8 sps:$4 sm:$0xff]   ;;  %v1235_v34 = vld [vmem:[%s1365_s28 + $0x184] ss:$8 sps:$4 sm:$0xff]   ;;  %v1238_v36 = vld [vmem:[%s1365_s28 + $0x180] ss:$8 sps:$4 sm:$0xff]  }
  0x24   : > { %787 = vmatprep.subr.bf16.mxu1 %v1205_v14  ;;  %v1239_v37 = vld [vmem:[%s1365_s28 + $0x94] ss:$8 sps:$4 sm:$0xff]   ;;  %v1243_v39 = vld [vmem:[%s1365_s28 + $0x90] ss:$8 sps:$4 sm:$0xff]   ;;  %v1245_v41 = vld [vmem:[%s1365_s28 + $0xa4] ss:$8 sps:$4 sm:$0xff]  }
  0x25   : > { %v1241_v38 = vld [vmem:[%s1365_s28 + $0x194] ss:$8 sps:$4 sm:$0xff]   ;;  %v1244_v40 = vld [vmem:[%s1365_s28 + $0x190] ss:$8 sps:$4 sm:$0xff]   ;;  %v1247_v42 = vld [vmem:[%s1365_s28 + $0x1a4] ss:$8 sps:$4 sm:$0xff]  }
  0x26   : > { %747 = vmatpush1.bf16.msra.mxu0 %v1207_v15  ;;  %v1249_v43 = vld [vmem:[%s1365_s28 + $0xa0] ss:$8 sps:$4 sm:$0xff]   ;;  %v1251_v45 = vld [vmem:[%s1365_s28 + $0xb4] ss:$8 sps:$4 sm:$0xff]   ;;  %v1255_v50 = vld [vmem:[%s1365_s28 + $0xb0] ss:$8 sps:$4 sm:$0xff]  }
  0x27   : > { %788 = vmatpush1.bf16.msra.mxu1 %v1208_v16  ;;  %748 = vmatprep.subr.bf16.mxu0 %v1209_v17  ;;  %v1250_v44 = vld [vmem:[%s1365_s28 + $0x1a0] ss:$8 sps:$4 sm:$0xff]   ;;  %v1253_v46 = vld [vmem:[%s1365_s28 + $0x1b4] ss:$8 sps:$4 sm:$0xff]   ;;  %v1256_v51 = vld [vmem:[%s1365_s28 + $0x1b0] ss:$8 sps:$4 sm:$0xff]  }
  0x28   : > { %789 = vmatprep.subr.bf16.mxu1 %v1211_v18  ;;  %v340_v47 = vld [vmem:[%s1360_s24] sm:$0xff]  ;;  %v341_v49 = vld [vmem:[%s1360_s24 + $0x8] sm:$0xff]  ;;  %v1263_v57 = vld [vmem:[%s1365_s28 + $0xd4] ss:$8 sps:$4 sm:$0xff]   ;;  %p1148_p7 = scmp.ne.s32.totalorder %s1299_s15, 4 }
  0x29   : > { %v1081_v48 = vcombine.high %v340_v47, %v340_v47  ;;  %v1083_v52 = vcombine.high %v341_v49, %v341_v49  ;;  %v1257_v53 = vld [vmem:[%s1365_s28 + $0xc4] ss:$8 sps:$4 sm:$0xff]   ;;  %v1261_v55 = vld [vmem:[%s1365_s28 + $0xc0] ss:$8 sps:$4 sm:$0xff]   ;;  %v1265_v58 = vld [vmem:[%s1365_s28 + $0x1d4] ss:$8 sps:$4 sm:$0xff]   ;;  %v1080_v5 = vcombine.low %v340_v47, %v340_v47  ;;  %v1082_v6 = vcombine.low %v341_v49, %v341_v49 }
  0x2a   : > { %749 = vmatpush1.bf16.msra.mxu0 %v1213_v19  ;;  %v1259_v54 = vld [vmem:[%s1365_s28 + $0x1c4] ss:$8 sps:$4 sm:$0xff]   ;;  %v1262_v56 = vld [vmem:[%s1365_s28 + $0x1c0] ss:$8 sps:$4 sm:$0xff]   ;;  %v1267_v59 = vld [vmem:[%s1365_s28 + $0xd0] ss:$8 sps:$4 sm:$0xff]  }
  0x2b   : > { %790 = vmatpush1.bf16.msra.mxu1 %v1214_v20  ;;  %750 = vmatprep.subr.bf16.mxu0 %v1215_v21  ;;  %v1268_v60 = vld [vmem:[%s1365_s28 + $0x1d0] ss:$8 sps:$4 sm:$0xff]   ;;  %v1269_v61 = vld [vmem:[%s1365_s28 + $0xe4] ss:$8 sps:$4 sm:$0xff]   ;;  %v1273_v63 = vld [vmem:[%s1365_s28 + $0xe0] ss:$8 sps:$4 sm:$0xff]  }
  0x2c   : > { %791 = vmatprep.subr.bf16.mxu1 %v1217_v22  ;;  %772 = vmatprep.mubr.bf16.mxu0 %v1081_v48  ;;  %v1271_v62 = vld [vmem:[%s1365_s28 + $0x1e4] ss:$8 sps:$4 sm:$0xff]   ;;  %v1274_v0 = vld [vmem:[%s1365_s28 + $0x1e0] ss:$8 sps:$4 sm:$0xff]   ;;  %v1275_v1 = vld [vmem:[%s1365_s28 + $0xf4] ss:$8 sps:$4 sm:$0xff]  }
  0x2d   : > { %813 = vmatprep.mubr.bf16.mxu1 %v1083_v52  ;;  %v1277_v2 = vld [vmem:[%s1365_s28 + $0x1f4] ss:$8 sps:$4 sm:$0xff]   ;;  %v1279_v3 = vld [vmem:[%s1365_s28 + $0xf0] ss:$8 sps:$4 sm:$0xff]   ;;  %v338_v8 = vld [vmem:[#allocation2] sm:$0xff] }
  0x2e   : > { %751 = vmatpush1.bf16.msra.mxu0 %v1219_v23  ;;  %v1280_v4 = vld [vmem:[%s1365_s28 + $0x1f0] ss:$8 sps:$4 sm:$0xff]   ;;  %v339_v12 = vld [vmem:[#allocation2 + $0x8] sm:$0xff] }
  0x2f   : > { %792 = vmatpush1.bf16.msra.mxu1 %v1220_v24  ;;  %752 = vmatprep.subr.bf16.mxu0 %v1221_v25 }
  0x30   : > { %793 = vmatprep.subr.bf16.mxu1 %v1223_v26 }
  0x32   : > { %753 = vmatpush1.bf16.msra.mxu0 %v1225_v27 }
  0x33   : > { %794 = vmatpush1.bf16.msra.mxu1 %v1226_v28  ;;  %754 = vmatprep.subr.bf16.mxu0 %v1227_v29 }
  0x34   : > { %795 = vmatprep.subr.bf16.mxu1 %v1229_v30 }
  0x36   : > { %755 = vmatpush1.bf16.msra.mxu0 %v1231_v31 }
  0x37   : > { %796 = vmatpush1.bf16.msra.mxu1 %v1232_v32  ;;  %756 = vmatprep.subr.bf16.mxu0 %v1233_v33 }
  0x38   : > { %797 = vmatprep.subr.bf16.mxu1 %v1235_v34 }
  0x3a   : > { %757 = vmatpush1.bf16.msra.mxu0 %v1237_v35 }
  0x3b   : > { %798 = vmatpush1.bf16.msra.mxu1 %v1238_v36  ;;  %758 = vmatprep.subr.bf16.mxu0 %v1239_v37 }
  0x3c   : > { %799 = vmatprep.subr.bf16.mxu1 %v1241_v38 }
  0x3e   : > { %759 = vmatpush1.bf16.msra.mxu0 %v1243_v39 }
  0x3f   : > { %800 = vmatpush1.bf16.msra.mxu1 %v1244_v40  ;;  %760 = vmatprep.subr.bf16.mxu0 %v1245_v41 }
  0x40   : > { %801 = vmatprep.subr.bf16.mxu1 %v1247_v42 }
  0x42   : > { %761 = vmatpush1.bf16.msra.mxu0 %v1249_v43 }
  0x43   : > { %802 = vmatpush1.bf16.msra.mxu1 %v1250_v44  ;;  %762 = vmatprep.subr.bf16.mxu0 %v1251_v45 }
  0x44   : > { %803 = vmatprep.subr.bf16.mxu1 %v1253_v46 }
  0x46   : > { %763 = vmatpush1.bf16.msra.mxu0 %v1255_v50 }
  0x47   : > { %804 = vmatpush1.bf16.msra.mxu1 %v1256_v51  ;;  %764 = vmatprep.subr.bf16.mxu0 %v1257_v53 }
  0x48   : > { %805 = vmatprep.subr.bf16.mxu1 %v1259_v54 }
  0x4a   : > { %765 = vmatpush1.bf16.msra.mxu0 %v1261_v55 }
  0x4b   : > { %806 = vmatpush1.bf16.msra.mxu1 %v1262_v56  ;;  %766 = vmatprep.subr.bf16.mxu0 %v1263_v57 }
  0x4c   : > { %807 = vmatprep.subr.bf16.mxu1 %v1265_v58 }
  0x4e   : > { %767 = vmatpush1.bf16.msra.mxu0 %v1267_v59 }
  0x4f   : > { %808 = vmatpush1.bf16.msra.mxu1 %v1268_v60  ;;  %768 = vmatprep.subr.bf16.mxu0 %v1269_v61 }
  0x50   : > { %809 = vmatprep.subr.bf16.mxu1 %v1271_v62 }
  0x52   : > { %769 = vmatpush1.bf16.msra.mxu0 %v1273_v63 }
  0x53   : > { %810 = vmatpush1.bf16.msra.mxu1 %v1274_v0  ;;  %770 = vmatprep.subr.bf16.mxu0 %v1275_v1 }
  0x54   : > { %811 = vmatprep.subr.bf16.mxu1 %v1277_v2 }
  0x56   : > { %771 = vmatpush1.bf16.msra.mxu0 %v1279_v3 }
  0x57   : > { %812 = vmatpush1.bf16.msra.mxu1 %v1280_v4 }
  0x59   : > { %773 = vmatmul.mubr.bf16.vlgmr.msra.gmra.mrb[0].mxu0 %v1080_v5 }
  0x5a   : > { %814 = vmatmul.mubr.bf16.vlgmr.msra.gmra.mrb[0].mxu1 %v1082_v6 }
 0x12c   : > { %v774_v7 = vpop.f32.mrb[0].mxu0 }
 0x12d   : > { %v815_v9 = vpop.f32.mrb[0].mxu1  ;;  %v776_v11 = vpop.f32.mrb[1].mxu0  ;;  %829 = sbr.rel (%p1148_p7) target bundleno = 330 (0x14a), region = 36 }
 0x12e   : > { %v816_v10 = vadd.f32 %v815_v9, %v774_v7  ;;  %v817_v13 = vpop.f32.mrb[1].mxu1  ;;  %v778_v15 = vpop.f32.mrb[2].mxu0 }
 0x12f   : > { %v818_v14 = vadd.f32 %v817_v13, %v776_v11  ;;  %v819_v16 = vpop.f32.mrb[2].mxu1  ;;  %v779_v18 = vpop.f32.mrb[3].mxu0 }
 0x130   : > { %v822_v17 = vadd.f32 %v816_v10, %v338_v8  ;;  %v820_v19 = vpop.f32.mrb[3].mxu1 }
 0x131   : > { %v823_v20 = vadd.f32 %v818_v14, %v339_v12 }
 0x132   : > { %824 = vst [vmem:[#allocation2] sm:$0xff] %v822_v17 }
 0x133   : > { %825 = vst [vmem:[#allocation2 + $0x8] sm:$0xff] %v823_v20 }
 0x139   : > { %v830_v21 = vld [vmem:[#allocation2] sm:$0xff] }
 0x13a   : > { %v831_v22 = vld [vmem:[#allocation2 + $0x8] sm:$0xff]  ;;  %v841_v24 = vrot.slane %v830_v21, 4  ;;  %v855_v26 = vmul.f32 %v830_v21, %v830_v21 }
 0x13b   : > { %v1159_v23 = vpack.c.bf16 %v831_v22, %v830_v21  ;;  %v847_v25 = vrot.slane %v831_v22, 4  ;;  %v856_v27 = vmul.f32 %v831_v22, %v831_v22 }
 0x13c   : > { %v842_v28 = vadd.f32 %v841_v24, %v830_v21  ;;  %v857_v30 = vrot.slane %v855_v26, 4 }
 0x13d   : > { %840 = vst [vmem:[%s1461_s2] sm:$0xff] %v1159_v23  ;;  %v848_v29 = vadd.f32 %v847_v25, %v831_v22  ;;  %v863_v31 = vrot.slane %v856_v27, 4 }
 0x13e   : > { %v843_v32 = vrot.slane %v842_v28, 2  ;;  %v858_v34 = vadd.f32 %v857_v30, %v855_v26 }
 0x13f   : > { %v849_v33 = vrot.slane %v848_v29, 2  ;;  %v864_v35 = vadd.f32 %v863_v31, %v856_v27 }
 0x140   : > { %v844_v36 = vadd.f32 %v843_v32, %v842_v28  ;;  %v859_v38 = vrot.slane %v858_v34, 2 }
 0x141   : > { %v850_v37 = vadd.f32 %v849_v33, %v848_v29  ;;  %v865_v39 = vrot.slane %v864_v35, 2 }
 0x142   : > { %v845_v40 = vrot.slane %v844_v36, 1  ;;  %v860_v42 = vadd.f32 %v859_v38, %v858_v34 }
 0x143   : > { %v851_v41 = vrot.slane %v850_v37, 1  ;;  %v866_v43 = vadd.f32 %v865_v39, %v864_v35 }
 0x144   : > { %v846_v44 = vadd.f32 %v845_v40, %v844_v36  ;;  %v861_v46 = vrot.slane %v860_v42, 1 }
 0x145   : > { %v852_v45 = vadd.f32 %v851_v41, %v850_v37  ;;  %v867_v47 = vrot.slane %v866_v43, 1 }
 0x146   : > { %853 = vst [vmem:[%s1462_s3] sm:$0xff] %v846_v44  ;;  %v862_v48 = vadd.f32 %v861_v46, %v860_v42 }
 0x147   : > { %854 = vst [vmem:[%s1462_s3 + $0x8] sm:$0xff] %v852_v45  ;;  %v868_v49 = vadd.f32 %v867_v47, %v866_v43 }
 0x148   : > { %869 = vst [vmem:[%s1463_s4] sm:$0xff] %v862_v48 }
 0x149   : > { %870 = vst [vmem:[%s1463_s4 + $0x8] sm:$0xff] %v868_v49 }
 0x14a PF: > { %s15_s17 = sadd.s32 1, %s1307_s17   ;;  %s1464_s15 = smov %s1303_s16 }
 0x14b   : > { %p12_p8 = scmp.ge.s32.totalorder %s15_s17, 7   ;;  %s1465_s16 = smov %s1467_s18 }
 0x14d   :  { %14 = sbr.rel (!%p12_p8) target bundleno = 2 (0x2), region = 93 }

// kernel: resnet_forward.75
= control target key start
LH: loop header
LB: loop body
LE: loop exit
PB: predicated region body
PF: predicated region fallthrough
CT: control target
= control target key end

     0   :  { %s1198_s15 = smov 0   ;;  %s1200_s16 = smov 0   ;;  %s1384_s0 = inlined_call_operand.vmem [shape: bf16[8,256], index: 0, kind: input, shape index: {}]   ;;  %s1385_s1 = inlined_call_operand.vmem [shape: bf16[256,512], index: 1, kind: input, shape index: {}]   ;;  %s1386_s2 = inlined_call_operand.vmem [shape: bf16[8,512], index: 2, kind: output, shape index: {0}]   ;;  %s1387_s3 = inlined_call_operand.vmem [shape: f32[8,512], index: 3, kind: output, shape index: {1}]   ;;  %s1388_s4 = inlined_call_operand.vmem [shape: f32[8,512], index: 4, kind: output, shape index: {2}]  }
   0x1   :  { %s1202_s17 = smov 0   ;;  %s1204_s18 = smov 0  }
   0x2   :  { %s1206_s19 = smov 0  }
   0x3 LB: > { %s30_s20 = sadd.s32 1, %s1167_s18  ;;  %p78_p1 = scmp.ne.s32.totalorder %s1159_s16, %s1155_s15  ;;  %s1171_s19 = sphi %s1206_s19, %s15_s19   ;;  %s1167_s18 = sphi %s1204_s18, %s1392_s18   ;;  %s1163_s17 = sphi %s1202_s17, %s1391_s17   ;;  %s1159_s16 = sphi %s1200_s16, %s1390_s16   ;;  %s1155_s15 = sphi %s1198_s15, %s1389_s15  }
   0x4   : > { %p32_p0 = scmp.ge.s32.totalorder %s30_s20, 2  ;;  %p79_p2 = scmp.eq.s32.totalorder %s1171_s19, 0 }
   0x5   : > { %s71_s22 = sadd.s32 1, %s1159_s16  ;;  %p992_p5 = scmp.ge.s32.totalorder %s1171_s19, 2 }
   0x6   : > { %s1394_s20 = smov (%p32_p0, %s30_s20), 0  ;;  %p80_p3 = por %p79_p2, %p78_p1 }
   0x7   : > { %s67_s21 = ssub.s32 %s1167_s18, %s1394_s20  ;;  %201 = sbr.rel (%p992_p5) target bundleno = 34 (0x22), region = 20 }
   0x8   : > { %p69_p4 = scmp.eq.s32.totalorder %s67_s21, 0 }
   0xa   : > { %s1233_s23 = scalar_select %p69_p4, %s1159_s16, %s71_s22  }
   0xe   : > { %204 = sbr.rel (!%p80_p3) target bundleno = 34 (0x22), region = 24  ;;  %s206_s24 = sand.u32 (%p80_p3), 1, %s1159_s16  }
   0xf   : > { %s1041_s25 = sshll.u32 (%p80_p3), %s1167_s18, 3  ;;  %s993_s26 = sshll.u32 (%p80_p3), %s206_s24, 8 }
  0x10   : > { %s1241_s29 = scalar_lea.vmem (%p80_p3), %s1385_s1, %s1041_s25  ;;  %s1246_s30 = scalar_lea.vmem (%p80_p3), [#allocation3], %s993_s26 }
  0x11   : > { %v304_v0 = vld [vmem:[%s1241_s29] sm:$0xff] (%p80_p3)  ;;  %v306_v1 = vld [vmem:[%s1241_s29 + $0x10] sm:$0xff] (%p80_p3) }
  0x12   : > { %v308_v2 = vld [vmem:[%s1241_s29 + $0x20] sm:$0xff] (%p80_p3)  ;;  %305 = vst [vmem:[%s1246_s30] sm:$0xff] (%p80_p3), %v304_v0  ;;  %307 = vst [vmem:[%s1246_s30 + $0x8] sm:$0xff] (%p80_p3), %v306_v1  ;;  %v310_v3 = vld [vmem:[%s1241_s29 + $0x30] sm:$0xff] (%p80_p3) }
  0x13   : > { %309 = vst [vmem:[%s1246_s30 + $0x10] sm:$0xff] (%p80_p3), %v308_v2  ;;  %v312_v4 = vld [vmem:[%s1241_s29 + $0x40] sm:$0xff] (%p80_p3)  ;;  %v314_v5 = vld [vmem:[%s1241_s29 + $0x50] sm:$0xff] (%p80_p3)  ;;  %311 = vst [vmem:[%s1246_s30 + $0x18] sm:$0xff] (%p80_p3), %v310_v3 }
  0x14   : > { %313 = vst [vmem:[%s1246_s30 + $0x20] sm:$0xff] (%p80_p3), %v312_v4  ;;  %315 = vst [vmem:[%s1246_s30 + $0x28] sm:$0xff] (%p80_p3), %v314_v5  ;;  %v316_v6 = vld [vmem:[%s1241_s29 + $0x60] sm:$0xff] (%p80_p3)  ;;  %v318_v7 = vld [vmem:[%s1241_s29 + $0x70] sm:$0xff] (%p80_p3) }
  0x15   : > { %v320_v8 = vld [vmem:[%s1241_s29 + $0x80] sm:$0xff]  ;;  %317 = vst [vmem:[%s1246_s30 + $0x30] sm:$0xff] %v316_v6  ;;  %319 = vst [vmem:[%s1246_s30 + $0x38] sm:$0xff] %v318_v7  ;;  %v322_v9 = vld [vmem:[%s1241_s29 + $0x90] sm:$0xff] }
  0x16   : > { %321 = vst [vmem:[%s1246_s30 + $0x40] sm:$0xff] %v320_v8  ;;  %v324_v10 = vld [vmem:[%s1241_s29 + $0xa0] sm:$0xff]  ;;  %v326_v11 = vld [vmem:[%s1241_s29 + $0xb0] sm:$0xff]  ;;  %323 = vst [vmem:[%s1246_s30 + $0x48] sm:$0xff] %v322_v9 }
  0x17   : > { %325 = vst [vmem:[%s1246_s30 + $0x50] sm:$0xff] %v324_v10  ;;  %327 = vst [vmem:[%s1246_s30 + $0x58] sm:$0xff] %v326_v11  ;;  %v328_v12 = vld [vmem:[%s1241_s29 + $0xc0] sm:$0xff]  ;;  %v330_v13 = vld [vmem:[%s1241_s29 + $0xd0] sm:$0xff] }
  0x18   : > { %v332_v14 = vld [vmem:[%s1241_s29 + $0xe0] sm:$0xff]  ;;  %329 = vst [vmem:[%s1246_s30 + $0x60] sm:$0xff] %v328_v12  ;;  %331 = vst [vmem:[%s1246_s30 + $0x68] sm:$0xff] %v330_v13  ;;  %v334_v15 = vld [vmem:[%s1241_s29 + $0xf0] sm:$0xff] }
  0x19   : > { %333 = vst [vmem:[%s1246_s30 + $0x70] sm:$0xff] %v332_v14  ;;  %v336_v16 = vld [vmem:[%s1241_s29 + $0x100] sm:$0xff]  ;;  %v338_v17 = vld [vmem:[%s1241_s29 + $0x110] sm:$0xff]  ;;  %335 = vst [vmem:[%s1246_s30 + $0x78] sm:$0xff] %v334_v15 }
  0x1a   : > { %337 = vst [vmem:[%s1246_s30 + $0x80] sm:$0xff] %v336_v16  ;;  %339 = vst [vmem:[%s1246_s30 + $0x88] sm:$0xff] %v338_v17  ;;  %v340_v18 = vld [vmem:[%s1241_s29 + $0x120] sm:$0xff]  ;;  %v342_v19 = vld [vmem:[%s1241_s29 + $0x130] sm:$0xff] }
  0x1b   : > { %v344_v20 = vld [vmem:[%s1241_s29 + $0x140] sm:$0xff]  ;;  %341 = vst [vmem:[%s1246_s30 + $0x90] sm:$0xff] %v340_v18  ;;  %343 = vst [vmem:[%s1246_s30 + $0x98] sm:$0xff] %v342_v19  ;;  %v346_v21 = vld [vmem:[%s1241_s29 + $0x150] sm:$0xff] }
  0x1c   : > { %345 = vst [vmem:[%s1246_s30 + $0xa0] sm:$0xff] %v344_v20  ;;  %v348_v22 = vld [vmem:[%s1241_s29 + $0x160] sm:$0xff]  ;;  %v350_v23 = vld [vmem:[%s1241_s29 + $0x170] sm:$0xff]  ;;  %347 = vst [vmem:[%s1246_s30 + $0xa8] sm:$0xff] %v346_v21 }
  0x1d   : > { %349 = vst [vmem:[%s1246_s30 + $0xb0] sm:$0xff] %v348_v22  ;;  %351 = vst [vmem:[%s1246_s30 + $0xb8] sm:$0xff] %v350_v23  ;;  %v352_v24 = vld [vmem:[%s1241_s29 + $0x180] sm:$0xff]  ;;  %v354_v25 = vld [vmem:[%s1241_s29 + $0x190] sm:$0xff] }
  0x1e   : > { %v356_v26 = vld [vmem:[%s1241_s29 + $0x1a0] sm:$0xff]  ;;  %353 = vst [vmem:[%s1246_s30 + $0xc0] sm:$0xff] %v352_v24  ;;  %355 = vst [vmem:[%s1246_s30 + $0xc8] sm:$0xff] %v354_v25  ;;  %v358_v27 = vld [vmem:[%s1241_s29 + $0x1b0] sm:$0xff] }
  0x1f   : > { %357 = vst [vmem:[%s1246_s30 + $0xd0] sm:$0xff] %v356_v26  ;;  %v360_v28 = vld [vmem:[%s1241_s29 + $0x1c0] sm:$0xff]  ;;  %v362_v29 = vld [vmem:[%s1241_s29 + $0x1d0] sm:$0xff]  ;;  %359 = vst [vmem:[%s1246_s30 + $0xd8] sm:$0xff] %v358_v27 }
  0x20   : > { %361 = vst [vmem:[%s1246_s30 + $0xe0] sm:$0xff] %v360_v28  ;;  %363 = vst [vmem:[%s1246_s30 + $0xe8] sm:$0xff] %v362_v29  ;;  %v364_v30 = vld [vmem:[%s1241_s29 + $0x1e0] sm:$0xff]  ;;  %v366_v31 = vld [vmem:[%s1241_s29 + $0x1f0] sm:$0xff] }
  0x21   : > { %365 = vst [vmem:[%s1246_s30 + $0xf0] sm:$0xff] %v364_v30  ;;  %367 = vst [vmem:[%s1246_s30 + $0xf8] sm:$0xff] %v366_v31 }
  0x22 PF: > { %p996_p6 = scmp.ge.s32.totalorder %s1171_s19, 1  ;;  %p372_p7 = scmp.lt.s32.totalorder %s1171_s19, 3 }
  0x24   : > { %p373_p8 = pnand %p996_p6, %p372_p7 }
  0x25   : > { %s379_s5 = sand.u32 (!%p373_p8), 1, %s1155_s15   ;;  %v1315_v32 = vld [vmem:[%s1384_s0] sm:$0xff] (!%p373_p8)  ;;  %s998_s10 = sshll.u32 (!%p373_p8), %s1163_s17, 1 }
  0x26   : > { %376 = sbr.rel (%p373_p8) target bundleno = 333 (0x14d), region = 62  ;;  %s997_s8 = sshll.u32 (!%p373_p8), %s379_s5, 8  ;;  %v1005_v33 = vcombine.high (!%p373_p8), %v1315_v32, %v1315_v32  ;;  %v1004_v2 = vcombine.low (!%p373_p8), %v1315_v32, %v1315_v32 }
  0x27   : > { %s1319_s9 = scalar_lea.vmem (!%p373_p8), [#allocation3], %s997_s8  ;;  %p450_p9 = scmp.lt.s32.totalorder (!%p373_p8), %s998_s10, 3 }
  0x28   : > { %v1083_v34 = vld [vmem:[%s1319_s9 + $0x4] ss:$8 sps:$4 sm:$0xff] (!%p373_p8)   ;;  %717 = vmatprep.mubr.bf16.mxu0 (!%p373_p8), %v1005_v33  ;;  %v1085_v35 = vld [vmem:[%s1319_s9] ss:$8 sps:$4 sm:$0xff] (!%p373_p8)   ;;  %v1086_v36 = vld [vmem:[%s1319_s9 + $0x14] ss:$8 sps:$4 sm:$0xff] (!%p373_p8)  }
  0x29   : > { %685 = vmatprep.subr.bf16.mxu0 (!%p373_p8), %v1083_v34  ;;  %v1088_v37 = vld [vmem:[%s1319_s9 + $0x10] ss:$8 sps:$4 sm:$0xff] (!%p373_p8)   ;;  %v1089_v38 = vld [vmem:[%s1319_s9 + $0x24] ss:$8 sps:$4 sm:$0xff] (!%p373_p8)   ;;  %v1091_v39 = vld [vmem:[%s1319_s9 + $0x20] ss:$8 sps:$4 sm:$0xff] (!%p373_p8)  }
  0x2a   : > { %686 = vmatpush1.bf16.msra.mxu0 (!%p373_p8), %v1085_v35  ;;  %v1092_v40 = vld [vmem:[%s1319_s9 + $0x34] ss:$8 sps:$4 sm:$0xff] (!%p373_p8)   ;;  %v1094_v41 = vld [vmem:[%s1319_s9 + $0x30] ss:$8 sps:$4 sm:$0xff] (!%p373_p8)   ;;  %v1095_v42 = vld [vmem:[%s1319_s9 + $0x44] ss:$8 sps:$4 sm:$0xff] (!%p373_p8)  }
  0x2b   : > { %687 = vmatprep.subr.bf16.mxu0 (!%p373_p8), %v1086_v36  ;;  %v1097_v43 = vld [vmem:[%s1319_s9 + $0x40] ss:$8 sps:$4 sm:$0xff] (!%p373_p8)   ;;  %v1098_v44 = vld [vmem:[%s1319_s9 + $0x54] ss:$8 sps:$4 sm:$0xff] (!%p373_p8)   ;;  %v1100_v45 = vld [vmem:[%s1319_s9 + $0x50] ss:$8 sps:$4 sm:$0xff] (!%p373_p8)  }
  0x2c   : > { %v1101_v46 = vld [vmem:[%s1319_s9 + $0x64] ss:$8 sps:$4 sm:$0xff] (!%p373_p8)   ;;  %v1103_v47 = vld [vmem:[%s1319_s9 + $0x60] ss:$8 sps:$4 sm:$0xff] (!%p373_p8)   ;;  %v1104_v48 = vld [vmem:[%s1319_s9 + $0x74] ss:$8 sps:$4 sm:$0xff] (!%p373_p8)  }
  0x2d   : > { %v1106_v49 = vld [vmem:[%s1319_s9 + $0x70] ss:$8 sps:$4 sm:$0xff]   ;;  %v1107_v50 = vld [vmem:[%s1319_s9 + $0x84] ss:$8 sps:$4 sm:$0xff]   ;;  %v1109_v51 = vld [vmem:[%s1319_s9 + $0x80] ss:$8 sps:$4 sm:$0xff]  }
  0x2e   : > { %688 = vmatpush1.bf16.msra.mxu0 %v1088_v37  ;;  %v1110_v52 = vld [vmem:[%s1319_s9 + $0x94] ss:$8 sps:$4 sm:$0xff]   ;;  %v1112_v53 = vld [vmem:[%s1319_s9 + $0x90] ss:$8 sps:$4 sm:$0xff]   ;;  %v1113_v54 = vld [vmem:[%s1319_s9 + $0xa4] ss:$8 sps:$4 sm:$0xff]  }
  0x2f   : > { %689 = vmatprep.subr.bf16.mxu0 %v1089_v38  ;;  %v1115_v55 = vld [vmem:[%s1319_s9 + $0xa0] ss:$8 sps:$4 sm:$0xff]   ;;  %v1116_v56 = vld [vmem:[%s1319_s9 + $0xb4] ss:$8 sps:$4 sm:$0xff]   ;;  %v1118_v57 = vld [vmem:[%s1319_s9 + $0xb0] ss:$8 sps:$4 sm:$0xff]  }
  0x30   : > { %v1119_v58 = vld [vmem:[%s1319_s9 + $0xc4] ss:$8 sps:$4 sm:$0xff]   ;;  %v1121_v59 = vld [vmem:[%s1319_s9 + $0xc0] ss:$8 sps:$4 sm:$0xff]   ;;  %v1122_v60 = vld [vmem:[%s1319_s9 + $0xd4] ss:$8 sps:$4 sm:$0xff]  }
  0x31   : > { %v1124_v61 = vld [vmem:[%s1319_s9 + $0xd0] ss:$8 sps:$4 sm:$0xff]   ;;  %v1125_v62 = vld [vmem:[%s1319_s9 + $0xe4] ss:$8 sps:$4 sm:$0xff]   ;;  %v1127_v63 = vld [vmem:[%s1319_s9 + $0xe0] ss:$8 sps:$4 sm:$0xff]  }
  0x32   : > { %690 = vmatpush1.bf16.msra.mxu0 %v1091_v39  ;;  %v1128_v0 = vld [vmem:[%s1319_s9 + $0xf4] ss:$8 sps:$4 sm:$0xff]   ;;  %v1130_v1 = vld [vmem:[%s1319_s9 + $0xf0] ss:$8 sps:$4 sm:$0xff]   ;;  %s1396_s10 = smov (!%p450_p9, %s998_s10), 3 }
  0x33   : > { %691 = vmatprep.subr.bf16.mxu0 %v1092_v40  ;;  %s999_s11 = sshll.u32 %s1396_s10, 2  ;;  %s1001_s15 = sshll.u32 %s1396_s10, 3 }
  0x34   : > { %s455_s14 = scalar_lea.vmem %s1386_s2, %s999_s11  ;;  %s465_s22 = scalar_lea.vmem %s1387_s3, %s1001_s15 }
  0x35   : > { %s475_s26 = scalar_lea.vmem %s1388_s4, %s1001_s15 }
  0x36   : > { %692 = vmatpush1.bf16.msra.mxu0 %v1094_v41 }
  0x37   : > { %693 = vmatprep.subr.bf16.mxu0 %v1095_v42 }
  0x3a   : > { %694 = vmatpush1.bf16.msra.mxu0 %v1097_v43 }
  0x3b   : > { %695 = vmatprep.subr.bf16.mxu0 %v1098_v44 }
  0x3e   : > { %696 = vmatpush1.bf16.msra.mxu0 %v1100_v45 }
  0x3f   : > { %697 = vmatprep.subr.bf16.mxu0 %v1101_v46 }
  0x42   : > { %698 = vmatpush1.bf16.msra.mxu0 %v1103_v47 }
  0x43   : > { %699 = vmatprep.subr.bf16.mxu0 %v1104_v48 }
  0x46   : > { %700 = vmatpush1.bf16.msra.mxu0 %v1106_v49 }
  0x47   : > { %701 = vmatprep.subr.bf16.mxu0 %v1107_v50 }
  0x4a   : > { %702 = vmatpush1.bf16.msra.mxu0 %v1109_v51 }
  0x4b   : > { %703 = vmatprep.subr.bf16.mxu0 %v1110_v52 }
  0x4e   : > { %704 = vmatpush1.bf16.msra.mxu0 %v1112_v53 }
  0x4f   : > { %705 = vmatprep.subr.bf16.mxu0 %v1113_v54 }
  0x52   : > { %706 = vmatpush1.bf16.msra.mxu0 %v1115_v55 }
  0x53   : > { %707 = vmatprep.subr.bf16.mxu0 %v1116_v56 }
  0x56   : > { %708 = vmatpush1.bf16.msra.mxu0 %v1118_v57 }
  0x57   : > { %709 = vmatprep.subr.bf16.mxu0 %v1119_v58 }
  0x5a   : > { %710 = vmatpush1.bf16.msra.mxu0 %v1121_v59 }
  0x5b   : > { %711 = vmatprep.subr.bf16.mxu0 %v1122_v60 }
  0x5e   : > { %712 = vmatpush1.bf16.msra.mxu0 %v1124_v61 }
  0x5f   : > { %713 = vmatprep.subr.bf16.mxu0 %v1125_v62 }
  0x62   : > { %714 = vmatpush1.bf16.msra.mxu0 %v1127_v63 }
  0x63   : > { %715 = vmatprep.subr.bf16.mxu0 %v1128_v0 }
  0x66   : > { %716 = vmatpush1.bf16.msra.mxu0 %v1130_v1 }
  0x69   : > { %718 = vmatmul.mubr.bf16.vlgmr.msra.gmra.mrb[0].mxu0 %v1004_v2 }
 0x13c   : > { %v719_v3 = vpop.f32.mrb[0].mxu0 }
 0x13d   : > { %v744_v4 = vrot.slane %v719_v3, 4  ;;  %v758_v5 = vmul.f32 %v719_v3, %v719_v3  ;;  %v721_v6 = vpop.f32.mrb[1].mxu0 }
 0x13e   : > { %v1042_v7 = vpack.c.bf16 %v721_v6, %v719_v3  ;;  %v750_v8 = vrot.slane %v721_v6, 4  ;;  %v759_v9 = vmul.f32 %v721_v6, %v721_v6  ;;  %v723_v10 = vpop.f32.mrb[2].mxu0 }
 0x13f   : > { %v745_v11 = vadd.f32 %v744_v4, %v719_v3  ;;  %v760_v12 = vrot.slane %v758_v5, 4  ;;  %v724_v13 = vpop.f32.mrb[3].mxu0 }
 0x140   : > { %743 = vst [vmem:[%s455_s14] sm:$0xff] %v1042_v7  ;;  %v751_v14 = vadd.f32 %v750_v8, %v721_v6  ;;  %v766_v15 = vrot.slane %v759_v9, 4 }
 0x141   : > { %v746_v16 = vrot.slane %v745_v11, 2  ;;  %v761_v17 = vadd.f32 %v760_v12, %v758_v5 }
 0x142   : > { %v752_v18 = vrot.slane %v751_v14, 2  ;;  %v767_v19 = vadd.f32 %v766_v15, %v759_v9 }
 0x143   : > { %v747_v20 = vadd.f32 %v746_v16, %v745_v11  ;;  %v762_v21 = vrot.slane %v761_v17, 2 }
 0x144   : > { %v753_v22 = vadd.f32 %v752_v18, %v751_v14  ;;  %v768_v23 = vrot.slane %v767_v19, 2 }
 0x145   : > { %v748_v24 = vrot.slane %v747_v20, 1  ;;  %v763_v25 = vadd.f32 %v762_v21, %v761_v17 }
 0x146   : > { %v754_v26 = vrot.slane %v753_v22, 1  ;;  %v769_v27 = vadd.f32 %v768_v23, %v767_v19 }
 0x147   : > { %v749_v28 = vadd.f32 %v748_v24, %v747_v20  ;;  %v764_v29 = vrot.slane %v763_v25, 1 }
 0x148   : > { %v755_v30 = vadd.f32 %v754_v26, %v753_v22  ;;  %v770_v31 = vrot.slane %v769_v27, 1 }
 0x149   : > { %v765_v32 = vadd.f32 %v764_v29, %v763_v25  ;;  %756 = vst [vmem:[%s465_s22] sm:$0xff] %v749_v28 }
 0x14a   : > { %757 = vst [vmem:[%s465_s22 + $0x8] sm:$0xff] %v755_v30  ;;  %v771_v33 = vadd.f32 %v770_v31, %v769_v27 }
 0x14b   : > { %772 = vst [vmem:[%s475_s26] sm:$0xff] %v765_v32 }
 0x14c   : > { %773 = vst [vmem:[%s475_s26 + $0x8] sm:$0xff] %v771_v33 }
 0x14d PF: > { %s15_s19 = sadd.s32 1, %s1171_s19   ;;  %s1389_s15 = smov %s1159_s16 }
 0x14e   : > { %p12_p10 = scmp.ge.s32.totalorder %s15_s19, 4   ;;  %s1390_s16 = smov %s1233_s23 }
 0x14f   : > { %s1391_s17 = smov %s1167_s18  ;;  %s1392_s18 = smov %s1394_s20 }
 0x150   :  { %14 = sbr.rel (!%p12_p10) target bundleno = 3 (0x3), region = 136 }

// kernel: resnet_forward.76
= control target key start
LH: loop header
LB: loop body
LE: loop exit
PB: predicated region body
PF: predicated region fallthrough
CT: control target
= control target key end

     0   :  { %s476_s12 = smov 0   ;;  %s478_s13 = smov 0   ;;  %s515_s0 = inlined_call_operand.vmem [shape: bf16[8,512], index: 0, kind: input, shape index: {}]   ;;  %s516_s1 = inlined_call_operand.vmem [shape: f32[1,512], index: 1, kind: input, shape index: {}]   ;;  %s517_s2 = inlined_call_operand.vmem [shape: f32[1,512], index: 2, kind: input, shape index: {}]   ;;  %s518_s3 = inlined_call_operand.vmem [shape: bf16[8,512], index: 3, kind: output, shape index: {}]  }
   0x1   :  { %s480_s14 = smov 0  }
   0x2 LB: > { %s22_s15 = sadd.s32 1, %s450_s13  ;;  %p397_p0 = scmp.ge.s32.totalorder %s454_s14, 1  ;;  %s454_s14 = sphi %s480_s14, %s13_s14   ;;  %s450_s13 = sphi %s478_s13, %s520_s13   ;;  %s446_s12 = sphi %s476_s12, %s519_s12  }
   0x3   : > { %p23_p1 = scmp.ge.s32.totalorder %s22_s15, 2  ;;  %p178_p2 = scmp.lt.s32.totalorder %s454_s14, 3 }
   0x5   : > { %s522_s15 = smov (%p23_p1, %s22_s15), 0  ;;  %p179_p3 = pnand %p397_p0, %p178_p2 }
   0x6   : > { %s398_s16 = sshll.u32 (!%p179_p3), %s446_s12, 1  ;;  %v253_v0 = vlaneseq (!%p179_p3) }
   0x7   : > { %182 = sbr.rel (%p179_p3) target bundleno = 27 (0x1b), region = 32  ;;  %p221_p4 = scmp.lt.s32.totalorder (!%p179_p3), %s398_s16, 3 }
   0x8   : > { %v254_v1 = vshrl.u32 (!%p179_p3), %v253_v0, 7 }
   0xa   : > { %v255_v2 = vsub.s32 (!%p179_p3), 0, %v254_v1  ;;  %v259_v3 = vsub.s32 (!%p179_p3), 1, %v254_v1 }
   0xe   : > { %s524_s16 = smov (!%p221_p4, %s398_s16), 3 }
   0xf   : > { %s399_s17 = sshll.u32 %s524_s16, 2  ;;  %s231_s20 = scalar_lea.vmem %s516_s1, %s524_s16 }
  0x10   : > { %s226_s23 = scalar_lea.vmem %s515_s0, %s399_s17  ;;  %s236_s26 = scalar_lea.vmem %s517_s2, %s524_s16  ;;  %v251_v4 = vld [vmem:[%s231_s20] sm:$0x3] }
  0x11   : > { %v248_v5 = vld [vmem:[%s226_s23] sm:$0xff]  ;;  %v256_v6 = vrot.slane %v251_v4, %v255_v2  ;;  %v260_v7 = vrot.slane %v251_v4, %v259_v3  ;;  %s246_s29 = scalar_lea.vmem %s518_s3, %s399_s17 }
  0x12   : > { %v265_v8 = vld [vmem:[%s236_s26] sm:$0x3]  ;;  %v249_v9 = vunpack.c.l.bf16 %v248_v5  ;;  %v250_v10 = vunpack.c.h.bf16 %v248_v5 }
  0x13   : > { %v270_v11 = vrot.slane %v265_v8, %v255_v2  ;;  %v274_v12 = vrot.slane %v265_v8, %v259_v3 }
  0x14   : > { %v263_v13 = vmul.f32 %v256_v6, %v249_v9  ;;  %v264_v14 = vmul.f32 %v260_v7, %v250_v10 }
  0x16   : > { %v277_v15 = vadd.f32 %v270_v11, %v263_v13  ;;  %v278_v16 = vadd.f32 %v274_v12, %v264_v14 }
  0x18   : > { %v407_v17 = vpack.c.bf16 %v278_v16, %v277_v15 }
  0x1a   : > { %287 = vst [vmem:[%s246_s29] sm:$0xff] %v407_v17 }
  0x1b PF: > { %s13_s14 = sadd.s32 1, %s454_s14   ;;  %s519_s12 = smov %s450_s13 }
  0x1c   : > { %p10_p5 = scmp.ge.s32.totalorder %s13_s14, 4   ;;  %s520_s13 = smov %s522_s15 }
  0x1e   :  { %12 = sbr.rel (!%p10_p5) target bundleno = 2 (0x2), region = 68 }

// kernel: resnet_forward.74
= control target key start
LH: loop header
LB: loop body
LE: loop exit
PB: predicated region body
PF: predicated region fallthrough
CT: control target
= control target key end

     0   :  { %s478_s12 = smov 0   ;;  %s480_s13 = smov 0   ;;  %s517_s0 = inlined_call_operand.vmem [shape: bf16[8,512], index: 0, kind: input, shape index: {}]   ;;  %s518_s1 = inlined_call_operand.vmem [shape: f32[1,512], index: 1, kind: input, shape index: {}]   ;;  %s519_s2 = inlined_call_operand.vmem [shape: f32[1,512], index: 2, kind: input, shape index: {}]   ;;  %s520_s3 = inlined_call_operand.vmem [shape: bf16[8,512], index: 3, kind: output, shape index: {}]  }
   0x1   :  { %s482_s14 = smov 0  }
   0x2 LB: > { %s22_s15 = sadd.s32 1, %s452_s13  ;;  %p399_p0 = scmp.ge.s32.totalorder %s456_s14, 1  ;;  %s456_s14 = sphi %s482_s14, %s13_s14   ;;  %s452_s13 = sphi %s480_s13, %s522_s13   ;;  %s448_s12 = sphi %s478_s12, %s521_s12  }
   0x3   : > { %p23_p1 = scmp.ge.s32.totalorder %s22_s15, 2  ;;  %p178_p2 = scmp.lt.s32.totalorder %s456_s14, 3 }
   0x5   : > { %s524_s15 = smov (%p23_p1, %s22_s15), 0  ;;  %p179_p3 = pnand %p399_p0, %p178_p2 }
   0x6   : > { %s400_s16 = sshll.u32 (!%p179_p3), %s448_s12, 1  ;;  %v253_v0 = vlaneseq (!%p179_p3) }
   0x7   : > { %182 = sbr.rel (%p179_p3) target bundleno = 29 (0x1d), region = 32  ;;  %p221_p4 = scmp.lt.s32.totalorder (!%p179_p3), %s400_s16, 3 }
   0x8   : > { %v254_v1 = vshrl.u32 (!%p179_p3), %v253_v0, 7 }
   0xa   : > { %v255_v2 = vsub.s32 (!%p179_p3), 0, %v254_v1  ;;  %v259_v3 = vsub.s32 (!%p179_p3), 1, %v254_v1 }
   0xe   : > { %s526_s16 = smov (!%p221_p4, %s400_s16), 3 }
   0xf   : > { %s401_s17 = sshll.u32 %s526_s16, 2  ;;  %s231_s20 = scalar_lea.vmem %s518_s1, %s526_s16 }
  0x10   : > { %s226_s23 = scalar_lea.vmem %s517_s0, %s401_s17  ;;  %s236_s26 = scalar_lea.vmem %s519_s2, %s526_s16  ;;  %v251_v4 = vld [vmem:[%s231_s20] sm:$0x3] }
  0x11   : > { %v248_v5 = vld [vmem:[%s226_s23] sm:$0xff]  ;;  %v256_v6 = vrot.slane %v251_v4, %v255_v2  ;;  %v260_v7 = vrot.slane %v251_v4, %v259_v3  ;;  %s246_s29 = scalar_lea.vmem %s520_s3, %s401_s17 }
  0x12   : > { %v265_v8 = vld [vmem:[%s236_s26] sm:$0x3]  ;;  %v249_v9 = vunpack.c.l.bf16 %v248_v5  ;;  %v250_v10 = vunpack.c.h.bf16 %v248_v5 }
  0x13   : > { %v270_v11 = vrot.slane %v265_v8, %v255_v2  ;;  %v274_v12 = vrot.slane %v265_v8, %v259_v3 }
  0x14   : > { %v263_v13 = vmul.f32 %v256_v6, %v249_v9  ;;  %v264_v14 = vmul.f32 %v260_v7, %v250_v10 }
  0x16   : > { %v277_v15 = vadd.f32 %v270_v11, %v263_v13  ;;  %v278_v16 = vadd.f32 %v274_v12, %v264_v14 }
  0x18   : > { %v279_v17 = vmax.f32 %v277_v15, 0.0  ;;  %v280_v18 = vmax.f32 %v278_v16, 0.0 }
  0x1a   : > { %v409_v19 = vpack.c.bf16 %v280_v18, %v279_v17 }
  0x1c   : > { %289 = vst [vmem:[%s246_s29] sm:$0xff] %v409_v19 }
  0x1d PF: > { %s13_s14 = sadd.s32 1, %s456_s14   ;;  %s521_s12 = smov %s452_s13 }
  0x1e   : > { %p10_p5 = scmp.ge.s32.totalorder %s13_s14, 4   ;;  %s522_s13 = smov %s524_s15 }
  0x20   :  { %12 = sbr.rel (!%p10_p5) target bundleno = 2 (0x2), region = 68 }

// kernel: resnet_forward.73
= control target key start
LH: loop header
LB: loop body
LE: loop exit
PB: predicated region body
PF: predicated region fallthrough
CT: control target
= control target key end

     0   :  { %s1691_s15 = smov 0   ;;  %s1693_s16 = smov 0   ;;  %s2004_s0 = inlined_call_operand.vmem [shape: bf16[8,2560], index: 0, kind: input, shape index: {}]   ;;  %s2005_s1 = inlined_call_operand.vmem [shape: bf16[2560,512], index: 1, kind: input, shape index: {}]   ;;  %s2006_s2 = inlined_call_operand.vmem [shape: bf16[8,512], index: 2, kind: output, shape index: {0}]   ;;  %s2007_s3 = inlined_call_operand.vmem [shape: f32[8,512], index: 3, kind: output, shape index: {1}]   ;;  %s2008_s4 = inlined_call_operand.vmem [shape: f32[8,512], index: 4, kind: output, shape index: {2}]  }
   0x1   :  { %s1695_s17 = smov 0   ;;  %s1697_s18 = smov 0  }
   0x2   :  { %s1699_s19 = smov 0   ;;  %s1701_s20 = smov 0  }
   0x3   :  { %s1703_s21 = smov 0  }
   0x4 LB: > { %s27_s22 = sadd.s32 1, %s1655_s19  ;;  %s30_s23 = sadd.s32 1, %s1659_s20  ;;  %s1663_s21 = sphi %s1703_s21, %s15_s21   ;;  %s1659_s20 = sphi %s1701_s20, %s2014_s20   ;;  %s1655_s19 = sphi %s1699_s19, %s2013_s19   ;;  %s1651_s18 = sphi %s1697_s18, %s2012_s18   ;;  %s1647_s17 = sphi %s1695_s17, %s2011_s17   ;;  %s1643_s16 = sphi %s1693_s16, %s2010_s16   ;;  %s1639_s15 = sphi %s1691_s15, %s2009_s15  }
   0x5   : > { %p28_p0 = scmp.ge.s32.totalorder %s27_s22, 5  ;;  %p78_p1 = scmp.ne.s32.totalorder %s1643_s16, %s1639_s15 }
   0x6   : > { %p79_p2 = scmp.eq.s32.totalorder %s1663_s21, 0  ;;  %s71_s27 = sadd.s32 1, %s1643_s16 }
   0x7   : > { %s2016_s22 = smov (%p28_p0, %s27_s22), 0  ;;  %s2018_s23 = smov (!%p28_p0, %s30_s23), %s1659_s20 }
   0x8   : > { %p80_p3 = por %p79_p2, %p78_p1  ;;  %p32_p4 = scmp.ge.s32.totalorder %s2018_s23, 2 }
   0x9   : > { %s66_s24 = ssub.s32 %s1655_s19, %s2016_s22  ;;  %p1361_p6 = scmp.ge.s32.totalorder %s1663_s21, 10 }
   0xa   : > { %s2020_s23 = smov (%p32_p4, %s2018_s23), 0 }
   0xb   : > { %s67_s25 = ssub.s32 %s1659_s20, %s2020_s23  ;;  %188 = sbr.rel (%p1361_p6) target bundleno = 57 (0x39), region = 16 }
   0xc   : > { %s68_s26 = sor.u32 %s67_s25, %s66_s24 }
   0xd   : > { %p69_p5 = scmp.eq.s32.totalorder %s68_s26, 0 }
   0xf   : > { %s1742_s28 = scalar_select %p69_p5, %s1643_s16, %s71_s27  }
  0x12   : > { %204 = sbr.rel (!%p80_p3) target bundleno = 57 (0x39), region = 24  ;;  %s206_s29 = sand.u32 (%p80_p3), 1, %s1643_s16  }
  0x13   : > { %s1364_s30 = sshll.u32 (%p80_p3), %s1659_s20, 1  ;;  %s1362_s5 = sshll.u32 (%p80_p3), %s206_s29, 9 }
  0x14   : > { %s1450_s6 = sshll.u32 (%p80_p3), %s1655_s19, 8  ;;  %s1756_s12 = scalar_lea.vmem (%p80_p3), [#allocation3], %s1362_s5 }
  0x15   : > { %s212_s7 = sadd.s32 (%p80_p3), %s1450_s6, %s1364_s30 }
  0x16   : > { %s1366_s8 = sshll.u32 (%p80_p3), %s212_s7, 2 }
  0x17   : > { %s1751_s11 = scalar_lea.vmem (%p80_p3), %s2005_s1, %s1366_s8 }
  0x18   : > { %v368_v0 = vld [vmem:[%s1751_s11] sm:$0xff] (%p80_p3)  ;;  %v370_v1 = vld [vmem:[%s1751_s11 + $0x10] sm:$0xff] (%p80_p3) }
  0x19   : > { %v372_v2 = vld [vmem:[%s1751_s11 + $0x20] sm:$0xff]  ;;  %369 = vst [vmem:[%s1756_s12] sm:$0xff] %v368_v0  ;;  %371 = vst [vmem:[%s1756_s12 + $0x8] sm:$0xff] %v370_v1  ;;  %v374_v3 = vld [vmem:[%s1751_s11 + $0x30] sm:$0xff] }
  0x1a   : > { %373 = vst [vmem:[%s1756_s12 + $0x10] sm:$0xff] %v372_v2  ;;  %v376_v4 = vld [vmem:[%s1751_s11 + $0x40] sm:$0xff]  ;;  %v378_v5 = vld [vmem:[%s1751_s11 + $0x50] sm:$0xff]  ;;  %375 = vst [vmem:[%s1756_s12 + $0x18] sm:$0xff] %v374_v3 }
  0x1b   : > { %377 = vst [vmem:[%s1756_s12 + $0x20] sm:$0xff] %v376_v4  ;;  %379 = vst [vmem:[%s1756_s12 + $0x28] sm:$0xff] %v378_v5  ;;  %v380_v6 = vld [vmem:[%s1751_s11 + $0x60] sm:$0xff]  ;;  %v382_v7 = vld [vmem:[%s1751_s11 + $0x70] sm:$0xff] }
  0x1c   : > { %v384_v8 = vld [vmem:[%s1751_s11 + $0x80] sm:$0xff]  ;;  %381 = vst [vmem:[%s1756_s12 + $0x30] sm:$0xff] %v380_v6  ;;  %383 = vst [vmem:[%s1756_s12 + $0x38] sm:$0xff] %v382_v7  ;;  %v386_v9 = vld [vmem:[%s1751_s11 + $0x90] sm:$0xff] }
  0x1d   : > { %385 = vst [vmem:[%s1756_s12 + $0x40] sm:$0xff] %v384_v8  ;;  %v388_v10 = vld [vmem:[%s1751_s11 + $0xa0] sm:$0xff]  ;;  %v390_v11 = vld [vmem:[%s1751_s11 + $0xb0] sm:$0xff]  ;;  %387 = vst [vmem:[%s1756_s12 + $0x48] sm:$0xff] %v386_v9 }
  0x1e   : > { %389 = vst [vmem:[%s1756_s12 + $0x50] sm:$0xff] %v388_v10  ;;  %391 = vst [vmem:[%s1756_s12 + $0x58] sm:$0xff] %v390_v11  ;;  %v392_v12 = vld [vmem:[%s1751_s11 + $0xc0] sm:$0xff]  ;;  %v394_v13 = vld [vmem:[%s1751_s11 + $0xd0] sm:$0xff] }
  0x1f   : > { %v396_v14 = vld [vmem:[%s1751_s11 + $0xe0] sm:$0xff]  ;;  %393 = vst [vmem:[%s1756_s12 + $0x60] sm:$0xff] %v392_v12  ;;  %395 = vst [vmem:[%s1756_s12 + $0x68] sm:$0xff] %v394_v13  ;;  %v398_v15 = vld [vmem:[%s1751_s11 + $0xf0] sm:$0xff] }
  0x20   : > { %397 = vst [vmem:[%s1756_s12 + $0x70] sm:$0xff] %v396_v14  ;;  %v400_v16 = vld [vmem:[%s1751_s11 + $0x100] sm:$0xff]  ;;  %v402_v17 = vld [vmem:[%s1751_s11 + $0x110] sm:$0xff]  ;;  %399 = vst [vmem:[%s1756_s12 + $0x78] sm:$0xff] %v398_v15 }
  0x21   : > { %401 = vst [vmem:[%s1756_s12 + $0x80] sm:$0xff] %v400_v16  ;;  %403 = vst [vmem:[%s1756_s12 + $0x88] sm:$0xff] %v402_v17  ;;  %v404_v18 = vld [vmem:[%s1751_s11 + $0x120] sm:$0xff]  ;;  %v406_v19 = vld [vmem:[%s1751_s11 + $0x130] sm:$0xff] }
  0x22   : > { %v408_v20 = vld [vmem:[%s1751_s11 + $0x140] sm:$0xff]  ;;  %405 = vst [vmem:[%s1756_s12 + $0x90] sm:$0xff] %v404_v18  ;;  %407 = vst [vmem:[%s1756_s12 + $0x98] sm:$0xff] %v406_v19  ;;  %v410_v21 = vld [vmem:[%s1751_s11 + $0x150] sm:$0xff] }
  0x23   : > { %409 = vst [vmem:[%s1756_s12 + $0xa0] sm:$0xff] %v408_v20  ;;  %v412_v22 = vld [vmem:[%s1751_s11 + $0x160] sm:$0xff]  ;;  %v414_v23 = vld [vmem:[%s1751_s11 + $0x170] sm:$0xff]  ;;  %411 = vst [vmem:[%s1756_s12 + $0xa8] sm:$0xff] %v410_v21 }
  0x24   : > { %413 = vst [vmem:[%s1756_s12 + $0xb0] sm:$0xff] %v412_v22  ;;  %415 = vst [vmem:[%s1756_s12 + $0xb8] sm:$0xff] %v414_v23  ;;  %v416_v24 = vld [vmem:[%s1751_s11 + $0x180] sm:$0xff]  ;;  %v418_v25 = vld [vmem:[%s1751_s11 + $0x190] sm:$0xff] }
  0x25   : > { %v420_v26 = vld [vmem:[%s1751_s11 + $0x1a0] sm:$0xff]  ;;  %417 = vst [vmem:[%s1756_s12 + $0xc0] sm:$0xff] %v416_v24  ;;  %419 = vst [vmem:[%s1756_s12 + $0xc8] sm:$0xff] %v418_v25  ;;  %v422_v27 = vld [vmem:[%s1751_s11 + $0x1b0] sm:$0xff] }
  0x26   : > { %421 = vst [vmem:[%s1756_s12 + $0xd0] sm:$0xff] %v420_v26  ;;  %v424_v28 = vld [vmem:[%s1751_s11 + $0x1c0] sm:$0xff]  ;;  %v426_v29 = vld [vmem:[%s1751_s11 + $0x1d0] sm:$0xff]  ;;  %423 = vst [vmem:[%s1756_s12 + $0xd8] sm:$0xff] %v422_v27 }
  0x27   : > { %425 = vst [vmem:[%s1756_s12 + $0xe0] sm:$0xff] %v424_v28  ;;  %427 = vst [vmem:[%s1756_s12 + $0xe8] sm:$0xff] %v426_v29  ;;  %v428_v30 = vld [vmem:[%s1751_s11 + $0x1e0] sm:$0xff]  ;;  %v430_v31 = vld [vmem:[%s1751_s11 + $0x1f0] sm:$0xff] }
  0x28   : > { %v432_v32 = vld [vmem:[%s1751_s11 + $0x200] sm:$0xff]  ;;  %429 = vst [vmem:[%s1756_s12 + $0xf0] sm:$0xff] %v428_v30  ;;  %431 = vst [vmem:[%s1756_s12 + $0xf8] sm:$0xff] %v430_v31  ;;  %v434_v33 = vld [vmem:[%s1751_s11 + $0x210] sm:$0xff] }
  0x29   : > { %433 = vst [vmem:[%s1756_s12 + $0x100] sm:$0xff] %v432_v32  ;;  %v436_v34 = vld [vmem:[%s1751_s11 + $0x220] sm:$0xff]  ;;  %v438_v35 = vld [vmem:[%s1751_s11 + $0x230] sm:$0xff]  ;;  %435 = vst [vmem:[%s1756_s12 + $0x108] sm:$0xff] %v434_v33 }
  0x2a   : > { %437 = vst [vmem:[%s1756_s12 + $0x110] sm:$0xff] %v436_v34  ;;  %439 = vst [vmem:[%s1756_s12 + $0x118] sm:$0xff] %v438_v35  ;;  %v440_v36 = vld [vmem:[%s1751_s11 + $0x240] sm:$0xff]  ;;  %v442_v37 = vld [vmem:[%s1751_s11 + $0x250] sm:$0xff] }
  0x2b   : > { %v444_v38 = vld [vmem:[%s1751_s11 + $0x260] sm:$0xff]  ;;  %441 = vst [vmem:[%s1756_s12 + $0x120] sm:$0xff] %v440_v36  ;;  %443 = vst [vmem:[%s1756_s12 + $0x128] sm:$0xff] %v442_v37  ;;  %v446_v39 = vld [vmem:[%s1751_s11 + $0x270] sm:$0xff] }
  0x2c   : > { %445 = vst [vmem:[%s1756_s12 + $0x130] sm:$0xff] %v444_v38  ;;  %v448_v40 = vld [vmem:[%s1751_s11 + $0x280] sm:$0xff]  ;;  %v450_v41 = vld [vmem:[%s1751_s11 + $0x290] sm:$0xff]  ;;  %447 = vst [vmem:[%s1756_s12 + $0x138] sm:$0xff] %v446_v39 }
  0x2d   : > { %449 = vst [vmem:[%s1756_s12 + $0x140] sm:$0xff] %v448_v40  ;;  %451 = vst [vmem:[%s1756_s12 + $0x148] sm:$0xff] %v450_v41  ;;  %v452_v42 = vld [vmem:[%s1751_s11 + $0x2a0] sm:$0xff]  ;;  %v454_v43 = vld [vmem:[%s1751_s11 + $0x2b0] sm:$0xff] }
  0x2e   : > { %v456_v44 = vld [vmem:[%s1751_s11 + $0x2c0] sm:$0xff]  ;;  %453 = vst [vmem:[%s1756_s12 + $0x150] sm:$0xff] %v452_v42  ;;  %455 = vst [vmem:[%s1756_s12 + $0x158] sm:$0xff] %v454_v43  ;;  %v458_v45 = vld [vmem:[%s1751_s11 + $0x2d0] sm:$0xff] }
  0x2f   : > { %457 = vst [vmem:[%s1756_s12 + $0x160] sm:$0xff] %v456_v44  ;;  %v460_v46 = vld [vmem:[%s1751_s11 + $0x2e0] sm:$0xff]  ;;  %v462_v47 = vld [vmem:[%s1751_s11 + $0x2f0] sm:$0xff]  ;;  %459 = vst [vmem:[%s1756_s12 + $0x168] sm:$0xff] %v458_v45 }
  0x30   : > { %461 = vst [vmem:[%s1756_s12 + $0x170] sm:$0xff] %v460_v46  ;;  %463 = vst [vmem:[%s1756_s12 + $0x178] sm:$0xff] %v462_v47  ;;  %v464_v48 = vld [vmem:[%s1751_s11 + $0x300] sm:$0xff]  ;;  %v466_v49 = vld [vmem:[%s1751_s11 + $0x310] sm:$0xff] }
  0x31   : > { %v468_v50 = vld [vmem:[%s1751_s11 + $0x320] sm:$0xff]  ;;  %465 = vst [vmem:[%s1756_s12 + $0x180] sm:$0xff] %v464_v48  ;;  %467 = vst [vmem:[%s1756_s12 + $0x188] sm:$0xff] %v466_v49  ;;  %v470_v51 = vld [vmem:[%s1751_s11 + $0x330] sm:$0xff] }
  0x32   : > { %469 = vst [vmem:[%s1756_s12 + $0x190] sm:$0xff] %v468_v50  ;;  %v472_v52 = vld [vmem:[%s1751_s11 + $0x340] sm:$0xff]  ;;  %v474_v53 = vld [vmem:[%s1751_s11 + $0x350] sm:$0xff]  ;;  %471 = vst [vmem:[%s1756_s12 + $0x198] sm:$0xff] %v470_v51 }
  0x33   : > { %473 = vst [vmem:[%s1756_s12 + $0x1a0] sm:$0xff] %v472_v52  ;;  %475 = vst [vmem:[%s1756_s12 + $0x1a8] sm:$0xff] %v474_v53  ;;  %v476_v54 = vld [vmem:[%s1751_s11 + $0x360] sm:$0xff]  ;;  %v478_v55 = vld [vmem:[%s1751_s11 + $0x370] sm:$0xff] }
  0x34   : > { %v480_v56 = vld [vmem:[%s1751_s11 + $0x380] sm:$0xff]  ;;  %477 = vst [vmem:[%s1756_s12 + $0x1b0] sm:$0xff] %v476_v54  ;;  %479 = vst [vmem:[%s1756_s12 + $0x1b8] sm:$0xff] %v478_v55  ;;  %v482_v57 = vld [vmem:[%s1751_s11 + $0x390] sm:$0xff] }
  0x35   : > { %481 = vst [vmem:[%s1756_s12 + $0x1c0] sm:$0xff] %v480_v56  ;;  %v484_v58 = vld [vmem:[%s1751_s11 + $0x3a0] sm:$0xff]  ;;  %v486_v59 = vld [vmem:[%s1751_s11 + $0x3b0] sm:$0xff]  ;;  %483 = vst [vmem:[%s1756_s12 + $0x1c8] sm:$0xff] %v482_v57 }
  0x36   : > { %485 = vst [vmem:[%s1756_s12 + $0x1d0] sm:$0xff] %v484_v58  ;;  %487 = vst [vmem:[%s1756_s12 + $0x1d8] sm:$0xff] %v486_v59  ;;  %v488_v60 = vld [vmem:[%s1751_s11 + $0x3c0] sm:$0xff]  ;;  %v490_v61 = vld [vmem:[%s1751_s11 + $0x3d0] sm:$0xff] }
  0x37   : > { %v492_v62 = vld [vmem:[%s1751_s11 + $0x3e0] sm:$0xff]  ;;  %489 = vst [vmem:[%s1756_s12 + $0x1e0] sm:$0xff] %v488_v60  ;;  %491 = vst [vmem:[%s1756_s12 + $0x1e8] sm:$0xff] %v490_v61  ;;  %v494_v63 = vld [vmem:[%s1751_s11 + $0x3f0] sm:$0xff] }
  0x38   : > { %493 = vst [vmem:[%s1756_s12 + $0x1f0] sm:$0xff] %v492_v62  ;;  %495 = vst [vmem:[%s1756_s12 + $0x1f8] sm:$0xff] %v494_v63 }
  0x39 PF: > { %p1367_p7 = scmp.ge.s32.totalorder %s1663_s21, 1  ;;  %p500_p8 = scmp.lt.s32.totalorder %s1663_s21, 11 }
  0x3b   : > { %p501_p9 = pnand %p1367_p7, %p500_p8 }
  0x3c   : > { %s507_s13 = sand.u32 (!%p501_p9), 1, %s1639_s15   ;;  %s1369_s14 = sshll.u32 (!%p501_p9), %s1647_s17, 2 }
  0x3d   : > { %504 = sbr.rel (%p501_p9) target bundleno = 386 (0x182), region = 62  ;;  %s1368_s24 = sshll.u32 (!%p501_p9), %s507_s13, 9 }
  0x3e   : > { %p566_p10 = scmp.lt.s32.totalorder (!%p501_p9), %s1369_s14, 19  ;;  %s1371_s25 = sshll.u32 (!%p501_p9), %s1651_s18, 1 }
  0x3f   : > { %p578_p11 = scmp.lt.s32.totalorder (!%p501_p9), %s1371_s25, 3  ;;  %p1377_p12 = scmp.ne.s32.totalorder (!%p501_p9), %s1647_s17, 0 }
  0x44   : > { %s2022_s14 = smov (!%p566_p10, %s1369_s14), 19  ;;  %s2024_s25 = smov (!%p578_p11, %s1371_s25), 3 }
  0x45   : > { %s1370_s26 = sshll.u32 %s2022_s14, 2  ;;  %s1372_s5 = sshll.u32 %s2024_s25, 2  ;;  %v1665_v0 = vmov (!%p1377_p12), 0.0  }
  0x46   : > { %s1891_s30 = scalar_lea.vmem %s2004_s0, %s1370_s26  ;;  %s1374_s6 = sshll.u32 %s2024_s25, 3  ;;  %609 = vst [vmem:[#allocation2] sm:$0xff] (!%p1377_p12), %v1665_v0  ;;  %610 = vst [vmem:[#allocation2 + $0x8] sm:$0xff] (!%p1377_p12), %v1665_v0 }
  0x47   : > { %s1896_s9 = scalar_lea.vmem %s2006_s2, %s1372_s5  ;;  %s1901_s18 = scalar_lea.vmem %s2007_s3, %s1374_s6 }
  0x48   : > { %s1906_s13 = scalar_lea.vmem %s2008_s4, %s1374_s6  ;;  %s1908_s14 = scalar_lea.vmem [#allocation3], %s1368_s24 }
  0x49   : > { %608 = sbr.rel (%p1377_p12) target bundleno = 80 (0x50), region = 70 }
  0x50 PF: > { %v1509_v1 = vld [vmem:[%s1908_s14 + $0x4] ss:$8 sps:$4 sm:$0xff]   ;;  %v1513_v3 = vld [vmem:[%s1908_s14] ss:$8 sps:$4 sm:$0xff]   ;;  %v1515_v5 = vld [vmem:[%s1908_s14 + $0x14] ss:$8 sps:$4 sm:$0xff]  }
  0x51   : > { %v1511_v2 = vld [vmem:[%s1908_s14 + $0x104] ss:$8 sps:$4 sm:$0xff]   ;;  %1013 = vmatprep.subr.bf16.mxu0 %v1509_v1  ;;  %v1514_v4 = vld [vmem:[%s1908_s14 + $0x100] ss:$8 sps:$4 sm:$0xff]   ;;  %v1517_v6 = vld [vmem:[%s1908_s14 + $0x114] ss:$8 sps:$4 sm:$0xff]  }
  0x52   : > { %1054 = vmatprep.subr.bf16.mxu1 %v1511_v2  ;;  %1014 = vmatpush1.bf16.msra.mxu0 %v1513_v3  ;;  %v1519_v7 = vld [vmem:[%s1908_s14 + $0x10] ss:$8 sps:$4 sm:$0xff]   ;;  %v1521_v9 = vld [vmem:[%s1908_s14 + $0x24] ss:$8 sps:$4 sm:$0xff]   ;;  %v1525_v11 = vld [vmem:[%s1908_s14 + $0x20] ss:$8 sps:$4 sm:$0xff]  }
  0x53   : > { %1055 = vmatpush1.bf16.msra.mxu1 %v1514_v4  ;;  %1015 = vmatprep.subr.bf16.mxu0 %v1515_v5  ;;  %v1520_v8 = vld [vmem:[%s1908_s14 + $0x110] ss:$8 sps:$4 sm:$0xff]   ;;  %v1523_v10 = vld [vmem:[%s1908_s14 + $0x124] ss:$8 sps:$4 sm:$0xff]   ;;  %v1526_v12 = vld [vmem:[%s1908_s14 + $0x120] ss:$8 sps:$4 sm:$0xff]  }
  0x54   : > { %1056 = vmatprep.subr.bf16.mxu1 %v1517_v6  ;;  %v1527_v13 = vld [vmem:[%s1908_s14 + $0x34] ss:$8 sps:$4 sm:$0xff]   ;;  %v1531_v15 = vld [vmem:[%s1908_s14 + $0x30] ss:$8 sps:$4 sm:$0xff]   ;;  %v1533_v17 = vld [vmem:[%s1908_s14 + $0x44] ss:$8 sps:$4 sm:$0xff]  }
  0x55   : > { %v1529_v14 = vld [vmem:[%s1908_s14 + $0x134] ss:$8 sps:$4 sm:$0xff]   ;;  %v1532_v16 = vld [vmem:[%s1908_s14 + $0x130] ss:$8 sps:$4 sm:$0xff]   ;;  %v1535_v18 = vld [vmem:[%s1908_s14 + $0x144] ss:$8 sps:$4 sm:$0xff]  }
  0x56   : > { %1016 = vmatpush1.bf16.msra.mxu0 %v1519_v7  ;;  %v1537_v19 = vld [vmem:[%s1908_s14 + $0x40] ss:$8 sps:$4 sm:$0xff]   ;;  %v1539_v21 = vld [vmem:[%s1908_s14 + $0x54] ss:$8 sps:$4 sm:$0xff]   ;;  %v1543_v23 = vld [vmem:[%s1908_s14 + $0x50] ss:$8 sps:$4 sm:$0xff]  }
  0x57   : > { %1057 = vmatpush1.bf16.msra.mxu1 %v1520_v8  ;;  %1017 = vmatprep.subr.bf16.mxu0 %v1521_v9  ;;  %v1538_v20 = vld [vmem:[%s1908_s14 + $0x140] ss:$8 sps:$4 sm:$0xff]   ;;  %v1541_v22 = vld [vmem:[%s1908_s14 + $0x154] ss:$8 sps:$4 sm:$0xff]   ;;  %v1544_v24 = vld [vmem:[%s1908_s14 + $0x150] ss:$8 sps:$4 sm:$0xff]  }
  0x58   : > { %1058 = vmatprep.subr.bf16.mxu1 %v1523_v10  ;;  %v1545_v25 = vld [vmem:[%s1908_s14 + $0x64] ss:$8 sps:$4 sm:$0xff]   ;;  %v1549_v27 = vld [vmem:[%s1908_s14 + $0x60] ss:$8 sps:$4 sm:$0xff]   ;;  %v1551_v29 = vld [vmem:[%s1908_s14 + $0x74] ss:$8 sps:$4 sm:$0xff]  }
  0x59   : > { %v1547_v26 = vld [vmem:[%s1908_s14 + $0x164] ss:$8 sps:$4 sm:$0xff]   ;;  %v1550_v28 = vld [vmem:[%s1908_s14 + $0x160] ss:$8 sps:$4 sm:$0xff]   ;;  %v1553_v30 = vld [vmem:[%s1908_s14 + $0x174] ss:$8 sps:$4 sm:$0xff]  }
  0x5a   : > { %1018 = vmatpush1.bf16.msra.mxu0 %v1525_v11  ;;  %v1555_v31 = vld [vmem:[%s1908_s14 + $0x70] ss:$8 sps:$4 sm:$0xff]   ;;  %v1557_v33 = vld [vmem:[%s1908_s14 + $0x84] ss:$8 sps:$4 sm:$0xff]   ;;  %v1561_v35 = vld [vmem:[%s1908_s14 + $0x80] ss:$8 sps:$4 sm:$0xff]  }
  0x5b   : > { %1059 = vmatpush1.bf16.msra.mxu1 %v1526_v12  ;;  %1019 = vmatprep.subr.bf16.mxu0 %v1527_v13  ;;  %v1556_v32 = vld [vmem:[%s1908_s14 + $0x170] ss:$8 sps:$4 sm:$0xff]   ;;  %v1559_v34 = vld [vmem:[%s1908_s14 + $0x184] ss:$8 sps:$4 sm:$0xff]   ;;  %v1562_v36 = vld [vmem:[%s1908_s14 + $0x180] ss:$8 sps:$4 sm:$0xff]  }
  0x5c   : > { %1060 = vmatprep.subr.bf16.mxu1 %v1529_v14  ;;  %v1563_v37 = vld [vmem:[%s1908_s14 + $0x94] ss:$8 sps:$4 sm:$0xff]   ;;  %v1567_v39 = vld [vmem:[%s1908_s14 + $0x90] ss:$8 sps:$4 sm:$0xff]   ;;  %v1569_v41 = vld [vmem:[%s1908_s14 + $0xa4] ss:$8 sps:$4 sm:$0xff]  }
  0x5d   : > { %v1565_v38 = vld [vmem:[%s1908_s14 + $0x194] ss:$8 sps:$4 sm:$0xff]   ;;  %v1568_v40 = vld [vmem:[%s1908_s14 + $0x190] ss:$8 sps:$4 sm:$0xff]   ;;  %v1571_v42 = vld [vmem:[%s1908_s14 + $0x1a4] ss:$8 sps:$4 sm:$0xff]  }
  0x5e   : > { %1020 = vmatpush1.bf16.msra.mxu0 %v1531_v15  ;;  %v1573_v43 = vld [vmem:[%s1908_s14 + $0xa0] ss:$8 sps:$4 sm:$0xff]   ;;  %v1575_v45 = vld [vmem:[%s1908_s14 + $0xb4] ss:$8 sps:$4 sm:$0xff]   ;;  %v1579_v50 = vld [vmem:[%s1908_s14 + $0xb0] ss:$8 sps:$4 sm:$0xff]  }
  0x5f   : > { %1061 = vmatpush1.bf16.msra.mxu1 %v1532_v16  ;;  %1021 = vmatprep.subr.bf16.mxu0 %v1533_v17  ;;  %v1574_v44 = vld [vmem:[%s1908_s14 + $0x1a0] ss:$8 sps:$4 sm:$0xff]   ;;  %v1577_v46 = vld [vmem:[%s1908_s14 + $0x1b4] ss:$8 sps:$4 sm:$0xff]   ;;  %v1580_v51 = vld [vmem:[%s1908_s14 + $0x1b0] ss:$8 sps:$4 sm:$0xff]  }
  0x60   : > { %1062 = vmatprep.subr.bf16.mxu1 %v1535_v18  ;;  %v613_v47 = vld [vmem:[%s1891_s30] sm:$0xff]  ;;  %v614_v49 = vld [vmem:[%s1891_s30 + $0x8] sm:$0xff]  ;;  %v1581_v53 = vld [vmem:[%s1908_s14 + $0xc4] ss:$8 sps:$4 sm:$0xff]   ;;  %p1446_p13 = scmp.ne.s32.totalorder %s1647_s17, 4 }
  0x61   : > { %v1379_v48 = vcombine.high %v613_v47, %v613_v47  ;;  %v1381_v52 = vcombine.high %v614_v49, %v614_v49  ;;  %v1583_v54 = vld [vmem:[%s1908_s14 + $0x1c4] ss:$8 sps:$4 sm:$0xff]   ;;  %v1585_v55 = vld [vmem:[%s1908_s14 + $0xc0] ss:$8 sps:$4 sm:$0xff]   ;;  %v1587_v57 = vld [vmem:[%s1908_s14 + $0xd4] ss:$8 sps:$4 sm:$0xff]   ;;  %v1378_v5 = vcombine.low %v613_v47, %v613_v47  ;;  %v1380_v6 = vcombine.low %v614_v49, %v614_v49 }
  0x62   : > { %1022 = vmatpush1.bf16.msra.mxu0 %v1537_v19  ;;  %v1586_v56 = vld [vmem:[%s1908_s14 + $0x1c0] ss:$8 sps:$4 sm:$0xff]   ;;  %v1589_v58 = vld [vmem:[%s1908_s14 + $0x1d4] ss:$8 sps:$4 sm:$0xff]   ;;  %v1591_v59 = vld [vmem:[%s1908_s14 + $0xd0] ss:$8 sps:$4 sm:$0xff]  }
  0x63   : > { %1063 = vmatpush1.bf16.msra.mxu1 %v1538_v20  ;;  %1023 = vmatprep.subr.bf16.mxu0 %v1539_v21  ;;  %v1592_v60 = vld [vmem:[%s1908_s14 + $0x1d0] ss:$8 sps:$4 sm:$0xff]   ;;  %v1593_v61 = vld [vmem:[%s1908_s14 + $0xe4] ss:$8 sps:$4 sm:$0xff]   ;;  %v1597_v63 = vld [vmem:[%s1908_s14 + $0xe0] ss:$8 sps:$4 sm:$0xff]  }
  0x64   : > { %1064 = vmatprep.subr.bf16.mxu1 %v1541_v22  ;;  %1045 = vmatprep.mubr.bf16.mxu0 %v1379_v48  ;;  %v1595_v62 = vld [vmem:[%s1908_s14 + $0x1e4] ss:$8 sps:$4 sm:$0xff]   ;;  %v1598_v0 = vld [vmem:[%s1908_s14 + $0x1e0] ss:$8 sps:$4 sm:$0xff]   ;;  %v1599_v1 = vld [vmem:[%s1908_s14 + $0xf4] ss:$8 sps:$4 sm:$0xff]  }
  0x65   : > { %1086 = vmatprep.mubr.bf16.mxu1 %v1381_v52  ;;  %v1601_v2 = vld [vmem:[%s1908_s14 + $0x1f4] ss:$8 sps:$4 sm:$0xff]   ;;  %v1603_v3 = vld [vmem:[%s1908_s14 + $0xf0] ss:$8 sps:$4 sm:$0xff]  }
  0x66   : > { %1024 = vmatpush1.bf16.msra.mxu0 %v1543_v23  ;;  %v1604_v4 = vld [vmem:[%s1908_s14 + $0x1f0] ss:$8 sps:$4 sm:$0xff]  }
  0x67   : > { %1065 = vmatpush1.bf16.msra.mxu1 %v1544_v24  ;;  %1025 = vmatprep.subr.bf16.mxu0 %v1545_v25  ;;  %v611_v8 = vld [vmem:[#allocation2] sm:$0xff]  ;;  %v612_v12 = vld [vmem:[#allocation2 + $0x8] sm:$0xff] }
  0x68   : > { %1066 = vmatprep.subr.bf16.mxu1 %v1547_v26 }
  0x6a   : > { %1026 = vmatpush1.bf16.msra.mxu0 %v1549_v27 }
  0x6b   : > { %1067 = vmatpush1.bf16.msra.mxu1 %v1550_v28  ;;  %1027 = vmatprep.subr.bf16.mxu0 %v1551_v29 }
  0x6c   : > { %1068 = vmatprep.subr.bf16.mxu1 %v1553_v30 }
  0x6e   : > { %1028 = vmatpush1.bf16.msra.mxu0 %v1555_v31 }
  0x6f   : > { %1069 = vmatpush1.bf16.msra.mxu1 %v1556_v32  ;;  %1029 = vmatprep.subr.bf16.mxu0 %v1557_v33 }
  0x70   : > { %1070 = vmatprep.subr.bf16.mxu1 %v1559_v34 }
  0x72   : > { %1030 = vmatpush1.bf16.msra.mxu0 %v1561_v35 }
  0x73   : > { %1071 = vmatpush1.bf16.msra.mxu1 %v1562_v36  ;;  %1031 = vmatprep.subr.bf16.mxu0 %v1563_v37 }
  0x74   : > { %1072 = vmatprep.subr.bf16.mxu1 %v1565_v38 }
  0x76   : > { %1032 = vmatpush1.bf16.msra.mxu0 %v1567_v39 }
  0x77   : > { %1073 = vmatpush1.bf16.msra.mxu1 %v1568_v40  ;;  %1033 = vmatprep.subr.bf16.mxu0 %v1569_v41 }
  0x78   : > { %1074 = vmatprep.subr.bf16.mxu1 %v1571_v42 }
  0x7a   : > { %1034 = vmatpush1.bf16.msra.mxu0 %v1573_v43 }
  0x7b   : > { %1075 = vmatpush1.bf16.msra.mxu1 %v1574_v44  ;;  %1035 = vmatprep.subr.bf16.mxu0 %v1575_v45 }
  0x7c   : > { %1076 = vmatprep.subr.bf16.mxu1 %v1577_v46 }
  0x7e   : > { %1036 = vmatpush1.bf16.msra.mxu0 %v1579_v50 }
  0x7f   : > { %1077 = vmatpush1.bf16.msra.mxu1 %v1580_v51  ;;  %1037 = vmatprep.subr.bf16.mxu0 %v1581_v53 }
  0x80   : > { %1078 = vmatprep.subr.bf16.mxu1 %v1583_v54 }
  0x82   : > { %1038 = vmatpush1.bf16.msra.mxu0 %v1585_v55 }
  0x83   : > { %1079 = vmatpush1.bf16.msra.mxu1 %v1586_v56  ;;  %1039 = vmatprep.subr.bf16.mxu0 %v1587_v57 }
  0x84   : > { %1080 = vmatprep.subr.bf16.mxu1 %v1589_v58 }
  0x86   : > { %1040 = vmatpush1.bf16.msra.mxu0 %v1591_v59 }
  0x87   : > { %1081 = vmatpush1.bf16.msra.mxu1 %v1592_v60  ;;  %1041 = vmatprep.subr.bf16.mxu0 %v1593_v61 }
  0x88   : > { %1082 = vmatprep.subr.bf16.mxu1 %v1595_v62 }
  0x8a   : > { %1042 = vmatpush1.bf16.msra.mxu0 %v1597_v63 }
  0x8b   : > { %1083 = vmatpush1.bf16.msra.mxu1 %v1598_v0  ;;  %1043 = vmatprep.subr.bf16.mxu0 %v1599_v1 }
  0x8c   : > { %1084 = vmatprep.subr.bf16.mxu1 %v1601_v2 }
  0x8e   : > { %1044 = vmatpush1.bf16.msra.mxu0 %v1603_v3 }
  0x8f   : > { %1085 = vmatpush1.bf16.msra.mxu1 %v1604_v4 }
  0x91   : > { %1046 = vmatmul.mubr.bf16.vlgmr.msra.gmra.mrb[0].mxu0 %v1378_v5 }
  0x92   : > { %1087 = vmatmul.mubr.bf16.vlgmr.msra.gmra.mrb[0].mxu1 %v1380_v6 }
 0x164   : > { %v1047_v7 = vpop.f32.mrb[0].mxu0 }
 0x165   : > { %v1088_v9 = vpop.f32.mrb[0].mxu1  ;;  %v1049_v11 = vpop.f32.mrb[1].mxu0  ;;  %1102 = sbr.rel (%p1446_p13) target bundleno = 386 (0x182), region = 74 }
 0x166   : > { %v1089_v10 = vadd.f32 %v1088_v9, %v1047_v7  ;;  %v1090_v13 = vpop.f32.mrb[1].mxu1  ;;  %v1051_v15 = vpop.f32.mrb[2].mxu0 }
 0x167   : > { %v1091_v14 = vadd.f32 %v1090_v13, %v1049_v11  ;;  %v1092_v16 = vpop.f32.mrb[2].mxu1  ;;  %v1052_v18 = vpop.f32.mrb[3].mxu0 }
 0x168   : > { %v1095_v17 = vadd.f32 %v1089_v10, %v611_v8  ;;  %v1093_v19 = vpop.f32.mrb[3].mxu1 }
 0x169   : > { %v1096_v20 = vadd.f32 %v1091_v14, %v612_v12 }
 0x16a   : > { %1097 = vst [vmem:[#allocation2] sm:$0xff] %v1095_v17 }
 0x16b   : > { %1098 = vst [vmem:[#allocation2 + $0x8] sm:$0xff] %v1096_v20 }
 0x171   : > { %v1103_v21 = vld [vmem:[#allocation2] sm:$0xff] }
 0x172   : > { %v1104_v22 = vld [vmem:[#allocation2 + $0x8] sm:$0xff]  ;;  %v1114_v23 = vrot.slane %v1103_v21, 4  ;;  %v1128_v24 = vmul.f32 %v1103_v21, %v1103_v21 }
 0x173   : > { %v1451_v25 = vpack.c.bf16 %v1104_v22, %v1103_v21  ;;  %v1120_v26 = vrot.slane %v1104_v22, 4  ;;  %v1129_v27 = vmul.f32 %v1104_v22, %v1104_v22 }
 0x174   : > { %v1115_v28 = vadd.f32 %v1114_v23, %v1103_v21  ;;  %v1130_v29 = vrot.slane %v1128_v24, 4 }
 0x175   : > { %1113 = vst [vmem:[%s1896_s9] sm:$0xff] %v1451_v25  ;;  %v1121_v30 = vadd.f32 %v1120_v26, %v1104_v22  ;;  %v1136_v31 = vrot.slane %v1129_v27, 4 }
 0x176   : > { %v1116_v32 = vrot.slane %v1115_v28, 2  ;;  %v1131_v33 = vadd.f32 %v1130_v29, %v1128_v24 }
 0x177   : > { %v1122_v34 = vrot.slane %v1121_v30, 2  ;;  %v1137_v35 = vadd.f32 %v1136_v31, %v1129_v27 }
 0x178   : > { %v1117_v36 = vadd.f32 %v1116_v32, %v1115_v28  ;;  %v1132_v37 = vrot.slane %v1131_v33, 2 }
 0x179   : > { %v1123_v38 = vadd.f32 %v1122_v34, %v1121_v30  ;;  %v1138_v39 = vrot.slane %v1137_v35, 2 }
 0x17a   : > { %v1118_v40 = vrot.slane %v1117_v36, 1  ;;  %v1133_v41 = vadd.f32 %v1132_v37, %v1131_v33 }
 0x17b   : > { %v1124_v42 = vrot.slane %v1123_v38, 1  ;;  %v1139_v43 = vadd.f32 %v1138_v39, %v1137_v35 }
 0x17c   : > { %v1119_v44 = vadd.f32 %v1118_v40, %v1117_v36  ;;  %v1134_v45 = vrot.slane %v1133_v41, 1 }
 0x17d   : > { %v1125_v46 = vadd.f32 %v1124_v42, %v1123_v38  ;;  %v1140_v47 = vrot.slane %v1139_v43, 1 }
 0x17e   : > { %1126 = vst [vmem:[%s1901_s18] sm:$0xff] %v1119_v44  ;;  %v1135_v48 = vadd.f32 %v1134_v45, %v1133_v41 }
 0x17f   : > { %1127 = vst [vmem:[%s1901_s18 + $0x8] sm:$0xff] %v1125_v46  ;;  %v1141_v49 = vadd.f32 %v1140_v47, %v1139_v43 }
 0x180   : > { %1142 = vst [vmem:[%s1906_s13] sm:$0xff] %v1135_v48 }
 0x181   : > { %1143 = vst [vmem:[%s1906_s13 + $0x8] sm:$0xff] %v1141_v49 }
 0x182 PF: > { %s15_s21 = sadd.s32 1, %s1663_s21   ;;  %s2009_s15 = smov %s1643_s16 }
 0x183   : > { %p12_p0 = scmp.ge.s32.totalorder %s15_s21, 12   ;;  %s2010_s16 = smov %s1742_s28 }
 0x184   : > { %s2011_s17 = smov %s1655_s19  ;;  %s2012_s18 = smov %s1659_s20 }
 0x185   : > { %s2013_s19 = smov %s2016_s22  ;;  %s2014_s20 = smov %s2020_s23 }
 0x186   :  { %14 = sbr.rel (!%p12_p0) target bundleno = 4 (0x4), region = 136 }

// kernel: resnet_forward.78
= control target key start
LH: loop header
LB: loop body
LE: loop exit
PB: predicated region body
PF: predicated region fallthrough
CT: control target
= control target key end

     0   :  { %s571_s15 = smov 0   ;;  %s573_s16 = smov 0   ;;  %s613_s0 = inlined_call_operand.vmem [shape: bf16[8,512], index: 0, kind: input, shape index: {}]   ;;  %s614_s1 = inlined_call_operand.vmem [shape: f32[1,512], index: 1, kind: input, shape index: {}]   ;;  %s615_s2 = inlined_call_operand.vmem [shape: f32[1,512], index: 2, kind: input, shape index: {}]   ;;  %s616_s3 = inlined_call_operand.vmem [shape: bf16[8,512], index: 3, kind: input, shape index: {}]   ;;  %s617_s4 = inlined_call_operand.vmem [shape: bf16[8,512], index: 4, kind: output, shape index: {}]  }
   0x1   :  { %s575_s17 = smov 0  }
   0x2 LB: > { %s23_s18 = sadd.s32 1, %s540_s16  ;;  %p485_p0 = scmp.ge.s32.totalorder %s544_s17, 1  ;;  %s544_s17 = sphi %s575_s17, %s14_s17   ;;  %s540_s16 = sphi %s573_s16, %s619_s16   ;;  %s536_s15 = sphi %s571_s15, %s618_s15  }
   0x3   : > { %p24_p1 = scmp.ge.s32.totalorder %s23_s18, 2  ;;  %p220_p2 = scmp.lt.s32.totalorder %s544_s17, 3 }
   0x5   : > { %s621_s18 = smov (%p24_p1, %s23_s18), 0  ;;  %p221_p3 = pnand %p485_p0, %p220_p2 }
   0x6   : > { %s486_s19 = sshll.u32 (!%p221_p3), %s536_s15, 1  ;;  %v316_v0 = vlaneseq (!%p221_p3) }
   0x7   : > { %224 = sbr.rel (%p221_p3) target bundleno = 31 (0x1f), region = 36  ;;  %p274_p4 = scmp.lt.s32.totalorder (!%p221_p3), %s486_s19, 3 }
   0x8   : > { %v317_v1 = vshrl.u32 (!%p221_p3), %v316_v0, 7 }
   0xa   : > { %v318_v2 = vsub.s32 (!%p221_p3), 0, %v317_v1  ;;  %v322_v3 = vsub.s32 (!%p221_p3), 1, %v317_v1 }
   0xe   : > { %s623_s19 = smov (!%p274_p4, %s486_s19), 3 }
   0xf   : > { %s487_s20 = sshll.u32 %s623_s19, 2  ;;  %s284_s23 = scalar_lea.vmem %s614_s1, %s623_s19 }
  0x10   : > { %s279_s26 = scalar_lea.vmem %s613_s0, %s487_s20  ;;  %s289_s29 = scalar_lea.vmem %s615_s2, %s623_s19  ;;  %v314_v4 = vld [vmem:[%s284_s23] sm:$0x3] }
  0x11   : > { %s299_s6 = scalar_lea.vmem %s616_s3, %s487_s20  ;;  %v311_v5 = vld [vmem:[%s279_s26] sm:$0xff]  ;;  %v319_v6 = vrot.slane %v314_v4, %v318_v2  ;;  %v323_v7 = vrot.slane %v314_v4, %v322_v3  ;;  %s309_s9 = scalar_lea.vmem %s617_s4, %s487_s20 }
  0x12   : > { %v328_v8 = vld [vmem:[%s289_s29] sm:$0x3]  ;;  %v312_v9 = vunpack.c.l.bf16 %v311_v5  ;;  %v313_v10 = vunpack.c.h.bf16 %v311_v5 }
  0x13   : > { %v333_v11 = vrot.slane %v328_v8, %v318_v2  ;;  %v337_v12 = vrot.slane %v328_v8, %v322_v3  ;;  %v342_v13 = vld [vmem:[%s299_s6] sm:$0xff] }
  0x14   : > { %v326_v14 = vmul.f32 %v319_v6, %v312_v9  ;;  %v327_v15 = vmul.f32 %v323_v7, %v313_v10  ;;  %v343_v16 = vunpack.c.l.bf16 %v342_v13  ;;  %v344_v17 = vunpack.c.h.bf16 %v342_v13 }
  0x16   : > { %v340_v18 = vadd.f32 %v333_v11, %v326_v14  ;;  %v341_v19 = vadd.f32 %v337_v12, %v327_v15 }
  0x18   : > { %v345_v20 = vadd.f32 %v343_v16, %v340_v18  ;;  %v346_v21 = vadd.f32 %v344_v17, %v341_v19 }
  0x1a   : > { %v347_v22 = vmax.f32 %v345_v20, 0.0  ;;  %v348_v23 = vmax.f32 %v346_v21, 0.0 }
  0x1c   : > { %v497_v24 = vpack.c.bf16 %v348_v23, %v347_v22 }
  0x1e   : > { %357 = vst [vmem:[%s309_s9] sm:$0xff] %v497_v24 }
  0x1f PF: > { %s14_s17 = sadd.s32 1, %s544_s17   ;;  %s618_s15 = smov %s540_s16 }
  0x20   : > { %p11_p5 = scmp.ge.s32.totalorder %s14_s17, 4   ;;  %s619_s16 = smov %s621_s18 }
  0x22   :  { %13 = sbr.rel (!%p11_p5) target bundleno = 2 (0x2), region = 75 }

// kernel: resnet_forward.77
= control target key start
LH: loop header
LB: loop body
LE: loop exit
PB: predicated region body
PF: predicated region fallthrough
CT: control target
= control target key end

     0   :  { %s1691_s15 = smov 0   ;;  %s1693_s16 = smov 0   ;;  %s2004_s0 = inlined_call_operand.vmem [shape: bf16[8,4608], index: 0, kind: input, shape index: {}]   ;;  %s2005_s1 = inlined_call_operand.vmem [shape: bf16[4608,512], index: 1, kind: input, shape index: {}]   ;;  %s2006_s2 = inlined_call_operand.vmem [shape: bf16[8,512], index: 2, kind: output, shape index: {0}]   ;;  %s2007_s3 = inlined_call_operand.vmem [shape: f32[8,512], index: 3, kind: output, shape index: {1}]   ;;  %s2008_s4 = inlined_call_operand.vmem [shape: f32[8,512], index: 4, kind: output, shape index: {2}]  }
   0x1   :  { %s1695_s17 = smov 0   ;;  %s1697_s18 = smov 0  }
   0x2   :  { %s1699_s19 = smov 0   ;;  %s1701_s20 = smov 0  }
   0x3   :  { %s1703_s21 = smov 0  }
   0x4 LB: > { %s27_s22 = sadd.s32 1, %s1655_s19  ;;  %s30_s23 = sadd.s32 1, %s1659_s20  ;;  %s1663_s21 = sphi %s1703_s21, %s15_s21   ;;  %s1659_s20 = sphi %s1701_s20, %s2014_s20   ;;  %s1655_s19 = sphi %s1699_s19, %s2013_s19   ;;  %s1651_s18 = sphi %s1697_s18, %s2012_s18   ;;  %s1647_s17 = sphi %s1695_s17, %s2011_s17   ;;  %s1643_s16 = sphi %s1693_s16, %s2010_s16   ;;  %s1639_s15 = sphi %s1691_s15, %s2009_s15  }
   0x5   : > { %p28_p0 = scmp.ge.s32.totalorder %s27_s22, 9  ;;  %p78_p1 = scmp.ne.s32.totalorder %s1643_s16, %s1639_s15 }
   0x6   : > { %p79_p2 = scmp.eq.s32.totalorder %s1663_s21, 0  ;;  %s71_s27 = sadd.s32 1, %s1643_s16 }
   0x7   : > { %s2016_s22 = smov (%p28_p0, %s27_s22), 0  ;;  %s2018_s23 = smov (!%p28_p0, %s30_s23), %s1659_s20 }
   0x8   : > { %p80_p3 = por %p79_p2, %p78_p1  ;;  %p32_p4 = scmp.ge.s32.totalorder %s2018_s23, 2 }
   0x9   : > { %s66_s24 = ssub.s32 %s1655_s19, %s2016_s22  ;;  %p1361_p6 = scmp.ge.s32.totalorder %s1663_s21, 18 }
   0xa   : > { %s2020_s23 = smov (%p32_p4, %s2018_s23), 0 }
   0xb   : > { %s67_s25 = ssub.s32 %s1659_s20, %s2020_s23  ;;  %188 = sbr.rel (%p1361_p6) target bundleno = 57 (0x39), region = 16 }
   0xc   : > { %s68_s26 = sor.u32 %s67_s25, %s66_s24 }
   0xd   : > { %p69_p5 = scmp.eq.s32.totalorder %s68_s26, 0 }
   0xf   : > { %s1742_s28 = scalar_select %p69_p5, %s1643_s16, %s71_s27  }
  0x12   : > { %204 = sbr.rel (!%p80_p3) target bundleno = 57 (0x39), region = 24  ;;  %s206_s29 = sand.u32 (%p80_p3), 1, %s1643_s16  }
  0x13   : > { %s1364_s30 = sshll.u32 (%p80_p3), %s1659_s20, 1  ;;  %s1362_s5 = sshll.u32 (%p80_p3), %s206_s29, 9 }
  0x14   : > { %s1450_s6 = sshll.u32 (%p80_p3), %s1655_s19, 8  ;;  %s1756_s12 = scalar_lea.vmem (%p80_p3), [#allocation3], %s1362_s5 }
  0x15   : > { %s212_s7 = sadd.s32 (%p80_p3), %s1450_s6, %s1364_s30 }
  0x16   : > { %s1366_s8 = sshll.u32 (%p80_p3), %s212_s7, 2 }
  0x17   : > { %s1751_s11 = scalar_lea.vmem (%p80_p3), %s2005_s1, %s1366_s8 }
  0x18   : > { %v368_v0 = vld [vmem:[%s1751_s11] sm:$0xff] (%p80_p3)  ;;  %v370_v1 = vld [vmem:[%s1751_s11 + $0x10] sm:$0xff] (%p80_p3) }
  0x19   : > { %v372_v2 = vld [vmem:[%s1751_s11 + $0x20] sm:$0xff]  ;;  %369 = vst [vmem:[%s1756_s12] sm:$0xff] %v368_v0  ;;  %371 = vst [vmem:[%s1756_s12 + $0x8] sm:$0xff] %v370_v1  ;;  %v374_v3 = vld [vmem:[%s1751_s11 + $0x30] sm:$0xff] }
  0x1a   : > { %373 = vst [vmem:[%s1756_s12 + $0x10] sm:$0xff] %v372_v2  ;;  %v376_v4 = vld [vmem:[%s1751_s11 + $0x40] sm:$0xff]  ;;  %v378_v5 = vld [vmem:[%s1751_s11 + $0x50] sm:$0xff]  ;;  %375 = vst [vmem:[%s1756_s12 + $0x18] sm:$0xff] %v374_v3 }
  0x1b   : > { %377 = vst [vmem:[%s1756_s12 + $0x20] sm:$0xff] %v376_v4  ;;  %379 = vst [vmem:[%s1756_s12 + $0x28] sm:$0xff] %v378_v5  ;;  %v380_v6 = vld [vmem:[%s1751_s11 + $0x60] sm:$0xff]  ;;  %v382_v7 = vld [vmem:[%s1751_s11 + $0x70] sm:$0xff] }
  0x1c   : > { %v384_v8 = vld [vmem:[%s1751_s11 + $0x80] sm:$0xff]  ;;  %381 = vst [vmem:[%s1756_s12 + $0x30] sm:$0xff] %v380_v6  ;;  %383 = vst [vmem:[%s1756_s12 + $0x38] sm:$0xff] %v382_v7  ;;  %v386_v9 = vld [vmem:[%s1751_s11 + $0x90] sm:$0xff] }
  0x1d   : > { %385 = vst [vmem:[%s1756_s12 + $0x40] sm:$0xff] %v384_v8  ;;  %v388_v10 = vld [vmem:[%s1751_s11 + $0xa0] sm:$0xff]  ;;  %v390_v11 = vld [vmem:[%s1751_s11 + $0xb0] sm:$0xff]  ;;  %387 = vst [vmem:[%s1756_s12 + $0x48] sm:$0xff] %v386_v9 }
  0x1e   : > { %389 = vst [vmem:[%s1756_s12 + $0x50] sm:$0xff] %v388_v10  ;;  %391 = vst [vmem:[%s1756_s12 + $0x58] sm:$0xff] %v390_v11  ;;  %v392_v12 = vld [vmem:[%s1751_s11 + $0xc0] sm:$0xff]  ;;  %v394_v13 = vld [vmem:[%s1751_s11 + $0xd0] sm:$0xff] }
  0x1f   : > { %v396_v14 = vld [vmem:[%s1751_s11 + $0xe0] sm:$0xff]  ;;  %393 = vst [vmem:[%s1756_s12 + $0x60] sm:$0xff] %v392_v12  ;;  %395 = vst [vmem:[%s1756_s12 + $0x68] sm:$0xff] %v394_v13  ;;  %v398_v15 = vld [vmem:[%s1751_s11 + $0xf0] sm:$0xff] }
  0x20   : > { %397 = vst [vmem:[%s1756_s12 + $0x70] sm:$0xff] %v396_v14  ;;  %v400_v16 = vld [vmem:[%s1751_s11 + $0x100] sm:$0xff]  ;;  %v402_v17 = vld [vmem:[%s1751_s11 + $0x110] sm:$0xff]  ;;  %399 = vst [vmem:[%s1756_s12 + $0x78] sm:$0xff] %v398_v15 }
  0x21   : > { %401 = vst [vmem:[%s1756_s12 + $0x80] sm:$0xff] %v400_v16  ;;  %403 = vst [vmem:[%s1756_s12 + $0x88] sm:$0xff] %v402_v17  ;;  %v404_v18 = vld [vmem:[%s1751_s11 + $0x120] sm:$0xff]  ;;  %v406_v19 = vld [vmem:[%s1751_s11 + $0x130] sm:$0xff] }
  0x22   : > { %v408_v20 = vld [vmem:[%s1751_s11 + $0x140] sm:$0xff]  ;;  %405 = vst [vmem:[%s1756_s12 + $0x90] sm:$0xff] %v404_v18  ;;  %407 = vst [vmem:[%s1756_s12 + $0x98] sm:$0xff] %v406_v19  ;;  %v410_v21 = vld [vmem:[%s1751_s11 + $0x150] sm:$0xff] }
  0x23   : > { %409 = vst [vmem:[%s1756_s12 + $0xa0] sm:$0xff] %v408_v20  ;;  %v412_v22 = vld [vmem:[%s1751_s11 + $0x160] sm:$0xff]  ;;  %v414_v23 = vld [vmem:[%s1751_s11 + $0x170] sm:$0xff]  ;;  %411 = vst [vmem:[%s1756_s12 + $0xa8] sm:$0xff] %v410_v21 }
  0x24   : > { %413 = vst [vmem:[%s1756_s12 + $0xb0] sm:$0xff] %v412_v22  ;;  %415 = vst [vmem:[%s1756_s12 + $0xb8] sm:$0xff] %v414_v23  ;;  %v416_v24 = vld [vmem:[%s1751_s11 + $0x180] sm:$0xff]  ;;  %v418_v25 = vld [vmem:[%s1751_s11 + $0x190] sm:$0xff] }
  0x25   : > { %v420_v26 = vld [vmem:[%s1751_s11 + $0x1a0] sm:$0xff]  ;;  %417 = vst [vmem:[%s1756_s12 + $0xc0] sm:$0xff] %v416_v24  ;;  %419 = vst [vmem:[%s1756_s12 + $0xc8] sm:$0xff] %v418_v25  ;;  %v422_v27 = vld [vmem:[%s1751_s11 + $0x1b0] sm:$0xff] }
  0x26   : > { %421 = vst [vmem:[%s1756_s12 + $0xd0] sm:$0xff] %v420_v26  ;;  %v424_v28 = vld [vmem:[%s1751_s11 + $0x1c0] sm:$0xff]  ;;  %v426_v29 = vld [vmem:[%s1751_s11 + $0x1d0] sm:$0xff]  ;;  %423 = vst [vmem:[%s1756_s12 + $0xd8] sm:$0xff] %v422_v27 }
  0x27   : > { %425 = vst [vmem:[%s1756_s12 + $0xe0] sm:$0xff] %v424_v28  ;;  %427 = vst [vmem:[%s1756_s12 + $0xe8] sm:$0xff] %v426_v29  ;;  %v428_v30 = vld [vmem:[%s1751_s11 + $0x1e0] sm:$0xff]  ;;  %v430_v31 = vld [vmem:[%s1751_s11 + $0x1f0] sm:$0xff] }
  0x28   : > { %v432_v32 = vld [vmem:[%s1751_s11 + $0x200] sm:$0xff]  ;;  %429 = vst [vmem:[%s1756_s12 + $0xf0] sm:$0xff] %v428_v30  ;;  %431 = vst [vmem:[%s1756_s12 + $0xf8] sm:$0xff] %v430_v31  ;;  %v434_v33 = vld [vmem:[%s1751_s11 + $0x210] sm:$0xff] }
  0x29   : > { %433 = vst [vmem:[%s1756_s12 + $0x100] sm:$0xff] %v432_v32  ;;  %v436_v34 = vld [vmem:[%s1751_s11 + $0x220] sm:$0xff]  ;;  %v438_v35 = vld [vmem:[%s1751_s11 + $0x230] sm:$0xff]  ;;  %435 = vst [vmem:[%s1756_s12 + $0x108] sm:$0xff] %v434_v33 }
  0x2a   : > { %437 = vst [vmem:[%s1756_s12 + $0x110] sm:$0xff] %v436_v34  ;;  %439 = vst [vmem:[%s1756_s12 + $0x118] sm:$0xff] %v438_v35  ;;  %v440_v36 = vld [vmem:[%s1751_s11 + $0x240] sm:$0xff]  ;;  %v442_v37 = vld [vmem:[%s1751_s11 + $0x250] sm:$0xff] }
  0x2b   : > { %v444_v38 = vld [vmem:[%s1751_s11 + $0x260] sm:$0xff]  ;;  %441 = vst [vmem:[%s1756_s12 + $0x120] sm:$0xff] %v440_v36  ;;  %443 = vst [vmem:[%s1756_s12 + $0x128] sm:$0xff] %v442_v37  ;;  %v446_v39 = vld [vmem:[%s1751_s11 + $0x270] sm:$0xff] }
  0x2c   : > { %445 = vst [vmem:[%s1756_s12 + $0x130] sm:$0xff] %v444_v38  ;;  %v448_v40 = vld [vmem:[%s1751_s11 + $0x280] sm:$0xff]  ;;  %v450_v41 = vld [vmem:[%s1751_s11 + $0x290] sm:$0xff]  ;;  %447 = vst [vmem:[%s1756_s12 + $0x138] sm:$0xff] %v446_v39 }
  0x2d   : > { %449 = vst [vmem:[%s1756_s12 + $0x140] sm:$0xff] %v448_v40  ;;  %451 = vst [vmem:[%s1756_s12 + $0x148] sm:$0xff] %v450_v41  ;;  %v452_v42 = vld [vmem:[%s1751_s11 + $0x2a0] sm:$0xff]  ;;  %v454_v43 = vld [vmem:[%s1751_s11 + $0x2b0] sm:$0xff] }
  0x2e   : > { %v456_v44 = vld [vmem:[%s1751_s11 + $0x2c0] sm:$0xff]  ;;  %453 = vst [vmem:[%s1756_s12 + $0x150] sm:$0xff] %v452_v42  ;;  %455 = vst [vmem:[%s1756_s12 + $0x158] sm:$0xff] %v454_v43  ;;  %v458_v45 = vld [vmem:[%s1751_s11 + $0x2d0] sm:$0xff] }
  0x2f   : > { %457 = vst [vmem:[%s1756_s12 + $0x160] sm:$0xff] %v456_v44  ;;  %v460_v46 = vld [vmem:[%s1751_s11 + $0x2e0] sm:$0xff]  ;;  %v462_v47 = vld [vmem:[%s1751_s11 + $0x2f0] sm:$0xff]  ;;  %459 = vst [vmem:[%s1756_s12 + $0x168] sm:$0xff] %v458_v45 }
  0x30   : > { %461 = vst [vmem:[%s1756_s12 + $0x170] sm:$0xff] %v460_v46  ;;  %463 = vst [vmem:[%s1756_s12 + $0x178] sm:$0xff] %v462_v47  ;;  %v464_v48 = vld [vmem:[%s1751_s11 + $0x300] sm:$0xff]  ;;  %v466_v49 = vld [vmem:[%s1751_s11 + $0x310] sm:$0xff] }
  0x31   : > { %v468_v50 = vld [vmem:[%s1751_s11 + $0x320] sm:$0xff]  ;;  %465 = vst [vmem:[%s1756_s12 + $0x180] sm:$0xff] %v464_v48  ;;  %467 = vst [vmem:[%s1756_s12 + $0x188] sm:$0xff] %v466_v49  ;;  %v470_v51 = vld [vmem:[%s1751_s11 + $0x330] sm:$0xff] }
  0x32   : > { %469 = vst [vmem:[%s1756_s12 + $0x190] sm:$0xff] %v468_v50  ;;  %v472_v52 = vld [vmem:[%s1751_s11 + $0x340] sm:$0xff]  ;;  %v474_v53 = vld [vmem:[%s1751_s11 + $0x350] sm:$0xff]  ;;  %471 = vst [vmem:[%s1756_s12 + $0x198] sm:$0xff] %v470_v51 }
  0x33   : > { %473 = vst [vmem:[%s1756_s12 + $0x1a0] sm:$0xff] %v472_v52  ;;  %475 = vst [vmem:[%s1756_s12 + $0x1a8] sm:$0xff] %v474_v53  ;;  %v476_v54 = vld [vmem:[%s1751_s11 + $0x360] sm:$0xff]  ;;  %v478_v55 = vld [vmem:[%s1751_s11 + $0x370] sm:$0xff] }
  0x34   : > { %v480_v56 = vld [vmem:[%s1751_s11 + $0x380] sm:$0xff]  ;;  %477 = vst [vmem:[%s1756_s12 + $0x1b0] sm:$0xff] %v476_v54  ;;  %479 = vst [vmem:[%s1756_s12 + $0x1b8] sm:$0xff] %v478_v55  ;;  %v482_v57 = vld [vmem:[%s1751_s11 + $0x390] sm:$0xff] }
  0x35   : > { %481 = vst [vmem:[%s1756_s12 + $0x1c0] sm:$0xff] %v480_v56  ;;  %v484_v58 = vld [vmem:[%s1751_s11 + $0x3a0] sm:$0xff]  ;;  %v486_v59 = vld [vmem:[%s1751_s11 + $0x3b0] sm:$0xff]  ;;  %483 = vst [vmem:[%s1756_s12 + $0x1c8] sm:$0xff] %v482_v57 }
  0x36   : > { %485 = vst [vmem:[%s1756_s12 + $0x1d0] sm:$0xff] %v484_v58  ;;  %487 = vst [vmem:[%s1756_s12 + $0x1d8] sm:$0xff] %v486_v59  ;;  %v488_v60 = vld [vmem:[%s1751_s11 + $0x3c0] sm:$0xff]  ;;  %v490_v61 = vld [vmem:[%s1751_s11 + $0x3d0] sm:$0xff] }
  0x37   : > { %v492_v62 = vld [vmem:[%s1751_s11 + $0x3e0] sm:$0xff]  ;;  %489 = vst [vmem:[%s1756_s12 + $0x1e0] sm:$0xff] %v488_v60  ;;  %491 = vst [vmem:[%s1756_s12 + $0x1e8] sm:$0xff] %v490_v61  ;;  %v494_v63 = vld [vmem:[%s1751_s11 + $0x3f0] sm:$0xff] }
  0x38   : > { %493 = vst [vmem:[%s1756_s12 + $0x1f0] sm:$0xff] %v492_v62  ;;  %495 = vst [vmem:[%s1756_s12 + $0x1f8] sm:$0xff] %v494_v63 }
  0x39 PF: > { %p1367_p7 = scmp.ge.s32.totalorder %s1663_s21, 1  ;;  %p500_p8 = scmp.lt.s32.totalorder %s1663_s21, 19 }
  0x3b   : > { %p501_p9 = pnand %p1367_p7, %p500_p8 }
  0x3c   : > { %s507_s13 = sand.u32 (!%p501_p9), 1, %s1639_s15   ;;  %s1369_s14 = sshll.u32 (!%p501_p9), %s1647_s17, 2 }
  0x3d   : > { %504 = sbr.rel (%p501_p9) target bundleno = 386 (0x182), region = 62  ;;  %s1368_s24 = sshll.u32 (!%p501_p9), %s507_s13, 9 }
  0x3e   : > { %p566_p10 = scmp.lt.s32.totalorder (!%p501_p9), %s1369_s14, 35  ;;  %s1371_s25 = sshll.u32 (!%p501_p9), %s1651_s18, 1 }
  0x3f   : > { %p578_p11 = scmp.lt.s32.totalorder (!%p501_p9), %s1371_s25, 3  ;;  %p1377_p12 = scmp.ne.s32.totalorder (!%p501_p9), %s1647_s17, 0 }
  0x44   : > { %s2022_s14 = smov (!%p566_p10, %s1369_s14), 35  ;;  %s2024_s25 = smov (!%p578_p11, %s1371_s25), 3 }
  0x45   : > { %s1370_s26 = sshll.u32 %s2022_s14, 2  ;;  %s1372_s5 = sshll.u32 %s2024_s25, 2  ;;  %v1665_v0 = vmov (!%p1377_p12), 0.0  }
  0x46   : > { %s1891_s30 = scalar_lea.vmem %s2004_s0, %s1370_s26  ;;  %s1374_s6 = sshll.u32 %s2024_s25, 3  ;;  %609 = vst [vmem:[#allocation2] sm:$0xff] (!%p1377_p12), %v1665_v0  ;;  %610 = vst [vmem:[#allocation2 + $0x8] sm:$0xff] (!%p1377_p12), %v1665_v0 }
  0x47   : > { %s1896_s9 = scalar_lea.vmem %s2006_s2, %s1372_s5  ;;  %s1901_s18 = scalar_lea.vmem %s2007_s3, %s1374_s6 }
  0x48   : > { %s1906_s13 = scalar_lea.vmem %s2008_s4, %s1374_s6  ;;  %s1908_s14 = scalar_lea.vmem [#allocation3], %s1368_s24 }
  0x49   : > { %608 = sbr.rel (%p1377_p12) target bundleno = 80 (0x50), region = 70 }
  0x50 PF: > { %v1509_v1 = vld [vmem:[%s1908_s14 + $0x4] ss:$8 sps:$4 sm:$0xff]   ;;  %v1513_v3 = vld [vmem:[%s1908_s14] ss:$8 sps:$4 sm:$0xff]   ;;  %v1515_v5 = vld [vmem:[%s1908_s14 + $0x14] ss:$8 sps:$4 sm:$0xff]  }
  0x51   : > { %v1511_v2 = vld [vmem:[%s1908_s14 + $0x104] ss:$8 sps:$4 sm:$0xff]   ;;  %1013 = vmatprep.subr.bf16.mxu0 %v1509_v1  ;;  %v1514_v4 = vld [vmem:[%s1908_s14 + $0x100] ss:$8 sps:$4 sm:$0xff]   ;;  %v1517_v6 = vld [vmem:[%s1908_s14 + $0x114] ss:$8 sps:$4 sm:$0xff]  }
  0x52   : > { %1054 = vmatprep.subr.bf16.mxu1 %v1511_v2  ;;  %1014 = vmatpush1.bf16.msra.mxu0 %v1513_v3  ;;  %v1519_v7 = vld [vmem:[%s1908_s14 + $0x10] ss:$8 sps:$4 sm:$0xff]   ;;  %v1521_v9 = vld [vmem:[%s1908_s14 + $0x24] ss:$8 sps:$4 sm:$0xff]   ;;  %v1525_v11 = vld [vmem:[%s1908_s14 + $0x20] ss:$8 sps:$4 sm:$0xff]  }
  0x53   : > { %1055 = vmatpush1.bf16.msra.mxu1 %v1514_v4  ;;  %1015 = vmatprep.subr.bf16.mxu0 %v1515_v5  ;;  %v1520_v8 = vld [vmem:[%s1908_s14 + $0x110] ss:$8 sps:$4 sm:$0xff]   ;;  %v1523_v10 = vld [vmem:[%s1908_s14 + $0x124] ss:$8 sps:$4 sm:$0xff]   ;;  %v1526_v12 = vld [vmem:[%s1908_s14 + $0x120] ss:$8 sps:$4 sm:$0xff]  }
  0x54   : > { %1056 = vmatprep.subr.bf16.mxu1 %v1517_v6  ;;  %v1527_v13 = vld [vmem:[%s1908_s14 + $0x34] ss:$8 sps:$4 sm:$0xff]   ;;  %v1531_v15 = vld [vmem:[%s1908_s14 + $0x30] ss:$8 sps:$4 sm:$0xff]   ;;  %v1533_v17 = vld [vmem:[%s1908_s14 + $0x44] ss:$8 sps:$4 sm:$0xff]  }
  0x55   : > { %v1529_v14 = vld [vmem:[%s1908_s14 + $0x134] ss:$8 sps:$4 sm:$0xff]   ;;  %v1532_v16 = vld [vmem:[%s1908_s14 + $0x130] ss:$8 sps:$4 sm:$0xff]   ;;  %v1535_v18 = vld [vmem:[%s1908_s14 + $0x144] ss:$8 sps:$4 sm:$0xff]  }
  0x56   : > { %1016 = vmatpush1.bf16.msra.mxu0 %v1519_v7  ;;  %v1537_v19 = vld [vmem:[%s1908_s14 + $0x40] ss:$8 sps:$4 sm:$0xff]   ;;  %v1539_v21 = vld [vmem:[%s1908_s14 + $0x54] ss:$8 sps:$4 sm:$0xff]   ;;  %v1543_v23 = vld [vmem:[%s1908_s14 + $0x50] ss:$8 sps:$4 sm:$0xff]  }
  0x57   : > { %1057 = vmatpush1.bf16.msra.mxu1 %v1520_v8  ;;  %1017 = vmatprep.subr.bf16.mxu0 %v1521_v9  ;;  %v1538_v20 = vld [vmem:[%s1908_s14 + $0x140] ss:$8 sps:$4 sm:$0xff]   ;;  %v1541_v22 = vld [vmem:[%s1908_s14 + $0x154] ss:$8 sps:$4 sm:$0xff]   ;;  %v1544_v24 = vld [vmem:[%s1908_s14 + $0x150] ss:$8 sps:$4 sm:$0xff]  }
  0x58   : > { %1058 = vmatprep.subr.bf16.mxu1 %v1523_v10  ;;  %v1545_v25 = vld [vmem:[%s1908_s14 + $0x64] ss:$8 sps:$4 sm:$0xff]   ;;  %v1549_v27 = vld [vmem:[%s1908_s14 + $0x60] ss:$8 sps:$4 sm:$0xff]   ;;  %v1551_v29 = vld [vmem:[%s1908_s14 + $0x74] ss:$8 sps:$4 sm:$0xff]  }
  0x59   : > { %v1547_v26 = vld [vmem:[%s1908_s14 + $0x164] ss:$8 sps:$4 sm:$0xff]   ;;  %v1550_v28 = vld [vmem:[%s1908_s14 + $0x160] ss:$8 sps:$4 sm:$0xff]   ;;  %v1553_v30 = vld [vmem:[%s1908_s14 + $0x174] ss:$8 sps:$4 sm:$0xff]  }
  0x5a   : > { %1018 = vmatpush1.bf16.msra.mxu0 %v1525_v11  ;;  %v1555_v31 = vld [vmem:[%s1908_s14 + $0x70] ss:$8 sps:$4 sm:$0xff]   ;;  %v1557_v33 = vld [vmem:[%s1908_s14 + $0x84] ss:$8 sps:$4 sm:$0xff]   ;;  %v1561_v35 = vld [vmem:[%s1908_s14 + $0x80] ss:$8 sps:$4 sm:$0xff]  }
  0x5b   : > { %1059 = vmatpush1.bf16.msra.mxu1 %v1526_v12  ;;  %1019 = vmatprep.subr.bf16.mxu0 %v1527_v13  ;;  %v1556_v32 = vld [vmem:[%s1908_s14 + $0x170] ss:$8 sps:$4 sm:$0xff]   ;;  %v1559_v34 = vld [vmem:[%s1908_s14 + $0x184] ss:$8 sps:$4 sm:$0xff]   ;;  %v1562_v36 = vld [vmem:[%s1908_s14 + $0x180] ss:$8 sps:$4 sm:$0xff]  }
  0x5c   : > { %1060 = vmatprep.subr.bf16.mxu1 %v1529_v14  ;;  %v1563_v37 = vld [vmem:[%s1908_s14 + $0x94] ss:$8 sps:$4 sm:$0xff]   ;;  %v1567_v39 = vld [vmem:[%s1908_s14 + $0x90] ss:$8 sps:$4 sm:$0xff]   ;;  %v1569_v41 = vld [vmem:[%s1908_s14 + $0xa4] ss:$8 sps:$4 sm:$0xff]  }
  0x5d   : > { %v1565_v38 = vld [vmem:[%s1908_s14 + $0x194] ss:$8 sps:$4 sm:$0xff]   ;;  %v1568_v40 = vld [vmem:[%s1908_s14 + $0x190] ss:$8 sps:$4 sm:$0xff]   ;;  %v1571_v42 = vld [vmem:[%s1908_s14 + $0x1a4] ss:$8 sps:$4 sm:$0xff]  }
  0x5e   : > { %1020 = vmatpush1.bf16.msra.mxu0 %v1531_v15  ;;  %v1573_v43 = vld [vmem:[%s1908_s14 + $0xa0] ss:$8 sps:$4 sm:$0xff]   ;;  %v1575_v45 = vld [vmem:[%s1908_s14 + $0xb4] ss:$8 sps:$4 sm:$0xff]   ;;  %v1579_v50 = vld [vmem:[%s1908_s14 + $0xb0] ss:$8 sps:$4 sm:$0xff]  }
  0x5f   : > { %1061 = vmatpush1.bf16.msra.mxu1 %v1532_v16  ;;  %1021 = vmatprep.subr.bf16.mxu0 %v1533_v17  ;;  %v1574_v44 = vld [vmem:[%s1908_s14 + $0x1a0] ss:$8 sps:$4 sm:$0xff]   ;;  %v1577_v46 = vld [vmem:[%s1908_s14 + $0x1b4] ss:$8 sps:$4 sm:$0xff]   ;;  %v1580_v51 = vld [vmem:[%s1908_s14 + $0x1b0] ss:$8 sps:$4 sm:$0xff]  }
  0x60   : > { %1062 = vmatprep.subr.bf16.mxu1 %v1535_v18  ;;  %v613_v47 = vld [vmem:[%s1891_s30] sm:$0xff]  ;;  %v614_v49 = vld [vmem:[%s1891_s30 + $0x8] sm:$0xff]  ;;  %v1581_v53 = vld [vmem:[%s1908_s14 + $0xc4] ss:$8 sps:$4 sm:$0xff]   ;;  %p1446_p13 = scmp.ne.s32.totalorder %s1647_s17, 8 }
  0x61   : > { %v1379_v48 = vcombine.high %v613_v47, %v613_v47  ;;  %v1381_v52 = vcombine.high %v614_v49, %v614_v49  ;;  %v1583_v54 = vld [vmem:[%s1908_s14 + $0x1c4] ss:$8 sps:$4 sm:$0xff]   ;;  %v1585_v55 = vld [vmem:[%s1908_s14 + $0xc0] ss:$8 sps:$4 sm:$0xff]   ;;  %v1587_v57 = vld [vmem:[%s1908_s14 + $0xd4] ss:$8 sps:$4 sm:$0xff]   ;;  %v1378_v5 = vcombine.low %v613_v47, %v613_v47  ;;  %v1380_v6 = vcombine.low %v614_v49, %v614_v49 }
  0x62   : > { %1022 = vmatpush1.bf16.msra.mxu0 %v1537_v19  ;;  %v1586_v56 = vld [vmem:[%s1908_s14 + $0x1c0] ss:$8 sps:$4 sm:$0xff]   ;;  %v1589_v58 = vld [vmem:[%s1908_s14 + $0x1d4] ss:$8 sps:$4 sm:$0xff]   ;;  %v1591_v59 = vld [vmem:[%s1908_s14 + $0xd0] ss:$8 sps:$4 sm:$0xff]  }
  0x63   : > { %1063 = vmatpush1.bf16.msra.mxu1 %v1538_v20  ;;  %1023 = vmatprep.subr.bf16.mxu0 %v1539_v21  ;;  %v1592_v60 = vld [vmem:[%s1908_s14 + $0x1d0] ss:$8 sps:$4 sm:$0xff]   ;;  %v1593_v61 = vld [vmem:[%s1908_s14 + $0xe4] ss:$8 sps:$4 sm:$0xff]   ;;  %v1597_v63 = vld [vmem:[%s1908_s14 + $0xe0] ss:$8 sps:$4 sm:$0xff]  }
  0x64   : > { %1064 = vmatprep.subr.bf16.mxu1 %v1541_v22  ;;  %1045 = vmatprep.mubr.bf16.mxu0 %v1379_v48  ;;  %v1595_v62 = vld [vmem:[%s1908_s14 + $0x1e4] ss:$8 sps:$4 sm:$0xff]   ;;  %v1598_v0 = vld [vmem:[%s1908_s14 + $0x1e0] ss:$8 sps:$4 sm:$0xff]   ;;  %v1599_v1 = vld [vmem:[%s1908_s14 + $0xf4] ss:$8 sps:$4 sm:$0xff]  }
  0x65   : > { %1086 = vmatprep.mubr.bf16.mxu1 %v1381_v52  ;;  %v1601_v2 = vld [vmem:[%s1908_s14 + $0x1f4] ss:$8 sps:$4 sm:$0xff]   ;;  %v1603_v3 = vld [vmem:[%s1908_s14 + $0xf0] ss:$8 sps:$4 sm:$0xff]  }
  0x66   : > { %1024 = vmatpush1.bf16.msra.mxu0 %v1543_v23  ;;  %v1604_v4 = vld [vmem:[%s1908_s14 + $0x1f0] ss:$8 sps:$4 sm:$0xff]  }
  0x67   : > { %1065 = vmatpush1.bf16.msra.mxu1 %v1544_v24  ;;  %1025 = vmatprep.subr.bf16.mxu0 %v1545_v25  ;;  %v611_v8 = vld [vmem:[#allocation2] sm:$0xff]  ;;  %v612_v12 = vld [vmem:[#allocation2 + $0x8] sm:$0xff] }
  0x68   : > { %1066 = vmatprep.subr.bf16.mxu1 %v1547_v26 }
  0x6a   : > { %1026 = vmatpush1.bf16.msra.mxu0 %v1549_v27 }
  0x6b   : > { %1067 = vmatpush1.bf16.msra.mxu1 %v1550_v28  ;;  %1027 = vmatprep.subr.bf16.mxu0 %v1551_v29 }
  0x6c   : > { %1068 = vmatprep.subr.bf16.mxu1 %v1553_v30 }
  0x6e   : > { %1028 = vmatpush1.bf16.msra.mxu0 %v1555_v31 }
  0x6f   : > { %1069 = vmatpush1.bf16.msra.mxu1 %v1556_v32  ;;  %1029 = vmatprep.subr.bf16.mxu0 %v1557_v33 }
  0x70   : > { %1070 = vmatprep.subr.bf16.mxu1 %v1559_v34 }
  0x72   : > { %1030 = vmatpush1.bf16.msra.mxu0 %v1561_v35 }
  0x73   : > { %1071 = vmatpush1.bf16.msra.mxu1 %v1562_v36  ;;  %1031 = vmatprep.subr.bf16.mxu0 %v1563_v37 }
  0x74   : > { %1072 = vmatprep.subr.bf16.mxu1 %v1565_v38 }
  0x76   : > { %1032 = vmatpush1.bf16.msra.mxu0 %v1567_v39 }
  0x77   : > { %1073 = vmatpush1.bf16.msra.mxu1 %v1568_v40  ;;  %1033 = vmatprep.subr.bf16.mxu0 %v1569_v41 }
  0x78   : > { %1074 = vmatprep.subr.bf16.mxu1 %v1571_v42 }
  0x7a   : > { %1034 = vmatpush1.bf16.msra.mxu0 %v1573_v43 }
  0x7b   : > { %1075 = vmatpush1.bf16.msra.mxu1 %v1574_v44  ;;  %1035 = vmatprep.subr.bf16.mxu0 %v1575_v45 }
  0x7c   : > { %1076 = vmatprep.subr.bf16.mxu1 %v1577_v46 }
  0x7e   : > { %1036 = vmatpush1.bf16.msra.mxu0 %v1579_v50 }
  0x7f   : > { %1077 = vmatpush1.bf16.msra.mxu1 %v1580_v51  ;;  %1037 = vmatprep.subr.bf16.mxu0 %v1581_v53 }
  0x80   : > { %1078 = vmatprep.subr.bf16.mxu1 %v1583_v54 }
  0x82   : > { %1038 = vmatpush1.bf16.msra.mxu0 %v1585_v55 }
  0x83   : > { %1079 = vmatpush1.bf16.msra.mxu1 %v1586_v56  ;;  %1039 = vmatprep.subr.bf16.mxu0 %v1587_v57 }
  0x84   : > { %1080 = vmatprep.subr.bf16.mxu1 %v1589_v58 }
  0x86   : > { %1040 = vmatpush1.bf16.msra.mxu0 %v1591_v59 }
  0x87   : > { %1081 = vmatpush1.bf16.msra.mxu1 %v1592_v60  ;;  %1041 = vmatprep.subr.bf16.mxu0 %v1593_v61 }
  0x88   : > { %1082 = vmatprep.subr.bf16.mxu1 %v1595_v62 }
  0x8a   : > { %1042 = vmatpush1.bf16.msra.mxu0 %v1597_v63 }
  0x8b   : > { %1083 = vmatpush1.bf16.msra.mxu1 %v1598_v0  ;;  %1043 = vmatprep.subr.bf16.mxu0 %v1599_v1 }
  0x8c   : > { %1084 = vmatprep.subr.bf16.mxu1 %v1601_v2 }
  0x8e   : > { %1044 = vmatpush1.bf16.msra.mxu0 %v1603_v3 }
  0x8f   : > { %1085 = vmatpush1.bf16.msra.mxu1 %v1604_v4 }
  0x91   : > { %1046 = vmatmul.mubr.bf16.vlgmr.msra.gmra.mrb[0].mxu0 %v1378_v5 }
  0x92   : > { %1087 = vmatmul.mubr.bf16.vlgmr.msra.gmra.mrb[0].mxu1 %v1380_v6 }
 0x164   : > { %v1047_v7 = vpop.f32.mrb[0].mxu0 }
 0x165   : > { %v1088_v9 = vpop.f32.mrb[0].mxu1  ;;  %v1049_v11 = vpop.f32.mrb[1].mxu0  ;;  %1102 = sbr.rel (%p1446_p13) target bundleno = 386 (0x182), region = 74 }
 0x166   : > { %v1089_v10 = vadd.f32 %v1088_v9, %v1047_v7  ;;  %v1090_v13 = vpop.f32.mrb[1].mxu1  ;;  %v1051_v15 = vpop.f32.mrb[2].mxu0 }
 0x167   : > { %v1091_v14 = vadd.f32 %v1090_v13, %v1049_v11  ;;  %v1092_v16 = vpop.f32.mrb[2].mxu1  ;;  %v1052_v18 = vpop.f32.mrb[3].mxu0 }
 0x168   : > { %v1095_v17 = vadd.f32 %v1089_v10, %v611_v8  ;;  %v1093_v19 = vpop.f32.mrb[3].mxu1 }
 0x169   : > { %v1096_v20 = vadd.f32 %v1091_v14, %v612_v12 }
 0x16a   : > { %1097 = vst [vmem:[#allocation2] sm:$0xff] %v1095_v17 }
 0x16b   : > { %1098 = vst [vmem:[#allocation2 + $0x8] sm:$0xff] %v1096_v20 }
 0x171   : > { %v1103_v21 = vld [vmem:[#allocation2] sm:$0xff] }
 0x172   : > { %v1104_v22 = vld [vmem:[#allocation2 + $0x8] sm:$0xff]  ;;  %v1114_v23 = vrot.slane %v1103_v21, 4  ;;  %v1128_v24 = vmul.f32 %v1103_v21, %v1103_v21 }
 0x173   : > { %v1451_v25 = vpack.c.bf16 %v1104_v22, %v1103_v21  ;;  %v1120_v26 = vrot.slane %v1104_v22, 4  ;;  %v1129_v27 = vmul.f32 %v1104_v22, %v1104_v22 }
 0x174   : > { %v1115_v28 = vadd.f32 %v1114_v23, %v1103_v21  ;;  %v1130_v29 = vrot.slane %v1128_v24, 4 }
 0x175   : > { %1113 = vst [vmem:[%s1896_s9] sm:$0xff] %v1451_v25  ;;  %v1121_v30 = vadd.f32 %v1120_v26, %v1104_v22  ;;  %v1136_v31 = vrot.slane %v1129_v27, 4 }
 0x176   : > { %v1116_v32 = vrot.slane %v1115_v28, 2  ;;  %v1131_v33 = vadd.f32 %v1130_v29, %v1128_v24 }
 0x177   : > { %v1122_v34 = vrot.slane %v1121_v30, 2  ;;  %v1137_v35 = vadd.f32 %v1136_v31, %v1129_v27 }
 0x178   : > { %v1117_v36 = vadd.f32 %v1116_v32, %v1115_v28  ;;  %v1132_v37 = vrot.slane %v1131_v33, 2 }
 0x179   : > { %v1123_v38 = vadd.f32 %v1122_v34, %v1121_v30  ;;  %v1138_v39 = vrot.slane %v1137_v35, 2 }
 0x17a   : > { %v1118_v40 = vrot.slane %v1117_v36, 1  ;;  %v1133_v41 = vadd.f32 %v1132_v37, %v1131_v33 }
 0x17b   : > { %v1124_v42 = vrot.slane %v1123_v38, 1  ;;  %v1139_v43 = vadd.f32 %v1138_v39, %v1137_v35 }
 0x17c   : > { %v1119_v44 = vadd.f32 %v1118_v40, %v1117_v36  ;;  %v1134_v45 = vrot.slane %v1133_v41, 1 }
 0x17d   : > { %v1125_v46 = vadd.f32 %v1124_v42, %v1123_v38  ;;  %v1140_v47 = vrot.slane %v1139_v43, 1 }
 0x17e   : > { %1126 = vst [vmem:[%s1901_s18] sm:$0xff] %v1119_v44  ;;  %v1135_v48 = vadd.f32 %v1134_v45, %v1133_v41 }
 0x17f   : > { %1127 = vst [vmem:[%s1901_s18 + $0x8] sm:$0xff] %v1125_v46  ;;  %v1141_v49 = vadd.f32 %v1140_v47, %v1139_v43 }
 0x180   : > { %1142 = vst [vmem:[%s1906_s13] sm:$0xff] %v1135_v48 }
 0x181   : > { %1143 = vst [vmem:[%s1906_s13 + $0x8] sm:$0xff] %v1141_v49 }
 0x182 PF: > { %s15_s21 = sadd.s32 1, %s1663_s21   ;;  %s2009_s15 = smov %s1643_s16 }
 0x183   : > { %p12_p0 = scmp.ge.s32.totalorder %s15_s21, 20   ;;  %s2010_s16 = smov %s1742_s28 }
 0x184   : > { %s2011_s17 = smov %s1655_s19  ;;  %s2012_s18 = smov %s1659_s20 }
 0x185   : > { %s2013_s19 = smov %s2016_s22  ;;  %s2014_s20 = smov %s2020_s23 }
 0x186   :  { %14 = sbr.rel (!%p12_p0) target bundleno = 4 (0x4), region = 136 }

// kernel: resnet_forward.83
= control target key start
LH: loop header
LB: loop body
LE: loop exit
PB: predicated region body
PF: predicated region fallthrough
CT: control target
= control target key end

     0   :  { %v59_v24 = vlaneseq  ;;  %vm387_vm0 = vcmask 1041409   ;;  %vm390_vm1 = vcmask 1042434   ;;  %vm393_vm2 = vcmask 1043459   ;;  %s1351_s1 = inlined_call_operand.vmem [shape: bf16[512,128], index: 1, kind: input, shape index: {}]   ;;  %s1352_s0 = inlined_call_operand.vmem [shape: bf16[8,1,512], index: 0, kind: input, shape index: {}]   ;;  %s1353_s5 = inlined_call_operand.vmem [shape: bf16[128,128], index: 5, kind: input, shape index: {}]   ;;  %s1354_s2 = inlined_call_operand.vmem [shape: f32[1,128], index: 2, kind: input, shape index: {}]   ;;  %s1355_s3 = inlined_call_operand.vmem [shape: f32[1,128], index: 3, kind: input, shape index: {}]   ;;  %s1356_s4 = inlined_call_operand.vmem [shape: f32[1,128], index: 4, kind: input, shape index: {}]   ;;  %s1357_s6 = inlined_call_operand.vmem [shape: f32[1,128], index: 6, kind: input, shape index: {}]   ;;  %s1358_s7 = inlined_call_operand.vmem [shape: f32[8,128], index: 7, kind: output, shape index: {}]  }
   0x1   :  { %v1024_v0 = vld [vmem:[%s1351_s1 + $0x40] sm:$0xff]   ;;  %v1028_v4 = vld [vmem:[%s1351_s1 + $0x48] sm:$0xff]   ;;  %v1032_v8 = vld [vmem:[%s1351_s1 + $0x50] sm:$0xff]   ;;  %vm396_vm3 = vcmask 1044484   ;;  %vm399_vm4 = vcmask 1045509   ;;  %vm402_vm5 = vcmask 1046534  }
   0x2   :  { %v1025_v1 = vld [vmem:[%s1351_s1 + $0xc0] sm:$0xff]   ;;  %949 = vmatprep.subr.bf16.mxu0 %v1024_v0  ;;  %v1029_v5 = vld [vmem:[%s1351_s1 + $0xc8] sm:$0xff]   ;;  %v1033_v9 = vld [vmem:[%s1351_s1 + $0xd0] sm:$0xff]   ;;  %v60_v29 = vshrl.u32 %v59_v24, 7  ;;  %vm405_vm6 = vcmask 1047559   ;;  %vm1067_vm7 = vmmov 0  }
   0x3   :  { %v1026_v2 = vld [vmem:[%s1351_s1] sm:$0xff]   ;;  %971 = vmatprep.subr.bf16.mxu1 %v1025_v1  ;;  %v1030_v6 = vld [vmem:[%s1351_s1 + $0x8] sm:$0xff]   ;;  %v1034_v10 = vld [vmem:[%s1351_s1 + $0x10] sm:$0xff]   ;;  %vm729_vm8 = vcmask 1041408  }
   0x4   :  { %v1027_v3 = vld [vmem:[%s1351_s1 + $0x80] sm:$0xff]   ;;  %950 = vmatpush3.bf16.msra.mxu0 %v1026_v2  ;;  %v1031_v7 = vld [vmem:[%s1351_s1 + $0x88] sm:$0xff]   ;;  %v1035_v11 = vld [vmem:[%s1351_s1 + $0x90] sm:$0xff]   ;;  %v65_v34 = vsub.s32 2, %v60_v29  ;;  %v73_v38 = vsub.s32 6, %v60_v29  ;;  %v1213_v39 = vsub.s32 0, %v60_v29 }
   0x5   :  { %972 = vmatpush3.bf16.msra.mxu1 %v1027_v3  ;;  %951 = vmatprep.subr.bf16.mxu0 %v1028_v4  ;;  %v1036_v12 = vld [vmem:[%s1351_s1 + $0x58] sm:$0xff]   ;;  %v1040_v16 = vld [vmem:[%s1351_s1 + $0x60] sm:$0xff]   ;;  %v1044_v20 = vld [vmem:[%s1351_s1 + $0x68] sm:$0xff]   ;;  %v1215_v40 = vsub.s32 4, %v60_v29 }
   0x6   :  { %973 = vmatprep.subr.bf16.mxu1 %v1029_v5  ;;  %v1037_v13 = vld [vmem:[%s1351_s1 + $0xd8] sm:$0xff]   ;;  %v1041_v17 = vld [vmem:[%s1351_s1 + $0xe0] sm:$0xff]   ;;  %v1045_v21 = vld [vmem:[%s1351_s1 + $0xe8] sm:$0xff]  }
   0x7   :  { %v1038_v14 = vld [vmem:[%s1351_s1 + $0x18] sm:$0xff]   ;;  %v1042_v18 = vld [vmem:[%s1351_s1 + $0x20] sm:$0xff]   ;;  %v1046_v22 = vld [vmem:[%s1351_s1 + $0x28] sm:$0xff]  }
   0x8   :  { %952 = vmatpush3.bf16.msra.mxu0 %v1030_v6  ;;  %v1039_v15 = vld [vmem:[%s1351_s1 + $0x98] sm:$0xff]   ;;  %v1043_v19 = vld [vmem:[%s1351_s1 + $0xa0] sm:$0xff]   ;;  %v1047_v23 = vld [vmem:[%s1351_s1 + $0xa8] sm:$0xff]  }
   0x9   :  { %974 = vmatpush3.bf16.msra.mxu1 %v1031_v7  ;;  %953 = vmatprep.subr.bf16.mxu0 %v1032_v8  ;;  %v1048_v25 = vld [vmem:[%s1351_s1 + $0x70] sm:$0xff]   ;;  %v1052_v30 = vld [vmem:[%s1351_s1 + $0x78] sm:$0xff]   ;;  %v931_v35 = vld [vmem:[%s1352_s0] sm:$0xff]  }
   0xa   :  { %975 = vmatprep.subr.bf16.mxu1 %v1033_v9  ;;  %v1049_v26 = vld [vmem:[%s1351_s1 + $0xf0] sm:$0xff]   ;;  %v1053_v31 = vld [vmem:[%s1351_s1 + $0xf8] sm:$0xff]   ;;  %v946_v36 = vld [vmem:[%s1352_s0 + $0x8] sm:$0xff]   ;;  %v1217_v41 = vunpack.c.l.bf16 %v931_v35  ;;  %v1219_v42 = vunpack.c.h.bf16 %v931_v35 }
   0xb   :  { %v1050_v27 = vld [vmem:[%s1351_s1 + $0x30] sm:$0xff]   ;;  %v1054_v32 = vld [vmem:[%s1351_s1 + $0x38] sm:$0xff]   ;;  %v1221_v43 = vunpack.c.l.bf16 %v946_v36  ;;  %v1223_v44 = vunpack.c.h.bf16 %v946_v36 }
   0xc   :  { %954 = vmatpush3.bf16.msra.mxu0 %v1034_v10  ;;  %v1051_v28 = vld [vmem:[%s1351_s1 + $0xb0] sm:$0xff]   ;;  %v1055_v33 = vld [vmem:[%s1351_s1 + $0xb8] sm:$0xff]   ;;  %v66_v50 = vrot.slane %v1217_v41, %v65_v34  ;;  %v82_v51 = vrot.slane %v1219_v42, %v65_v34 }
   0xd   :  { %976 = vmatpush3.bf16.msra.mxu1 %v1035_v11  ;;  %955 = vmatprep.subr.bf16.mxu0 %v1036_v12  ;;  %v947_v37 = vld [vmem:[%s1352_s0 + $0x10] sm:$0xff]   ;;  %v948_v45 = vld [vmem:[%s1352_s0 + $0x18] sm:$0xff]   ;;  %v98_v52 = vrot.slane %v1221_v43, %v65_v34  ;;  %v114_v53 = vrot.slane %v1223_v44, %v65_v34 }
   0xe   :  { %977 = vmatprep.subr.bf16.mxu1 %v1037_v13  ;;  %v1228_v46 = vunpack.c.l.bf16 %v947_v37  ;;  %v1230_v47 = vunpack.c.h.bf16 %v947_v37  ;;  %v1232_v48 = vunpack.c.l.bf16 %v948_v45  ;;  %v1234_v49 = vunpack.c.h.bf16 %v948_v45 }
   0xf   :  { %v220_v58 = vpack.c.bf16 %v66_v50, %v66_v50  ;;  %v224_v59 = vpack.c.bf16 %v82_v51, %v82_v51  ;;  %v228_v60 = vpack.c.bf16 %v98_v52, %v98_v52  ;;  %v232_v61 = vpack.c.bf16 %v114_v53, %v114_v53 }
  0x10   :  { %956 = vmatpush3.bf16.msra.mxu0 %v1038_v14  ;;  %v130_v54 = vrot.slane %v1228_v46, %v65_v34  ;;  %v146_v55 = vrot.slane %v1230_v47, %v65_v34  ;;  %v162_v56 = vrot.slane %v1232_v48, %v65_v34  ;;  %v178_v57 = vrot.slane %v1234_v49, %v65_v34 }
  0x11   :  { %978 = vmatpush3.bf16.msra.mxu1 %v1039_v15  ;;  %957 = vmatprep.subr.bf16.mxu0 %v1040_v16  ;;  %v355_v2 = vunpack.c.l.b16 %v220_v58  ;;  %v359_v3 = vunpack.c.l.b16 %v224_v59  ;;  %v363_v4 = vunpack.c.l.b16 %v228_v60  ;;  %v367_v5 = vunpack.c.l.b16 %v232_v61 }
  0x12   :  { %979 = vmatprep.subr.bf16.mxu1 %v1041_v17  ;;  %v236_v62 = vpack.c.bf16 %v130_v54, %v130_v54  ;;  %v240_v63 = vpack.c.bf16 %v146_v55, %v146_v55  ;;  %v244_v0 = vpack.c.bf16 %v162_v56, %v162_v56  ;;  %v248_v1 = vpack.c.bf16 %v178_v57, %v178_v57 }
  0x13   :  { %v407_v10 = vrot.slane %v359_v3, 7  ;;  %v409_v11 = vrot.slane %v363_v4, 6  ;;  %v411_v12 = vrot.slane %v367_v5, 5  ;;  %v74_v13 = vrot.slane %v1217_v41, %v73_v38 }
  0x14   :  { %958 = vmatpush3.bf16.msra.mxu0 %v1042_v18  ;;  %v371_v6 = vunpack.c.l.b16 %v236_v62  ;;  %v375_v7 = vunpack.c.l.b16 %v240_v63  ;;  %v379_v8 = vunpack.c.l.b16 %v244_v0  ;;  %v383_v9 = vunpack.c.l.b16 %v248_v1 }
  0x15   :  { %980 = vmatpush3.bf16.msra.mxu1 %v1043_v19  ;;  %959 = vmatprep.subr.bf16.mxu0 %v1044_v20  ;;  %v408_v18 = vsel %vm387_vm0, %v407_v10, %v355_v2  ;;  %v90_v19 = vrot.slane %v1219_v42, %v73_v38  ;;  %v106_v20 = vrot.slane %v1221_v43, %v73_v38 }
  0x16   :  { %981 = vmatprep.subr.bf16.mxu1 %v1045_v21  ;;  %v413_v14 = vrot.slane %v371_v6, 4  ;;  %v415_v15 = vrot.slane %v375_v7, 3  ;;  %v417_v16 = vrot.slane %v379_v8, 2  ;;  %v419_v17 = vrot.slane %v383_v9, 1 }
  0x17   :  { %v122_v21 = vrot.slane %v1223_v44, %v73_v38  ;;  %v154_v24 = vrot.slane %v1230_v47, %v73_v38  ;;  %v226_v29 = vpack.c.bf16 %v90_v19, %v90_v19  ;;  %v62_v3 = vrot.slane %v1217_v41, %v1213_v39 }
  0x18   :  { %960 = vmatpush3.bf16.msra.mxu0 %v1046_v22  ;;  %v410_v22 = vsel %vm390_vm1, %v409_v11, %v408_v18  ;;  %v78_v5 = vrot.slane %v1219_v42, %v1213_v39  ;;  %v94_v6 = vrot.slane %v1221_v43, %v1213_v39  ;;  %v110_v7 = vrot.slane %v1223_v44, %v1213_v39 }
  0x19   :  { %982 = vmatpush3.bf16.msra.mxu1 %v1047_v23  ;;  %961 = vmatprep.subr.bf16.mxu0 %v1048_v25  ;;  %v138_v23 = vrot.slane %v1228_v46, %v73_v38  ;;  %v170_v25 = vrot.slane %v1232_v48, %v73_v38  ;;  %v242_v35 = vpack.c.bf16 %v154_v24, %v154_v24  ;;  %v361_v51 = vunpack.c.l.b16 %v226_v29 }
  0x1a   :  { %983 = vmatprep.subr.bf16.mxu1 %v1049_v26  ;;  %v412_v26 = vsel %vm393_vm2, %v411_v12, %v410_v22  ;;  %v126_v9 = vrot.slane %v1228_v46, %v1213_v39  ;;  %v142_v10 = vrot.slane %v1230_v47, %v1213_v39  ;;  %v158_v11 = vrot.slane %v1232_v48, %v1213_v39 }
  0x1b   :  { %v246_v36 = vpack.c.bf16 %v170_v25, %v170_v25  ;;  %v377_v55 = vunpack.c.l.b16 %v242_v35  ;;  %v435_v59 = vrot.slane %v361_v51, 7  ;;  %v231_v18 = vpack.c.bf16 %v110_v7, %v110_v7 }
  0x1c   :  { %962 = vmatpush3.bf16.msra.mxu0 %v1050_v27  ;;  %v186_v27 = vrot.slane %v1234_v49, %v73_v38  ;;  %v235_v19 = vpack.c.bf16 %v126_v9, %v126_v9  ;;  %v243_v22 = vpack.c.bf16 %v158_v11, %v158_v11 }
  0x1d   :  { %984 = vmatpush3.bf16.msra.mxu1 %v1051_v28  ;;  %963 = vmatprep.subr.bf16.mxu0 %v1052_v30  ;;  %v222_v28 = vpack.c.bf16 %v74_v13, %v74_v13  ;;  %v414_v30 = vsel %vm396_vm3, %v413_v14, %v412_v26  ;;  %v381_v57 = vunpack.c.l.b16 %v246_v36  ;;  %v443_v63 = vrot.slane %v377_v55, 3 }
  0x1e   :  { %985 = vmatprep.subr.bf16.mxu1 %v1053_v31  ;;  %v230_v31 = vpack.c.bf16 %v106_v20, %v106_v20  ;;  %v416_v34 = vsel %vm399_vm4, %v415_v15, %v414_v30  ;;  %v250_v37 = vpack.c.bf16 %v186_v27, %v186_v27  ;;  %v174_v13 = vrot.slane %v1234_v49, %v1213_v39 }
  0x1f   :  { %v418_v45 = vsel %vm402_vm5, %v417_v16, %v416_v34  ;;  %v357_v50 = vunpack.c.l.b16 %v222_v28  ;;  %v445_v1 = vrot.slane %v381_v57, 2  ;;  %v219_v14 = vpack.c.bf16 %v62_v3, %v62_v3 }
  0x20   :  { %964 = vmatpush3.bf16.msra.mxu0 %v1054_v32  ;;  %v234_v32 = vpack.c.bf16 %v122_v21, %v122_v21  ;;  %v365_v52 = vunpack.c.l.b16 %v230_v31  ;;  %v420_v53 = vsel %vm405_vm6, %v419_v17, %v418_v45  ;;  %v385_v58 = vunpack.c.l.b16 %v250_v37 }
  0x21   :  { %986 = vmatpush3.bf16.msra.mxu1 %v1055_v33  ;;  %v238_v33 = vpack.c.bf16 %v138_v23, %v138_v23  ;;  %v450_v56 = vpack.c.b16 %v420_v53, %v420_v53  ;;  %v436_v0 = vsel %vm387_vm0, %v435_v59, %v357_v50  ;;  %v223_v15 = vpack.c.bf16 %v78_v5, %v78_v5 }
  0x22   :  { %v369_v38 = vunpack.c.l.b16 %v234_v32  ;;  %v437_v60 = vrot.slane %v365_v52, 6  ;;  %v447_v2 = vrot.slane %v385_v58, 1  ;;  %v227_v17 = vpack.c.bf16 %v94_v6, %v94_v6 }
  0x23   :  { %v373_v54 = vunpack.c.l.b16 %v238_v33  ;;  %681 = vmatprep.mubr.bf16.mxu0 %v450_v56  ;;  %v239_v21 = vpack.c.bf16 %v142_v10, %v142_v10  ;;  %v247_v23 = vpack.c.bf16 %v174_v13, %v174_v13  ;;  %v354_v25 = vunpack.c.l.b16 %v219_v14 }
  0x24   :  { %v439_v61 = vrot.slane %v369_v38, 5  ;;  %v438_v4 = vsel %vm390_vm1, %v437_v60, %v436_v0  ;;  %v358_v26 = vunpack.c.l.b16 %v223_v15  ;;  %v362_v27 = vunpack.c.l.b16 %v227_v17 }
  0x25   :  { %v441_v62 = vrot.slane %v373_v54, 4  ;;  %v366_v29 = vunpack.c.l.b16 %v231_v18  ;;  %v370_v39 = vunpack.c.l.b16 %v235_v19  ;;  %v374_v30 = vunpack.c.l.b16 %v239_v21 }
  0x26   :  { %v440_v8 = vsel %vm393_vm2, %v439_v61, %v438_v4  ;;  %v378_v31 = vunpack.c.l.b16 %v243_v22  ;;  %v382_v32 = vunpack.c.l.b16 %v247_v23  ;;  %v386_v33 = vrot.slane %v358_v26, 7  ;;  %v1057_v26 = vld [vmem:[%s1353_s5 + $0x8] sm:$0xff]  }
  0x27   :  { %v442_v12 = vsel %vm396_vm3, %v441_v62, %v440_v8  ;;  %v389_v34 = vrot.slane %v362_v27, 6  ;;  %v392_v35 = vrot.slane %v366_v29, 5  ;;  %v395_v36 = vrot.slane %v370_v39, 4  ;;  %v1058_v27 = vld [vmem:[%s1353_s5 + $0x10] sm:$0xff]   ;;  %v1060_v29 = vld [vmem:[%s1353_s5 + $0x20] sm:$0xff]   ;;  %v1061_v39 = vld [vmem:[%s1353_s5 + $0x28] sm:$0xff]  }
  0x28   :  { %v444_v16 = vsel %vm399_vm4, %v443_v63, %v442_v12  ;;  %v398_v37 = vrot.slane %v374_v30, 3  ;;  %v70_v45 = vrot.slane %v1217_v41, %v1215_v40  ;;  %v388_v50 = vsel %vm387_vm0, %v386_v33, %v354_v25  ;;  %v1062_v30 = vld [vmem:[%s1353_s5 + $0x30] sm:$0xff]  }
  0x29   :  { %v446_v20 = vsel %vm402_vm5, %v445_v1, %v444_v16  ;;  %v401_v51 = vrot.slane %v378_v31, 2  ;;  %v404_v52 = vrot.slane %v382_v32, 1  ;;  %v86_v53 = vrot.slane %v1219_v42, %v1215_v40  ;;  %v1063_v31 = vld [vmem:[%s1353_s5 + $0x38] sm:$0xff]  }
  0x2a   :  { %v448_v24 = vsel %vm405_vm6, %v447_v2, %v446_v20  ;;  %v391_v38 = vsel %vm390_vm1, %v389_v34, %v388_v50  ;;  %v102_v54 = vrot.slane %v1221_v43, %v1215_v40  ;;  %v118_v55 = vrot.slane %v1223_v44, %v1215_v40 }
  0x2b   :  { %v452_v28 = vpack.c.b16 %v448_v24, %v448_v24  ;;  %v134_v56 = vrot.slane %v1228_v46, %v1215_v40  ;;  %v394_v41 = vsel %vm393_vm2, %v392_v35, %v391_v38  ;;  %v150_v57 = vrot.slane %v1230_v47, %v1215_v40  ;;  %v1056_v24 = vld [vmem:[%s1353_s5] sm:$0xff]  }
  0x2c   :  { %v166_v58 = vrot.slane %v1232_v48, %v1215_v40  ;;  %v182_v42 = vrot.slane %v1234_v49, %v1215_v40  ;;  %v397_v59 = vsel %vm396_vm3, %v395_v36, %v394_v41  ;;  %v221_v43 = vpack.c.bf16 %v70_v45, %v70_v45 }
  0x2d   :  { %721 = vmatprep.mubr.bf16.mxu1 %v452_v28  ;;  %v225_v60 = vpack.c.bf16 %v86_v53, %v86_v53  ;;  %v229_v61 = vpack.c.bf16 %v102_v54, %v102_v54  ;;  %v400_v44 = vsel %vm399_vm4, %v398_v37, %v397_v59  ;;  %v233_v62 = vpack.c.bf16 %v118_v55, %v118_v55  ;;  %v1059_v28 = vld [vmem:[%s1353_s5 + $0x18] sm:$0xff]   ;;  %v886_v37 = vld [vmem:[%s1354_s2] ss:$0 sm:$0xff] }
  0x2e   :  { %v237_v46 = vpack.c.bf16 %v134_v56, %v134_v56  ;;  %v241_v63 = vpack.c.bf16 %v150_v57, %v150_v57  ;;  %v403_v0 = vsel %vm402_vm5, %v401_v51, %v400_v44  ;;  %v245_v1 = vpack.c.bf16 %v166_v58, %v166_v58 }
  0x2f   :  { %v249_v47 = vpack.c.bf16 %v182_v42, %v182_v42  ;;  %v356_v2 = vunpack.c.l.b16 %v221_v43  ;;  %v406_v48 = vsel %vm405_vm6, %v404_v52, %v403_v0  ;;  %v360_v3 = vunpack.c.l.b16 %v225_v60 }
  0x30   :  { %v364_v4 = vunpack.c.l.b16 %v229_v61  ;;  %v368_v40 = vunpack.c.l.b16 %v233_v62  ;;  %v449_v49 = vpack.c.b16 %v406_v48, %v406_v48  ;;  %v372_v5 = vunpack.c.l.b16 %v237_v46 }
  0x31   :  { %v376_v6 = vunpack.c.l.b16 %v241_v63  ;;  %v380_v7 = vunpack.c.l.b16 %v245_v1  ;;  %v384_v8 = vunpack.c.l.b16 %v249_v47  ;;  %v421_v9 = vrot.slane %v360_v3, 7 }
  0x32   :  { %v423_v10 = vrot.slane %v364_v4, 6  ;;  %v425_v11 = vrot.slane %v368_v40, 5  ;;  %682 = vmatmul.mubr.bf16.vlgmr.msra.gmra.mrb[0].mxu0 %v449_v49  ;;  %v427_v12 = vrot.slane %v372_v5, 4  ;;  %v1066_v25 = vmov 0.0   ;;  %v919_v4 = vld [vmem:[%s1355_s3] ss:$0 sm:$0xff] }
  0x33   :  { %v422_v13 = vsel %vm387_vm0, %v421_v9, %v356_v2  ;;  %v429_v14 = vrot.slane %v376_v6, 3  ;;  %v431_v16 = vrot.slane %v380_v7, 2  ;;  %v433_v18 = vrot.slane %v384_v8, 1  ;;  %1002 = vmatprep.subr.bf16.mxu0 %v1066_v25  ;;  %1018 = vmatprep.mubr.msk.bf16.mxu0 %vm1067_vm7, %v1066_v25  ;;  %v920_v49 = vld [vmem:[%s1356_s4] ss:$0 sm:$0xff] }
  0x34   :  { %v424_v15 = vsel %vm390_vm1, %v423_v10, %v422_v13  ;;  %1003 = vmatpush3.bf16.msra.mxu0 %v1056_v24  ;;  %v921_v9 = vld [vmem:[%s1357_s6] ss:$0 sm:$0xff] }
  0x35   :  { %v426_v17 = vsel %vm393_vm2, %v425_v11, %v424_v15  ;;  %1004 = vmatprep.subr.bf16.mxu0 %v1066_v25 }
  0x36   :  { %v428_v19 = vsel %vm396_vm3, %v427_v12, %v426_v17 }
  0x37   :  { %v430_v20 = vsel %vm399_vm4, %v429_v14, %v428_v19 }
  0x38   :  { %v432_v21 = vsel %vm402_vm5, %v431_v16, %v430_v20  ;;  %1005 = vmatpush3.bf16.msra.mxu0 %v1057_v26 }
  0x39   :  { %v434_v22 = vsel %vm405_vm6, %v433_v18, %v432_v21  ;;  %1006 = vmatprep.subr.bf16.mxu0 %v1066_v25 }
  0x3a   :  { %v451_v23 = vpack.c.b16 %v434_v22, %v434_v22 }
  0x3c   :  { %722 = vmatmul.mubr.bf16.vlgmr.msra.gmra.mrb[0].mxu1 %v451_v23  ;;  %1007 = vmatpush3.bf16.msra.mxu0 %v1058_v27 }
  0x3d   :  { %1008 = vmatprep.subr.bf16.mxu0 %v1066_v25 }
  0x40   :  { %1009 = vmatpush3.bf16.msra.mxu0 %v1059_v28 }
  0x41   :  { %1010 = vmatprep.subr.bf16.mxu0 %v1066_v25 }
  0x44   :  { %1011 = vmatpush3.bf16.msra.mxu0 %v1060_v29 }
  0x45   :  { %1012 = vmatprep.subr.bf16.mxu0 %v1066_v25 }
  0x48   :  { %1013 = vmatpush3.bf16.msra.mxu0 %v1061_v39 }
  0x49   :  { %1014 = vmatprep.subr.bf16.mxu0 %v1066_v25 }
  0x4c   :  { %1015 = vmatpush3.bf16.msra.mxu0 %v1062_v30 }
  0x4d   :  { %1016 = vmatprep.subr.bf16.mxu0 %v1066_v25 }
  0x50   :  { %1017 = vmatpush3.bf16.msra.mxu0 %v1063_v31 }
 0x105   :  { %v965_v32 = vpop.f32.mrb[0].mxu0 }
 0x106   :  { %v966_v33 = vpop.f32.mrb[1].mxu0 }
 0x107   :  { %v967_v34 = vadd.f32 %v966_v33, %v965_v32  ;;  %v968_v35 = vpop.f32.mrb[2].mxu0 }
 0x108   :  { %v969_v36 = vpop.f32.mrb[3].mxu0 }
 0x109   :  { %v684_v50 = vadd.f32 %v967_v34, %v886_v37 }
 0x10f   :  { %v987_v45 = vpop.f32.mrb[0].mxu1 }
 0x110   :  { %v988_v51 = vpop.f32.mrb[1].mxu1 }
 0x111   :  { %v989_v52 = vadd.f32 %v988_v51, %v987_v45  ;;  %v990_v53 = vpop.f32.mrb[2].mxu1 }
 0x112   :  { %v991_v38 = vpop.f32.mrb[3].mxu1 }
 0x113   :  { %v724_v54 = vadd.f32 %v989_v52, %v684_v50 }
 0x115   :  { %v730_v55 = vsel %vm729_vm8, %v724_v54, 0.0 }
 0x116   :  { %v731_v56 = vrot.slane %v730_v55, 4 }
 0x118   :  { %v732_v41 = vadd.f32 %v731_v56, %v730_v55 }
 0x11a   :  { %v733_v57 = vrot.slane %v732_v41, 2 }
 0x11c   :  { %v734_v58 = vadd.f32 %v733_v57, %v732_v41 }
 0x11e   :  { %v735_v42 = vrot.slane %v734_v58, 1 }
 0x120   :  { %v736_v59 = vadd.f32 %v735_v42, %v734_v58 }
 0x122   :  { %v738_v43 = vmul.f32 0.5, %v736_v59 }
 0x124   :  { %v739_v60 = vsub.f32 %v724_v54, %v738_v43 }
 0x126   :  { %v740_v61 = vmul.f32 %v739_v60, %v739_v60 }
 0x128   :  { %v741_v44 = vsel %vm729_vm8, %v740_v61, 0.0 }
 0x129   :  { %v742_v62 = vrot.slane %v741_v44, 4 }
 0x12b   :  { %v743_v46 = vadd.f32 %v742_v62, %v741_v44 }
 0x12d   :  { %v744_v63 = vrot.slane %v743_v46, 2 }
 0x12f   :  { %v745_v0 = vadd.f32 %v744_v63, %v743_v46 }
 0x131   :  { %v746_v1 = vrot.slane %v745_v0, 1 }
 0x133   :  { %v747_v47 = vadd.f32 %v746_v1, %v745_v0 }
 0x135   :  { %v748_v2 = vmul.f32 0.5, %v747_v47 }
 0x137   :  { %v749_v48 = vadd.f32 1e-05, %v748_v2 }
 0x139   :  { %1064 = vrsqrt.f32 %v749_v48 }
 0x143   :  { %v1065_v3 = vpop.eup %1064 }
 0x144   :  { %v751_v40 = vmul.f32 %v1065_v3, %v739_v60 }
 0x146   :  { %v759_v5 = vmul.f32 %v919_v4, %v751_v40 }
 0x148   :  { %v767_v6 = vadd.f32 %v920_v49, %v759_v5 }
 0x14a   :  { %v768_v7 = vmax.f32 %v767_v6, 0.0 }
 0x14c   :  { %v769_v8 = vpack.c.bf16 %v768_v7, %v768_v7 }
 0x14e   :  { %1019 = vmatmul.mubr.bf16.vlgmr.msra.gmra.mrb[4].mxu0 %v769_v8 }
 0x221   :  { %v875_v10 = vpop.f32.mrb[4].mxu0 }
 0x222   :  { %v876_v11 = vadd.f32 %v921_v9, %v875_v10  ;;  %v1020_v12 = vpop.f32.mrb[5].mxu0 }
 0x223   :  { %v878_v13 = vpop.f32.mrb[6].mxu0 }
 0x224   :  { %881 = vst [vmem:[%s1358_s7] sm:$0xff] %v876_v11  ;;  %v1021_v14 = vpop.f32.mrb[7].mxu0 }

</bundles_post_ra>
